<compile_context>
chip_gen: v5e
topology: v5e:2x2
jax: 0.10.0
libtpu: 0.0.40
codegen_flags: <defaults>
</compile_context>

<pallas_src>
import jax
import jax.numpy as jnp
from jax.experimental import pallas as pl
from jax.experimental.pallas import tpu as pltpu

LANE = 128
VMEM_LIMIT = 32 * 1024 * 1024   # fits the scoped-VMEM default on v5e/v6e/v7x


def _round_up(x, m):
    return (x + m - 1) // m * m


def _cdiv(a, b):
    return -(-a // b)


def _pick_tile(m, tm_max, align=16):
    """Tile the M axis: largest tile <= tm_max, sized from the actual row count
    so padding waste stays < `align` rows per block."""
    nblocks = max(1, _cdiv(m, tm_max))
    tm = _round_up(_cdiv(m, nblocks), align)
    grid = _cdiv(m, tm)
    return tm, grid, tm * grid


def _grid_semantics(nsteps):
    """CORE_PARALLEL only where it helps: v7x has 2 TensorCores per chip and
    only core_parallel actually shards grid steps across them; on 1-TC chips
    (v5e/v6e) plain "parallel" is used."""
    try:
        kind = jax.devices()[0].device_kind.lower()
    except Exception:
        kind = ""
    if nsteps >= 2 and ("v7" in kind or "tpu7" in kind):
        return (pltpu.CORE_PARALLEL,)
    return ("parallel",)


# ---------------------------------------------------------------------------
# Pallas kernels
# ---------------------------------------------------------------------------
def _conv_gemm_pool_kernel(p_ref, w_ref, b_ref, o_ref):
    """Fused 3x3 conv (im2col GEMM) + bias + ReLU + 2x2 max-pool.

    p_ref: (4, TM, K) bf16 -- the 4 pool-window positions for TM pooled pixels
    w_ref: (K, F)     bf16 -- constant block index => resident in VMEM
    b_ref: (1, F)     f32
    o_ref: (TM, F)    bf16 -- pooled, ReLU'd activations, lane-dense (F = 128)
    """
    tm = o_ref.shape[0]
    k = p_ref.shape[2]
    # One long MXU stream instead of 4 short ones: TM is 16-aligned, so the
    # (4, TM, K) -> (4*TM, K) collapse is a layout-preserving view.
    stacked = p_ref[...].reshape(4 * tm, k)
    acc = jnp.dot(stacked, w_ref[...], preferred_element_type=jnp.float32)
    # 2x2 max-pool == max over the 4 row slabs (sublane-aligned f32 slices).
    m = jnp.maximum(jnp.maximum(acc[0 * tm:1 * tm], acc[1 * tm:2 * tm]),
                    jnp.maximum(acc[2 * tm:3 * tm], acc[3 * tm:4 * tm]))
    # Bias + ReLU after the pool-max is valid: bias is constant over the 2x2
    # window and ReLU is monotone.
    o_ref[...] = jnp.maximum(m + b_ref[...], 0.0).astype(o_ref.dtype)


def _conv3_mlp_kernel(p_ref, wc_ref, bc_ref, w1_ref, b1_ref, w2_ref, b2_ref,
                      o_ref):
    """conv3 (im2col GEMM) + bias + ReLU + 2x2 pool + fc1 + ReLU + fc2.

    p_ref : (4, 9*NB, 576) bf16 -- rows ordered pixel-major: row = pix*NB + n
    wc_ref: (576, 128) bf16, bc_ref: (1, 128) f32       (conv3)
    w1_ref: (9, 128, 512) bf16, b1_ref: (1, 512) f32    (fc1, split per pixel)
    w2_ref: (512, 128) bf16, b2_ref: (1, 128) f32       (fc2, padded 16 -> 128)
    o_ref : (NB, 128) f32 -- logits (first 16 lanes real)
    """
    nb = o_ref.shape[0]
    rows = p_ref.shape[1]            # 9 * NB, 16-aligned
    k = p_ref.shape[2]
    # conv3 GEMM over all 4 pool positions as one stacked MXU stream.
    stacked = p_ref[...].reshape(4 * rows, k)
    acc = jnp.dot(stacked, wc_ref[...], preferred_element_type=jnp.float32)
    m = jnp.maximum(jnp.maximum(acc[0 * rows:1 * rows], acc[1 * rows:2 * rows]),
                    jnp.maximum(acc[2 * rows:3 * rows], acc[3 * rows:4 * rows]))
    pooled = jnp.maximum(m + bc_ref[...], 0.0).astype(jnp.bfloat16)  # (9*NB,128)
    # fc1 as 9 per-pooled-pixel matmuls: avoids an in-kernel
    # (9*NB,128)->(NB,1152) sublane->lane relayout; NB is 16-aligned so these
    # row slices are free views.
    h = jnp.dot(pooled[0:nb], w1_ref[0], preferred_element_type=jnp.float32)
    for p in range(1, 9):
        h = h + jnp.dot(pooled[p * nb:(p + 1) * nb], w1_ref[p],
                        preferred_element_type=jnp.float32)
    h = jnp.maximum(h + b1_ref[...], 0.0)
    # TODO(synk): dropout implemented as identity (inference/eval semantics);
    # training-mode dropout would use pltpu.prng_seed / pltpu.prng_random_bits.
    out = jnp.dot(h.astype(jnp.bfloat16), w2_ref[...],
                  preferred_element_type=jnp.float32)
    o_ref[...] = out + b2_ref[...]


# ---------------------------------------------------------------------------
# Kernel wrappers
# ---------------------------------------------------------------------------
def conv_gemm_pool(patches, w, b, tm_max=2048):
    """patches: (4, M, K) bf16; w: (K, F) bf16; b: (1, F) f32 -> (M, F) bf16."""
    _, M, K = patches.shape
    F = w.shape[1]
    TM, grid, Mp = _pick_tile(M, tm_max)
    if Mp != M:
        patches = jnp.pad(patches, ((0, 0), (0, Mp - M), (0, 0)))
    cost = pl.CostEstimate(
        flops=2 * 4 * Mp * K * F, transcendentals=0,
        bytes_accessed=4 * Mp * K * 2 + K * F * 2 + F * 4 + Mp * F * 2)
    out = pl.pallas_call(
        _conv_gemm_pool_kernel,
        out_shape=jax.ShapeDtypeStruct((Mp, F), jnp.bfloat16),
        grid=(grid,),
        in_specs=[
            pl.BlockSpec((4, TM, K), lambda i: (0, i, 0)),   # M-tiled, pipelined
            pl.BlockSpec((K, F), lambda i: (0, 0)),          # weights resident
            pl.BlockSpec((1, F), lambda i: (0, 0)),
        ],
        out_specs=pl.BlockSpec((TM, F), lambda i: (i, 0)),
        compiler_params=pltpu.CompilerParams(
            dimension_semantics=_grid_semantics(grid),
            vmem_limit_bytes=VMEM_LIMIT),
        cost_estimate=cost,
    )(patches, w, b)
    return out[:M]


def conv3x3_relu_pool(x, w, b, cout_real, tm_max=2048):
    """x: (N, H, W, Cin) bf16 NHWC -> (N, H//2, W//2, cout_real) bf16."""
    N, H, W, Cin = x.shape
    Ho, Wo = H // 2, W // 2
    K = 9 * Cin
    xp = jnp.pad(x, ((0, 0), (1, 1), (1, 1), (0, 0)))
    # (ky, kx, cin) patch ordering matches the (2,3,1,0) weight transpose.
    cols = [xp[:, ky:ky + H, kx:kx + W, :] for ky in range(3) for kx in range(3)]
    pf = jnp.concatenate(cols, axis=-1)              # (N, H, W, 9*Cin)
    pf = pf[:, :2 * Ho, :2 * Wo, :]                  # floor-mode pooling crop
    pf = pf.reshape(N, Ho, 2, Wo, 2, K).transpose(2, 4, 0, 1, 3, 5)
    patches = pf.reshape(4, N * Ho * Wo, K)          # pool-position-major rows
    out = conv_gemm_pool(patches, w, b, tm_max=tm_max)
    return out.reshape(N, Ho, Wo, LANE)[..., :cout_real]


def conv3_mlp(x, wc, bc, w1, b1, w2, b2, nb_max=128):
    """x: (N, 7, 7, 64) bf16 (conv2 output) -> (N, 128) f32 logits (16 real).

    conv3 + bias + ReLU + 2x2 pool + flatten + fc1 + ReLU + fc2 in ONE
    pallas_call, blocked on batch (9 pooled conv3 pixels == one fc1 row).
    """
    N, H, W, Cin = x.shape
    Ho, Wo = H // 2, W // 2                          # 3, 3
    K = 9 * Cin                                      # 576
    F1 = w1.shape[2]                                 # 512
    F2 = w2.shape[1]                                 # 128
    # Batch blocking; NB is 16-aligned so in-kernel row slices are free views.
    nblocks = max(1, _cdiv(N, nb_max))
    NB = _round_up(_cdiv(N, nblocks), 16)
    nblocks = _cdiv(N, NB)
    Npad = NB * nblocks
    if Npad != N:
        x = jnp.pad(x, ((0, Npad - N), (0, 0), (0, 0), (0, 0)))
    # im2col (XLA); rows ordered (batch_block, pooled_pixel, sample_in_block).
    xp = jnp.pad(x, ((0, 0), (1, 1), (1, 1), (0, 0)))
    cols = [xp[:, ky:ky + H, kx:kx + W, :] for ky in range(3) for kx in range(3)]
    pf = jnp.concatenate(cols, axis=-1)[:, :2 * Ho, :2 * Wo, :]
    pf = pf.reshape(nblocks, NB, Ho, 2, Wo, 2, K).transpose(3, 5, 0, 2, 4, 1, 6)
    patches = pf.reshape(4, nblocks * 9 * NB, K)

    cost = pl.CostEstimate(
        flops=(2 * 4 * 9 * Npad * K * LANE + 2 * Npad * 9 * LANE * F1
               + 2 * Npad * F1 * F2),
        transcendentals=0,
        bytes_accessed=(4 * 9 * Npad * K * 2 + K * LANE * 2 + 9 * LANE * F1 * 2
                        + F1 * F2 * 2 + Npad * F2 * 4))
    out = pl.pallas_call(
        _conv3_mlp_kernel,
        out_shape=jax.ShapeDtypeStruct((Npad, F2), jnp.float32),
        grid=(nblocks,),
        in_specs=[
            pl.BlockSpec((4, 9 * NB, K), lambda i: (0, i, 0)),  # batch-tiled
            pl.BlockSpec((K, LANE), lambda i: (0, 0)),          # conv3 weights
            pl.BlockSpec((1, LANE), lambda i: (0, 0)),
            pl.BlockSpec((9, LANE, F1), lambda i: (0, 0, 0)),   # fc1 per-pixel
            pl.BlockSpec((1, F1), lambda i: (0, 0)),
            pl.BlockSpec((F1, F2), lambda i: (0, 0)),           # fc2
            pl.BlockSpec((1, F2), lambda i: (0, 0)),
        ],
        out_specs=pl.BlockSpec((NB, F2), lambda i: (i, 0)),
        compiler_params=pltpu.CompilerParams(
            dimension_semantics=_grid_semantics(nblocks),
            vmem_limit_bytes=VMEM_LIMIT),
        cost_estimate=cost,
    )(patches, wc, bc, w1, b1, w2, b2)
    return out[:N]


# ---------------------------------------------------------------------------
# Parameters (PyTorch layouts) + one-time relayout for the kernels
# ---------------------------------------------------------------------------
def init_params(key):
    ks = jax.random.split(key, 10)
    return {
        "conv1_w": jax.random.normal(ks[0], (32, 1, 3, 3), jnp.float32) * 0.1,
        "conv1_b": jax.random.normal(ks[1], (32,), jnp.float32) * 0.01,
        "conv2_w": jax.random.normal(ks[2], (64, 32, 3, 3), jnp.float32) * 0.05,
        "conv2_b": jax.random.normal(ks[3], (64,), jnp.float32) * 0.01,
        "conv3_w": jax.random.normal(ks[4], (128, 64, 3, 3), jnp.float32) * 0.05,
        "conv3_b": jax.random.normal(ks[5], (128,), jnp.float32) * 0.01,
        "fc1_w": jax.random.normal(ks[6], (500, 128 * 3 * 3), jnp.float32) * 0.02,
        "fc1_b": jax.random.normal(ks[7], (500,), jnp.float32) * 0.01,
        "fc2_w": jax.random.normal(ks[8], (16, 500), jnp.float32) * 0.02,
        "fc2_b": jax.random.normal(ks[9], (16,), jnp.float32) * 0.01,
    }


def _prep_conv(w_torch, b, f_pad):
    cout, cin, _, _ = w_torch.shape
    w2 = jnp.transpose(w_torch, (2, 3, 1, 0)).reshape(9 * cin, cout)
    w2 = jnp.pad(w2, ((0, 0), (0, f_pad - cout))).astype(jnp.bfloat16)
    b2 = jnp.pad(b, (0, f_pad - cout)).astype(jnp.float32).reshape(1, f_pad)
    return w2, b2


def prepare_params(p):
    """One-time relayout: pre-transpose weights and zero-pad GEMM outputs to
    128-lane multiples so no per-forward XLA weight transposes are needed."""
    c1 = _prep_conv(p["conv1_w"], p["conv1_b"], LANE)
    c2 = _prep_conv(p["conv2_w"], p["conv2_b"], LANE)
    c3 = _prep_conv(p["conv3_w"], p["conv3_b"], LANE)

    # fc1: PyTorch flattens NCHW (c, h, w); split into per-pooled-pixel
    # (p = h*3 + w) blocks of shape (128, 500) so the fused kernel consumes the
    # conv3 pooled activations directly (no in-kernel relayout). 500 -> 512.
    f1, _ = p["fc1_w"].shape                                   # (500, 1152)
    F1 = _round_up(f1, LANE)                                   # 512
    w1 = p["fc1_w"].reshape(f1, 128, 3, 3).transpose(2, 3, 1, 0).reshape(9, 128, f1)
    w1 = jnp.pad(w1, ((0, 0), (0, 0), (0, F1 - f1))).astype(jnp.bfloat16)
    b1 = jnp.pad(p["fc1_b"], (0, F1 - f1)).astype(jnp.float32).reshape(1, F1)

    f2 = p["fc2_w"].shape[0]                                   # 16
    F2 = _round_up(f2, LANE)                                   # 128
    w2 = jnp.pad(p["fc2_w"].T, ((0, F1 - f1), (0, F2 - f2))).astype(jnp.bfloat16)
    b2 = jnp.pad(p["fc2_b"], (0, F2 - f2)).astype(jnp.float32).reshape(1, F2)

    return {"c1": c1, "c2": c2, "c3": c3, "fc1": (w1, b1), "fc2": (w2, b2)}


# ---------------------------------------------------------------------------
# CNN1 forward (inference semantics: dropout is identity, as in model.eval())
# ---------------------------------------------------------------------------
def cnn1_forward(prepped, x_nchw):
    """x_nchw: (N, 1, 28, 28) float32 -> logits (N, 16) float32.
    bf16 MXU operands with f32 accumulation => bf16-level tolerance vs a
    float32 PyTorch reference."""
    x = jnp.transpose(x_nchw, (0, 2, 3, 1)).astype(jnp.bfloat16)   # NCHW -> NHWC

    # conv1 (K=9) is MXU-underutilized but <1% of total FLOPs; the coarse
    # 2048-row tiling gives it a single grid step at small batch.
    x = conv3x3_relu_pool(x, *prepped["c1"], cout_real=32)     # (N,14,14, 32)
    x = conv3x3_relu_pool(x, *prepped["c2"], cout_real=64)     # (N, 7, 7, 64)
    # conv3 + pool + flatten + fc1 + ReLU + (dropout=id) + fc2, fused.
    logits = conv3_mlp(x, *prepped["c3"], *prepped["fc1"], *prepped["fc2"])
    return logits[:, :16]


if __name__ == "__main__":
    key = jax.random.PRNGKey(0)
    pkey, xkey = jax.random.split(key)
    params = init_params(pkey)
    prepped = prepare_params(params)     # one-time weight relayout (hoisted)
    # CNN1's fc1 = Linear(128*3*3, 500) implies 28x28 single-channel input.
    x = jax.random.normal(xkey, (2, 1, 28, 28), jnp.float32)

    fwd = jax.jit(cnn1_forward)
    out = fwd(prepped, x)
    out = jax.block_until_ready(out)
    assert out.shape == (2, 16) and out.dtype == jnp.float32
    print("KERNEL_OK")
</pallas_src>

<mosaic_0001>
module attributes {stable_mosaic.version = 11 : i64} {
  func.func @_conv_gemm_pool_kernel(%arg0: i32, %arg1: memref<4x400x9xbf16, #tpu.memory_space<vmem>>, %arg2: memref<9x128xbf16, #tpu.memory_space<vmem>>, %arg3: memref<1x128xf32, #tpu.memory_space<vmem>>, %arg4: memref<400x128xbf16, #tpu.memory_space<vmem>>) attributes {dimension_semantics = [#tpu.dimension_semantics<parallel>], iteration_bounds = array<i64: 1>, scalar_prefetch = 0 : i64, scratch_operands = 0 : i64, tpu.core_type = #tpu.core_type<tc>, window_params = [{transform_indices = @transform_0, window_bounds = array<i64: 4, 400, 9>}, {pipeline_mode = #tpu.pipeline_mode<synchronous>, transform_indices = @transform_1, window_bounds = array<i64: 9, 128>}, {pipeline_mode = #tpu.pipeline_mode<synchronous>, transform_indices = @transform_2, window_bounds = array<i64: 1, 128>}, {transform_indices = @transform_3, window_bounds = array<i64: 400, 128>}]} {
    %c0 = arith.constant 0 : index
    %c0_0 = arith.constant 0 : index
    %c0_1 = arith.constant 0 : index
    %0 = vector.load %arg1[%c0, %c0_0, %c0_1] : memref<4x400x9xbf16, #tpu.memory_space<vmem>>, vector<4x400x9xbf16>
    %1 = vector.shape_cast %0 : vector<4x400x9xbf16> to vector<1600x9xbf16>
    %c0_2 = arith.constant 0 : index
    %c0_3 = arith.constant 0 : index
    %2 = vector.load %arg2[%c0_2, %c0_3] : memref<9x128xbf16, #tpu.memory_space<vmem>>, vector<9x128xbf16>
    %cst = arith.constant dense<0.000000e+00> : vector<1600x128xf32>
    %3 = tpu.matmul %1, %2, %cst {dimension_numbers = #tpu.dot_dimension_numbers<[1], [0], [0], [1], [0, 0, 1, 1], [], []>} : vector<1600x9xbf16>, vector<9x128xbf16>, vector<1600x128xf32> -> vector<1600x128xf32>
    %4 = vector.extract_strided_slice %3 {offsets = [0, 0], sizes = [400, 128], strides = [1, 1]} : vector<1600x128xf32> to vector<400x128xf32>
    %5 = vector.extract_strided_slice %3 {offsets = [400, 0], sizes = [400, 128], strides = [1, 1]} : vector<1600x128xf32> to vector<400x128xf32>
    %6 = arith.maximumf %4, %5 : vector<400x128xf32>
    %7 = vector.extract_strided_slice %3 {offsets = [800, 0], sizes = [400, 128], strides = [1, 1]} : vector<1600x128xf32> to vector<400x128xf32>
    %8 = vector.extract_strided_slice %3 {offsets = [1200, 0], sizes = [400, 128], strides = [1, 1]} : vector<1600x128xf32> to vector<400x128xf32>
    %9 = arith.maximumf %7, %8 : vector<400x128xf32>
    %10 = arith.maximumf %6, %9 : vector<400x128xf32>
    %c0_4 = arith.constant 0 : index
    %c0_5 = arith.constant 0 : index
    %11 = vector.load %arg3[%c0_4, %c0_5] : memref<1x128xf32, #tpu.memory_space<vmem>>, vector<1x128xf32>
    %12 = vector.broadcast %11 : vector<1x128xf32> to vector<400x128xf32>
    %13 = arith.addf %10, %12 : vector<400x128xf32>
    %cst_6 = arith.constant 0.000000e+00 : f32
    %14 = vector.broadcast %cst_6 : f32 to vector<400x128xf32>
    %15 = arith.maximumf %13, %14 : vector<400x128xf32>
    %16 = arith.truncf %15 : vector<400x128xf32> to vector<400x128xbf16>
    %c0_7 = arith.constant 0 : index
    %c0_8 = arith.constant 0 : index
    %17 = vector.load %arg4[%c0_7, %c0_8] : memref<400x128xbf16, #tpu.memory_space<vmem>>, vector<400x128xbf16>
    tpu.vector_store %arg4[%c0_7, %c0_8], %16 {strides = array<i32>} : memref<400x128xbf16, #tpu.memory_space<vmem>>, vector<400x128xbf16>,
    return
  }
  func.func @transform_0(%arg0: i32) -> (i32, i32, i32) {
    %c0_i32 = arith.constant 0 : i32
    %c0_i32_0 = arith.constant 0 : i32
    %c0_i32_1 = arith.constant 0 : i32
    return %c0_i32, %arg0, %c0_i32_0 : i32, i32, i32
  }
  func.func @transform_1(%arg0: i32) -> (i32, i32) {
    %c0_i32 = arith.constant 0 : i32
    %c0_i32_0 = arith.constant 0 : i32
    %c0_i32_1 = arith.constant 0 : i32
    return %c0_i32, %c0_i32_0 : i32, i32
  }
  func.func @transform_2(%arg0: i32) -> (i32, i32) {
    %c0_i32 = arith.constant 0 : i32
    %c0_i32_0 = arith.constant 0 : i32
    %c0_i32_1 = arith.constant 0 : i32
    return %c0_i32, %c0_i32_0 : i32, i32
  }
  func.func @transform_3(%arg0: i32) -> (i32, i32) {
    %c0_i32 = arith.constant 0 : i32
    %c0_i32_0 = arith.constant 0 : i32
    return %arg0, %c0_i32 : i32, i32
  }
}

module attributes {stable_mosaic.version = 11 : i64} {
  func.func @_conv_gemm_pool_kernel(%arg0: i32, %arg1: memref<4x112x288xbf16, #tpu.memory_space<vmem>>, %arg2: memref<288x128xbf16, #tpu.memory_space<vmem>>, %arg3: memref<1x128xf32, #tpu.memory_space<vmem>>, %arg4: memref<112x128xbf16, #tpu.memory_space<vmem>>) attributes {dimension_semantics = [#tpu.dimension_semantics<parallel>], iteration_bounds = array<i64: 1>, scalar_prefetch = 0 : i64, scratch_operands = 0 : i64, tpu.core_type = #tpu.core_type<tc>, window_params = [{transform_indices = @transform_0, window_bounds = array<i64: 4, 112, 288>}, {pipeline_mode = #tpu.pipeline_mode<synchronous>, transform_indices = @transform_1, window_bounds = array<i64: 288, 128>}, {pipeline_mode = #tpu.pipeline_mode<synchronous>, transform_indices = @transform_2, window_bounds = array<i64: 1, 128>}, {transform_indices = @transform_3, window_bounds = array<i64: 112, 128>}]} {
    %c0 = arith.constant 0 : index
    %c0_0 = arith.constant 0 : index
    %c0_1 = arith.constant 0 : index
    %0 = vector.load %arg1[%c0, %c0_0, %c0_1] : memref<4x112x288xbf16, #tpu.memory_space<vmem>>, vector<4x112x288xbf16>
    %1 = vector.shape_cast %0 : vector<4x112x288xbf16> to vector<448x288xbf16>
    %c0_2 = arith.constant 0 : index
    %c0_3 = arith.constant 0 : index
    %2 = vector.load %arg2[%c0_2, %c0_3] : memref<288x128xbf16, #tpu.memory_space<vmem>>, vector<288x128xbf16>
    %cst = arith.constant dense<0.000000e+00> : vector<448x128xf32>
    %3 = tpu.matmul %1, %2, %cst {dimension_numbers = #tpu.dot_dimension_numbers<[1], [0], [0], [1], [0, 0, 1, 1], [], []>} : vector<448x288xbf16>, vector<288x128xbf16>, vector<448x128xf32> -> vector<448x128xf32>
    %4 = vector.extract_strided_slice %3 {offsets = [0, 0], sizes = [112, 128], strides = [1, 1]} : vector<448x128xf32> to vector<112x128xf32>
    %5 = vector.extract_strided_slice %3 {offsets = [112, 0], sizes = [112, 128], strides = [1, 1]} : vector<448x128xf32> to vector<112x128xf32>
    %6 = arith.maximumf %4, %5 : vector<112x128xf32>
    %7 = vector.extract_strided_slice %3 {offsets = [224, 0], sizes = [112, 128], strides = [1, 1]} : vector<448x128xf32> to vector<112x128xf32>
    %8 = vector.extract_strided_slice %3 {offsets = [336, 0], sizes = [112, 128], strides = [1, 1]} : vector<448x128xf32> to vector<112x128xf32>
    %9 = arith.maximumf %7, %8 : vector<112x128xf32>
    %10 = arith.maximumf %6, %9 : vector<112x128xf32>
    %c0_4 = arith.constant 0 : index
    %c0_5 = arith.constant 0 : index
    %11 = vector.load %arg3[%c0_4, %c0_5] : memref<1x128xf32, #tpu.memory_space<vmem>>, vector<1x128xf32>
    %12 = vector.broadcast %11 : vector<1x128xf32> to vector<112x128xf32>
    %13 = arith.addf %10, %12 : vector<112x128xf32>
    %cst_6 = arith.constant 0.000000e+00 : f32
    %14 = vector.broadcast %cst_6 : f32 to vector<112x128xf32>
    %15 = arith.maximumf %13, %14 : vector<112x128xf32>
    %16 = arith.truncf %15 : vector<112x128xf32> to vector<112x128xbf16>
    %c0_7 = arith.constant 0 : index
    %c0_8 = arith.constant 0 : index
    %17 = vector.load %arg4[%c0_7, %c0_8] : memref<112x128xbf16, #tpu.memory_space<vmem>>, vector<112x128xbf16>
    tpu.vector_store %arg4[%c0_7, %c0_8], %16 {strides = array<i32>} : memref<112x128xbf16, #tpu.memory_space<vmem>>, vector<112x128xbf16>,
    return
  }
  func.func @transform_0(%arg0: i32) -> (i32, i32, i32) {
    %c0_i32 = arith.constant 0 : i32
    %c0_i32_0 = arith.constant 0 : i32
    %c0_i32_1 = arith.constant 0 : i32
    return %c0_i32, %arg0, %c0_i32_0 : i32, i32, i32
  }
  func.func @transform_1(%arg0: i32) -> (i32, i32) {
    %c0_i32 = arith.constant 0 : i32
    %c0_i32_0 = arith.constant 0 : i32
    %c0_i32_1 = arith.constant 0 : i32
    return %c0_i32, %c0_i32_0 : i32, i32
  }
  func.func @transform_2(%arg0: i32) -> (i32, i32) {
    %c0_i32 = arith.constant 0 : i32
    %c0_i32_0 = arith.constant 0 : i32
    %c0_i32_1 = arith.constant 0 : i32
    return %c0_i32, %c0_i32_0 : i32, i32
  }
  func.func @transform_3(%arg0: i32) -> (i32, i32) {
    %c0_i32 = arith.constant 0 : i32
    %c0_i32_0 = arith.constant 0 : i32
    return %arg0, %c0_i32 : i32, i32
  }
}

module attributes {stable_mosaic.version = 11 : i64} {
  func.func @_conv3_mlp_kernel(%arg0: i32, %arg1: memref<4x144x576xbf16, #tpu.memory_space<vmem>>, %arg2: memref<576x128xbf16, #tpu.memory_space<vmem>>, %arg3: memref<1x128xf32, #tpu.memory_space<vmem>>, %arg4: memref<9x128x512xbf16, #tpu.memory_space<vmem>>, %arg5: memref<1x512xf32, #tpu.memory_space<vmem>>, %arg6: memref<512x128xbf16, #tpu.memory_space<vmem>>, %arg7: memref<1x128xf32, #tpu.memory_space<vmem>>, %arg8: memref<16x128xf32, #tpu.memory_space<vmem>>) attributes {dimension_semantics = [#tpu.dimension_semantics<parallel>], iteration_bounds = array<i64: 1>, scalar_prefetch = 0 : i64, scratch_operands = 0 : i64, tpu.core_type = #tpu.core_type<tc>, window_params = [{transform_indices = @transform_0, window_bounds = array<i64: 4, 144, 576>}, {pipeline_mode = #tpu.pipeline_mode<synchronous>, transform_indices = @transform_1, window_bounds = array<i64: 576, 128>}, {pipeline_mode = #tpu.pipeline_mode<synchronous>, transform_indices = @transform_2, window_bounds = array<i64: 1, 128>}, {pipeline_mode = #tpu.pipeline_mode<synchronous>, transform_indices = @transform_3, window_bounds = array<i64: 9, 128, 512>}, {pipeline_mode = #tpu.pipeline_mode<synchronous>, transform_indices = @transform_4, window_bounds = array<i64: 1, 512>}, {pipeline_mode = #tpu.pipeline_mode<synchronous>, transform_indices = @transform_5, window_bounds = array<i64: 512, 128>}, {pipeline_mode = #tpu.pipeline_mode<synchronous>, transform_indices = @transform_6, window_bounds = array<i64: 1, 128>}, {transform_indices = @transform_7, window_bounds = array<i64: 16, 128>}]} {
    %c0 = arith.constant 0 : index
    %c0_0 = arith.constant 0 : index
    %c0_1 = arith.constant 0 : index
    %0 = vector.load %arg1[%c0, %c0_0, %c0_1] : memref<4x144x576xbf16, #tpu.memory_space<vmem>>, vector<4x144x576xbf16>
    %1 = vector.shape_cast %0 : vector<4x144x576xbf16> to vector<576x576xbf16>
    %c0_2 = arith.constant 0 : index
    %c0_3 = arith.constant 0 : index
    %2 = vector.load %arg2[%c0_2, %c0_3] : memref<576x128xbf16, #tpu.memory_space<vmem>>, vector<576x128xbf16>
    %cst = arith.constant dense<0.000000e+00> : vector<576x128xf32>
    %3 = tpu.matmul %1, %2, %cst {dimension_numbers = #tpu.dot_dimension_numbers<[1], [0], [0], [1], [0, 0, 1, 1], [], []>} : vector<576x576xbf16>, vector<576x128xbf16>, vector<576x128xf32> -> vector<576x128xf32>
    %4 = vector.extract_strided_slice %3 {offsets = [0, 0], sizes = [144, 128], strides = [1, 1]} : vector<576x128xf32> to vector<144x128xf32>
    %5 = vector.extract_strided_slice %3 {offsets = [144, 0], sizes = [144, 128], strides = [1, 1]} : vector<576x128xf32> to vector<144x128xf32>
    %6 = arith.maximumf %4, %5 : vector<144x128xf32>
    %7 = vector.extract_strided_slice %3 {offsets = [288, 0], sizes = [144, 128], strides = [1, 1]} : vector<576x128xf32> to vector<144x128xf32>
    %8 = vector.extract_strided_slice %3 {offsets = [432, 0], sizes = [144, 128], strides = [1, 1]} : vector<576x128xf32> to vector<144x128xf32>
    %9 = arith.maximumf %7, %8 : vector<144x128xf32>
    %10 = arith.maximumf %6, %9 : vector<144x128xf32>
    %c0_4 = arith.constant 0 : index
    %c0_5 = arith.constant 0 : index
    %11 = vector.load %arg3[%c0_4, %c0_5] : memref<1x128xf32, #tpu.memory_space<vmem>>, vector<1x128xf32>
    %12 = vector.broadcast %11 : vector<1x128xf32> to vector<144x128xf32>
    %13 = arith.addf %10, %12 : vector<144x128xf32>
    %cst_6 = arith.constant 0.000000e+00 : f32
    %14 = vector.broadcast %cst_6 : f32 to vector<144x128xf32>
    %15 = arith.maximumf %13, %14 : vector<144x128xf32>
    %16 = arith.truncf %15 : vector<144x128xf32> to vector<144x128xbf16>
    %17 = vector.extract_strided_slice %16 {offsets = [0, 0], sizes = [16, 128], strides = [1, 1]} : vector<144x128xbf16> to vector<16x128xbf16>
    %c0_7 = arith.constant 0 : index
    %c0_8 = arith.constant 0 : index
    %c0_9 = arith.constant 0 : index
    %18 = vector.load %arg4[%c0_7, %c0_8, %c0_9] : memref<9x128x512xbf16, #tpu.memory_space<vmem>>, vector<1x128x512xbf16>
    %19 = vector.shape_cast %18 : vector<1x128x512xbf16> to vector<128x512xbf16>
    %cst_10 = arith.constant dense<0.000000e+00> : vector<16x512xf32>
    %20 = tpu.matmul %17, %19, %cst_10 {dimension_numbers = #tpu.dot_dimension_numbers<[1], [0], [0], [1], [0, 0, 1, 1], [], []>} : vector<16x128xbf16>, vector<128x512xbf16>, vector<16x512xf32> -> vector<16x512xf32>
    %21 = vector.extract_strided_slice %16 {offsets = [16, 0], sizes = [16, 128], strides = [1, 1]} : vector<144x128xbf16> to vector<16x128xbf16>
    %c1 = arith.constant 1 : index
    %c0_11 = arith.constant 0 : index
    %c0_12 = arith.constant 0 : index
    %22 = vector.load %arg4[%c1, %c0_11, %c0_12] : memref<9x128x512xbf16, #tpu.memory_space<vmem>>, vector<1x128x512xbf16>
    %23 = vector.shape_cast %22 : vector<1x128x512xbf16> to vector<128x512xbf16>
    %cst_13 = arith.constant dense<0.000000e+00> : vector<16x512xf32>
    %24 = tpu.matmul %21, %23, %cst_13 {dimension_numbers = #tpu.dot_dimension_numbers<[1], [0], [0], [1], [0, 0, 1, 1], [], []>} : vector<16x128xbf16>, vector<128x512xbf16>, vector<16x512xf32> -> vector<16x512xf32>
    %25 = arith.addf %20, %24 : vector<16x512xf32>
    %26 = vector.extract_strided_slice %16 {offsets = [32, 0], sizes = [16, 128], strides = [1, 1]} : vector<144x128xbf16> to vector<16x128xbf16>
    %c2 = arith.constant 2 : index
    %c0_14 = arith.constant 0 : index
    %c0_15 = arith.constant 0 : index
    %27 = vector.load %arg4[%c2, %c0_14, %c0_15] : memref<9x128x512xbf16, #tpu.memory_space<vmem>>, vector<1x128x512xbf16>
    %28 = vector.shape_cast %27 : vector<1x128x512xbf16> to vector<128x512xbf16>
    %cst_16 = arith.constant dense<0.000000e+00> : vector<16x512xf32>
    %29 = tpu.matmul %26, %28, %cst_16 {dimension_numbers = #tpu.dot_dimension_numbers<[1], [0], [0], [1], [0, 0, 1, 1], [], []>} : vector<16x128xbf16>, vector<128x512xbf16>, vector<16x512xf32> -> vector<16x512xf32>
    %30 = arith.addf %25, %29 : vector<16x512xf32>
    %31 = vector.extract_strided_slice %16 {offsets = [48, 0], sizes = [16, 128], strides = [1, 1]} : vector<144x128xbf16> to vector<16x128xbf16>
    %c3 = arith.constant 3 : index
    %c0_17 = arith.constant 0 : index
    %c0_18 = arith.constant 0 : index
    %32 = vector.load %arg4[%c3, %c0_17, %c0_18] : memref<9x128x512xbf16, #tpu.memory_space<vmem>>, vector<1x128x512xbf16>
    %33 = vector.shape_cast %32 : vector<1x128x512xbf16> to vector<128x512xbf16>
    %cst_19 = arith.constant dense<0.000000e+00> : vector<16x512xf32>
    %34 = tpu.matmul %31, %33, %cst_19 {dimension_numbers = #tpu.dot_dimension_numbers<[1], [0], [0], [1], [0, 0, 1, 1], [], []>} : vector<16x128xbf16>, vector<128x512xbf16>, vector<16x512xf32> -> vector<16x512xf32>
    %35 = arith.addf %30, %34 : vector<16x512xf32>
    %36 = vector.extract_strided_slice %16 {offsets = [64, 0], sizes = [16, 128], strides = [1, 1]} : vector<144x128xbf16> to vector<16x128xbf16>
    %c4 = arith.constant 4 : index
    %c0_20 = arith.constant 0 : index
    %c0_21 = arith.constant 0 : index
    %37 = vector.load %arg4[%c4, %c0_20, %c0_21] : memref<9x128x512xbf16, #tpu.memory_space<vmem>>, vector<1x128x512xbf16>
    %38 = vector.shape_cast %37 : vector<1x128x512xbf16> to vector<128x512xbf16>
    %cst_22 = arith.constant dense<0.000000e+00> : vector<16x512xf32>
    %39 = tpu.matmul %36, %38, %cst_22 {dimension_numbers = #tpu.dot_dimension_numbers<[1], [0], [0], [1], [0, 0, 1, 1], [], []>} : vector<16x128xbf16>, vector<128x512xbf16>, vector<16x512xf32> -> vector<16x512xf32>
    %40 = arith.addf %35, %39 : vector<16x512xf32>
    %41 = vector.extract_strided_slice %16 {offsets = [80, 0], sizes = [16, 128], strides = [1, 1]} : vector<144x128xbf16> to vector<16x128xbf16>
    %c5 = arith.constant 5 : index
    %c0_23 = arith.constant 0 : index
    %c0_24 = arith.constant 0 : index
    %42 = vector.load %arg4[%c5, %c0_23, %c0_24] : memref<9x128x512xbf16, #tpu.memory_space<vmem>>, vector<1x128x512xbf16>
    %43 = vector.shape_cast %42 : vector<1x128x512xbf16> to vector<128x512xbf16>
    %cst_25 = arith.constant dense<0.000000e+00> : vector<16x512xf32>
    %44 = tpu.matmul %41, %43, %cst_25 {dimension_numbers = #tpu.dot_dimension_numbers<[1], [0], [0], [1], [0, 0, 1, 1], [], []>} : vector<16x128xbf16>, vector<128x512xbf16>, vector<16x512xf32> -> vector<16x512xf32>
    %45 = arith.addf %40, %44 : vector<16x512xf32>
    %46 = vector.extract_strided_slice %16 {offsets = [96, 0], sizes = [16, 128], strides = [1, 1]} : vector<144x128xbf16> to vector<16x128xbf16>
    %c6 = arith.constant 6 : index
    %c0_26 = arith.constant 0 : index
    %c0_27 = arith.constant 0 : index
    %47 = vector.load %arg4[%c6, %c0_26, %c0_27] : memref<9x128x512xbf16, #tpu.memory_space<vmem>>, vector<1x128x512xbf16>
    %48 = vector.shape_cast %47 : vector<1x128x512xbf16> to vector<128x512xbf16>
    %cst_28 = arith.constant dense<0.000000e+00> : vector<16x512xf32>
    %49 = tpu.matmul %46, %48, %cst_28 {dimension_numbers = #tpu.dot_dimension_numbers<[1], [0], [0], [1], [0, 0, 1, 1], [], []>} : vector<16x128xbf16>, vector<128x512xbf16>, vector<16x512xf32> -> vector<16x512xf32>
    %50 = arith.addf %45, %49 : vector<16x512xf32>
    %51 = vector.extract_strided_slice %16 {offsets = [112, 0], sizes = [16, 128], strides = [1, 1]} : vector<144x128xbf16> to vector<16x128xbf16>
    %c7 = arith.constant 7 : index
    %c0_29 = arith.constant 0 : index
    %c0_30 = arith.constant 0 : index
    %52 = vector.load %arg4[%c7, %c0_29, %c0_30] : memref<9x128x512xbf16, #tpu.memory_space<vmem>>, vector<1x128x512xbf16>
    %53 = vector.shape_cast %52 : vector<1x128x512xbf16> to vector<128x512xbf16>
    %cst_31 = arith.constant dense<0.000000e+00> : vector<16x512xf32>
    %54 = tpu.matmul %51, %53, %cst_31 {dimension_numbers = #tpu.dot_dimension_numbers<[1], [0], [0], [1], [0, 0, 1, 1], [], []>} : vector<16x128xbf16>, vector<128x512xbf16>, vector<16x512xf32> -> vector<16x512xf32>
    %55 = arith.addf %50, %54 : vector<16x512xf32>
    %56 = vector.extract_strided_slice %16 {offsets = [128, 0], sizes = [16, 128], strides = [1, 1]} : vector<144x128xbf16> to vector<16x128xbf16>
    %c8 = arith.constant 8 : index
    %c0_32 = arith.constant 0 : index
    %c0_33 = arith.constant 0 : index
    %57 = vector.load %arg4[%c8, %c0_32, %c0_33] : memref<9x128x512xbf16, #tpu.memory_space<vmem>>, vector<1x128x512xbf16>
    %58 = vector.shape_cast %57 : vector<1x128x512xbf16> to vector<128x512xbf16>
    %cst_34 = arith.constant dense<0.000000e+00> : vector<16x512xf32>
    %59 = tpu.matmul %56, %58, %cst_34 {dimension_numbers = #tpu.dot_dimension_numbers<[1], [0], [0], [1], [0, 0, 1, 1], [], []>} : vector<16x128xbf16>, vector<128x512xbf16>, vector<16x512xf32> -> vector<16x512xf32>
    %60 = arith.addf %55, %59 : vector<16x512xf32>
    %c0_35 = arith.constant 0 : index
    %c0_36 = arith.constant 0 : index
    %61 = vector.load %arg5[%c0_35, %c0_36] : memref<1x512xf32, #tpu.memory_space<vmem>>, vector<1x512xf32>
    %62 = vector.broadcast %61 : vector<1x512xf32> to vector<16x512xf32>
    %63 = arith.addf %60, %62 : vector<16x512xf32>
    %cst_37 = arith.constant 0.000000e+00 : f32
    %64 = vector.broadcast %cst_37 : f32 to vector<16x512xf32>
    %65 = arith.maximumf %63, %64 : vector<16x512xf32>
    %66 = arith.truncf %65 : vector<16x512xf32> to vector<16x512xbf16>
    %c0_38 = arith.constant 0 : index
    %c0_39 = arith.constant 0 : index
    %67 = vector.load %arg6[%c0_38, %c0_39] : memref<512x128xbf16, #tpu.memory_space<vmem>>, vector<512x128xbf16>
    %cst_40 = arith.constant dense<0.000000e+00> : vector<16x128xf32>
    %68 = tpu.matmul %66, %67, %cst_40 {dimension_numbers = #tpu.dot_dimension_numbers<[1], [0], [0], [1], [0, 0, 1, 1], [], []>} : vector<16x512xbf16>, vector<512x128xbf16>, vector<16x128xf32> -> vector<16x128xf32>
    %c0_41 = arith.constant 0 : index
    %c0_42 = arith.constant 0 : index
    %69 = vector.load %arg7[%c0_41, %c0_42] : memref<1x128xf32, #tpu.memory_space<vmem>>, vector<1x128xf32>
    %70 = vector.broadcast %69 : vector<1x128xf32> to vector<16x128xf32>
    %71 = arith.addf %68, %70 : vector<16x128xf32>
    %c0_43 = arith.constant 0 : index
    %c0_44 = arith.constant 0 : index
    %72 = vector.load %arg8[%c0_43, %c0_44] : memref<16x128xf32, #tpu.memory_space<vmem>>, vector<16x128xf32>
    tpu.vector_store %arg8[%c0_43, %c0_44], %71 {strides = array<i32>} : memref<16x128xf32, #tpu.memory_space<vmem>>, vector<16x128xf32>,
    return
  }
  func.func @transform_0(%arg0: i32) -> (i32, i32, i32) {
    %c0_i32 = arith.constant 0 : i32
    %c0_i32_0 = arith.constant 0 : i32
    %c0_i32_1 = arith.constant 0 : i32
    return %c0_i32, %arg0, %c0_i32_0 : i32, i32, i32
  }
  func.func @transform_1(%arg0: i32) -> (i32, i32) {
    %c0_i32 = arith.constant 0 : i32
    %c0_i32_0 = arith.constant 0 : i32
    %c0_i32_1 = arith.constant 0 : i32
    return %c0_i32, %c0_i32_0 : i32, i32
  }
  func.func @transform_2(%arg0: i32) -> (i32, i32) {
    %c0_i32 = arith.constant 0 : i32
    %c0_i32_0 = arith.constant 0 : i32
    %c0_i32_1 = arith.constant 0 : i32
    return %c0_i32, %c0_i32_0 : i32, i32
  }
  func.func @transform_3(%arg0: i32) -> (i32, i32, i32) {
    %c0_i32 = arith.constant 0 : i32
    %c0_i32_0 = arith.constant 0 : i32
    %c0_i32_1 = arith.constant 0 : i32
    %c0_i32_2 = arith.constant 0 : i32
    return %c0_i32, %c0_i32_0, %c0_i32_1 : i32, i32, i32
  }
  func.func @transform_4(%arg0: i32) -> (i32, i32) {
    %c0_i32 = arith.constant 0 : i32
    %c0_i32_0 = arith.constant 0 : i32
    %c0_i32_1 = arith.constant 0 : i32
    return %c0_i32, %c0_i32_0 : i32, i32
  }
  func.func @transform_5(%arg0: i32) -> (i32, i32) {
    %c0_i32 = arith.constant 0 : i32
    %c0_i32_0 = arith.constant 0 : i32
    %c0_i32_1 = arith.constant 0 : i32
    return %c0_i32, %c0_i32_0 : i32, i32
  }
  func.func @transform_6(%arg0: i32) -> (i32, i32) {
    %c0_i32 = arith.constant 0 : i32
    %c0_i32_0 = arith.constant 0 : i32
    %c0_i32_1 = arith.constant 0 : i32
    return %c0_i32, %c0_i32_0 : i32, i32
  }
  func.func @transform_7(%arg0: i32) -> (i32, i32) {
    %c0_i32 = arith.constant 0 : i32
    %c0_i32_0 = arith.constant 0 : i32
    return %arg0, %c0_i32 : i32, i32
  }
}

</mosaic_0001>

<bundles_post_ra>
// kernel: cnn1_forward.3
= control target key start
LH: loop header
LB: loop body
LE: loop exit
PB: predicated region body
PF: predicated region fallthrough
CT: control target
= control target key end

     0   :  { %vm1023_vm0 = vcmask 1043456   ;;  %vm1024_vm1 = vcmask 1044480   ;;  %v2657_v2 = vmov 65535   ;;  %vm722_vm2 = vcmask 72704   ;;  %s3219_s1 = inlined_call_operand.vmem [shape: bf16[9,128], index: 1, kind: input, shape index: {}]   ;;  %s3220_s0 = inlined_call_operand.vmem [shape: bf16[4,400,9], index: 0, kind: input, shape index: {}]   ;;  %s3221_s2 = inlined_call_operand.vmem [shape: f32[1,128], index: 2, kind: input, shape index: {}]   ;;  %s3222_s3 = inlined_call_operand.vmem [shape: bf16[400,128], index: 3, kind: output, shape index: {}]  }
   0x1   :  { %v2299_v0 = vld [vmem:[%s3219_s1] sm:$0xf]  ;;  %v2501_v1 = vld [vmem:[%s3219_s1] sm:$0x10]  ;;  %v1025_v3 = vsel %vm1023_vm0, 4294967295, %v2657_v2  ;;  %v2426_v8 = vld [vmem:[%s3220_s0 + $0xc8] sm:$0xff] }
   0x2   :  { %v2300_v4 = vor.u32 %v2501_v1, %v2299_v0  ;;  %v1026_v5 = vsel %vm1024_vm1, %v1025_v3, 0  ;;  %v2401_v7 = vld [vmem:[%s3220_s0] sm:$0xff]  ;;  %v2451_v9 = vld [vmem:[%s3220_s0 + $0x190] sm:$0xff]  ;;  %v2476_v10 = vld [vmem:[%s3220_s0 + $0x258] sm:$0xff] }
   0x3   :  { %v2402_v11 = vld [vmem:[%s3220_s0 + $0x8] sm:$0xff]  ;;  %v2427_v12 = vld [vmem:[%s3220_s0 + $0xd0] sm:$0xff]  ;;  %v2452_v13 = vld [vmem:[%s3220_s0 + $0x198] sm:$0xff] }
   0x4   :  { %v1028_v6 = vand.u32 %v2300_v4, %v1026_v5  ;;  %v2477_v14 = vld [vmem:[%s3220_s0 + $0x260] sm:$0xff]  ;;  %v2403_v15 = vld [vmem:[%s3220_s0 + $0x10] sm:$0xff]  ;;  %v2428_v16 = vld [vmem:[%s3220_s0 + $0xd8] sm:$0xff] }
   0x5   :  { %v2453_v17 = vld [vmem:[%s3220_s0 + $0x1a0] sm:$0xff]  ;;  %v2478_v18 = vld [vmem:[%s3220_s0 + $0x268] sm:$0xff]  ;;  %v2404_v19 = vld [vmem:[%s3220_s0 + $0x18] sm:$0xff] }
   0x6   :  { %1037 = vmatpush.bf16.msra.mxu0 %v1028_v6  ;;  %2651 = vmatpush.bf16.msra.mxu1 %v1028_v6  ;;  %v2429_v20 = vld [vmem:[%s3220_s0 + $0xe0] sm:$0xff]  ;;  %v2454_v21 = vld [vmem:[%s3220_s0 + $0x1a8] sm:$0xff]  ;;  %v2479_v22 = vld [vmem:[%s3220_s0 + $0x270] sm:$0xff] }
   0x7   :  { %2652 = vmatpush.bf16.msra.mxu2 %v1028_v6  ;;  %2653 = vmatpush.bf16.msra.mxu3 %v1028_v6  ;;  %v2405_v23 = vld [vmem:[%s3220_s0 + $0x20] sm:$0xff]  ;;  %v2430_v24 = vld [vmem:[%s3220_s0 + $0xe8] sm:$0xff]  ;;  %v2455_v25 = vld [vmem:[%s3220_s0 + $0x1b0] sm:$0xff] }
   0x8   :  { %v2480_v26 = vld [vmem:[%s3220_s0 + $0x278] sm:$0xff]  ;;  %v2406_v27 = vld [vmem:[%s3220_s0 + $0x28] sm:$0xff]  ;;  %v2431_v28 = vld [vmem:[%s3220_s0 + $0xf0] sm:$0xff] }
   0x9   :  { %2301 = vmatmul.msk.bf16.vlgmr.msra.gmra.mxu0 %vm722_vm2, %v2401_v7  ;;  %2326 = vmatmul.msk.bf16.vlgmr.msra.gmra.mxu1 %vm722_vm2, %v2426_v8  ;;  %v2456_v29 = vld [vmem:[%s3220_s0 + $0x1b8] sm:$0xff]  ;;  %v2481_v30 = vld [vmem:[%s3220_s0 + $0x280] sm:$0xff]  ;;  %v2407_v31 = vld [vmem:[%s3220_s0 + $0x30] sm:$0xff] }
   0xa   :  { %2351 = vmatmul.msk.bf16.vlgmr.msra.gmra.mxu2 %vm722_vm2, %v2451_v9  ;;  %2376 = vmatmul.msk.bf16.vlgmr.msra.gmra.mxu3 %vm722_vm2, %v2476_v10  ;;  %v2432_v32 = vld [vmem:[%s3220_s0 + $0xf8] sm:$0xff]  ;;  %v2457_v33 = vld [vmem:[%s3220_s0 + $0x1c0] sm:$0xff]  ;;  %v2482_v34 = vld [vmem:[%s3220_s0 + $0x288] sm:$0xff] }
   0xb   :  { %v2408_v35 = vld [vmem:[%s3220_s0 + $0x38] sm:$0xff]  ;;  %v2433_v36 = vld [vmem:[%s3220_s0 + $0x100] sm:$0xff]  ;;  %v2458_v37 = vld [vmem:[%s3220_s0 + $0x1c8] sm:$0xff] }
   0xc   :  { %v2483_v38 = vld [vmem:[%s3220_s0 + $0x290] sm:$0xff]  ;;  %v2409_v39 = vld [vmem:[%s3220_s0 + $0x40] sm:$0xff]  ;;  %v2434_v40 = vld [vmem:[%s3220_s0 + $0x108] sm:$0xff] }
   0xd   :  { %v2459_v43 = vld [vmem:[%s3220_s0 + $0x1d0] sm:$0xff]  ;;  %v2484_v44 = vld [vmem:[%s3220_s0 + $0x298] sm:$0xff]  ;;  %v2831_v52 = vld [vmem:[%s3221_s2] ss:$0 sm:$0xff] }
   0xe   :  { %v2410_v55 = vld [vmem:[%s3220_s0 + $0x48] sm:$0xff]  ;;  %v2435_v56 = vld [vmem:[%s3220_s0 + $0x110] sm:$0xff]  ;;  %v2460_v61 = vld [vmem:[%s3220_s0 + $0x1d8] sm:$0xff] }
   0xf   :  { %v2485_v62 = vld [vmem:[%s3220_s0 + $0x2a0] sm:$0xff] }
  0x19   :  { %2302 = vmatmul.msk.bf16.gmra.mxu0 %vm722_vm2, %v2402_v11  ;;  %2327 = vmatmul.msk.bf16.gmra.mxu1 %vm722_vm2, %v2427_v12 }
  0x1a   :  { %2352 = vmatmul.msk.bf16.gmra.mxu2 %vm722_vm2, %v2452_v13  ;;  %2377 = vmatmul.msk.bf16.gmra.mxu3 %vm722_vm2, %v2477_v14  ;;  %v2411_v14 = vld [vmem:[%s3220_s0 + $0x50] sm:$0xff] }
  0x29   :  { %2303 = vmatmul.msk.bf16.gmra.mxu0 %vm722_vm2, %v2403_v15  ;;  %2328 = vmatmul.msk.bf16.gmra.mxu1 %vm722_vm2, %v2428_v16  ;;  %v2436_v15 = vld [vmem:[%s3220_s0 + $0x118] sm:$0xff] }
  0x2a   :  { %2353 = vmatmul.msk.bf16.gmra.mxu2 %vm722_vm2, %v2453_v17  ;;  %2378 = vmatmul.msk.bf16.gmra.mxu3 %vm722_vm2, %v2478_v18 }
  0x39   :  { %2304 = vmatmul.msk.bf16.gmra.mxu0 %vm722_vm2, %v2404_v19  ;;  %2329 = vmatmul.msk.bf16.gmra.mxu1 %vm722_vm2, %v2429_v20  ;;  %v2461_v20 = vld [vmem:[%s3220_s0 + $0x1e0] sm:$0xff] }
  0x3a   :  { %2354 = vmatmul.msk.bf16.gmra.mxu2 %vm722_vm2, %v2454_v21  ;;  %2379 = vmatmul.msk.bf16.gmra.mxu3 %vm722_vm2, %v2479_v22  ;;  %v2486_v21 = vld [vmem:[%s3220_s0 + $0x2a8] sm:$0xff] }
  0x49   :  { %2305 = vmatmul.msk.bf16.gmra.mxu0 %vm722_vm2, %v2405_v23  ;;  %2330 = vmatmul.msk.bf16.gmra.mxu1 %vm722_vm2, %v2430_v24 }
  0x4a   :  { %2355 = vmatmul.msk.bf16.gmra.mxu2 %vm722_vm2, %v2455_v25  ;;  %2380 = vmatmul.msk.bf16.gmra.mxu3 %vm722_vm2, %v2480_v26 }
  0x59   :  { %2306 = vmatmul.msk.bf16.gmra.mxu0 %vm722_vm2, %v2406_v27  ;;  %2331 = vmatmul.msk.bf16.gmra.mxu1 %vm722_vm2, %v2431_v28 }
  0x5a   :  { %2356 = vmatmul.msk.bf16.gmra.mxu2 %vm722_vm2, %v2456_v29  ;;  %2381 = vmatmul.msk.bf16.gmra.mxu3 %vm722_vm2, %v2481_v30 }
  0x69   :  { %2307 = vmatmul.msk.bf16.gmra.mxu0 %vm722_vm2, %v2407_v31  ;;  %2332 = vmatmul.msk.bf16.gmra.mxu1 %vm722_vm2, %v2432_v32 }
  0x6a   :  { %2357 = vmatmul.msk.bf16.gmra.mxu2 %vm722_vm2, %v2457_v33  ;;  %2382 = vmatmul.msk.bf16.gmra.mxu3 %vm722_vm2, %v2482_v34 }
  0x79   :  { %2308 = vmatmul.msk.bf16.gmra.mxu0 %vm722_vm2, %v2408_v35  ;;  %2333 = vmatmul.msk.bf16.gmra.mxu1 %vm722_vm2, %v2433_v36 }
  0x7a   :  { %2358 = vmatmul.msk.bf16.gmra.mxu2 %vm722_vm2, %v2458_v37  ;;  %2383 = vmatmul.msk.bf16.gmra.mxu3 %vm722_vm2, %v2483_v38  ;;  %v2412_v37 = vld [vmem:[%s3220_s0 + $0x58] sm:$0xff]  ;;  %v2437_v38 = vld [vmem:[%s3220_s0 + $0x120] sm:$0xff] }
  0x86   :  { %v1039_v41 = vpop.f32.mrf.mxu0  ;;  %v1164_v42 = vpop.f32.mrf.mxu1 }
  0x87   :  { %v1539_v49 = vmax.f32 %v1039_v41, %v1164_v42 }
  0x89   :  { %2309 = vmatmul.msk.bf16.gmra.mxu0 %vm722_vm2, %v2409_v39  ;;  %2334 = vmatmul.msk.bf16.gmra.mxu1 %vm722_vm2, %v2434_v40 }
  0x8a   :  { %2359 = vmatmul.msk.bf16.gmra.mxu2 %vm722_vm2, %v2459_v43  ;;  %2384 = vmatmul.msk.bf16.gmra.mxu3 %vm722_vm2, %v2484_v44  ;;  %v2462_v43 = vld [vmem:[%s3220_s0 + $0x1e8] sm:$0xff]  ;;  %v2487_v44 = vld [vmem:[%s3220_s0 + $0x2b0] sm:$0xff] }
  0x8d   :  { %v1289_v45 = vpop.f32.mrf.mxu2  ;;  %v1414_v46 = vpop.f32.mrf.mxu3 }
  0x8e   :  { %v1041_v47 = vpop.f32.mrf.mxu0  ;;  %v1166_v48 = vpop.f32.mrf.mxu1  ;;  %v1589_v50 = vmax.f32 %v1289_v45, %v1414_v46 }
  0x8f   :  { %v1540_v57 = vmax.f32 %v1041_v47, %v1166_v48 }
  0x90   :  { %v1639_v51 = vmax.f32 %v1539_v49, %v1589_v50 }
  0x92   :  { %v1693_v63 = vadd.f32 %v2831_v52, %v1639_v51 }
  0x94   :  { %v1743_v2 = vmax.f32 %v1693_v63, 0.0 }
  0x95   :  { %v1291_v53 = vpop.f32.mrf.mxu2  ;;  %v1416_v54 = vpop.f32.mrf.mxu3 }
  0x96   :  { %v1590_v58 = vmax.f32 %v1291_v53, %v1416_v54  ;;  %v1044_v59 = vpop.f32.mrf.mxu0  ;;  %v1169_v60 = vpop.f32.mrf.mxu1 }
  0x97   :  { %v1541_v9 = vmax.f32 %v1044_v59, %v1169_v60 }
  0x98   :  { %v1640_v0 = vmax.f32 %v1540_v57, %v1590_v58 }
  0x99   :  { %2310 = vmatmul.msk.bf16.gmra.mxu0 %vm722_vm2, %v2410_v55  ;;  %2335 = vmatmul.msk.bf16.gmra.mxu1 %vm722_vm2, %v2435_v56 }
  0x9a   :  { %v1694_v1 = vadd.f32 %v2831_v52, %v1640_v0  ;;  %2360 = vmatmul.msk.bf16.gmra.mxu2 %vm722_vm2, %v2460_v61  ;;  %2385 = vmatmul.msk.bf16.gmra.mxu3 %vm722_vm2, %v2485_v62  ;;  %v2413_v61 = vld [vmem:[%s3220_s0 + $0x60] sm:$0xff]  ;;  %v2438_v62 = vld [vmem:[%s3220_s0 + $0x128] sm:$0xff] }
  0x9c   :  { %v1744_v3 = vmax.f32 %v1694_v1, 0.0 }
  0x9d   :  { %v1294_v4 = vpop.f32.mrf.mxu2  ;;  %v1419_v5 = vpop.f32.mrf.mxu3 }
  0x9e   :  { %v2505_v6 = vpack.c.bf16 %v1744_v3, %v1743_v2  ;;  %v1046_v7 = vpop.f32.mrf.mxu0  ;;  %v1171_v8 = vpop.f32.mrf.mxu1  ;;  %v1591_v10 = vmax.f32 %v1294_v4, %v1419_v5  ;;  %v2463_v3 = vld [vmem:[%s3220_s0 + $0x1f0] sm:$0xff]  ;;  %v2488_v4 = vld [vmem:[%s3220_s0 + $0x2b8] sm:$0xff] }
  0x9f   :  { %v1542_v16 = vmax.f32 %v1046_v7, %v1171_v8 }
  0xa0   :  { %2506 = vst [vmem:[%s3222_s3] sm:$0xff] %v2505_v6   ;;  %v1641_v11 = vmax.f32 %v1541_v9, %v1591_v10 }
  0xa2   :  { %v1695_v22 = vadd.f32 %v2831_v52, %v1641_v11 }
  0xa4   :  { %v1745_v25 = vmax.f32 %v1695_v22, 0.0 }
  0xa5   :  { %v1296_v12 = vpop.f32.mrf.mxu2  ;;  %v1421_v13 = vpop.f32.mrf.mxu3 }
  0xa6   :  { %v1592_v17 = vmax.f32 %v1296_v12, %v1421_v13  ;;  %v1049_v18 = vpop.f32.mrf.mxu0  ;;  %v1174_v19 = vpop.f32.mrf.mxu1 }
  0xa7   :  { %v1543_v32 = vmax.f32 %v1049_v18, %v1174_v19 }
  0xa8   :  { %v1642_v23 = vmax.f32 %v1542_v16, %v1592_v17 }
  0xa9   :  { %2311 = vmatmul.msk.bf16.gmra.mxu0 %vm722_vm2, %v2411_v14  ;;  %2336 = vmatmul.msk.bf16.gmra.mxu1 %vm722_vm2, %v2436_v15 }
  0xaa   :  { %v1696_v24 = vadd.f32 %v2831_v52, %v1642_v23  ;;  %2361 = vmatmul.msk.bf16.gmra.mxu2 %vm722_vm2, %v2461_v20  ;;  %2386 = vmatmul.msk.bf16.gmra.mxu3 %vm722_vm2, %v2486_v21  ;;  %v2414_v20 = vld [vmem:[%s3220_s0 + $0x68] sm:$0xff]  ;;  %v2439_v21 = vld [vmem:[%s3220_s0 + $0x130] sm:$0xff] }
  0xac   :  { %v1746_v26 = vmax.f32 %v1696_v24, 0.0 }
  0xad   :  { %v1299_v27 = vpop.f32.mrf.mxu2  ;;  %v1424_v28 = vpop.f32.mrf.mxu3 }
  0xae   :  { %v2510_v29 = vpack.c.bf16 %v1746_v26, %v1745_v25  ;;  %v1051_v30 = vpop.f32.mrf.mxu0  ;;  %v1176_v31 = vpop.f32.mrf.mxu1  ;;  %v1593_v33 = vmax.f32 %v1299_v27, %v1424_v28  ;;  %v2464_v26 = vld [vmem:[%s3220_s0 + $0x1f8] sm:$0xff]  ;;  %v2489_v27 = vld [vmem:[%s3220_s0 + $0x2c0] sm:$0xff] }
  0xaf   :  { %v1544_v39 = vmax.f32 %v1051_v30, %v1176_v31 }
  0xb0   :  { %2627 = vst [vmem:[%s3222_s3 + $0x8] sm:$0xff] %v2510_v29   ;;  %v1643_v34 = vmax.f32 %v1543_v32, %v1593_v33 }
  0xb2   :  { %v1697_v45 = vadd.f32 %v2831_v52, %v1643_v34 }
  0xb4   :  { %v1747_v48 = vmax.f32 %v1697_v45, 0.0 }
  0xb5   :  { %v1301_v35 = vpop.f32.mrf.mxu2  ;;  %v1426_v36 = vpop.f32.mrf.mxu3 }
  0xb6   :  { %v1594_v40 = vmax.f32 %v1301_v35, %v1426_v36  ;;  %v1054_v41 = vpop.f32.mrf.mxu0  ;;  %v1179_v42 = vpop.f32.mrf.mxu1 }
  0xb7   :  { %v1545_v56 = vmax.f32 %v1054_v41, %v1179_v42 }
  0xb8   :  { %v1644_v46 = vmax.f32 %v1544_v39, %v1594_v40 }
  0xb9   :  { %2312 = vmatmul.msk.bf16.gmra.mxu0 %vm722_vm2, %v2412_v37  ;;  %2337 = vmatmul.msk.bf16.gmra.mxu1 %vm722_vm2, %v2437_v38 }
  0xba   :  { %v1698_v47 = vadd.f32 %v2831_v52, %v1644_v46  ;;  %2362 = vmatmul.msk.bf16.gmra.mxu2 %vm722_vm2, %v2462_v43  ;;  %2387 = vmatmul.msk.bf16.gmra.mxu3 %vm722_vm2, %v2487_v44  ;;  %v2415_v43 = vld [vmem:[%s3220_s0 + $0x70] sm:$0xff]  ;;  %v2440_v44 = vld [vmem:[%s3220_s0 + $0x138] sm:$0xff] }
  0xbc   :  { %v1748_v49 = vmax.f32 %v1698_v47, 0.0 }
  0xbd   :  { %v1304_v50 = vpop.f32.mrf.mxu2  ;;  %v1429_v51 = vpop.f32.mrf.mxu3 }
  0xbe   :  { %v2515_v53 = vpack.c.bf16 %v1748_v49, %v1747_v48  ;;  %v1056_v54 = vpop.f32.mrf.mxu0  ;;  %v1181_v55 = vpop.f32.mrf.mxu1  ;;  %v1595_v57 = vmax.f32 %v1304_v50, %v1429_v51  ;;  %v2465_v49 = vld [vmem:[%s3220_s0 + $0x200] sm:$0xff]  ;;  %v2490_v50 = vld [vmem:[%s3220_s0 + $0x2c8] sm:$0xff] }
  0xbf   :  { %v1546_v63 = vmax.f32 %v1056_v54, %v1181_v55 }
  0xc0   :  { %2628 = vst [vmem:[%s3222_s3 + $0x10] sm:$0xff] %v2515_v53   ;;  %v1645_v58 = vmax.f32 %v1545_v56, %v1595_v57 }
  0xc2   :  { %v1699_v5 = vadd.f32 %v2831_v52, %v1645_v58 }
  0xc4   :  { %v1749_v8 = vmax.f32 %v1699_v5, 0.0 }
  0xc5   :  { %v1306_v59 = vpop.f32.mrf.mxu2  ;;  %v1431_v60 = vpop.f32.mrf.mxu3 }
  0xc6   :  { %v1596_v0 = vmax.f32 %v1306_v59, %v1431_v60  ;;  %v1059_v1 = vpop.f32.mrf.mxu0  ;;  %v1184_v2 = vpop.f32.mrf.mxu1 }
  0xc7   :  { %v1547_v15 = vmax.f32 %v1059_v1, %v1184_v2 }
  0xc8   :  { %v1646_v6 = vmax.f32 %v1546_v63, %v1596_v0 }
  0xc9   :  { %2313 = vmatmul.msk.bf16.gmra.mxu0 %vm722_vm2, %v2413_v61  ;;  %2338 = vmatmul.msk.bf16.gmra.mxu1 %vm722_vm2, %v2438_v62 }
  0xca   :  { %v1700_v7 = vadd.f32 %v2831_v52, %v1646_v6  ;;  %2363 = vmatmul.msk.bf16.gmra.mxu2 %vm722_vm2, %v2463_v3  ;;  %2388 = vmatmul.msk.bf16.gmra.mxu3 %vm722_vm2, %v2488_v4  ;;  %v2416_v3 = vld [vmem:[%s3220_s0 + $0x78] sm:$0xff]  ;;  %v2441_v4 = vld [vmem:[%s3220_s0 + $0x140] sm:$0xff] }
  0xcc   :  { %v1750_v9 = vmax.f32 %v1700_v7, 0.0 }
  0xcd   :  { %v1309_v10 = vpop.f32.mrf.mxu2  ;;  %v1434_v11 = vpop.f32.mrf.mxu3 }
  0xce   :  { %v2520_v12 = vpack.c.bf16 %v1750_v9, %v1749_v8  ;;  %v1061_v13 = vpop.f32.mrf.mxu0  ;;  %v1186_v14 = vpop.f32.mrf.mxu1  ;;  %v1597_v16 = vmax.f32 %v1309_v10, %v1434_v11  ;;  %v2466_v9 = vld [vmem:[%s3220_s0 + $0x208] sm:$0xff]  ;;  %v2491_v10 = vld [vmem:[%s3220_s0 + $0x2d0] sm:$0xff] }
  0xcf   :  { %v1548_v22 = vmax.f32 %v1061_v13, %v1186_v14 }
  0xd0   :  { %2629 = vst [vmem:[%s3222_s3 + $0x18] sm:$0xff] %v2520_v12   ;;  %v1647_v17 = vmax.f32 %v1547_v15, %v1597_v16 }
  0xd2   :  { %v1701_v28 = vadd.f32 %v2831_v52, %v1647_v17 }
  0xd4   :  { %v1751_v31 = vmax.f32 %v1701_v28, 0.0 }
  0xd5   :  { %v1311_v18 = vpop.f32.mrf.mxu2  ;;  %v1436_v19 = vpop.f32.mrf.mxu3 }
  0xd6   :  { %v1598_v23 = vmax.f32 %v1311_v18, %v1436_v19  ;;  %v1064_v24 = vpop.f32.mrf.mxu0  ;;  %v1189_v25 = vpop.f32.mrf.mxu1 }
  0xd7   :  { %v1549_v38 = vmax.f32 %v1064_v24, %v1189_v25 }
  0xd8   :  { %v1648_v29 = vmax.f32 %v1548_v22, %v1598_v23 }
  0xd9   :  { %2314 = vmatmul.msk.bf16.gmra.mxu0 %vm722_vm2, %v2414_v20  ;;  %2339 = vmatmul.msk.bf16.gmra.mxu1 %vm722_vm2, %v2439_v21 }
  0xda   :  { %v1702_v30 = vadd.f32 %v2831_v52, %v1648_v29  ;;  %2364 = vmatmul.msk.bf16.gmra.mxu2 %vm722_vm2, %v2464_v26  ;;  %2389 = vmatmul.msk.bf16.gmra.mxu3 %vm722_vm2, %v2489_v27  ;;  %v2417_v26 = vld [vmem:[%s3220_s0 + $0x80] sm:$0xff]  ;;  %v2442_v27 = vld [vmem:[%s3220_s0 + $0x148] sm:$0xff] }
  0xdc   :  { %v1752_v32 = vmax.f32 %v1702_v30, 0.0 }
  0xdd   :  { %v1314_v33 = vpop.f32.mrf.mxu2  ;;  %v1439_v34 = vpop.f32.mrf.mxu3 }
  0xde   :  { %v2525_v35 = vpack.c.bf16 %v1752_v32, %v1751_v31  ;;  %v1066_v36 = vpop.f32.mrf.mxu0  ;;  %v1191_v37 = vpop.f32.mrf.mxu1  ;;  %v1599_v39 = vmax.f32 %v1314_v33, %v1439_v34  ;;  %v2467_v32 = vld [vmem:[%s3220_s0 + $0x210] sm:$0xff]  ;;  %v2492_v33 = vld [vmem:[%s3220_s0 + $0x2d8] sm:$0xff] }
  0xdf   :  { %v1550_v45 = vmax.f32 %v1066_v36, %v1191_v37 }
  0xe0   :  { %2630 = vst [vmem:[%s3222_s3 + $0x20] sm:$0xff] %v2525_v35   ;;  %v1649_v40 = vmax.f32 %v1549_v38, %v1599_v39 }
  0xe2   :  { %v1703_v51 = vadd.f32 %v2831_v52, %v1649_v40 }
  0xe4   :  { %v1753_v55 = vmax.f32 %v1703_v51, 0.0 }
  0xe5   :  { %v1316_v41 = vpop.f32.mrf.mxu2  ;;  %v1441_v42 = vpop.f32.mrf.mxu3 }
  0xe6   :  { %v1600_v46 = vmax.f32 %v1316_v41, %v1441_v42  ;;  %v1069_v47 = vpop.f32.mrf.mxu0  ;;  %v1194_v48 = vpop.f32.mrf.mxu1 }
  0xe7   :  { %v1551_v62 = vmax.f32 %v1069_v47, %v1194_v48 }
  0xe8   :  { %v1650_v53 = vmax.f32 %v1550_v45, %v1600_v46 }
  0xe9   :  { %2315 = vmatmul.msk.bf16.gmra.mxu0 %vm722_vm2, %v2415_v43  ;;  %2340 = vmatmul.msk.bf16.gmra.mxu1 %vm722_vm2, %v2440_v44 }
  0xea   :  { %v1704_v54 = vadd.f32 %v2831_v52, %v1650_v53  ;;  %2365 = vmatmul.msk.bf16.gmra.mxu2 %vm722_vm2, %v2465_v49  ;;  %2390 = vmatmul.msk.bf16.gmra.mxu3 %vm722_vm2, %v2490_v50  ;;  %v2418_v49 = vld [vmem:[%s3220_s0 + $0x88] sm:$0xff]  ;;  %v2443_v50 = vld [vmem:[%s3220_s0 + $0x150] sm:$0xff] }
  0xec   :  { %v1754_v56 = vmax.f32 %v1704_v54, 0.0 }
  0xed   :  { %v1319_v57 = vpop.f32.mrf.mxu2  ;;  %v1444_v58 = vpop.f32.mrf.mxu3 }
  0xee   :  { %v2530_v59 = vpack.c.bf16 %v1754_v56, %v1753_v55  ;;  %v1071_v60 = vpop.f32.mrf.mxu0  ;;  %v1196_v61 = vpop.f32.mrf.mxu1  ;;  %v1601_v63 = vmax.f32 %v1319_v57, %v1444_v58  ;;  %v2468_v56 = vld [vmem:[%s3220_s0 + $0x218] sm:$0xff]  ;;  %v2493_v57 = vld [vmem:[%s3220_s0 + $0x2e0] sm:$0xff] }
  0xef   :  { %v1552_v5 = vmax.f32 %v1071_v60, %v1196_v61 }
  0xf0   :  { %2631 = vst [vmem:[%s3222_s3 + $0x28] sm:$0xff] %v2530_v59   ;;  %v1651_v0 = vmax.f32 %v1551_v62, %v1601_v63 }
  0xf2   :  { %v1705_v11 = vadd.f32 %v2831_v52, %v1651_v0 }
  0xf4   :  { %v1755_v14 = vmax.f32 %v1705_v11, 0.0 }
  0xf5   :  { %v1321_v1 = vpop.f32.mrf.mxu2  ;;  %v1446_v2 = vpop.f32.mrf.mxu3 }
  0xf6   :  { %v1602_v6 = vmax.f32 %v1321_v1, %v1446_v2  ;;  %v1074_v7 = vpop.f32.mrf.mxu0  ;;  %v1199_v8 = vpop.f32.mrf.mxu1 }
  0xf7   :  { %v1553_v21 = vmax.f32 %v1074_v7, %v1199_v8 }
  0xf8   :  { %v1652_v12 = vmax.f32 %v1552_v5, %v1602_v6 }
  0xf9   :  { %2316 = vmatmul.msk.bf16.gmra.mxu0 %vm722_vm2, %v2416_v3  ;;  %2341 = vmatmul.msk.bf16.gmra.mxu1 %vm722_vm2, %v2441_v4 }
  0xfa   :  { %v1706_v13 = vadd.f32 %v2831_v52, %v1652_v12  ;;  %2366 = vmatmul.msk.bf16.gmra.mxu2 %vm722_vm2, %v2466_v9  ;;  %2391 = vmatmul.msk.bf16.gmra.mxu3 %vm722_vm2, %v2491_v10  ;;  %v2419_v9 = vld [vmem:[%s3220_s0 + $0x90] sm:$0xff]  ;;  %v2444_v10 = vld [vmem:[%s3220_s0 + $0x158] sm:$0xff] }
  0xfc   :  { %v1756_v15 = vmax.f32 %v1706_v13, 0.0 }
  0xfd   :  { %v1324_v16 = vpop.f32.mrf.mxu2  ;;  %v1449_v17 = vpop.f32.mrf.mxu3 }
  0xfe   :  { %v2535_v18 = vpack.c.bf16 %v1756_v15, %v1755_v14  ;;  %v1076_v19 = vpop.f32.mrf.mxu0  ;;  %v1201_v20 = vpop.f32.mrf.mxu1  ;;  %v1603_v22 = vmax.f32 %v1324_v16, %v1449_v17  ;;  %v2469_v15 = vld [vmem:[%s3220_s0 + $0x220] sm:$0xff]  ;;  %v2494_v16 = vld [vmem:[%s3220_s0 + $0x2e8] sm:$0xff] }
  0xff   :  { %v1554_v28 = vmax.f32 %v1076_v19, %v1201_v20 }
 0x100   :  { %2632 = vst [vmem:[%s3222_s3 + $0x30] sm:$0xff] %v2535_v18   ;;  %v1653_v23 = vmax.f32 %v1553_v21, %v1603_v22 }
 0x102   :  { %v1707_v34 = vadd.f32 %v2831_v52, %v1653_v23 }
 0x104   :  { %v1757_v37 = vmax.f32 %v1707_v34, 0.0 }
 0x105   :  { %v1326_v24 = vpop.f32.mrf.mxu2  ;;  %v1451_v25 = vpop.f32.mrf.mxu3 }
 0x106   :  { %v1604_v29 = vmax.f32 %v1326_v24, %v1451_v25  ;;  %v1079_v30 = vpop.f32.mrf.mxu0  ;;  %v1204_v31 = vpop.f32.mrf.mxu1 }
 0x107   :  { %v1555_v44 = vmax.f32 %v1079_v30, %v1204_v31 }
 0x108   :  { %v1654_v35 = vmax.f32 %v1554_v28, %v1604_v29 }
 0x109   :  { %2317 = vmatmul.msk.bf16.gmra.mxu0 %vm722_vm2, %v2417_v26  ;;  %2342 = vmatmul.msk.bf16.gmra.mxu1 %vm722_vm2, %v2442_v27 }
 0x10a   :  { %v1708_v36 = vadd.f32 %v2831_v52, %v1654_v35  ;;  %2367 = vmatmul.msk.bf16.gmra.mxu2 %vm722_vm2, %v2467_v32  ;;  %2392 = vmatmul.msk.bf16.gmra.mxu3 %vm722_vm2, %v2492_v33  ;;  %v2420_v32 = vld [vmem:[%s3220_s0 + $0x98] sm:$0xff]  ;;  %v2445_v33 = vld [vmem:[%s3220_s0 + $0x160] sm:$0xff] }
 0x10c   :  { %v1758_v38 = vmax.f32 %v1708_v36, 0.0 }
 0x10d   :  { %v1329_v39 = vpop.f32.mrf.mxu2  ;;  %v1454_v40 = vpop.f32.mrf.mxu3 }
 0x10e   :  { %v2540_v41 = vpack.c.bf16 %v1758_v38, %v1757_v37  ;;  %v1081_v42 = vpop.f32.mrf.mxu0  ;;  %v1206_v43 = vpop.f32.mrf.mxu1  ;;  %v1605_v45 = vmax.f32 %v1329_v39, %v1454_v40  ;;  %v2470_v38 = vld [vmem:[%s3220_s0 + $0x228] sm:$0xff]  ;;  %v2495_v39 = vld [vmem:[%s3220_s0 + $0x2f0] sm:$0xff] }
 0x10f   :  { %v1556_v51 = vmax.f32 %v1081_v42, %v1206_v43 }
 0x110   :  { %2633 = vst [vmem:[%s3222_s3 + $0x38] sm:$0xff] %v2540_v41   ;;  %v1655_v46 = vmax.f32 %v1555_v44, %v1605_v45 }
 0x112   :  { %v1709_v58 = vadd.f32 %v2831_v52, %v1655_v46 }
 0x114   :  { %v1759_v61 = vmax.f32 %v1709_v58, 0.0 }
 0x115   :  { %v1331_v47 = vpop.f32.mrf.mxu2  ;;  %v1456_v48 = vpop.f32.mrf.mxu3 }
 0x116   :  { %v1606_v53 = vmax.f32 %v1331_v47, %v1456_v48  ;;  %v1084_v54 = vpop.f32.mrf.mxu0  ;;  %v1209_v55 = vpop.f32.mrf.mxu1 }
 0x117   :  { %v1557_v4 = vmax.f32 %v1084_v54, %v1209_v55 }
 0x118   :  { %v1656_v59 = vmax.f32 %v1556_v51, %v1606_v53 }
 0x119   :  { %2318 = vmatmul.msk.bf16.gmra.mxu0 %vm722_vm2, %v2418_v49  ;;  %2343 = vmatmul.msk.bf16.gmra.mxu1 %vm722_vm2, %v2443_v50 }
 0x11a   :  { %v1710_v60 = vadd.f32 %v2831_v52, %v1656_v59  ;;  %2368 = vmatmul.msk.bf16.gmra.mxu2 %vm722_vm2, %v2468_v56  ;;  %2393 = vmatmul.msk.bf16.gmra.mxu3 %vm722_vm2, %v2493_v57  ;;  %v2421_v56 = vld [vmem:[%s3220_s0 + $0xa0] sm:$0xff]  ;;  %v2446_v57 = vld [vmem:[%s3220_s0 + $0x168] sm:$0xff] }
 0x11c   :  { %v1760_v62 = vmax.f32 %v1710_v60, 0.0 }
 0x11d   :  { %v1334_v63 = vpop.f32.mrf.mxu2  ;;  %v1459_v0 = vpop.f32.mrf.mxu3 }
 0x11e   :  { %v2545_v1 = vpack.c.bf16 %v1760_v62, %v1759_v61  ;;  %v1086_v2 = vpop.f32.mrf.mxu0  ;;  %v1211_v3 = vpop.f32.mrf.mxu1  ;;  %v1607_v5 = vmax.f32 %v1334_v63, %v1459_v0  ;;  %v2471_v62 = vld [vmem:[%s3220_s0 + $0x230] sm:$0xff]  ;;  %v2496_v63 = vld [vmem:[%s3220_s0 + $0x2f8] sm:$0xff] }
 0x11f   :  { %v1558_v11 = vmax.f32 %v1086_v2, %v1211_v3 }
 0x120   :  { %2634 = vst [vmem:[%s3222_s3 + $0x40] sm:$0xff] %v2545_v1   ;;  %v1657_v6 = vmax.f32 %v1557_v4, %v1607_v5 }
 0x122   :  { %v1711_v17 = vadd.f32 %v2831_v52, %v1657_v6 }
 0x124   :  { %v1761_v20 = vmax.f32 %v1711_v17, 0.0 }
 0x125   :  { %v1336_v7 = vpop.f32.mrf.mxu2  ;;  %v1461_v8 = vpop.f32.mrf.mxu3 }
 0x126   :  { %v1608_v12 = vmax.f32 %v1336_v7, %v1461_v8  ;;  %v1089_v13 = vpop.f32.mrf.mxu0  ;;  %v1214_v14 = vpop.f32.mrf.mxu1 }
 0x127   :  { %v1559_v27 = vmax.f32 %v1089_v13, %v1214_v14 }
 0x128   :  { %v1658_v18 = vmax.f32 %v1558_v11, %v1608_v12 }
 0x129   :  { %2319 = vmatmul.msk.bf16.gmra.mxu0 %vm722_vm2, %v2419_v9  ;;  %2344 = vmatmul.msk.bf16.gmra.mxu1 %vm722_vm2, %v2444_v10 }
 0x12a   :  { %v1712_v19 = vadd.f32 %v2831_v52, %v1658_v18  ;;  %2369 = vmatmul.msk.bf16.gmra.mxu2 %vm722_vm2, %v2469_v15  ;;  %2394 = vmatmul.msk.bf16.gmra.mxu3 %vm722_vm2, %v2494_v16  ;;  %v2422_v15 = vld [vmem:[%s3220_s0 + $0xa8] sm:$0xff]  ;;  %v2447_v16 = vld [vmem:[%s3220_s0 + $0x170] sm:$0xff] }
 0x12c   :  { %v1762_v21 = vmax.f32 %v1712_v19, 0.0 }
 0x12d   :  { %v1339_v22 = vpop.f32.mrf.mxu2  ;;  %v1464_v23 = vpop.f32.mrf.mxu3 }
 0x12e   :  { %v2550_v24 = vpack.c.bf16 %v1762_v21, %v1761_v20  ;;  %v1091_v25 = vpop.f32.mrf.mxu0  ;;  %v1216_v26 = vpop.f32.mrf.mxu1  ;;  %v1609_v28 = vmax.f32 %v1339_v22, %v1464_v23  ;;  %v2472_v21 = vld [vmem:[%s3220_s0 + $0x238] sm:$0xff]  ;;  %v2497_v22 = vld [vmem:[%s3220_s0 + $0x300] sm:$0xff] }
 0x12f   :  { %v1560_v34 = vmax.f32 %v1091_v25, %v1216_v26 }
 0x130   :  { %2635 = vst [vmem:[%s3222_s3 + $0x48] sm:$0xff] %v2550_v24   ;;  %v1659_v29 = vmax.f32 %v1559_v27, %v1609_v28 }
 0x132   :  { %v1713_v40 = vadd.f32 %v2831_v52, %v1659_v29 }
 0x134   :  { %v1763_v43 = vmax.f32 %v1713_v40, 0.0 }
 0x135   :  { %v1341_v30 = vpop.f32.mrf.mxu2  ;;  %v1466_v31 = vpop.f32.mrf.mxu3 }
 0x136   :  { %v1610_v35 = vmax.f32 %v1341_v30, %v1466_v31  ;;  %v1094_v36 = vpop.f32.mrf.mxu0  ;;  %v1219_v37 = vpop.f32.mrf.mxu1 }
 0x137   :  { %v1561_v50 = vmax.f32 %v1094_v36, %v1219_v37 }
 0x138   :  { %v1660_v41 = vmax.f32 %v1560_v34, %v1610_v35 }
 0x139   :  { %2320 = vmatmul.msk.bf16.gmra.mxu0 %vm722_vm2, %v2420_v32  ;;  %2345 = vmatmul.msk.bf16.gmra.mxu1 %vm722_vm2, %v2445_v33 }
 0x13a   :  { %v1714_v42 = vadd.f32 %v2831_v52, %v1660_v41  ;;  %2370 = vmatmul.msk.bf16.gmra.mxu2 %vm722_vm2, %v2470_v38  ;;  %2395 = vmatmul.msk.bf16.gmra.mxu3 %vm722_vm2, %v2495_v39  ;;  %v2423_v38 = vld [vmem:[%s3220_s0 + $0xb0] sm:$0xff]  ;;  %v2448_v39 = vld [vmem:[%s3220_s0 + $0x178] sm:$0xff] }
 0x13c   :  { %v1764_v44 = vmax.f32 %v1714_v42, 0.0 }
 0x13d   :  { %v1344_v45 = vpop.f32.mrf.mxu2  ;;  %v1469_v46 = vpop.f32.mrf.mxu3 }
 0x13e   :  { %v2555_v47 = vpack.c.bf16 %v1764_v44, %v1763_v43  ;;  %v1096_v48 = vpop.f32.mrf.mxu0  ;;  %v1221_v49 = vpop.f32.mrf.mxu1  ;;  %v1611_v51 = vmax.f32 %v1344_v45, %v1469_v46  ;;  %v2473_v44 = vld [vmem:[%s3220_s0 + $0x240] sm:$0xff]  ;;  %v2498_v45 = vld [vmem:[%s3220_s0 + $0x308] sm:$0xff] }
 0x13f   :  { %v1562_v58 = vmax.f32 %v1096_v48, %v1221_v49 }
 0x140   :  { %2636 = vst [vmem:[%s3222_s3 + $0x50] sm:$0xff] %v2555_v47   ;;  %v1661_v53 = vmax.f32 %v1561_v50, %v1611_v51 }
 0x142   :  { %v1715_v0 = vadd.f32 %v2831_v52, %v1661_v53 }
 0x144   :  { %v1765_v3 = vmax.f32 %v1715_v0, 0.0 }
 0x145   :  { %v1346_v54 = vpop.f32.mrf.mxu2  ;;  %v1471_v55 = vpop.f32.mrf.mxu3 }
 0x146   :  { %v1612_v59 = vmax.f32 %v1346_v54, %v1471_v55  ;;  %v1099_v60 = vpop.f32.mrf.mxu0  ;;  %v1224_v61 = vpop.f32.mrf.mxu1 }
 0x147   :  { %v1563_v10 = vmax.f32 %v1099_v60, %v1224_v61 }
 0x148   :  { %v1662_v1 = vmax.f32 %v1562_v58, %v1612_v59 }
 0x149   :  { %2321 = vmatmul.msk.bf16.gmra.mxu0 %vm722_vm2, %v2421_v56  ;;  %2346 = vmatmul.msk.bf16.gmra.mxu1 %vm722_vm2, %v2446_v57 }
 0x14a   :  { %v1716_v2 = vadd.f32 %v2831_v52, %v1662_v1  ;;  %2371 = vmatmul.msk.bf16.gmra.mxu2 %vm722_vm2, %v2471_v62  ;;  %2396 = vmatmul.msk.bf16.gmra.mxu3 %vm722_vm2, %v2496_v63  ;;  %v2424_v62 = vld [vmem:[%s3220_s0 + $0xb8] sm:$0xff]  ;;  %v2449_v63 = vld [vmem:[%s3220_s0 + $0x180] sm:$0xff] }
 0x14c   :  { %v1766_v4 = vmax.f32 %v1716_v2, 0.0 }
 0x14d   :  { %v1349_v5 = vpop.f32.mrf.mxu2  ;;  %v1474_v6 = vpop.f32.mrf.mxu3 }
 0x14e   :  { %v2560_v7 = vpack.c.bf16 %v1766_v4, %v1765_v3  ;;  %v1101_v8 = vpop.f32.mrf.mxu0  ;;  %v1226_v9 = vpop.f32.mrf.mxu1  ;;  %v1613_v11 = vmax.f32 %v1349_v5, %v1474_v6  ;;  %v2474_v4 = vld [vmem:[%s3220_s0 + $0x248] sm:$0xff]  ;;  %v2499_v5 = vld [vmem:[%s3220_s0 + $0x310] sm:$0xff] }
 0x14f   :  { %v1564_v17 = vmax.f32 %v1101_v8, %v1226_v9 }
 0x150   :  { %2637 = vst [vmem:[%s3222_s3 + $0x58] sm:$0xff] %v2560_v7   ;;  %v1663_v12 = vmax.f32 %v1563_v10, %v1613_v11 }
 0x152   :  { %v1717_v23 = vadd.f32 %v2831_v52, %v1663_v12 }
 0x154   :  { %v1767_v26 = vmax.f32 %v1717_v23, 0.0 }
 0x155   :  { %v1351_v13 = vpop.f32.mrf.mxu2  ;;  %v1476_v14 = vpop.f32.mrf.mxu3 }
 0x156   :  { %v1614_v18 = vmax.f32 %v1351_v13, %v1476_v14  ;;  %v1104_v19 = vpop.f32.mrf.mxu0  ;;  %v1229_v20 = vpop.f32.mrf.mxu1 }
 0x157   :  { %v1565_v33 = vmax.f32 %v1104_v19, %v1229_v20 }
 0x158   :  { %v1664_v24 = vmax.f32 %v1564_v17, %v1614_v18 }
 0x159   :  { %2322 = vmatmul.msk.bf16.gmra.mxu0 %vm722_vm2, %v2422_v15  ;;  %2347 = vmatmul.msk.bf16.gmra.mxu1 %vm722_vm2, %v2447_v16 }
 0x15a   :  { %v1718_v25 = vadd.f32 %v2831_v52, %v1664_v24  ;;  %2372 = vmatmul.msk.bf16.gmra.mxu2 %vm722_vm2, %v2472_v21  ;;  %2397 = vmatmul.msk.bf16.gmra.mxu3 %vm722_vm2, %v2497_v22  ;;  %v2425_v21 = vld [vmem:[%s3220_s0 + $0xc0] sm:$0xff]  ;;  %v2450_v22 = vld [vmem:[%s3220_s0 + $0x188] sm:$0xff] }
 0x15c   :  { %v1768_v27 = vmax.f32 %v1718_v25, 0.0 }
 0x15d   :  { %v1354_v28 = vpop.f32.mrf.mxu2  ;;  %v1479_v29 = vpop.f32.mrf.mxu3 }
 0x15e   :  { %v2565_v30 = vpack.c.bf16 %v1768_v27, %v1767_v26  ;;  %v1106_v31 = vpop.f32.mrf.mxu0  ;;  %v1231_v32 = vpop.f32.mrf.mxu1  ;;  %v1615_v34 = vmax.f32 %v1354_v28, %v1479_v29  ;;  %v2475_v27 = vld [vmem:[%s3220_s0 + $0x250] sm:$0xff]  ;;  %v2500_v28 = vld [vmem:[%s3220_s0 + $0x318] sm:$0xff] }
 0x15f   :  { %v1566_v40 = vmax.f32 %v1106_v31, %v1231_v32 }
 0x160   :  { %2638 = vst [vmem:[%s3222_s3 + $0x60] sm:$0xff] %v2565_v30   ;;  %v1665_v35 = vmax.f32 %v1565_v33, %v1615_v34 }
 0x162   :  { %v1719_v46 = vadd.f32 %v2831_v52, %v1665_v35 }
 0x164   :  { %v1769_v49 = vmax.f32 %v1719_v46, 0.0 }
 0x165   :  { %v1356_v36 = vpop.f32.mrf.mxu2  ;;  %v1481_v37 = vpop.f32.mrf.mxu3 }
 0x166   :  { %v1616_v41 = vmax.f32 %v1356_v36, %v1481_v37  ;;  %v1109_v42 = vpop.f32.mrf.mxu0  ;;  %v1234_v43 = vpop.f32.mrf.mxu1 }
 0x167   :  { %v1567_v57 = vmax.f32 %v1109_v42, %v1234_v43 }
 0x168   :  { %v1666_v47 = vmax.f32 %v1566_v40, %v1616_v41 }
 0x169   :  { %2323 = vmatmul.msk.bf16.gmra.mxu0 %vm722_vm2, %v2423_v38  ;;  %2348 = vmatmul.msk.bf16.gmra.mxu1 %vm722_vm2, %v2448_v39 }
 0x16a   :  { %v1720_v48 = vadd.f32 %v2831_v52, %v1666_v47  ;;  %2373 = vmatmul.msk.bf16.gmra.mxu2 %vm722_vm2, %v2473_v44  ;;  %2398 = vmatmul.msk.bf16.gmra.mxu3 %vm722_vm2, %v2498_v45 }
 0x16c   :  { %v1770_v50 = vmax.f32 %v1720_v48, 0.0 }
 0x16d   :  { %v1359_v51 = vpop.f32.mrf.mxu2  ;;  %v1484_v53 = vpop.f32.mrf.mxu3 }
 0x16e   :  { %v2570_v54 = vpack.c.bf16 %v1770_v50, %v1769_v49  ;;  %v1111_v55 = vpop.f32.mrf.mxu0  ;;  %v1236_v56 = vpop.f32.mrf.mxu1  ;;  %v1617_v58 = vmax.f32 %v1359_v51, %v1484_v53 }
 0x16f   :  { %v1568_v0 = vmax.f32 %v1111_v55, %v1236_v56 }
 0x170   :  { %2639 = vst [vmem:[%s3222_s3 + $0x68] sm:$0xff] %v2570_v54   ;;  %v1667_v59 = vmax.f32 %v1567_v57, %v1617_v58 }
 0x172   :  { %v1721_v6 = vadd.f32 %v2831_v52, %v1667_v59 }
 0x174   :  { %v1771_v9 = vmax.f32 %v1721_v6, 0.0 }
 0x175   :  { %v1361_v60 = vpop.f32.mrf.mxu2  ;;  %v1486_v61 = vpop.f32.mrf.mxu3 }
 0x176   :  { %v1618_v1 = vmax.f32 %v1361_v60, %v1486_v61  ;;  %v1114_v2 = vpop.f32.mrf.mxu0  ;;  %v1239_v3 = vpop.f32.mrf.mxu1 }
 0x177   :  { %v1569_v16 = vmax.f32 %v1114_v2, %v1239_v3 }
 0x178   :  { %v1668_v7 = vmax.f32 %v1568_v0, %v1618_v1 }
 0x179   :  { %2324 = vmatmul.msk.bf16.gmra.mxu0 %vm722_vm2, %v2424_v62  ;;  %2349 = vmatmul.msk.bf16.gmra.mxu1 %vm722_vm2, %v2449_v63 }
 0x17a   :  { %v1722_v8 = vadd.f32 %v2831_v52, %v1668_v7  ;;  %2374 = vmatmul.msk.bf16.gmra.mxu2 %vm722_vm2, %v2474_v4  ;;  %2399 = vmatmul.msk.bf16.gmra.mxu3 %vm722_vm2, %v2499_v5 }
 0x17c   :  { %v1772_v10 = vmax.f32 %v1722_v8, 0.0 }
 0x17d   :  { %v1364_v11 = vpop.f32.mrf.mxu2  ;;  %v1489_v12 = vpop.f32.mrf.mxu3 }
 0x17e   :  { %v2575_v13 = vpack.c.bf16 %v1772_v10, %v1771_v9  ;;  %v1116_v14 = vpop.f32.mrf.mxu0  ;;  %v1241_v15 = vpop.f32.mrf.mxu1  ;;  %v1619_v17 = vmax.f32 %v1364_v11, %v1489_v12 }
 0x17f   :  { %v1570_v23 = vmax.f32 %v1116_v14, %v1241_v15 }
 0x180   :  { %2640 = vst [vmem:[%s3222_s3 + $0x70] sm:$0xff] %v2575_v13   ;;  %v1669_v18 = vmax.f32 %v1569_v16, %v1619_v17 }
 0x182   :  { %v1723_v29 = vadd.f32 %v2831_v52, %v1669_v18 }
 0x184   :  { %v1773_v32 = vmax.f32 %v1723_v29, 0.0 }
 0x185   :  { %v1366_v19 = vpop.f32.mrf.mxu2  ;;  %v1491_v20 = vpop.f32.mrf.mxu3 }
 0x186   :  { %v1620_v24 = vmax.f32 %v1366_v19, %v1491_v20  ;;  %v1119_v25 = vpop.f32.mrf.mxu0  ;;  %v1244_v26 = vpop.f32.mrf.mxu1 }
 0x187   :  { %v1571_v39 = vmax.f32 %v1119_v25, %v1244_v26 }
 0x188   :  { %v1670_v30 = vmax.f32 %v1570_v23, %v1620_v24 }
 0x189   :  { %2325 = vmatmul.msk.bf16.gmra.mxu0 %vm722_vm2, %v2425_v21  ;;  %2350 = vmatmul.msk.bf16.gmra.mxu1 %vm722_vm2, %v2450_v22 }
 0x18a   :  { %v1724_v31 = vadd.f32 %v2831_v52, %v1670_v30  ;;  %2375 = vmatmul.msk.bf16.gmra.mxu2 %vm722_vm2, %v2475_v27  ;;  %2400 = vmatmul.msk.bf16.gmra.mxu3 %vm722_vm2, %v2500_v28 }
 0x18c   :  { %v1774_v33 = vmax.f32 %v1724_v31, 0.0 }
 0x18d   :  { %v1369_v34 = vpop.f32.mrf.mxu2  ;;  %v1494_v35 = vpop.f32.mrf.mxu3 }
 0x18e   :  { %v2580_v36 = vpack.c.bf16 %v1774_v33, %v1773_v32  ;;  %v1121_v37 = vpop.f32.mrf.mxu0  ;;  %v1246_v38 = vpop.f32.mrf.mxu1  ;;  %v1621_v40 = vmax.f32 %v1369_v34, %v1494_v35 }
 0x18f   :  { %v1572_v44 = vmax.f32 %v1121_v37, %v1246_v38 }
 0x190   :  { %2641 = vst [vmem:[%s3222_s3 + $0x78] sm:$0xff] %v2580_v36   ;;  %v1671_v41 = vmax.f32 %v1571_v39, %v1621_v40 }
 0x192   :  { %v1725_v48 = vadd.f32 %v2831_v52, %v1671_v41  ;;  %v3187_v41 = vld [vmem:[%s3221_s2] ss:$0 sm:$0xff] }
 0x194   :  { %v1775_v51 = vmax.f32 %v1725_v48, 0.0 }
 0x195   :  { %v1371_v42 = vpop.f32.mrf.mxu2  ;;  %v1496_v43 = vpop.f32.mrf.mxu3 }
 0x196   :  { %v1622_v45 = vmax.f32 %v1371_v42, %v1496_v43  ;;  %v1124_v46 = vpop.f32.mrf.mxu0  ;;  %v1249_v47 = vpop.f32.mrf.mxu1 }
 0x197   :  { %v1573_v59 = vmax.f32 %v1124_v46, %v1249_v47 }
 0x198   :  { %v1672_v49 = vmax.f32 %v1572_v44, %v1622_v45 }
 0x19a   :  { %v1726_v50 = vadd.f32 %v2831_v52, %v1672_v49 }
 0x19c   :  { %v1776_v53 = vmax.f32 %v1726_v50, 0.0 }
 0x19d   :  { %v1374_v54 = vpop.f32.mrf.mxu2  ;;  %v1499_v55 = vpop.f32.mrf.mxu3 }
 0x19e   :  { %v2585_v56 = vpack.c.bf16 %v1776_v53, %v1775_v51  ;;  %v1126_v57 = vpop.f32.mrf.mxu0  ;;  %v1251_v58 = vpop.f32.mrf.mxu1  ;;  %v1623_v60 = vmax.f32 %v1374_v54, %v1499_v55 }
 0x19f   :  { %v1574_v0 = vmax.f32 %v1126_v57, %v1251_v58 }
 0x1a0   :  { %2642 = vst [vmem:[%s3222_s3 + $0x80] sm:$0xff] %v2585_v56   ;;  %v1673_v61 = vmax.f32 %v1573_v59, %v1623_v60 }
 0x1a2   :  { %v1727_v4 = vadd.f32 %v2831_v52, %v1673_v61 }
 0x1a4   :  { %v1777_v7 = vmax.f32 %v1727_v4, 0.0 }
 0x1a5   :  { %v1376_v62 = vpop.f32.mrf.mxu2  ;;  %v1501_v63 = vpop.f32.mrf.mxu3 }
 0x1a6   :  { %v1624_v1 = vmax.f32 %v1376_v62, %v1501_v63  ;;  %v1129_v2 = vpop.f32.mrf.mxu0  ;;  %v1254_v3 = vpop.f32.mrf.mxu1 }
 0x1a7   :  { %v1575_v14 = vmax.f32 %v1129_v2, %v1254_v3 }
 0x1a8   :  { %v1674_v5 = vmax.f32 %v1574_v0, %v1624_v1 }
 0x1aa   :  { %v1728_v6 = vadd.f32 %v2831_v52, %v1674_v5 }
 0x1ac   :  { %v1778_v8 = vmax.f32 %v1728_v6, 0.0 }
 0x1ad   :  { %v1379_v9 = vpop.f32.mrf.mxu2  ;;  %v1504_v10 = vpop.f32.mrf.mxu3 }
 0x1ae   :  { %v2590_v11 = vpack.c.bf16 %v1778_v8, %v1777_v7  ;;  %v1131_v12 = vpop.f32.mrf.mxu0  ;;  %v1256_v13 = vpop.f32.mrf.mxu1  ;;  %v1625_v15 = vmax.f32 %v1379_v9, %v1504_v10 }
 0x1af   :  { %v1576_v19 = vmax.f32 %v1131_v12, %v1256_v13 }
 0x1b0   :  { %2643 = vst [vmem:[%s3222_s3 + $0x88] sm:$0xff] %v2590_v11   ;;  %v1675_v16 = vmax.f32 %v1575_v14, %v1625_v15 }
 0x1b2   :  { %v1729_v23 = vadd.f32 %v2831_v52, %v1675_v16 }
 0x1b4   :  { %v1779_v26 = vmax.f32 %v1729_v23, 0.0 }
 0x1b5   :  { %v1381_v17 = vpop.f32.mrf.mxu2  ;;  %v1506_v18 = vpop.f32.mrf.mxu3 }
 0x1b6   :  { %v1626_v20 = vmax.f32 %v1381_v17, %v1506_v18  ;;  %v1134_v21 = vpop.f32.mrf.mxu0  ;;  %v1259_v22 = vpop.f32.mrf.mxu1 }
 0x1b7   :  { %v1577_v33 = vmax.f32 %v1134_v21, %v1259_v22 }
 0x1b8   :  { %v1676_v24 = vmax.f32 %v1576_v19, %v1626_v20 }
 0x1ba   :  { %v1730_v25 = vadd.f32 %v2831_v52, %v1676_v24 }
 0x1bc   :  { %v1780_v27 = vmax.f32 %v1730_v25, 0.0 }
 0x1bd   :  { %v1384_v28 = vpop.f32.mrf.mxu2  ;;  %v1509_v29 = vpop.f32.mrf.mxu3 }
 0x1be   :  { %v2595_v30 = vpack.c.bf16 %v1780_v27, %v1779_v26  ;;  %v1136_v31 = vpop.f32.mrf.mxu0  ;;  %v1261_v32 = vpop.f32.mrf.mxu1  ;;  %v1627_v34 = vmax.f32 %v1384_v28, %v1509_v29 }
 0x1bf   :  { %v1578_v38 = vmax.f32 %v1136_v31, %v1261_v32 }
 0x1c0   :  { %2644 = vst [vmem:[%s3222_s3 + $0x90] sm:$0xff] %v2595_v30   ;;  %v1677_v35 = vmax.f32 %v1577_v33, %v1627_v34 }
 0x1c2   :  { %v1731_v42 = vadd.f32 %v3187_v41, %v1677_v35 }
 0x1c4   :  { %v1781_v45 = vmax.f32 %v1731_v42, 0.0 }
 0x1c5   :  { %v1386_v36 = vpop.f32.mrf.mxu2  ;;  %v1511_v37 = vpop.f32.mrf.mxu3 }
 0x1c6   :  { %v1628_v39 = vmax.f32 %v1386_v36, %v1511_v37  ;;  %v1139_v40 = vpop.f32.mrf.mxu0  ;;  %v1264_v52 = vpop.f32.mrf.mxu1 }
 0x1c7   :  { %v1579_v53 = vmax.f32 %v1139_v40, %v1264_v52 }
 0x1c8   :  { %v1678_v43 = vmax.f32 %v1578_v38, %v1628_v39 }
 0x1ca   :  { %v1732_v44 = vadd.f32 %v3187_v41, %v1678_v43 }
 0x1cc   :  { %v1782_v46 = vmax.f32 %v1732_v44, 0.0 }
 0x1cd   :  { %v1389_v47 = vpop.f32.mrf.mxu2  ;;  %v1514_v48 = vpop.f32.mrf.mxu3 }
 0x1ce   :  { %v2600_v49 = vpack.c.bf16 %v1782_v46, %v1781_v45  ;;  %v1141_v50 = vpop.f32.mrf.mxu0  ;;  %v1266_v51 = vpop.f32.mrf.mxu1  ;;  %v1629_v54 = vmax.f32 %v1389_v47, %v1514_v48 }
 0x1cf   :  { %v1580_v58 = vmax.f32 %v1141_v50, %v1266_v51 }
 0x1d0   :  { %2645 = vst [vmem:[%s3222_s3 + $0x98] sm:$0xff] %v2600_v49   ;;  %v1679_v55 = vmax.f32 %v1579_v53, %v1629_v54 }
 0x1d2   :  { %v1733_v62 = vadd.f32 %v3187_v41, %v1679_v55 }
 0x1d4   :  { %v1783_v1 = vmax.f32 %v1733_v62, 0.0 }
 0x1d5   :  { %v1391_v56 = vpop.f32.mrf.mxu2  ;;  %v1516_v57 = vpop.f32.mrf.mxu3 }
 0x1d6   :  { %v1630_v59 = vmax.f32 %v1391_v56, %v1516_v57  ;;  %v1144_v60 = vpop.f32.mrf.mxu0  ;;  %v1269_v61 = vpop.f32.mrf.mxu1 }
 0x1d7   :  { %v1581_v8 = vmax.f32 %v1144_v60, %v1269_v61 }
 0x1d8   :  { %v1680_v63 = vmax.f32 %v1580_v58, %v1630_v59 }
 0x1da   :  { %v1734_v0 = vadd.f32 %v3187_v41, %v1680_v63 }
 0x1dc   :  { %v1784_v2 = vmax.f32 %v1734_v0, 0.0 }
 0x1dd   :  { %v1394_v3 = vpop.f32.mrf.mxu2  ;;  %v1519_v4 = vpop.f32.mrf.mxu3 }
 0x1de   :  { %v2605_v5 = vpack.c.bf16 %v1784_v2, %v1783_v1  ;;  %v1146_v6 = vpop.f32.mrf.mxu0  ;;  %v1271_v7 = vpop.f32.mrf.mxu1  ;;  %v1631_v9 = vmax.f32 %v1394_v3, %v1519_v4 }
 0x1df   :  { %v1582_v13 = vmax.f32 %v1146_v6, %v1271_v7 }
 0x1e0   :  { %2646 = vst [vmem:[%s3222_s3 + $0xa0] sm:$0xff] %v2605_v5   ;;  %v1681_v10 = vmax.f32 %v1581_v8, %v1631_v9 }
 0x1e2   :  { %v1735_v17 = vadd.f32 %v3187_v41, %v1681_v10 }
 0x1e4   :  { %v1785_v20 = vmax.f32 %v1735_v17, 0.0 }
 0x1e5   :  { %v1396_v11 = vpop.f32.mrf.mxu2  ;;  %v1521_v12 = vpop.f32.mrf.mxu3 }
 0x1e6   :  { %v1632_v14 = vmax.f32 %v1396_v11, %v1521_v12  ;;  %v1149_v15 = vpop.f32.mrf.mxu0  ;;  %v1274_v16 = vpop.f32.mrf.mxu1 }
 0x1e7   :  { %v1583_v27 = vmax.f32 %v1149_v15, %v1274_v16 }
 0x1e8   :  { %v1682_v18 = vmax.f32 %v1582_v13, %v1632_v14 }
 0x1ea   :  { %v1736_v19 = vadd.f32 %v3187_v41, %v1682_v18 }
 0x1ec   :  { %v1786_v21 = vmax.f32 %v1736_v19, 0.0 }
 0x1ed   :  { %v1399_v22 = vpop.f32.mrf.mxu2  ;;  %v1524_v23 = vpop.f32.mrf.mxu3 }
 0x1ee   :  { %v2610_v24 = vpack.c.bf16 %v1786_v21, %v1785_v20  ;;  %v1151_v25 = vpop.f32.mrf.mxu0  ;;  %v1276_v26 = vpop.f32.mrf.mxu1  ;;  %v1633_v28 = vmax.f32 %v1399_v22, %v1524_v23 }
 0x1ef   :  { %v1584_v32 = vmax.f32 %v1151_v25, %v1276_v26 }
 0x1f0   :  { %2647 = vst [vmem:[%s3222_s3 + $0xa8] sm:$0xff] %v2610_v24   ;;  %v1683_v29 = vmax.f32 %v1583_v27, %v1633_v28 }
 0x1f2   :  { %v1737_v36 = vadd.f32 %v3187_v41, %v1683_v29 }
 0x1f4   :  { %v1787_v39 = vmax.f32 %v1737_v36, 0.0 }
 0x1f5   :  { %v1401_v30 = vpop.f32.mrf.mxu2  ;;  %v1526_v31 = vpop.f32.mrf.mxu3 }
 0x1f6   :  { %v1634_v33 = vmax.f32 %v1401_v30, %v1526_v31  ;;  %v1154_v34 = vpop.f32.mrf.mxu0  ;;  %v1279_v35 = vpop.f32.mrf.mxu1 }
 0x1f7   :  { %v1585_v46 = vmax.f32 %v1154_v34, %v1279_v35 }
 0x1f8   :  { %v1684_v37 = vmax.f32 %v1584_v32, %v1634_v33 }
 0x1fa   :  { %v1738_v38 = vadd.f32 %v3187_v41, %v1684_v37 }
 0x1fc   :  { %v1788_v40 = vmax.f32 %v1738_v38, 0.0 }
 0x1fd   :  { %v1404_v52 = vpop.f32.mrf.mxu2  ;;  %v1529_v42 = vpop.f32.mrf.mxu3 }
 0x1fe   :  { %v2615_v43 = vpack.c.bf16 %v1788_v40, %v1787_v39  ;;  %v1156_v44 = vpop.f32.mrf.mxu0  ;;  %v1281_v45 = vpop.f32.mrf.mxu1  ;;  %v1635_v47 = vmax.f32 %v1404_v52, %v1529_v42 }
 0x1ff   :  { %v1586_v51 = vmax.f32 %v1156_v44, %v1281_v45 }
 0x200   :  { %2648 = vst [vmem:[%s3222_s3 + $0xb0] sm:$0xff] %v2615_v43   ;;  %v1685_v48 = vmax.f32 %v1585_v46, %v1635_v47 }
 0x202   :  { %v1739_v54 = vadd.f32 %v3187_v41, %v1685_v48 }
 0x204   :  { %v1789_v59 = vmax.f32 %v1739_v54, 0.0 }
 0x205   :  { %v1406_v49 = vpop.f32.mrf.mxu2  ;;  %v1531_v50 = vpop.f32.mrf.mxu3 }
 0x206   :  { %v1636_v53 = vmax.f32 %v1406_v49, %v1531_v50  ;;  %v1159_v56 = vpop.f32.mrf.mxu0  ;;  %v1284_v57 = vpop.f32.mrf.mxu1 }
 0x207   :  { %v1587_v0 = vmax.f32 %v1159_v56, %v1284_v57 }
 0x208   :  { %v1686_v55 = vmax.f32 %v1586_v51, %v1636_v53 }
 0x20a   :  { %v1740_v58 = vadd.f32 %v3187_v41, %v1686_v55 }
 0x20c   :  { %v1790_v60 = vmax.f32 %v1740_v58, 0.0 }
 0x20d   :  { %v1409_v61 = vpop.f32.mrf.mxu2  ;;  %v1534_v62 = vpop.f32.mrf.mxu3 }
 0x20e   :  { %v2620_v63 = vpack.c.bf16 %v1790_v60, %v1789_v59  ;;  %v1637_v1 = vmax.f32 %v1409_v61, %v1534_v62  ;;  %v1161_v2 = vpop.f32.mrf.mxu0  ;;  %v1286_v3 = vpop.f32.mrf.mxu1 }
 0x20f   :  { %v1588_v7 = vmax.f32 %v1161_v2, %v1286_v3 }
 0x210   :  { %2649 = vst [vmem:[%s3222_s3 + $0xb8] sm:$0xff] %v2620_v63   ;;  %v1687_v4 = vmax.f32 %v1587_v0, %v1637_v1 }
 0x212   :  { %v1741_v9 = vadd.f32 %v3187_v41, %v1687_v4 }
 0x214   :  { %v1791_v12 = vmax.f32 %v1741_v9, 0.0 }
 0x215   :  { %v1411_v5 = vpop.f32.mrf.mxu2  ;;  %v1536_v6 = vpop.f32.mrf.mxu3 }
 0x216   :  { %v1638_v8 = vmax.f32 %v1411_v5, %v1536_v6 }
 0x218   :  { %v1688_v10 = vmax.f32 %v1588_v7, %v1638_v8 }
 0x21a   :  { %v1742_v11 = vadd.f32 %v3187_v41, %v1688_v10 }
 0x21c   :  { %v1792_v13 = vmax.f32 %v1742_v11, 0.0 }
 0x21e   :  { %v2625_v14 = vpack.c.bf16 %v1792_v13, %v1791_v12 }
 0x220   :  { %2650 = vst [vmem:[%s3222_s3 + $0xc0] sm:$0xff] %v2625_v14  }

// kernel: cnn1_forward.4
= control target key start
LH: loop header
LB: loop body
LE: loop exit
PB: predicated region body
PF: predicated region fallthrough
CT: control target
= control target key end

     0   :  { %vm691_vm0 = vcmask 261120   ;;  %s2803_s1 = inlined_call_operand.vmem [shape: bf16[288,128], index: 1, kind: input, shape index: {}]   ;;  %s2804_s0 = inlined_call_operand.vmem [shape: bf16[4,112,288], index: 0, kind: input, shape index: {}]   ;;  %s2805_s2 = inlined_call_operand.vmem [shape: f32[1,128], index: 2, kind: input, shape index: {}]   ;;  %s2806_s3 = inlined_call_operand.vmem [shape: bf16[112,128], index: 3, kind: output, shape index: {}]  }
   0x1   :  { %v1856_v0 = vld [vmem:[%s2803_s1 + $0x38] sm:$0xff]  ;;  %v1956_v2 = vld [vmem:[%s2803_s1 + $0x88] sm:$0xff]  ;;  %v1855_v3 = vld [vmem:[%s2803_s1 + $0x30] sm:$0xff] }
   0x2   :  { %v1864_v1 = vld [vmem:[%s2803_s1 + $0x78] sm:$0xff]  ;;  %776 = vmatpush.bf16.msra.mxu0 %v1856_v0  ;;  %1908 = vmatpush.bf16.msra.mxu3 %v1856_v0  ;;  %v1863_v4 = vld [vmem:[%s2803_s1 + $0x70] sm:$0xff]  ;;  %v1968_v5 = vld [vmem:[%s2803_s1 + $0x80] sm:$0xff] }
   0x3   :  { %925 = vmatpush.bf16.msra.mxu1 %v1864_v1  ;;  %1080 = vmatpush.bf16.msra.mxu2 %v1956_v2  ;;  %v1339_v6 = vld [vmem:[%s2804_s0 + $0x8] sm:$0xf]  ;;  %v1767_v7 = vld [vmem:[%s2804_s0 + $0x10] sm:$0xf0]  ;;  %v1853_v11 = vld [vmem:[%s2803_s1 + $0x20] sm:$0xff] }
   0x4   :  { %v1340_v8 = vor.u32 %v1767_v7, %v1339_v6  ;;  %v1854_v9 = vld [vmem:[%s2803_s1 + $0x28] sm:$0xff]  ;;  %v1861_v12 = vld [vmem:[%s2803_s1 + $0x60] sm:$0xff]  ;;  %v1852_v13 = vld [vmem:[%s2803_s1 + $0x18] sm:$0xff] }
   0x5   :  { %v1862_v10 = vld [vmem:[%s2803_s1 + $0x68] sm:$0xff]  ;;  %v1860_v14 = vld [vmem:[%s2803_s1 + $0x58] sm:$0xff]  ;;  %v1851_v15 = vld [vmem:[%s2803_s1 + $0x10] sm:$0xff] }
   0x6   :  { %777 = vmatpush.bf16.msra.mxu0 %v1855_v3  ;;  %1909 = vmatpush.bf16.msra.mxu3 %v1855_v3  ;;  %v1859_v16 = vld [vmem:[%s2803_s1 + $0x50] sm:$0xff]  ;;  %v1351_v17 = vld [vmem:[%s2804_s0 + $0x20] sm:$0xf]  ;;  %v1770_v18 = vld [vmem:[%s2804_s0 + $0x28] sm:$0xf0] }
   0x7   :  { %926 = vmatpush.bf16.msra.mxu1 %v1863_v4  ;;  %1081 = vmatpush.bf16.msra.mxu2 %v1968_v5  ;;  %v1352_v19 = vor.u32 %v1770_v18, %v1351_v17  ;;  %v1850_v20 = vld [vmem:[%s2803_s1 + $0x8] sm:$0xff]  ;;  %v1849_v22 = vld [vmem:[%s2803_s1] sm:$0xff]  ;;  %v1583_v26 = vld [vmem:[%s2804_s0 + $0x1f8] sm:$0xf] }
   0x8   :  { %v1858_v21 = vld [vmem:[%s2803_s1 + $0x48] sm:$0xff]  ;;  %v1857_v23 = vld [vmem:[%s2803_s1 + $0x40] sm:$0xff]  ;;  %v1333_v29 = vld [vmem:[%s2804_s0 + $0xc] sm:$0xf0] }
   0x9   :  { %v1331_v24 = vld [vmem:[%s2804_s0] sm:$0xf]  ;;  %v1766_v25 = vld [vmem:[%s2804_s0 + $0x8] sm:$0xf0]  ;;  %v1829_v27 = vld [vmem:[%s2804_s0 + $0x200] sm:$0xf0] }
   0xa   :  { %1737 = vmatmul.msk.bf16.vlgmr.msra.gmra.mxu2 %vm691_vm0, %v1340_v8  ;;  %778 = vmatpush.bf16.msra.mxu0 %v1854_v9  ;;  %v1765_v28 = vld [vmem:[%s2804_s0 + $0x4] sm:$0xf]  ;;  %v1332_v30 = vor.u32 %v1766_v25, %v1331_v24  ;;  %v1584_v31 = vor.u32 %v1829_v27, %v1583_v26  ;;  %v1363_v33 = vld [vmem:[%s2804_s0 + $0x38] sm:$0xf]  ;;  %v1595_v38 = vld [vmem:[%s2804_s0 + $0x210] sm:$0xf] }
   0xb   :  { %1910 = vmatpush.bf16.msra.mxu3 %v1854_v9  ;;  %927 = vmatpush.bf16.msra.mxu1 %v1862_v10  ;;  %v1336_v32 = vor.u32 %v1765_v28, %v1333_v29  ;;  %v1773_v34 = vld [vmem:[%s2804_s0 + $0x40] sm:$0xf0]  ;;  %v1343_v36 = vld [vmem:[%s2804_s0 + $0x18] sm:$0xf]  ;;  %v1832_v39 = vld [vmem:[%s2804_s0 + $0x218] sm:$0xf0] }
   0xc   :  { %v1364_v35 = vor.u32 %v1773_v34, %v1363_v33  ;;  %v1769_v37 = vld [vmem:[%s2804_s0 + $0x20] sm:$0xf0]  ;;  %v1768_v40 = vld [vmem:[%s2804_s0 + $0x1c] sm:$0xf]  ;;  %v1345_v41 = vld [vmem:[%s2804_s0 + $0x24] sm:$0xf0]  ;;  %v1596_v43 = vor.u32 %v1832_v39, %v1595_v38 }
   0xd   :  { %v1344_v42 = vor.u32 %v1769_v37, %v1343_v36  ;;  %v1348_v44 = vor.u32 %v1768_v40, %v1345_v41  ;;  %v1375_v45 = vld [vmem:[%s2804_s0 + $0x50] sm:$0xf]  ;;  %v1776_v46 = vld [vmem:[%s2804_s0 + $0x58] sm:$0xf0]  ;;  %v1607_v50 = vld [vmem:[%s2804_s0 + $0x228] sm:$0xf] }
   0xe   :  { %779 = vmatpush.bf16.msra.mxu0 %v1853_v11  ;;  %v1376_v47 = vor.u32 %v1776_v46, %v1375_v45  ;;  %v1355_v48 = vld [vmem:[%s2804_s0 + $0x30] sm:$0xf]  ;;  %v1772_v49 = vld [vmem:[%s2804_s0 + $0x38] sm:$0xf0]  ;;  %v1835_v51 = vld [vmem:[%s2804_s0 + $0x230] sm:$0xf0] }
   0xf   :  { %1911 = vmatpush.bf16.msra.mxu3 %v1853_v11  ;;  %928 = vmatpush.bf16.msra.mxu1 %v1861_v12  ;;  %v1771_v52 = vld [vmem:[%s2804_s0 + $0x34] sm:$0xf]  ;;  %v1357_v53 = vld [vmem:[%s2804_s0 + $0x3c] sm:$0xf0]  ;;  %v1356_v54 = vor.u32 %v1772_v49, %v1355_v48  ;;  %v1608_v55 = vor.u32 %v1835_v51, %v1607_v50  ;;  %v1387_v57 = vld [vmem:[%s2804_s0 + $0x68] sm:$0xf] }
  0x10   :  { %v1360_v56 = vor.u32 %v1771_v52, %v1357_v53  ;;  %v1779_v58 = vld [vmem:[%s2804_s0 + $0x70] sm:$0xf0]  ;;  %v1367_v60 = vld [vmem:[%s2804_s0 + $0x48] sm:$0xf]  ;;  %v1619_v62 = vld [vmem:[%s2804_s0 + $0x240] sm:$0xf] }
  0x11   :  { %v1388_v59 = vor.u32 %v1779_v58, %v1387_v57  ;;  %v1775_v61 = vld [vmem:[%s2804_s0 + $0x50] sm:$0xf0]  ;;  %v1838_v63 = vld [vmem:[%s2804_s0 + $0x248] sm:$0xf0]  ;;  %v1379_v8 = vld [vmem:[%s2804_s0 + $0x60] sm:$0xf] }
  0x12   :  { %780 = vmatpush.bf16.msra.mxu0 %v1852_v13  ;;  %v1774_v0 = vld [vmem:[%s2804_s0 + $0x4c] sm:$0xf]  ;;  %v1620_v3 = vor.u32 %v1838_v63, %v1619_v62  ;;  %v1841_v11 = vld [vmem:[%s2804_s0 + $0x260] sm:$0xf0]  ;;  %v1411_v17 = vld [vmem:[%s2804_s0 + $0x98] sm:$0xf] }
  0x13   :  { %1912 = vmatpush.bf16.msra.mxu3 %v1852_v13  ;;  %929 = vmatpush.bf16.msra.mxu1 %v1860_v14  ;;  %v1782_v6 = vld [vmem:[%s2804_s0 + $0x88] sm:$0xf0]  ;;  %v1381_v13 = vld [vmem:[%s2804_s0 + $0x6c] sm:$0xf0]  ;;  %v1785_v18 = vld [vmem:[%s2804_s0 + $0xa0] sm:$0xf0] }
  0x14   :  { %v1778_v9 = vld [vmem:[%s2804_s0 + $0x68] sm:$0xf0]  ;;  %v1780_v24 = vld [vmem:[%s2804_s0 + $0x7c] sm:$0xf]  ;;  %v1393_v25 = vld [vmem:[%s2804_s0 + $0x84] sm:$0xf0] }
  0x15   :  { %v1396_v28 = vor.u32 %v1780_v24, %v1393_v25  ;;  %v1423_v29 = vld [vmem:[%s2804_s0 + $0xb0] sm:$0xf]  ;;  %v1784_v33 = vld [vmem:[%s2804_s0 + $0x98] sm:$0xf0]  ;;  %v1655_v34 = vld [vmem:[%s2804_s0 + $0x288] sm:$0xf] }
  0x16   :  { %781 = vmatpush.bf16.msra.mxu0 %v1851_v15  ;;  %v1783_v36 = vld [vmem:[%s2804_s0 + $0x94] sm:$0xf]  ;;  %v1405_v37 = vld [vmem:[%s2804_s0 + $0x9c] sm:$0xf0]  ;;  %v1435_v41 = vld [vmem:[%s2804_s0 + $0xc8] sm:$0xf] }
  0x17   :  { %1913 = vmatpush.bf16.msra.mxu3 %v1851_v15  ;;  %930 = vmatpush.bf16.msra.mxu1 %v1859_v16  ;;  %v1408_v40 = vor.u32 %v1783_v36, %v1405_v37  ;;  %v1787_v45 = vld [vmem:[%s2804_s0 + $0xb0] sm:$0xf0]  ;;  %v1786_v46 = vld [vmem:[%s2804_s0 + $0xac] sm:$0xf]  ;;  %v1828_v48 = vld [vmem:[%s2804_s0 + $0x1fc] sm:$0xf] }
  0x18   :  { %v1585_v49 = vld [vmem:[%s2804_s0 + $0x204] sm:$0xf0]  ;;  %v1427_v58 = vld [vmem:[%s2804_s0 + $0xc0] sm:$0xf]  ;;  %v1831_v62 = vld [vmem:[%s2804_s0 + $0x214] sm:$0xf] }
  0x19   :  { %v1588_v53 = vor.u32 %v1828_v48, %v1585_v49  ;;  %v1597_v63 = vld [vmem:[%s2804_s0 + $0x21c] sm:$0xf0] }
  0x1a   :  { %1738 = vmatmul.msk.bf16.gmra.mxu2 %vm691_vm0, %v1352_v19  ;;  %782 = vmatpush.bf16.msra.mxu0 %v1850_v20  ;;  %v1412_v19 = vor.u32 %v1785_v18, %v1411_v17  ;;  %v1439_v17 = vld [vmem:[%s2804_s0 + $0xd8] sm:$0xf]  ;;  %v1793_v18 = vld [vmem:[%s2804_s0 + $0xe0] sm:$0xf0] }
  0x1b   :  { %1914 = vmatpush.bf16.msra.mxu3 %v1850_v20  ;;  %931 = vmatpush.bf16.msra.mxu1 %v1858_v21  ;;  %v1391_v20 = vld [vmem:[%s2804_s0 + $0x78] sm:$0xf]  ;;  %v1440_v25 = vor.u32 %v1793_v18, %v1439_v17 }
  0x1e   :  { %783 = vmatpush.bf16.msra.mxu0 %v1849_v22 }
  0x1f   :  { %1915 = vmatpush.bf16.msra.mxu3 %v1849_v22  ;;  %932 = vmatpush.bf16.msra.mxu1 %v1857_v23  ;;  %v1643_v22 = vld [vmem:[%s2804_s0 + $0x270] sm:$0xf] }
  0x21   :  { %784 = vmatmul.bf16.vlgmr.msra.gmra.mxu0 %v1332_v30  ;;  %v1788_v30 = vld [vmem:[%s2804_s0 + $0xb8] sm:$0xf0] }
  0x22   :  { %889 = vmatmul.bf16.vlgmr.msra.gmra.mxu3 %v1584_v31  ;;  %933 = vmatmul.bf16.vlgmr.msra.gmra.mxu1 %v1336_v32  ;;  %v1424_v31 = vor.u32 %v1788_v30, %v1423_v29  ;;  %v1403_v32 = vld [vmem:[%s2804_s0 + $0x90] sm:$0xf] }
  0x23   :  { %1916 = vmatpush.bf16.msrb.mxu3 %v1864_v1  ;;  %v1369_v1 = vld [vmem:[%s2804_s0 + $0x54] sm:$0xf0]  ;;  %v1404_v38 = vor.u32 %v1784_v33, %v1403_v32  ;;  %v1471_v32 = vld [vmem:[%s2804_s0 + $0x110] sm:$0xf]  ;;  %v1800_v33 = vld [vmem:[%s2804_s0 + $0x118] sm:$0xf0] }
  0x24   :  { %v1472_v37 = vor.u32 %v1800_v33, %v1471_v32  ;;  %v1801_v32 = vld [vmem:[%s2804_s0 + $0x124] sm:$0xf]  ;;  %v1477_v33 = vld [vmem:[%s2804_s0 + $0x12c] sm:$0xf0] }
  0x27   :  { %1917 = vmatpush.bf16.msrb.mxu3 %v1863_v4  ;;  %v1372_v4 = vor.u32 %v1774_v0, %v1369_v1 }
  0x2a   :  { %1739 = vmatmul.msk.bf16.gmra.mxu2 %vm691_vm0, %v1364_v35  ;;  %v1847_v35 = vld [vmem:[%s2804_s0 + $0x290] sm:$0xf0] }
  0x2b   :  { %1918 = vmatpush.bf16.msrb.mxu3 %v1862_v10  ;;  %v1631_v10 = vld [vmem:[%s2804_s0 + $0x258] sm:$0xf]  ;;  %v1656_v39 = vor.u32 %v1847_v35, %v1655_v34 }
  0x2c   :  { %v1632_v15 = vor.u32 %v1841_v11, %v1631_v10 }
  0x2f   :  { %1919 = vmatpush.bf16.msrb.mxu3 %v1861_v12  ;;  %v1777_v12 = vld [vmem:[%s2804_s0 + $0x64] sm:$0xf] }
  0x31   :  { %789 = vmatmul.bf16.gmra.mxu0 %v1344_v42  ;;  %v1791_v42 = vld [vmem:[%s2804_s0 + $0xd0] sm:$0xf0] }
  0x32   :  { %894 = vmatmul.bf16.gmra.mxu3 %v1596_v43  ;;  %938 = vmatmul.bf16.gmra.mxu1 %v1348_v44  ;;  %v1436_v43 = vor.u32 %v1791_v42, %v1435_v41  ;;  %v1415_v44 = vld [vmem:[%s2804_s0 + $0xa8] sm:$0xf]  ;;  %v1451_v41 = vld [vmem:[%s2804_s0 + $0xf0] sm:$0xf]  ;;  %v1796_v42 = vld [vmem:[%s2804_s0 + $0xf8] sm:$0xf0] }
  0x33   :  { %1920 = vmatpush.bf16.msrb.mxu3 %v1860_v14  ;;  %v1380_v14 = vor.u32 %v1778_v9, %v1379_v8  ;;  %v1416_v51 = vor.u32 %v1787_v45, %v1415_v44  ;;  %v1459_v8 = vld [vmem:[%s2804_s0 + $0xf8] sm:$0xf]  ;;  %v1797_v9 = vld [vmem:[%s2804_s0 + $0x100] sm:$0xf0]  ;;  %v1453_v44 = vld [vmem:[%s2804_s0 + $0xfc] sm:$0xf0]  ;;  %v1452_v49 = vor.u32 %v1796_v42, %v1451_v41  ;;  %v1480_v42 = vor.u32 %v1801_v32, %v1477_v33 }
  0x34   :  { %v1837_v45 = vld [vmem:[%s2804_s0 + $0x244] sm:$0xf]  ;;  %v1501_v32 = vld [vmem:[%s2804_s0 + $0x15c] sm:$0xf0]  ;;  %v1615_v33 = vld [vmem:[%s2804_s0 + $0x230] sm:$0xf] }
  0x37   :  { %1921 = vmatpush.bf16.msrb.mxu3 %v1859_v16  ;;  %v1384_v16 = vor.u32 %v1777_v12, %v1381_v13  ;;  %v1460_v13 = vor.u32 %v1797_v9, %v1459_v8 }
  0x3a   :  { %1740 = vmatmul.msk.bf16.gmra.mxu2 %vm691_vm0, %v1376_v47  ;;  %v1417_v47 = vld [vmem:[%s2804_s0 + $0xb4] sm:$0xf0] }
  0x3b   :  { %1922 = vmatpush.bf16.msrb.mxu3 %v1858_v21  ;;  %v1781_v21 = vld [vmem:[%s2804_s0 + $0x80] sm:$0xf0]  ;;  %v1420_v52 = vor.u32 %v1786_v46, %v1417_v47  ;;  %v1621_v46 = vld [vmem:[%s2804_s0 + $0x24c] sm:$0xf0] }
  0x3c   :  { %v1392_v26 = vor.u32 %v1781_v21, %v1391_v20  ;;  %v1441_v20 = vld [vmem:[%s2804_s0 + $0xe4] sm:$0xf0]  ;;  %v1834_v21 = vld [vmem:[%s2804_s0 + $0x22c] sm:$0xf] }
  0x3f   :  { %1923 = vmatpush.bf16.msrb.mxu3 %v1857_v23  ;;  %v1844_v23 = vld [vmem:[%s2804_s0 + $0x278] sm:$0xf0] }
  0x40   :  { %v1644_v27 = vor.u32 %v1844_v23, %v1643_v22  ;;  %v1609_v22 = vld [vmem:[%s2804_s0 + $0x234] sm:$0xf0] }
  0x41   :  { %794 = vmatmul.bf16.gmra.mxu0 %v1356_v54  ;;  %v1447_v54 = vld [vmem:[%s2804_s0 + $0xe0] sm:$0xf] }
  0x42   :  { %899 = vmatmul.bf16.gmra.mxu3 %v1608_v55  ;;  %943 = vmatmul.bf16.gmra.mxu1 %v1360_v56  ;;  %v1794_v55 = vld [vmem:[%s2804_s0 + $0xe8] sm:$0xf0] }
  0x43   :  { %1924 = vmatpush.bf16.msra.mxu3 %v1956_v2  ;;  %v1368_v2 = vor.u32 %v1775_v61, %v1367_v60  ;;  %v1448_v57 = vor.u32 %v1794_v55, %v1447_v54  ;;  %v1789_v60 = vld [vmem:[%s2804_s0 + $0xc4] sm:$0xf]  ;;  %v1429_v61 = vld [vmem:[%s2804_s0 + $0xcc] sm:$0xf0] }
  0x47   :  { %1925 = vmatpush.bf16.msra.mxu3 %v1968_v5  ;;  %v1399_v5 = vld [vmem:[%s2804_s0 + $0x80] sm:$0xf] }
  0x48   :  { %v1400_v7 = vor.u32 %v1782_v6, %v1399_v5 }
  0x4a   :  { %1741 = vmatmul.msk.bf16.gmra.mxu2 %vm691_vm0, %v1388_v59  ;;  %v1790_v59 = vld [vmem:[%s2804_s0 + $0xc8] sm:$0xf0] }
  0x4b   :  { %v1428_v1 = vor.u32 %v1790_v59, %v1427_v58 }
  0x51   :  { %799 = vmatmul.bf16.gmra.mxu0 %v1368_v2 }
  0x52   :  { %904 = vmatmul.bf16.gmra.mxu3 %v1620_v3  ;;  %948 = vmatmul.bf16.gmra.mxu1 %v1372_v4  ;;  %v1432_v3 = vor.u32 %v1789_v60, %v1429_v61  ;;  %v1600_v4 = vor.u32 %v1831_v62, %v1597_v63 }
  0x5a   :  { %1742 = vmatmul.msk.bf16.gmra.mxu2 %vm691_vm0, %v1400_v7 }
  0x61   :  { %804 = vmatmul.bf16.gmra.mxu0 %v1380_v14 }
  0x62   :  { %909 = vmatmul.bf16.gmra.mxu3 %v1632_v15  ;;  %953 = vmatmul.bf16.gmra.mxu1 %v1384_v16 }
  0x6a   :  { %1743 = vmatmul.msk.bf16.gmra.mxu2 %vm691_vm0, %v1412_v19  ;;  %v1792_v19 = vld [vmem:[%s2804_s0 + $0xdc] sm:$0xf] }
  0x71   :  { %809 = vmatmul.bf16.gmra.mxu0 %v1392_v26 }
  0x72   :  { %914 = vmatmul.bf16.gmra.mxu3 %v1644_v27  ;;  %958 = vmatmul.bf16.gmra.mxu1 %v1396_v28  ;;  %v1444_v27 = vor.u32 %v1792_v19, %v1441_v20  ;;  %v1612_v28 = vor.u32 %v1834_v21, %v1609_v22  ;;  %v1495_v19 = vld [vmem:[%s2804_s0 + $0x140] sm:$0xf]  ;;  %v1806_v20 = vld [vmem:[%s2804_s0 + $0x148] sm:$0xf0] }
  0x7a   :  { %1744 = vmatmul.msk.bf16.gmra.mxu2 %vm691_vm0, %v1424_v31 }
  0x81   :  { %814 = vmatmul.bf16.gmra.mxu0 %v1404_v38 }
  0x82   :  { %919 = vmatmul.bf16.gmra.mxu3 %v1656_v39  ;;  %963 = vmatmul.bf16.gmra.mxu1 %v1408_v40 }
  0x8a   :  { %1745 = vmatmul.msk.bf16.gmra.mxu2 %vm691_vm0, %v1436_v43  ;;  %v1795_v43 = vld [vmem:[%s2804_s0 + $0xf4] sm:$0xf] }
  0x8d   :  { %v1083_v50 = vpop.f32.mrf.mxu2 }
  0x91   :  { %819 = vmatmul.bf16.gmra.mxu0 %v1416_v51  ;;  %v1456_v51 = vor.u32 %v1795_v43, %v1453_v44 }
  0x92   :  { %968 = vmatmul.bf16.gmra.mxu1 %v1420_v52  ;;  %1038 = vmatmul.bf16.vlgmr.msrb.gmra.mxu3 %v1588_v53  ;;  %v1624_v52 = vor.u32 %v1837_v45, %v1621_v46 }
  0x95   :  { %v1085_v56 = vpop.f32.mrf.mxu2 }
  0x9a   :  { %1746 = vmatmul.msk.bf16.gmra.mxu2 %vm691_vm0, %v1448_v57  ;;  %v1803_v57 = vld [vmem:[%s2804_s0 + $0x130] sm:$0xf0] }
  0x9d   :  { %v1088_v0 = vpop.f32.mrf.mxu2 }
  0x9e   :  { %v785_v2 = vpop.f32.mrf.mxu0 }
  0x9f   :  { %v934_v5 = vpop.f32.mrf.mxu1 }
  0xa0   :  { %v935_v6 = vadd.f32 %v934_v5, %v785_v2  ;;  %v1799_v2 = vld [vmem:[%s2804_s0 + $0x110] sm:$0xf0]  ;;  %v1840_v5 = vld [vmem:[%s2804_s0 + $0x25c] sm:$0xf] }
  0xa1   :  { %824 = vmatmul.bf16.gmra.mxu0 %v1428_v1  ;;  %v1463_v1 = vld [vmem:[%s2804_s0 + $0x108] sm:$0xf] }
  0xa2   :  { %v2241_v7 = vadd.f32 %v1083_v50, %v935_v6  ;;  %973 = vmatmul.bf16.gmra.mxu1 %v1432_v3  ;;  %1043 = vmatmul.bf16.gmra.mxu3 %v1600_v4  ;;  %v1798_v3 = vld [vmem:[%s2804_s0 + $0x10c] sm:$0xf]  ;;  %v1465_v4 = vld [vmem:[%s2804_s0 + $0x114] sm:$0xf0]  ;;  %v1633_v6 = vld [vmem:[%s2804_s0 + $0x264] sm:$0xf0] }
  0xa5   :  { %v2249_v10 = vpop.f32.mrf.mxu3  ;;  %v1090_v11 = vpop.f32.mrf.mxu2 }
  0xa6   :  { %v787_v12 = vpop.f32.mrf.mxu0 }
  0xa7   :  { %v936_v14 = vpop.f32.mrf.mxu1 }
  0xa8   :  { %v937_v15 = vadd.f32 %v936_v14, %v787_v12  ;;  %v1636_v14 = vor.u32 %v1840_v5, %v1633_v6 }
  0xaa   :  { %v2251_v16 = vadd.f32 %v1085_v56, %v937_v15  ;;  %1747 = vmatmul.msk.bf16.gmra.mxu2 %vm691_vm0, %v1460_v13  ;;  %v1483_v56 = vld [vmem:[%s2804_s0 + $0x128] sm:$0xf]  ;;  %v1468_v13 = vor.u32 %v1798_v3, %v1465_v4 }
  0xab   :  { %v1484_v61 = vor.u32 %v1803_v57, %v1483_v56 }
  0xac   :  { %2816 = vst [vmem:[#allocation2_spill] sm:$0xff] %v2251_v16 }
  0xad   :  { %v2272_v23 = vpop.f32.mrf.mxu3  ;;  %v1093_v24 = vpop.f32.mrf.mxu2 }
  0xae   :  { %v790_v26 = vpop.f32.mrf.mxu0 }
  0xaf   :  { %v939_v29 = vpop.f32.mrf.mxu1 }
  0xb0   :  { %v940_v30 = vadd.f32 %v939_v29, %v790_v26  ;;  %v1475_v29 = vld [vmem:[%s2804_s0 + $0x120] sm:$0xf] }
  0xb1   :  { %829 = vmatmul.bf16.gmra.mxu0 %v1440_v25  ;;  %v1496_v25 = vor.u32 %v1806_v20, %v1495_v19 }
  0xb2   :  { %v2274_v31 = vadd.f32 %v1088_v0, %v940_v30  ;;  %978 = vmatmul.bf16.gmra.mxu1 %v1444_v27  ;;  %1048 = vmatmul.bf16.gmra.mxu3 %v1612_v28  ;;  %v1802_v30 = vld [vmem:[%s2804_s0 + $0x128] sm:$0xf0] }
  0xb4   :  { %2817 = vst [vmem:[#allocation3_spill] sm:$0xff] %v2274_v31 }
  0xb5   :  { %v2282_v34 = vpop.f32.mrf.mxu3  ;;  %v1095_v35 = vpop.f32.mrf.mxu2 }
  0xb6   :  { %2818 = vst [vmem:[#allocation4_spill] sm:$0xff] %v2282_v34  ;;  %v792_v36 = vpop.f32.mrf.mxu0 }
  0xb7   :  { %v941_v38 = vpop.f32.mrf.mxu1 }
  0xb8   :  { %v942_v39 = vadd.f32 %v941_v38, %v792_v36  ;;  %v1645_v36 = vld [vmem:[%s2804_s0 + $0x27c] sm:$0xf0] }
  0xba   :  { %v2284_v40 = vadd.f32 %v1090_v11, %v942_v39  ;;  %1748 = vmatmul.msk.bf16.gmra.mxu2 %vm691_vm0, %v1472_v37  ;;  %v1464_v11 = vor.u32 %v1799_v2, %v1463_v1  ;;  %v1476_v39 = vor.u32 %v1802_v30, %v1475_v29  ;;  %v1657_v1 = vld [vmem:[%s2804_s0 + $0x294] sm:$0xf0]  ;;  %v1808_v29 = vld [vmem:[%s2804_s0 + $0x158] sm:$0xf0]  ;;  %v1807_v30 = vld [vmem:[%s2804_s0 + $0x154] sm:$0xf] }
  0xbc   :  { %2819 = vst [vmem:[#allocation5_spill] sm:$0xff] %v2284_v40 }
  0xbd   :  { %v2305_v47 = vpop.f32.mrf.mxu3  ;;  %v1098_v48 = vpop.f32.mrf.mxu2 }
  0xbe   :  { %2820 = vst [vmem:[#allocation6_spill] sm:$0xff] %v2305_v47  ;;  %v795_v50 = vpop.f32.mrf.mxu0 }
  0xbf   :  { %v944_v53 = vpop.f32.mrf.mxu1 }
  0xc0   :  { %v945_v54 = vadd.f32 %v944_v53, %v795_v50 }
  0xc1   :  { %834 = vmatmul.bf16.gmra.mxu0 %v1452_v49  ;;  %v1809_v49 = vld [vmem:[%s2804_s0 + $0x160] sm:$0xf0] }
  0xc2   :  { %v2307_v55 = vadd.f32 %v1093_v24, %v945_v54  ;;  %983 = vmatmul.bf16.gmra.mxu1 %v1456_v51  ;;  %1053 = vmatmul.bf16.gmra.mxu3 %v1624_v52 }
  0xc5   :  { %v2315_v58 = vpop.f32.mrf.mxu3  ;;  %v1100_v59 = vpop.f32.mrf.mxu2 }
  0xc6   :  { %v797_v60 = vpop.f32.mrf.mxu0 }
  0xc7   :  { %v946_v62 = vpop.f32.mrf.mxu1 }
  0xc8   :  { %v947_v63 = vadd.f32 %v946_v62, %v797_v60  ;;  %v1805_v60 = vld [vmem:[%s2804_s0 + $0x140] sm:$0xf0]  ;;  %v1489_v62 = vld [vmem:[%s2804_s0 + $0x144] sm:$0xf0] }
  0xca   :  { %v2317_v0 = vadd.f32 %v1095_v35, %v947_v63  ;;  %1749 = vmatmul.msk.bf16.gmra.mxu2 %vm691_vm0, %v1484_v61  ;;  %v1843_v35 = vld [vmem:[%s2804_s0 + $0x274] sm:$0xf]  ;;  %v1804_v61 = vld [vmem:[%s2804_s0 + $0x13c] sm:$0xf]  ;;  %v1846_v63 = vld [vmem:[%s2804_s0 + $0x28c] sm:$0xf] }
  0xcb   :  { %v1648_v43 = vor.u32 %v1843_v35, %v1645_v36  ;;  %v1492_v6 = vor.u32 %v1804_v61, %v1489_v62  ;;  %v1836_v35 = vld [vmem:[%s2804_s0 + $0x238] sm:$0xf0]  ;;  %v1511_v62 = vld [vmem:[%s2804_s0 + $0x168] sm:$0xf] }
  0xcd   :  { %v2338_v8 = vpop.f32.mrf.mxu3  ;;  %v1103_v9 = vpop.f32.mrf.mxu2 }
  0xce   :  { %v800_v12 = vpop.f32.mrf.mxu0 }
  0xcf   :  { %v949_v15 = vpop.f32.mrf.mxu1 }
  0xd0   :  { %v950_v17 = vadd.f32 %v949_v15, %v800_v12  ;;  %v1812_v15 = vld [vmem:[%s2804_s0 + $0x178] sm:$0xf0] }
  0xd1   :  { %839 = vmatmul.bf16.gmra.mxu0 %v1464_v11 }
  0xd2   :  { %v2340_v18 = vadd.f32 %v1098_v48, %v950_v17  ;;  %988 = vmatmul.bf16.gmra.mxu1 %v1468_v13  ;;  %1058 = vmatmul.bf16.gmra.mxu3 %v1636_v14  ;;  %v1507_v48 = vld [vmem:[%s2804_s0 + $0x158] sm:$0xf]  ;;  %v1519_v14 = vld [vmem:[%s2804_s0 + $0x170] sm:$0xf] }
  0xd3   :  { %v1508_v53 = vor.u32 %v1809_v49, %v1507_v48  ;;  %v1531_v49 = vld [vmem:[%s2804_s0 + $0x188] sm:$0xf] }
  0xd5   :  { %v2348_v21 = vpop.f32.mrf.mxu3  ;;  %v1105_v22 = vpop.f32.mrf.mxu2 }
  0xd6   :  { %v802_v24 = vpop.f32.mrf.mxu0 }
  0xd7   :  { %v951_v26 = vpop.f32.mrf.mxu1 }
  0xd8   :  { %v952_v27 = vadd.f32 %v951_v26, %v802_v24 }
  0xda   :  { %v2350_v28 = vadd.f32 %v1100_v59, %v952_v27  ;;  %1750 = vmatmul.msk.bf16.gmra.mxu2 %vm691_vm0, %v1496_v25  ;;  %v1487_v59 = vld [vmem:[%s2804_s0 + $0x138] sm:$0xf]  ;;  %v1499_v27 = vld [vmem:[%s2804_s0 + $0x150] sm:$0xf] }
  0xdb   :  { %v1488_v4 = vor.u32 %v1805_v60, %v1487_v59 }
  0xdd   :  { %v2371_v37 = vpop.f32.mrf.mxu3  ;;  %v1108_v38 = vpop.f32.mrf.mxu2 }
  0xde   :  { %v805_v41 = vpop.f32.mrf.mxu0 }
  0xdf   :  { %v954_v44 = vpop.f32.mrf.mxu1 }
  0xe0   :  { %v955_v45 = vadd.f32 %v954_v44, %v805_v41 }
  0xe1   :  { %844 = vmatmul.bf16.gmra.mxu0 %v1476_v39  ;;  %v1500_v39 = vor.u32 %v1808_v29, %v1499_v27 }
  0xe2   :  { %v2373_v46 = vadd.f32 %v1103_v9, %v955_v45  ;;  %993 = vmatmul.bf16.gmra.mxu1 %v1480_v42  ;;  %1063 = vmatmul.bf16.gmra.mxu3 %v1648_v43  ;;  %v1660_v9 = vor.u32 %v1846_v63, %v1657_v1  ;;  %v1504_v42 = vor.u32 %v1807_v30, %v1501_v32  ;;  %v1811_v63 = vld [vmem:[%s2804_s0 + $0x170] sm:$0xf0]  ;;  %v1810_v1 = vld [vmem:[%s2804_s0 + $0x16c] sm:$0xf] }
  0xe3   :  { %v1616_v43 = vor.u32 %v1836_v35, %v1615_v33 }
  0xe5   :  { %v2381_v50 = vpop.f32.mrf.mxu3  ;;  %v1110_v51 = vpop.f32.mrf.mxu2 }
  0xe6   :  { %v807_v52 = vpop.f32.mrf.mxu0 }
  0xe7   :  { %v956_v54 = vpop.f32.mrf.mxu1 }
  0xe8   :  { %v957_v56 = vadd.f32 %v956_v54, %v807_v52 }
  0xea   :  { %v2383_v57 = vadd.f32 %v1105_v22, %v957_v56  ;;  %1751 = vmatmul.msk.bf16.gmra.mxu2 %vm691_vm0, %v1508_v53  ;;  %v1520_v22 = vor.u32 %v1812_v15, %v1519_v14 }
  0xed   :  { %v2404_v2 = vpop.f32.mrf.mxu3  ;;  %v1113_v3 = vpop.f32.mrf.mxu2 }
  0xee   :  { %v810_v5 = vpop.f32.mrf.mxu0 }
  0xef   :  { %v959_v11 = vpop.f32.mrf.mxu1 }
  0xf0   :  { %v960_v12 = vadd.f32 %v959_v11, %v810_v5  ;;  %v1839_v5 = vld [vmem:[%s2804_s0 + $0x250] sm:$0xf0]  ;;  %v1512_v11 = vor.u32 %v1811_v63, %v1511_v62 }
  0xf1   :  { %849 = vmatmul.bf16.gmra.mxu0 %v1488_v4  ;;  %v1627_v4 = vld [vmem:[%s2804_s0 + $0x248] sm:$0xf] }
  0xf2   :  { %v2406_v13 = vadd.f32 %v1108_v38, %v960_v12  ;;  %998 = vmatmul.bf16.gmra.mxu1 %v1492_v6  ;;  %1068 = vmatmul.bf16.gmra.mxu3 %v1660_v9  ;;  %v1628_v15 = vor.u32 %v1839_v5, %v1627_v4  ;;  %v1555_v4 = vld [vmem:[%s2804_s0 + $0x1b8] sm:$0xf]  ;;  %v1821_v5 = vld [vmem:[%s2804_s0 + $0x1c0] sm:$0xf0] }
  0xf5   :  { %v2414_v17 = vpop.f32.mrf.mxu3  ;;  %v1115_v19 = vpop.f32.mrf.mxu2 }
  0xf6   :  { %v812_v20 = vpop.f32.mrf.mxu0 }
  0xf7   :  { %v961_v24 = vpop.f32.mrf.mxu1 }
  0xf8   :  { %v962_v25 = vadd.f32 %v961_v24, %v812_v20  ;;  %v1543_v24 = vld [vmem:[%s2804_s0 + $0x1a0] sm:$0xf] }
  0xfa   :  { %v2416_v26 = vadd.f32 %v1110_v51, %v962_v25  ;;  %1752 = vmatmul.msk.bf16.gmra.mxu2 %vm691_vm0, %v1520_v22  ;;  %v1815_v51 = vld [vmem:[%s2804_s0 + $0x190] sm:$0xf0]  ;;  %v1818_v25 = vld [vmem:[%s2804_s0 + $0x1a8] sm:$0xf0] }
  0xfb   :  { %v1532_v56 = vor.u32 %v1815_v51, %v1531_v49  ;;  %v1544_v33 = vor.u32 %v1818_v25, %v1543_v24  ;;  %v1842_v49 = vld [vmem:[%s2804_s0 + $0x268] sm:$0xf0]  ;;  %v1535_v25 = vld [vmem:[%s2804_s0 + $0x198] sm:$0xf] }
  0xfc   :  { %v1830_v51 = vld [vmem:[%s2804_s0 + $0x208] sm:$0xf0] }
  0xfd   :  { %v2437_v36 = vpop.f32.mrf.mxu3  ;;  %v1118_v38 = vpop.f32.mrf.mxu2 }
  0xfe   :  { %v815_v41 = vpop.f32.mrf.mxu0 }
  0xff   :  { %v964_v44 = vpop.f32.mrf.mxu1 }
 0x100   :  { %v965_v45 = vadd.f32 %v964_v44, %v815_v41  ;;  %v1523_v41 = vld [vmem:[%s2804_s0 + $0x180] sm:$0xf]  ;;  %v1525_v44 = vld [vmem:[%s2804_s0 + $0x18c] sm:$0xf0] }
 0x101   :  { %854 = vmatmul.bf16.gmra.mxu0 %v1500_v39 }
 0x102   :  { %v2439_v48 = vadd.f32 %v1113_v3, %v965_v45  ;;  %1003 = vmatmul.bf16.gmra.mxu1 %v1504_v42  ;;  %1760 = vmatmul.msk.bf16.vlgmr.msra.gmra.mxu3 %vm691_vm0, %v1616_v43  ;;  %v1513_v3 = vld [vmem:[%s2804_s0 + $0x174] sm:$0xf0]  ;;  %v1814_v42 = vld [vmem:[%s2804_s0 + $0x188] sm:$0xf0]  ;;  %v1813_v43 = vld [vmem:[%s2804_s0 + $0x184] sm:$0xf] }
 0x103   :  { %v1516_v14 = vor.u32 %v1810_v1, %v1513_v3  ;;  %v1639_v45 = vld [vmem:[%s2804_s0 + $0x260] sm:$0xf] }
 0x104   :  { %v1640_v62 = vor.u32 %v1842_v49, %v1639_v45 }
 0x105   :  { %v2448_v52 = vpop.f32.mrf.mxu3  ;;  %v1120_v53 = vpop.f32.mrf.mxu2 }
 0x106   :  { %v817_v54 = vpop.f32.mrf.mxu0 }
 0x107   :  { %v966_v59 = vpop.f32.mrf.mxu1 }
 0x108   :  { %v967_v60 = vadd.f32 %v966_v59, %v817_v54 }
 0x10a   :  { %v2450_v61 = vadd.f32 %v1115_v19, %v967_v60  ;;  %1753 = vmatmul.msk.bf16.gmra.mxu2 %vm691_vm0, %v1532_v56  ;;  %v1524_v56 = vor.u32 %v1814_v42, %v1523_v41  ;;  %v1528_v60 = vor.u32 %v1813_v43, %v1525_v44 }
 0x10c   :  { %2821 = vst [vmem:[#allocation7_spill] sm:$0xff] %v2450_v61 }
 0x10d   :  { %v2471_v6 = vpop.f32.mrf.mxu3  ;;  %v1123_v9 = vpop.f32.mrf.mxu2 }
 0x10e   :  { %2822 = vst [vmem:[#allocation8_spill] sm:$0xff] %v2471_v6  ;;  %v820_v12 = vpop.f32.mrf.mxu0 }
 0x10f   :  { %v969_v19 = vpop.f32.mrf.mxu1 }
 0x110   :  { %v970_v20 = vadd.f32 %v969_v19, %v820_v12 }
 0x111   :  { %859 = vmatmul.bf16.gmra.mxu0 %v1512_v11  ;;  %v1591_v11 = vld [vmem:[%s2804_s0 + $0x200] sm:$0xf] }
 0x112   :  { %v2473_v22 = vadd.f32 %v1118_v38, %v970_v20  ;;  %1008 = vmatmul.bf16.gmra.mxu1 %v1516_v14  ;;  %1761 = vmatmul.msk.bf16.gmra.mxu3 %vm691_vm0, %v1628_v15 }
 0x115   :  { %v2484_v29 = vpop.f32.mrf.mxu3  ;;  %v1125_v30 = vpop.f32.mrf.mxu2 }
 0x116   :  { %v822_v32 = vpop.f32.mrf.mxu0 }
 0x117   :  { %v971_v35 = vpop.f32.mrf.mxu1 }
 0x118   :  { %v972_v38 = vadd.f32 %v971_v35, %v822_v32  ;;  %v1817_v32 = vld [vmem:[%s2804_s0 + $0x1a0] sm:$0xf0]  ;;  %v1537_v35 = vld [vmem:[%s2804_s0 + $0x1a4] sm:$0xf0] }
 0x119   :  { %v1536_v44 = vor.u32 %v1817_v32, %v1535_v25  ;;  %v1547_v32 = vld [vmem:[%s2804_s0 + $0x1b0] sm:$0xf] }
 0x11a   :  { %v2486_v39 = vadd.f32 %v1120_v53, %v972_v38  ;;  %1754 = vmatmul.msk.bf16.gmra.mxu2 %vm691_vm0, %v1544_v33  ;;  %v1816_v33 = vld [vmem:[%s2804_s0 + $0x19c] sm:$0xf]  ;;  %v1845_v38 = vld [vmem:[%s2804_s0 + $0x280] sm:$0xf0] }
 0x11b   :  { %v1540_v49 = vor.u32 %v1816_v33, %v1537_v35  ;;  %v1820_v33 = vld [vmem:[%s2804_s0 + $0x1b8] sm:$0xf0]  ;;  %v1819_v35 = vld [vmem:[%s2804_s0 + $0x1b4] sm:$0xf] }
 0x11c   :  { %2823 = vst [vmem:[#allocation9_spill] sm:$0xff] %v2486_v39 }
 0x11d   :  { %v2509_v53 = vpop.f32.mrf.mxu3  ;;  %v1128_v54 = vpop.f32.mrf.mxu2 }
 0x11e   :  { %v825_v59 = vpop.f32.mrf.mxu0 }
 0x11f   :  { %v974_v63 = vpop.f32.mrf.mxu1 }
 0x120   :  { %v975_v1 = vadd.f32 %v974_v63, %v825_v59  ;;  %v1567_v63 = vld [vmem:[%s2804_s0 + $0x1d0] sm:$0xf] }
 0x121   :  { %864 = vmatmul.bf16.gmra.mxu0 %v1524_v56 }
 0x122   :  { %v2511_v3 = vadd.f32 %v1123_v9, %v975_v1  ;;  %1013 = vmatmul.bf16.gmra.mxu1 %v1528_v60  ;;  %1762 = vmatmul.msk.bf16.gmra.mxu3 %vm691_vm0, %v1640_v62  ;;  %v1556_v9 = vor.u32 %v1821_v5, %v1555_v4  ;;  %v1824_v1 = vld [vmem:[%s2804_s0 + $0x1d8] sm:$0xf0] }
 0x124   :  { %2824 = vst [vmem:[#allocation10_spill] sm:$0xff] %v2511_v3 }
 0x125   :  { %v2522_v12 = vpop.f32.mrf.mxu3  ;;  %v1130_v14 = vpop.f32.mrf.mxu2 }
 0x126   :  { %2825 = vst [vmem:[#allocation11_spill] sm:$0xff] %v2522_v12  ;;  %v827_v15 = vpop.f32.mrf.mxu0 }
 0x127   :  { %v976_v19 = vpop.f32.mrf.mxu1 }
 0x128   :  { %v977_v20 = vadd.f32 %v976_v19, %v827_v15 }
 0x12a   :  { %v2524_v24 = vadd.f32 %v1125_v30, %v977_v20  ;;  %1755 = vmatmul.msk.bf16.gmra.mxu2 %vm691_vm0, %v1556_v9  ;;  %v1651_v30 = vld [vmem:[%s2804_s0 + $0x278] sm:$0xf] }
 0x12b   :  { %v1652_v56 = vor.u32 %v1845_v38, %v1651_v30  ;;  %v1549_v30 = vld [vmem:[%s2804_s0 + $0x1bc] sm:$0xf0]  ;;  %v1848_v38 = vld [vmem:[%s2804_s0 + $0x298] sm:$0xf0] }
 0x12c   :  { %2826 = vst [vmem:[#allocation12_spill] sm:$0xff] %v2524_v24 }
 0x12d   :  { %v2547_v42 = vpop.f32.mrf.mxu3  ;;  %v1133_v43 = vpop.f32.mrf.mxu2 }
 0x12e   :  { %2827 = vst [vmem:[#allocation13_spill] sm:$0xff] %v2547_v42  ;;  %v830_v45 = vpop.f32.mrf.mxu0 }
 0x12f   :  { %v979_v59 = vpop.f32.mrf.mxu1 }
 0x130   :  { %v980_v60 = vadd.f32 %v979_v59, %v830_v45 }
 0x131   :  { %869 = vmatmul.bf16.gmra.mxu0 %v1536_v44  ;;  %v1603_v44 = vld [vmem:[%s2804_s0 + $0x218] sm:$0xf] }
 0x132   :  { %v2549_v62 = vadd.f32 %v1128_v54, %v980_v60  ;;  %1018 = vmatmul.bf16.gmra.mxu1 %v1540_v49  ;;  %1763 = vmatmul.msk.bf16.gmra.mxu3 %vm691_vm0, %v1652_v56  ;;  %v1568_v54 = vor.u32 %v1824_v1, %v1567_v63  ;;  %v1548_v56 = vor.u32 %v1820_v33, %v1547_v32 }
 0x133   :  { %v1552_v60 = vor.u32 %v1819_v35, %v1549_v30 }
 0x135   :  { %v2560_v5 = vpop.f32.mrf.mxu3  ;;  %v1135_v15 = vpop.f32.mrf.mxu2 }
 0x136   :  { %v832_v9 = vpop.f32.mrf.mxu0 }
 0x137   :  { %v981_v19 = vpop.f32.mrf.mxu1 }
 0x138   :  { %v982_v20 = vadd.f32 %v981_v19, %v832_v9  ;;  %v1579_v19 = vld [vmem:[%s2804_s0 + $0x1e8] sm:$0xf] }
 0x13a   :  { %v2562_v25 = vadd.f32 %v1130_v14, %v982_v20  ;;  %1756 = vmatmul.msk.bf16.gmra.mxu2 %vm691_vm0, %v1568_v54  ;;  %v1663_v14 = vld [vmem:[%s2804_s0 + $0x290] sm:$0xf]  ;;  %v1827_v20 = vld [vmem:[%s2804_s0 + $0x1f0] sm:$0xf0] }
 0x13b   :  { %v1664_v63 = vor.u32 %v1848_v38, %v1663_v14 }
 0x13d   :  { %v2585_v45 = vpop.f32.mrf.mxu3  ;;  %v1138_v49 = vpop.f32.mrf.mxu2 }
 0x13e   :  { %v835_v59 = vpop.f32.mrf.mxu0 }
 0x13f   :  { %v984_v1 = vpop.f32.mrf.mxu1 }
 0x140   :  { %v985_v9 = vadd.f32 %v984_v1, %v835_v59  ;;  %v1559_v59 = vld [vmem:[%s2804_s0 + $0x1c8] sm:$0xf]  ;;  %v1561_v1 = vld [vmem:[%s2804_s0 + $0x1d4] sm:$0xf0] }
 0x141   :  { %874 = vmatmul.bf16.gmra.mxu0 %v1548_v56 }
 0x142   :  { %v2587_v54 = vadd.f32 %v1133_v43, %v985_v9  ;;  %1023 = vmatmul.bf16.gmra.mxu1 %v1552_v60  ;;  %1764 = vmatmul.msk.bf16.gmra.mxu3 %vm691_vm0, %v1664_v63  ;;  %v1580_v43 = vor.u32 %v1827_v20, %v1579_v19  ;;  %v1823_v60 = vld [vmem:[%s2804_s0 + $0x1d0] sm:$0xf0]  ;;  %v1822_v63 = vld [vmem:[%s2804_s0 + $0x1cc] sm:$0xf] }
 0x143   :  { %v1560_v20 = vor.u32 %v1823_v60, %v1559_v59 }
 0x145   :  { %v2598_v33 = vpop.f32.mrf.mxu3  ;;  %v1140_v35 = vpop.f32.mrf.mxu2 }
 0x146   :  { %v837_v30 = vpop.f32.mrf.mxu0 }
 0x147   :  { %v986_v14 = vpop.f32.mrf.mxu1 }
 0x148   :  { %v987_v38 = vadd.f32 %v986_v14, %v837_v30 }
 0x14a   :  { %v2600_v56 = vadd.f32 %v1135_v15, %v987_v38  ;;  %1757 = vmatmul.msk.bf16.gmra.mxu2 %vm691_vm0, %v1580_v43  ;;  %v1564_v43 = vor.u32 %v1822_v63, %v1561_v1  ;;  %v1592_v1 = vor.u32 %v1830_v51, %v1591_v11  ;;  %v1573_v51 = vld [vmem:[%s2804_s0 + $0x1ec] sm:$0xf0]  ;;  %v1833_v11 = vld [vmem:[%s2804_s0 + $0x220] sm:$0xf0] }
 0x14d   :  { %v2617_v9 = vpop.f32.mrf.mxu3  ;;  %v1143_v19 = vpop.f32.mrf.mxu2 }
 0x14e   :  { %v840_v30 = vpop.f32.mrf.mxu0 }
 0x14f   :  { %v989_v14 = vpop.f32.mrf.mxu1 }
 0x150   :  { %v990_v38 = vadd.f32 %v989_v14, %v840_v30  ;;  %v1826_v14 = vld [vmem:[%s2804_s0 + $0x1e8] sm:$0xf0] }
 0x151   :  { %879 = vmatmul.bf16.gmra.mxu0 %v1560_v20 }
 0x152   :  { %v2619_v41 = vadd.f32 %v1138_v49, %v990_v38  ;;  %1028 = vmatmul.bf16.gmra.mxu1 %v1564_v43  ;;  %v1571_v43 = vld [vmem:[%s2804_s0 + $0x1e0] sm:$0xf]  ;;  %v1825_v38 = vld [vmem:[%s2804_s0 + $0x1e4] sm:$0xf] }
 0x155   :  { %v2629_v59 = vpop.f32.mrf.mxu3  ;;  %v1145_v60 = vpop.f32.mrf.mxu2 }
 0x156   :  { %v842_v63 = vpop.f32.mrf.mxu0 }
 0x157   :  { %v991_v20 = vpop.f32.mrf.mxu1 }
 0x158   :  { %v992_v49 = vadd.f32 %v991_v20, %v842_v63 }
 0x15a   :  { %v2631_v30 = vadd.f32 %v1140_v35, %v992_v49  ;;  %1758 = vmatmul.msk.bf16.gmra.mxu2 %vm691_vm0, %v1592_v1  ;;  %v1572_v1 = vor.u32 %v1826_v14, %v1571_v43  ;;  %v1576_v49 = vor.u32 %v1825_v38, %v1573_v51 }
 0x15d   :  { %v2648_v35 = vpop.f32.mrf.mxu3  ;;  %v1148_v63 = vpop.f32.mrf.mxu2 }
 0x15e   :  { %v845_v20 = vpop.f32.mrf.mxu0 }
 0x15f   :  { %v994_v27 = vpop.f32.mrf.mxu1 }
 0x160   :  { %v995_v15 = vadd.f32 %v994_v27, %v845_v20  ;;  %v1604_v27 = vor.u32 %v1833_v11, %v1603_v44 }
 0x161   :  { %884 = vmatmul.bf16.gmra.mxu0 %v1572_v1 }
 0x162   :  { %v2650_v32 = vadd.f32 %v1143_v19, %v995_v15  ;;  %1033 = vmatmul.bf16.gmra.mxu1 %v1576_v49 }
 0x165   :  { %v2660_v43 = vpop.f32.mrf.mxu3  ;;  %v1150_v14 = vpop.f32.mrf.mxu2 }
 0x166   :  { %v847_v38 = vpop.f32.mrf.mxu0 }
 0x167   :  { %v996_v51 = vpop.f32.mrf.mxu1 }
 0x168   :  { %v997_v15 = vadd.f32 %v996_v51, %v847_v38 }
 0x16a   :  { %v2662_v19 = vadd.f32 %v1145_v60, %v997_v15  ;;  %1759 = vmatmul.msk.bf16.gmra.mxu2 %vm691_vm0, %v1604_v27 }
 0x16d   :  { %v1153_v20 = vpop.f32.mrf.mxu2  ;;  %v2667_v24 = vpop.f32.mrf.mxu3 }
 0x16e   :  { %v850_v49 = vpop.f32.mrf.mxu0 }
 0x16f   :  { %v999_v40 = vpop.f32.mrf.mxu1 }
 0x170   :  { %v1000_v4 = vadd.f32 %v999_v40, %v850_v49 }
 0x172   :  { %v2669_v42 = vadd.f32 %v1148_v63, %v1000_v4 }
 0x174   :  { %2828 = vst [vmem:[#allocation14_spill] sm:$0xff] %v2669_v42 }
 0x175   :  { %v1155_v11 = vpop.f32.mrf.mxu2  ;;  %v2673_v15 = vpop.f32.mrf.mxu3 }
 0x176   :  { %v852_v38 = vpop.f32.mrf.mxu0 }
 0x177   :  { %v1001_v60 = vpop.f32.mrf.mxu1 }
 0x178   :  { %v1002_v51 = vadd.f32 %v1001_v60, %v852_v38 }
 0x17a   :  { %v2675_v27 = vadd.f32 %v1150_v14, %v1002_v51 }
 0x17c   :  { %2829 = vst [vmem:[#allocation15_spill] sm:$0xff] %v2675_v27 }
 0x17d   :  { %v1158_v47 = vpop.f32.mrf.mxu2  ;;  %v2681_v63 = vpop.f32.mrf.mxu3 }
 0x17e   :  { %v855_v3 = vpop.f32.mrf.mxu0  ;;  %2830 = vst [vmem:[#allocation16_spill] sm:$0xff] %v2681_v63 }
 0x17f   :  { %v1004_v31 = vpop.f32.mrf.mxu1 }
 0x180   :  { %v1005_v40 = vadd.f32 %v1004_v31, %v855_v3 }
 0x182   :  { %v2679_v4 = vadd.f32 %v1153_v20, %v1005_v40 }
 0x185   :  { %v1160_v49 = vpop.f32.mrf.mxu2  ;;  %v1198_v60 = vpop.f32.mrf.mxu3 }
 0x186   :  { %v857_v44 = vpop.f32.mrf.mxu0 }
 0x187   :  { %v1006_v12 = vpop.f32.mrf.mxu1 }
 0x188   :  { %v1007_v34 = vadd.f32 %v1006_v12, %v857_v44 }
 0x18a   :  { %v2683_v38 = vadd.f32 %v1155_v11, %v1007_v34  ;;  %v1050_v34 = vadd.f32 %v2560_v5, %v2315_v58  ;;  %v2699_v58 = vld [vmem:[%s2805_s2] ss:$0 sm:$0xff] }
 0x18c   :  { %2831 = vst [vmem:[#allocation17_spill] sm:$0xff] %v2683_v38  ;;  %v1199_v11 = vadd.f32 %v1198_v60, %v1050_v34 }
 0x18d   :  { %v1163_v14 = vpop.f32.mrf.mxu2  ;;  %v1200_v31 = vpop.f32.mrf.mxu3 }
 0x18e   :  { %v860_v51 = vpop.f32.mrf.mxu0 }
 0x18f   :  { %v1009_v39 = vpop.f32.mrf.mxu1 }
 0x190   :  { %v1010_v16 = vadd.f32 %v1009_v39, %v860_v51 }
 0x192   :  { %v2685_v1 = vadd.f32 %v1158_v47, %v1010_v16  ;;  %v2833_v47 = vmax.f32 %v2307_v55, %v2549_v62  ;;  %v2834_v55 = vmax.f32 %v2317_v0, %v2562_v25  ;;  %v2835_v0 = vmax.f32 %v2340_v18, %v2587_v54 }
 0x193   :  { %v1060_v54 = vadd.f32 %v2629_v59, %v2381_v50  ;;  %v1062_v59 = vadd.f32 %v2648_v35, %v2404_v2 }
 0x194   :  { %2832 = vst [vmem:[#allocation18_spill] sm:$0xff] %v2685_v1 }
 0x195   :  { %v1165_v27 = vpop.f32.mrf.mxu2  ;;  %v1203_v44 = vpop.f32.mrf.mxu3 }
 0x196   :  { %v862_v61 = vpop.f32.mrf.mxu0 }
 0x197   :  { %v1011_v3 = vpop.f32.mrf.mxu1 }
 0x198   :  { %v1012_v20 = vadd.f32 %v1011_v3, %v862_v61 }
 0x19a   :  { %v2687_v40 = vadd.f32 %v1160_v49, %v1012_v20  ;;  %v1052_v49 = vadd.f32 %v2585_v45, %v2338_v8  ;;  %v1055_v8 = vadd.f32 %v2598_v33, %v2348_v21 }
 0x19c   :  { %v1201_v20 = vadd.f32 %v1200_v31, %v1052_v49  ;;  %v1204_v31 = vadd.f32 %v1203_v44, %v1055_v8  ;;  %v1057_v44 = vadd.f32 %v2617_v9, %v2371_v37 }
 0x19d   :  { %v1168_v63 = vpop.f32.mrf.mxu2 }
 0x19e   :  { %v865_v6 = vpop.f32.mrf.mxu0 }
 0x19f   :  { %v1014_v42 = vpop.f32.mrf.mxu1 }
 0x1a0   :  { %v1015_v12 = vadd.f32 %v1014_v42, %v865_v6  ;;  %v1205_v42 = vpop.f32.mrf.mxu3 }
 0x1a2   :  { %v1164_v38 = vadd.f32 %v1163_v14, %v1015_v12 }
 0x1a4   :  { %v1241_v39 = vmax.f32 %v1164_v38, %v1199_v11 }
 0x1a5   :  { %v1170_v16 = vpop.f32.mrf.mxu2 }
 0x1a6   :  { %v1255_v51 = vmax.f32 %v2833_v47, %v1241_v39  ;;  %v867_v1 = vpop.f32.mrf.mxu0 }
 0x1a7   :  { %v1016_v61 = vpop.f32.mrf.mxu1 }
 0x1a8   :  { %v1017_v3 = vadd.f32 %v1016_v61, %v867_v1  ;;  %v1273_v60 = vadd.f32 %v2699_v58, %v1255_v51  ;;  %v1208_v61 = vpop.f32.mrf.mxu3 }
 0x1a9   :  { %v1209_v9 = vadd.f32 %v1208_v61, %v1060_v54 }
 0x1aa   :  { %v1166_v6 = vadd.f32 %v1165_v27, %v1017_v3  ;;  %v1287_v12 = vmax.f32 %v1273_v60, 0.0  ;;  %v1206_v3 = vadd.f32 %v1205_v42, %v1057_v44  ;;  %v2836_v60 = vmax.f32 %v2350_v28, %v2600_v56 }
 0x1ab   :  { %v2837_v28 = vmax.f32 %v2373_v46, %v2619_v41  ;;  %v1065_v41 = vadd.f32 %v2660_v43, %v2414_v17 }
 0x1ac   :  { %v1242_v5 = vmax.f32 %v1166_v6, %v1201_v20 }
 0x1ad   :  { %v1173_v38 = vpop.f32.mrf.mxu2 }
 0x1ae   :  { %v1256_v62 = vmax.f32 %v2834_v55, %v1242_v5  ;;  %v870_v14 = vpop.f32.mrf.mxu0 }
 0x1af   :  { %v1019_v34 = vpop.f32.mrf.mxu1 }
 0x1b0   :  { %v1274_v45 = vadd.f32 %v2699_v58, %v1256_v62  ;;  %v1020_v1 = vadd.f32 %v1019_v34, %v870_v14  ;;  %v1210_v14 = vpop.f32.mrf.mxu3 }
 0x1b2   :  { %v1288_v27 = vmax.f32 %v1274_v45, 0.0  ;;  %v1169_v11 = vadd.f32 %v1168_v63, %v1020_v1 }
 0x1b4   :  { %v1880_v39 = vpack.c.bf16 %v1288_v27, %v1287_v12  ;;  %v1243_v47 = vmax.f32 %v1169_v11, %v1204_v31 }
 0x1b5   :  { %v1175_v51 = vpop.f32.mrf.mxu2 }
 0x1b6   :  { %1903 = vst [vmem:[%s2806_s3 + $0x10] sm:$0xff] %v1880_v39   ;;  %v1257_v25 = vmax.f32 %v2835_v0, %v1243_v47  ;;  %v872_v21 = vpop.f32.mrf.mxu0  ;;  %v1211_v39 = vadd.f32 %v1210_v14, %v1062_v59 }
 0x1b7   :  { %v1021_v33 = vpop.f32.mrf.mxu1 }
 0x1b8   :  { %v1022_v49 = vadd.f32 %v1021_v33, %v872_v21  ;;  %v1275_v5 = vadd.f32 %v2699_v58, %v1257_v25  ;;  %v1213_v11 = vpop.f32.mrf.mxu3  ;;  %v2838_v25 = vmax.f32 %v2383_v57, %v2631_v30  ;;  %v2839_v57 = vmax.f32 %v2406_v13, %v2650_v32 }
 0x1b9   :  { %v1214_v35 = vadd.f32 %v1213_v11, %v1065_v41  ;;  %v2840_v13 = vmax.f32 %v2416_v26, %v2662_v19  ;;  %v1042_v19 = vadd.f32 %v2509_v53, %v2272_v23 }
 0x1ba   :  { %v1171_v63 = vadd.f32 %v1170_v16, %v1022_v49  ;;  %v1289_v42 = vmax.f32 %v1275_v5, 0.0 }
 0x1bc   :  { %v1244_v20 = vmax.f32 %v1171_v63, %v1206_v3 }
 0x1bd   :  { %v1178_v6 = vpop.f32.mrf.mxu2 }
 0x1be   :  { %v1258_v55 = vmax.f32 %v2836_v60, %v1244_v20  ;;  %v875_v62 = vpop.f32.mrf.mxu0 }
 0x1bf   :  { %v1024_v18 = vpop.f32.mrf.mxu1 }
 0x1c0   :  { %v1276_v34 = vadd.f32 %v2699_v58, %v1258_v55  ;;  %v1025_v37 = vadd.f32 %v1024_v18, %v875_v62  ;;  %v1215_v63 = vpop.f32.mrf.mxu3  ;;  %v1067_v55 = vadd.f32 %v2667_v24, %v2437_v36  ;;  %v1040_v18 = vadd.f32 %v2484_v29, %v2249_v10 }
 0x1c1   :  { %v1070_v36 = vadd.f32 %v2673_v15, %v2448_v52  ;;  %v2842_v15 = vld [vmem:[#allocation14_spill] sm:$0xff] }
 0x1c2   :  { %v1290_v16 = vmax.f32 %v1276_v34, 0.0  ;;  %v1174_v8 = vadd.f32 %v1173_v38, %v1025_v37  ;;  %v1216_v14 = vadd.f32 %v1215_v63, %v1067_v55 }
 0x1c4   :  { %v1885_v45 = vpack.c.bf16 %v1290_v16, %v1289_v42  ;;  %v1245_v1 = vmax.f32 %v1174_v8, %v1209_v9 }
 0x1c5   :  { %v1180_v31 = vpop.f32.mrf.mxu2 }
 0x1c6   :  { %1904 = vst [vmem:[%s2806_s3 + $0x18] sm:$0xff] %v1885_v45   ;;  %v1259_v56 = vmax.f32 %v2837_v28, %v1245_v1  ;;  %v877_v12 = vpop.f32.mrf.mxu0  ;;  %v2841_v28 = vmax.f32 %v2241_v7, %v2473_v22  ;;  %v2844_v22 = vld [vmem:[#allocation8_spill] sm:$0xff] }
 0x1c7   :  { %v1026_v50 = vpop.f32.mrf.mxu1 }
 0x1c8   :  { %v1027_v27 = vadd.f32 %v1026_v50, %v877_v12  ;;  %v1277_v0 = vadd.f32 %v2699_v58, %v1259_v56  ;;  %v1218_v34 = vpop.f32.mrf.mxu3 }
 0x1c9   :  { %v1219_v29 = vadd.f32 %v1218_v34, %v1070_v36  ;;  %v2856_v34 = vld [vmem:[#allocation3_spill] sm:$0xff] }
 0x1ca   :  { %v1176_v38 = vadd.f32 %v1175_v51, %v1027_v27  ;;  %v1291_v49 = vmax.f32 %v1277_v0, 0.0 }
 0x1cc   :  { %v1246_v47 = vmax.f32 %v1176_v38, %v1211_v39  ;;  %v2845_v38 = vld [vmem:[#allocation16_spill] sm:$0xff] }
 0x1cd   :  { %v1183_v61 = vpop.f32.mrf.mxu2 }
 0x1ce   :  { %v1260_v21 = vmax.f32 %v2838_v25, %v1246_v47  ;;  %v880_v33 = vpop.f32.mrf.mxu0  ;;  %v1072_v47 = vadd.f32 %v2845_v38, %v2844_v22 }
 0x1cf   :  { %v1029_v46 = vpop.f32.mrf.mxu1 }
 0x1d0   :  { %v1278_v44 = vadd.f32 %v2699_v58, %v1260_v21  ;;  %v1030_v2 = vadd.f32 %v1029_v46, %v880_v33  ;;  %v1220_v39 = vpop.f32.mrf.mxu3  ;;  %v2847_v21 = vld [vmem:[#allocation2_spill] sm:$0xff]  ;;  %v2848_v33 = vld [vmem:[#allocation9_spill] sm:$0xff] }
 0x1d1   :  { %v1221_v25 = vadd.f32 %v1220_v39, %v1072_v47  ;;  %v2849_v46 = vmax.f32 %v2847_v21, %v2848_v33 }
 0x1d2   :  { %v1292_v3 = vmax.f32 %v1278_v44, 0.0  ;;  %v1179_v51 = vadd.f32 %v1178_v6, %v1030_v2  ;;  %v2851_v2 = vld [vmem:[#allocation11_spill] sm:$0xff] }
 0x1d4   :  { %v1890_v20 = vpack.c.bf16 %v1292_v3, %v1291_v49  ;;  %v1247_v5 = vmax.f32 %v1179_v51, %v1214_v35 }
 0x1d5   :  { %v1185_v60 = vpop.f32.mrf.mxu2 }
 0x1d6   :  { %1905 = vst [vmem:[%s2806_s3 + $0x20] sm:$0xff] %v1890_v20   ;;  %v1261_v30 = vmax.f32 %v2839_v57, %v1247_v5  ;;  %v882_v17 = vpop.f32.mrf.mxu0  ;;  %v2852_v57 = vld [vmem:[#allocation7_spill] sm:$0xff] }
 0x1d7   :  { %v1031_v43 = vpop.f32.mrf.mxu1 }
 0x1d8   :  { %v1032_v62 = vadd.f32 %v1031_v43, %v882_v17  ;;  %v1279_v9 = vadd.f32 %v2699_v58, %v1261_v30  ;;  %v2853_v30 = vld [vmem:[#allocation15_spill] sm:$0xff] }
 0x1d9   :  { %v2854_v17 = vmax.f32 %v2852_v57, %v2853_v30 }
 0x1da   :  { %v1181_v6 = vadd.f32 %v1180_v31, %v1032_v62  ;;  %v1293_v1 = vmax.f32 %v1279_v9, 0.0 }
 0x1dc   :  { %v1248_v54 = vmax.f32 %v1181_v6, %v1216_v14 }
 0x1dd   :  { %v1188_v37 = vpop.f32.mrf.mxu2 }
 0x1de   :  { %v1262_v32 = vmax.f32 %v2840_v13, %v1248_v54  ;;  %v1189_v42 = vadd.f32 %v1188_v37, %v1040_v18  ;;  %v885_v16 = vpop.f32.mrf.mxu0  ;;  %v2857_v37 = vld [vmem:[#allocation10_spill] sm:$0xff] }
 0x1df   :  { %v1034_v24 = vpop.f32.mrf.mxu1  ;;  %v2858_v9 = vmax.f32 %v2856_v34, %v2857_v37 }
 0x1e0   :  { %v1280_v8 = vadd.f32 %v2699_v58, %v1262_v32  ;;  %v1237_v45 = vmax.f32 %v2679_v4, %v1189_v42  ;;  %v1035_v10 = vadd.f32 %v1034_v24, %v885_v16  ;;  %v2843_v4 = vmax.f32 %v2439_v48, %v2842_v15  ;;  %v2850_v48 = vld [vmem:[#allocation4_spill] sm:$0xff]  ;;  %v2859_v32 = vld [vmem:[#allocation6_spill] sm:$0xff]  ;;  %v2860_v42 = vld [vmem:[#allocation13_spill] sm:$0xff] }
 0x1e1   :  { %v1045_v35 = vadd.f32 %v2851_v2, %v2850_v48  ;;  %v1047_v16 = vadd.f32 %v2860_v42, %v2859_v32 }
 0x1e2   :  { %v1294_v31 = vmax.f32 %v1280_v8, 0.0  ;;  %v1251_v56 = vmax.f32 %v2841_v28, %v1237_v45  ;;  %v1184_v26 = vadd.f32 %v1183_v61, %v1035_v10  ;;  %v2846_v61 = vld [vmem:[#allocation17_spill] sm:$0xff] }
 0x1e4   :  { %v1895_v12 = vpack.c.bf16 %v1294_v31, %v1293_v1  ;;  %v1249_v50 = vmax.f32 %v1184_v26, %v1219_v29  ;;  %v1269_v0 = vadd.f32 %v2699_v58, %v1251_v56  ;;  %v2861_v29 = vld [vmem:[#allocation5_spill] sm:$0xff]  ;;  %v2862_v1 = vld [vmem:[#allocation12_spill] sm:$0xff] }
 0x1e5   :  { %v1190_v52 = vpop.f32.mrf.mxu2  ;;  %v2863_v31 = vmax.f32 %v2861_v29, %v2862_v1 }
 0x1e6   :  { %1906 = vst [vmem:[%s2806_s3 + $0x28] sm:$0xff] %v1895_v12   ;;  %v1263_v59 = vmax.f32 %v2843_v4, %v1249_v50  ;;  %v1191_v27 = vadd.f32 %v1190_v52, %v1042_v19  ;;  %v887_v11 = vpop.f32.mrf.mxu0  ;;  %v1283_v51 = vmax.f32 %v1269_v0, 0.0 }
 0x1e7   :  { %v1036_v7 = vpop.f32.mrf.mxu1 }
 0x1e8   :  { %v1238_v23 = vmax.f32 %v2846_v61, %v1191_v27  ;;  %v1037_v53 = vadd.f32 %v1036_v7, %v887_v11  ;;  %v1281_v20 = vadd.f32 %v2699_v58, %v1263_v59 }
 0x1ea   :  { %v1252_v41 = vmax.f32 %v2849_v46, %v1238_v23  ;;  %v1186_v44 = vadd.f32 %v1185_v60, %v1037_v53  ;;  %v2855_v60 = vld [vmem:[#allocation18_spill] sm:$0xff]  ;;  %v1295_v18 = vmax.f32 %v1281_v20, 0.0 }
 0x1ec   :  { %v1270_v49 = vadd.f32 %v2699_v58, %v1252_v41  ;;  %v1250_v3 = vmax.f32 %v1186_v44, %v1221_v25 }
 0x1ed   :  { %v1193_v63 = vpop.f32.mrf.mxu2 }
 0x1ee   :  { %v1284_v5 = vmax.f32 %v1270_v49, 0.0  ;;  %v1264_v43 = vmax.f32 %v2854_v17, %v1250_v3  ;;  %v1194_v55 = vadd.f32 %v1193_v63, %v1045_v35 }
 0x1f0   :  { %v1870_v62 = vpack.c.bf16 %v1284_v5, %v1283_v51  ;;  %v1282_v14 = vadd.f32 %v2699_v58, %v1264_v43  ;;  %v1239_v6 = vmax.f32 %v2855_v60, %v1194_v55 }
 0x1f2   :  { %1871 = vst [vmem:[%s2806_s3] sm:$0xff] %v1870_v62   ;;  %v1296_v54 = vmax.f32 %v1282_v14, 0.0  ;;  %v1253_v13 = vmax.f32 %v2858_v9, %v1239_v6 }
 0x1f4   :  { %v1900_v36 = vpack.c.bf16 %v1296_v54, %v1295_v18  ;;  %v1271_v10 = vadd.f32 %v2699_v58, %v1253_v13 }
 0x1f5   :  { %v1195_v24 = vpop.f32.mrf.mxu2 }
 0x1f6   :  { %1907 = vst [vmem:[%s2806_s3 + $0x30] sm:$0xff] %v1900_v36   ;;  %v1196_v8 = vadd.f32 %v1195_v24, %v1047_v16  ;;  %v1285_v26 = vmax.f32 %v1271_v10, 0.0 }
 0x1f8   :  { %v1240_v45 = vmax.f32 %v2687_v40, %v1196_v8 }
 0x1fa   :  { %v1254_v28 = vmax.f32 %v2863_v31, %v1240_v45 }
 0x1fc   :  { %v1272_v56 = vadd.f32 %v2699_v58, %v1254_v28 }
 0x1fe   :  { %v1286_v19 = vmax.f32 %v1272_v56, 0.0 }
 0x200   :  { %v1875_v12 = vpack.c.bf16 %v1286_v19, %v1285_v26 }
 0x202   :  { %1902 = vst [vmem:[%s2806_s3 + $0x8] sm:$0xff] %v1875_v12  }

// kernel: cnn1_forward.5
= control target key start
LH: loop header
LB: loop body
LE: loop exit
PB: predicated region body
PF: predicated region fallthrough
CT: control target
= control target key end

     0   :  { %vm1431_vm0 = vcmask 523264   ;;  %s12351_s1 = inlined_call_operand.vmem [shape: bf16[576,128], index: 1, kind: input, shape index: {}]   ;;  %s12352_s0 = inlined_call_operand.vmem [shape: bf16[4,144,576], index: 0, kind: input, shape index: {}]   ;;  %s12353_s3 = inlined_call_operand.vmem [shape: bf16[9,128,512], index: 3, kind: input, shape index: {}]   ;;  %s12354_s2 = inlined_call_operand.vmem [shape: f32[1,128], index: 2, kind: input, shape index: {}]   ;;  %s12355_s6 = inlined_call_operand.vmem [shape: f32[1,128], index: 6, kind: input, shape index: {}]   ;;  %s12356_s5 = inlined_call_operand.vmem [shape: bf16[512,128], index: 5, kind: input, shape index: {}]   ;;  %s12357_s4 = inlined_call_operand.vmem [shape: f32[1,512], index: 4, kind: input, shape index: {}]   ;;  %s12358_s7 = inlined_call_operand.vmem [shape: f32[16,128], index: 7, kind: output, shape index: {}]  }
   0x1   :  { %v7922_v0 = vld [vmem:[%s12351_s1 + $0x38] sm:$0xff]  ;;  %v7921_v2 = vld [vmem:[%s12351_s1 + $0x30] sm:$0xff]  ;;  %v7920_v4 = vld [vmem:[%s12351_s1 + $0x28] sm:$0xff] }
   0x2   :  { %v7930_v1 = vld [vmem:[%s12351_s1 + $0x78] sm:$0xff]  ;;  %1540 = vmatpush.bf16.msra.mxu0 %v7922_v0  ;;  %8271 = vmatpush.bf16.msra.mxu2 %v7922_v0  ;;  %v7929_v3 = vld [vmem:[%s12351_s1 + $0x70] sm:$0xff]  ;;  %v7928_v5 = vld [vmem:[%s12351_s1 + $0x68] sm:$0xff] }
   0x3   :  { %1729 = vmatpush.bf16.msra.mxu1 %v7930_v1  ;;  %8272 = vmatpush.bf16.msra.mxu3 %v7922_v0  ;;  %v7919_v6 = vld [vmem:[%s12351_s1 + $0x20] sm:$0xff]  ;;  %v7918_v8 = vld [vmem:[%s12351_s1 + $0x18] sm:$0xff]  ;;  %v7917_v10 = vld [vmem:[%s12351_s1 + $0x10] sm:$0xff] }
   0x4   :  { %v7927_v7 = vld [vmem:[%s12351_s1 + $0x60] sm:$0xff]  ;;  %v7926_v9 = vld [vmem:[%s12351_s1 + $0x58] sm:$0xff]  ;;  %v7925_v11 = vld [vmem:[%s12351_s1 + $0x50] sm:$0xff] }
   0x5   :  { %v7916_v12 = vld [vmem:[%s12351_s1 + $0x8] sm:$0xff]  ;;  %v7915_v14 = vld [vmem:[%s12351_s1] sm:$0xff]  ;;  %v7737_v17 = vld [vmem:[%s12352_s0 + $0x10] sm:$0xf0] }
   0x6   :  { %1541 = vmatpush.bf16.msra.mxu0 %v7921_v2  ;;  %8273 = vmatpush.bf16.msra.mxu2 %v7921_v2  ;;  %v7924_v13 = vld [vmem:[%s12351_s1 + $0x48] sm:$0xff]  ;;  %v7923_v15 = vld [vmem:[%s12351_s1 + $0x40] sm:$0xff]  ;;  %v7882_v19 = vld [vmem:[%s12352_s0 + $0x498] sm:$0xf0] }
   0x7   :  { %1730 = vmatpush.bf16.msra.mxu1 %v7929_v3  ;;  %8274 = vmatpush.bf16.msra.mxu3 %v7921_v2  ;;  %v5301_v16 = vld [vmem:[%s12352_s0] sm:$0xf]  ;;  %v5881_v18 = vld [vmem:[%s12352_s0 + $0x488] sm:$0xf]  ;;  %v7735_v20 = vld [vmem:[%s12352_s0 + $0x4] sm:$0xf] }
   0x8   :  { %v5303_v21 = vld [vmem:[%s12352_s0 + $0x14] sm:$0xf0]  ;;  %v5961_v22 = vld [vmem:[%s12352_s0 + $0x528] sm:$0xf]  ;;  %v7902_v23 = vld [vmem:[%s12352_s0 + $0x538] sm:$0xf0]  ;;  %v5302_v24 = vor.u32 %v7737_v17, %v5301_v16  ;;  %v5882_v25 = vor.u32 %v7882_v19, %v5881_v18 }
   0x9   :  { %v5306_v26 = vor.u32 %v7735_v20, %v5303_v21  ;;  %v5962_v27 = vor.u32 %v7902_v23, %v5961_v22  ;;  %v7938_v28 = vld [vmem:[%s12351_s1 + $0xb8] sm:$0xff]  ;;  %v7937_v30 = vld [vmem:[%s12351_s1 + $0xb0] sm:$0xff]  ;;  %v7936_v32 = vld [vmem:[%s12351_s1 + $0xa8] sm:$0xff] }
   0xa   :  { %1542 = vmatpush.bf16.msra.mxu0 %v7920_v4  ;;  %8275 = vmatpush.bf16.msra.mxu2 %v7920_v4  ;;  %v7946_v29 = vld [vmem:[%s12351_s1 + $0xf8] sm:$0xff]  ;;  %v7945_v31 = vld [vmem:[%s12351_s1 + $0xf0] sm:$0xff]  ;;  %v7944_v33 = vld [vmem:[%s12351_s1 + $0xe8] sm:$0xff] }
   0xb   :  { %1731 = vmatpush.bf16.msra.mxu1 %v7928_v5  ;;  %8276 = vmatpush.bf16.msra.mxu3 %v7920_v4  ;;  %v5321_v34 = vld [vmem:[%s12352_s0 + $0x28] sm:$0xf]  ;;  %v7742_v35 = vld [vmem:[%s12352_s0 + $0x38] sm:$0xf0]  ;;  %v5901_v36 = vld [vmem:[%s12352_s0 + $0x4b0] sm:$0xf] }
   0xc   :  { %v7887_v37 = vld [vmem:[%s12352_s0 + $0x4c0] sm:$0xf0]  ;;  %v7740_v38 = vld [vmem:[%s12352_s0 + $0x2c] sm:$0xf]  ;;  %v5323_v39 = vld [vmem:[%s12352_s0 + $0x3c] sm:$0xf0]  ;;  %v5322_v44 = vor.u32 %v7742_v35, %v5321_v34 }
   0xd   :  { %v5981_v40 = vld [vmem:[%s12352_s0 + $0x550] sm:$0xf]  ;;  %v7907_v41 = vld [vmem:[%s12352_s0 + $0x560] sm:$0xf0]  ;;  %v5902_v45 = vor.u32 %v7887_v37, %v5901_v36  ;;  %v5326_v46 = vor.u32 %v7740_v38, %v5323_v39  ;;  %v7934_v48 = vld [vmem:[%s12351_s1 + $0x98] sm:$0xff] }
   0xe   :  { %1543 = vmatpush.bf16.msra.mxu0 %v7919_v6  ;;  %8277 = vmatpush.bf16.msra.mxu2 %v7919_v6  ;;  %v7935_v42 = vld [vmem:[%s12351_s1 + $0xa0] sm:$0xff]  ;;  %v5982_v47 = vor.u32 %v7907_v41, %v5981_v40  ;;  %v7942_v49 = vld [vmem:[%s12351_s1 + $0xd8] sm:$0xff]  ;;  %v7933_v50 = vld [vmem:[%s12351_s1 + $0x90] sm:$0xff] }
   0xf   :  { %1732 = vmatpush.bf16.msra.mxu1 %v7927_v7  ;;  %8278 = vmatpush.bf16.msra.mxu3 %v7919_v6  ;;  %v7943_v43 = vld [vmem:[%s12351_s1 + $0xe0] sm:$0xff]  ;;  %v7941_v51 = vld [vmem:[%s12351_s1 + $0xd0] sm:$0xff]  ;;  %v7932_v52 = vld [vmem:[%s12351_s1 + $0x88] sm:$0xff] }
  0x10   :  { %v7940_v53 = vld [vmem:[%s12351_s1 + $0xc8] sm:$0xff]  ;;  %v5341_v54 = vld [vmem:[%s12352_s0 + $0x50] sm:$0xf]  ;;  %v7747_v55 = vld [vmem:[%s12352_s0 + $0x60] sm:$0xf0] }
  0x11   :  { %v5921_v56 = vld [vmem:[%s12352_s0 + $0x4d8] sm:$0xf]  ;;  %v7892_v57 = vld [vmem:[%s12352_s0 + $0x4e8] sm:$0xf0]  ;;  %v7745_v58 = vld [vmem:[%s12352_s0 + $0x54] sm:$0xf]  ;;  %v5342_v0 = vor.u32 %v7747_v55, %v5341_v54 }
  0x12   :  { %1544 = vmatpush.bf16.msra.mxu0 %v7918_v8  ;;  %8279 = vmatpush.bf16.msra.mxu2 %v7918_v8  ;;  %v5343_v59 = vld [vmem:[%s12352_s0 + $0x64] sm:$0xf0]  ;;  %v6001_v60 = vld [vmem:[%s12352_s0 + $0x578] sm:$0xf]  ;;  %v7912_v61 = vld [vmem:[%s12352_s0 + $0x588] sm:$0xf0]  ;;  %v5922_v1 = vor.u32 %v7892_v57, %v5921_v56 }
  0x13   :  { %1733 = vmatpush.bf16.msra.mxu1 %v7926_v9  ;;  %8280 = vmatpush.bf16.msra.mxu3 %v7918_v8  ;;  %v7931_v62 = vld [vmem:[%s12351_s1 + $0x80] sm:$0xff]  ;;  %v5346_v2 = vor.u32 %v7745_v58, %v5343_v59  ;;  %v6002_v3 = vor.u32 %v7912_v61, %v6001_v60  ;;  %v5361_v4 = vld [vmem:[%s12352_s0 + $0x78] sm:$0xf]  ;;  %v7752_v5 = vld [vmem:[%s12352_s0 + $0x88] sm:$0xf0] }
  0x14   :  { %v7939_v63 = vld [vmem:[%s12351_s1 + $0xc0] sm:$0xff]  ;;  %v7897_v7 = vld [vmem:[%s12352_s0 + $0x510] sm:$0xf0]  ;;  %v7750_v8 = vld [vmem:[%s12352_s0 + $0x7c] sm:$0xf] }
  0x15   :  { %v5941_v6 = vld [vmem:[%s12352_s0 + $0x500] sm:$0xf]  ;;  %v5363_v9 = vld [vmem:[%s12352_s0 + $0x8c] sm:$0xf0]  ;;  %v7757_v17 = vld [vmem:[%s12352_s0 + $0xb0] sm:$0xf0] }
  0x16   :  { %1545 = vmatpush.bf16.msra.mxu0 %v7917_v10  ;;  %8281 = vmatpush.bf16.msra.mxu2 %v7917_v10  ;;  %v5381_v16 = vld [vmem:[%s12352_s0 + $0xa0] sm:$0xf]  ;;  %v7755_v18 = vld [vmem:[%s12352_s0 + $0xa4] sm:$0xf]  ;;  %v5309_v19 = vld [vmem:[%s12352_s0 + $0x8] sm:$0xf] }
  0x17   :  { %1734 = vmatpush.bf16.msra.mxu1 %v7925_v11  ;;  %8282 = vmatpush.bf16.msra.mxu3 %v7917_v10  ;;  %v7736_v10 = vld [vmem:[%s12352_s0 + $0xc] sm:$0xf]  ;;  %v5311_v11 = vld [vmem:[%s12352_s0 + $0x1c] sm:$0xf0]  ;;  %v7738_v20 = vld [vmem:[%s12352_s0 + $0x18] sm:$0xf0] }
  0x18   :  { %v5383_v21 = vld [vmem:[%s12352_s0 + $0xb4] sm:$0xf0]  ;;  %v7741_v22 = vld [vmem:[%s12352_s0 + $0x34] sm:$0xf]  ;;  %v5331_v23 = vld [vmem:[%s12352_s0 + $0x44] sm:$0xf0] }
  0x19   :  { %v7746_v34 = vld [vmem:[%s12352_s0 + $0x5c] sm:$0xf]  ;;  %v5351_v35 = vld [vmem:[%s12352_s0 + $0x6c] sm:$0xf0]  ;;  %v7772_v54 = vld [vmem:[%s12352_s0 + $0x128] sm:$0xf0] }
  0x1a   :  { %1546 = vmatpush.bf16.msra.mxu0 %v7916_v12  ;;  %8283 = vmatpush.bf16.msra.mxu2 %v7916_v12  ;;  %v5354_v39 = vor.u32 %v7746_v34, %v5351_v35  ;;  %v7950_v40 = vld [vmem:[%s12351_s1 + $0x118] sm:$0xff]  ;;  %v5421_v41 = vld [vmem:[%s12352_s0 + $0xf0] sm:$0xf]  ;;  %v5369_v56 = vld [vmem:[%s12352_s0 + $0x80] sm:$0xf] }
  0x1b   :  { %1735 = vmatpush.bf16.msra.mxu1 %v7924_v13  ;;  %8284 = vmatpush.bf16.msra.mxu3 %v7916_v12  ;;  %v5362_v12 = vor.u32 %v7752_v5, %v5361_v4  ;;  %v5942_v13 = vor.u32 %v7897_v7, %v5941_v6  ;;  %v7770_v55 = vld [vmem:[%s12352_s0 + $0x11c] sm:$0xf]  ;;  %v7753_v57 = vld [vmem:[%s12352_s0 + $0x90] sm:$0xf0]  ;;  %v5443_v58 = vld [vmem:[%s12352_s0 + $0x12c] sm:$0xf0] }
  0x1c   :  { %v7756_v59 = vld [vmem:[%s12352_s0 + $0xac] sm:$0xf]  ;;  %v5391_v60 = vld [vmem:[%s12352_s0 + $0xbc] sm:$0xf0]  ;;  %v5389_v4 = vld [vmem:[%s12352_s0 + $0xa8] sm:$0xf] }
  0x1d   :  { %v7758_v5 = vld [vmem:[%s12352_s0 + $0xb8] sm:$0xf0]  ;;  %v5463_v6 = vld [vmem:[%s12352_s0 + $0x154] sm:$0xf0]  ;;  %v7761_v7 = vld [vmem:[%s12352_s0 + $0xd4] sm:$0xf] }
  0x1e   :  { %1547 = vmatpush.bf16.msra.mxu0 %v7915_v14  ;;  %8285 = vmatpush.bf16.msra.mxu2 %v7915_v14 }
  0x1f   :  { %1736 = vmatpush.bf16.msra.mxu1 %v7923_v15  ;;  %8286 = vmatpush.bf16.msra.mxu3 %v7915_v14  ;;  %v5366_v14 = vor.u32 %v7750_v8, %v5363_v9  ;;  %v5314_v15 = vor.u32 %v7736_v10, %v5311_v11  ;;  %v5411_v8 = vld [vmem:[%s12352_s0 + $0xe4] sm:$0xf0]  ;;  %v5390_v10 = vor.u32 %v7758_v5, %v5389_v4  ;;  %v5449_v4 = vld [vmem:[%s12352_s0 + $0x120] sm:$0xf]  ;;  %v7773_v5 = vld [vmem:[%s12352_s0 + $0x130] sm:$0xf0] }
  0x21   :  { %1548 = vmatmul.bf16.vlgmr.msra.gmra.mxu0 %v5302_v24  ;;  %1693 = vmatmul.bf16.vlgmr.msra.gmra.mxu2 %v5882_v25  ;;  %v5382_v24 = vor.u32 %v7757_v17, %v5381_v16  ;;  %v5310_v25 = vor.u32 %v7738_v20, %v5309_v19 }
  0x22   :  { %1737 = vmatmul.bf16.vlgmr.msra.gmra.mxu1 %v5306_v26  ;;  %1713 = vmatmul.bf16.vlgmr.msra.gmra.mxu3 %v5962_v27  ;;  %v5386_v26 = vor.u32 %v7755_v18, %v5383_v21  ;;  %v5334_v27 = vor.u32 %v7741_v22, %v5331_v23  ;;  %v5481_v21 = vld [vmem:[%s12352_s0 + $0x168] sm:$0xf]  ;;  %v7782_v22 = vld [vmem:[%s12352_s0 + $0x178] sm:$0xf0]  ;;  %v7780_v23 = vld [vmem:[%s12352_s0 + $0x16c] sm:$0xf] }
  0x23   :  { %1918 = vmatpush.bf16.msrb.mxu2 %v7938_v28  ;;  %2107 = vmatpush.bf16.msrb.mxu3 %v7946_v29  ;;  %v5401_v28 = vld [vmem:[%s12352_s0 + $0xc8] sm:$0xf]  ;;  %v7762_v29 = vld [vmem:[%s12352_s0 + $0xd8] sm:$0xf0] }
  0x24   :  { %v5402_v36 = vor.u32 %v7762_v29, %v5401_v28  ;;  %2300 = vmatpush.bf16.msrb.mxu0 %v7950_v40  ;;  %v5431_v28 = vld [vmem:[%s12352_s0 + $0x10c] sm:$0xf0] }
  0x27   :  { %1919 = vmatpush.bf16.msrb.mxu2 %v7937_v30  ;;  %2108 = vmatpush.bf16.msrb.mxu3 %v7945_v31  ;;  %v7760_v30 = vld [vmem:[%s12352_s0 + $0xcc] sm:$0xf]  ;;  %v5329_v31 = vld [vmem:[%s12352_s0 + $0x30] sm:$0xf] }
  0x2b   :  { %1920 = vmatpush.bf16.msrb.mxu2 %v7936_v32  ;;  %2109 = vmatpush.bf16.msrb.mxu3 %v7944_v33  ;;  %v7743_v32 = vld [vmem:[%s12352_s0 + $0x40] sm:$0xf0]  ;;  %v5403_v33 = vld [vmem:[%s12352_s0 + $0xdc] sm:$0xf0] }
  0x2c   :  { %v5330_v37 = vor.u32 %v7743_v32, %v5329_v31  ;;  %v5406_v38 = vor.u32 %v7760_v30, %v5403_v33  ;;  %v5482_v30 = vor.u32 %v7782_v22, %v5481_v21 }
  0x2f   :  { %1921 = vmatpush.bf16.msrb.mxu2 %v7935_v42  ;;  %2110 = vmatpush.bf16.msrb.mxu3 %v7943_v43  ;;  %v7767_v42 = vld [vmem:[%s12352_s0 + $0x100] sm:$0xf0]  ;;  %v7765_v43 = vld [vmem:[%s12352_s0 + $0xf4] sm:$0xf] }
  0x31   :  { %1553 = vmatmul.bf16.gmra.mxu0 %v5322_v44  ;;  %1698 = vmatmul.bf16.gmra.mxu2 %v5902_v45  ;;  %v5349_v44 = vld [vmem:[%s12352_s0 + $0x58] sm:$0xf]  ;;  %v7748_v45 = vld [vmem:[%s12352_s0 + $0x68] sm:$0xf0] }
  0x32   :  { %1742 = vmatmul.bf16.gmra.mxu1 %v5326_v46  ;;  %1718 = vmatmul.bf16.gmra.mxu3 %v5982_v47  ;;  %v5423_v46 = vld [vmem:[%s12352_s0 + $0x104] sm:$0xf0]  ;;  %v7751_v47 = vld [vmem:[%s12352_s0 + $0x84] sm:$0xf] }
  0x33   :  { %1922 = vmatpush.bf16.msrb.mxu2 %v7934_v48  ;;  %2111 = vmatpush.bf16.msrb.mxu3 %v7942_v49  ;;  %v5371_v48 = vld [vmem:[%s12352_s0 + $0x94] sm:$0xf0]  ;;  %v5422_v49 = vor.u32 %v7767_v42, %v5421_v41 }
  0x37   :  { %1923 = vmatpush.bf16.msrb.mxu2 %v7933_v50  ;;  %2112 = vmatpush.bf16.msrb.mxu3 %v7941_v51  ;;  %v5350_v50 = vor.u32 %v7748_v45, %v5349_v44  ;;  %v5426_v51 = vor.u32 %v7765_v43, %v5423_v46  ;;  %v5501_v43 = vld [vmem:[%s12352_s0 + $0x190] sm:$0xf]  ;;  %v7787_v44 = vld [vmem:[%s12352_s0 + $0x1a0] sm:$0xf0]  ;;  %v7785_v45 = vld [vmem:[%s12352_s0 + $0x194] sm:$0xf] }
  0x38   :  { %v5429_v46 = vld [vmem:[%s12352_s0 + $0xf8] sm:$0xf] }
  0x3b   :  { %1924 = vmatpush.bf16.msrb.mxu2 %v7932_v52  ;;  %2113 = vmatpush.bf16.msrb.mxu3 %v7940_v53  ;;  %v5374_v52 = vor.u32 %v7751_v47, %v5371_v48  ;;  %v5441_v53 = vld [vmem:[%s12352_s0 + $0x118] sm:$0xf]  ;;  %v7768_v47 = vld [vmem:[%s12352_s0 + $0x108] sm:$0xf0]  ;;  %v5503_v48 = vld [vmem:[%s12352_s0 + $0x1a4] sm:$0xf0] }
  0x3c   :  { %v5442_v61 = vor.u32 %v7772_v54, %v5441_v53  ;;  %v5430_v53 = vor.u32 %v7768_v47, %v5429_v46 }
  0x3f   :  { %1925 = vmatpush.bf16.msrb.mxu2 %v7931_v62  ;;  %2114 = vmatpush.bf16.msrb.mxu3 %v7939_v63  ;;  %v5370_v62 = vor.u32 %v7753_v57, %v5369_v56  ;;  %v5446_v63 = vor.u32 %v7770_v55, %v5443_v58  ;;  %v5506_v56 = vor.u32 %v7785_v45, %v5503_v48 }
  0x41   :  { %1558 = vmatmul.bf16.gmra.mxu0 %v5342_v0  ;;  %1703 = vmatmul.bf16.gmra.mxu2 %v5922_v1  ;;  %v5394_v0 = vor.u32 %v7756_v59, %v5391_v60  ;;  %v5461_v1 = vld [vmem:[%s12352_s0 + $0x140] sm:$0xf] }
  0x42   :  { %1747 = vmatmul.bf16.gmra.mxu1 %v5346_v2  ;;  %1723 = vmatmul.bf16.gmra.mxu3 %v6002_v3  ;;  %v7777_v2 = vld [vmem:[%s12352_s0 + $0x150] sm:$0xf0]  ;;  %v7775_v3 = vld [vmem:[%s12352_s0 + $0x144] sm:$0xf] }
  0x43   :  { %v5462_v9 = vor.u32 %v7777_v2, %v5461_v1  ;;  %v5521_v1 = vld [vmem:[%s12352_s0 + $0x1b8] sm:$0xf]  ;;  %v7792_v2 = vld [vmem:[%s12352_s0 + $0x1c8] sm:$0xf0] }
  0x51   :  { %1563 = vmatmul.bf16.gmra.mxu0 %v5362_v12  ;;  %1708 = vmatmul.bf16.gmra.mxu2 %v5942_v13  ;;  %v5466_v12 = vor.u32 %v7775_v3, %v5463_v6  ;;  %v5414_v13 = vor.u32 %v7761_v7, %v5411_v8  ;;  %v7790_v3 = vld [vmem:[%s12352_s0 + $0x1bc] sm:$0xf]  ;;  %v5523_v6 = vld [vmem:[%s12352_s0 + $0x1cc] sm:$0xf0]  ;;  %v7776_v7 = vld [vmem:[%s12352_s0 + $0x14c] sm:$0xf] }
  0x52   :  { %1752 = vmatmul.bf16.gmra.mxu1 %v5366_v14  ;;  %2115 = vmatmul.bf16.vlgmr.msrb.gmra.mxu3 %v5314_v15  ;;  %v5471_v8 = vld [vmem:[%s12352_s0 + $0x15c] sm:$0xf0] }
  0x61   :  { %1568 = vmatmul.bf16.gmra.mxu0 %v5382_v24  ;;  %1926 = vmatmul.bf16.vlgmr.msrb.gmra.mxu2 %v5310_v25  ;;  %v5409_v24 = vld [vmem:[%s12352_s0 + $0xd0] sm:$0xf]  ;;  %v7763_v25 = vld [vmem:[%s12352_s0 + $0xe0] sm:$0xf0] }
  0x62   :  { %1757 = vmatmul.bf16.gmra.mxu1 %v5386_v26  ;;  %2120 = vmatmul.bf16.gmra.mxu3 %v5334_v27  ;;  %v5483_v26 = vld [vmem:[%s12352_s0 + $0x17c] sm:$0xf0]  ;;  %v7766_v27 = vld [vmem:[%s12352_s0 + $0xfc] sm:$0xf]  ;;  %v5410_v31 = vor.u32 %v7763_v25, %v5409_v24 }
  0x63   :  { %v5486_v34 = vor.u32 %v7780_v23, %v5483_v26  ;;  %v5434_v35 = vor.u32 %v7766_v27, %v5431_v28  ;;  %v5541_v27 = vld [vmem:[%s12352_s0 + $0x1e0] sm:$0xf]  ;;  %v7797_v28 = vld [vmem:[%s12352_s0 + $0x1f0] sm:$0xf0] }
  0x71   :  { %1573 = vmatmul.bf16.gmra.mxu0 %v5402_v36  ;;  %1931 = vmatmul.bf16.gmra.mxu2 %v5330_v37 }
  0x72   :  { %1762 = vmatmul.bf16.gmra.mxu1 %v5406_v38  ;;  %2125 = vmatmul.bf16.gmra.mxu3 %v5354_v39 }
  0x81   :  { %1578 = vmatmul.bf16.gmra.mxu0 %v5422_v49  ;;  %1936 = vmatmul.bf16.gmra.mxu2 %v5350_v50  ;;  %v7771_v49 = vld [vmem:[%s12352_s0 + $0x124] sm:$0xf]  ;;  %v5451_v50 = vld [vmem:[%s12352_s0 + $0x134] sm:$0xf0] }
  0x82   :  { %1767 = vmatmul.bf16.gmra.mxu1 %v5426_v51  ;;  %2130 = vmatmul.bf16.gmra.mxu3 %v5374_v52  ;;  %v5502_v52 = vor.u32 %v7787_v44, %v5501_v43  ;;  %v5454_v57 = vor.u32 %v7771_v49, %v5451_v50 }
  0x91   :  { %1583 = vmatmul.bf16.gmra.mxu0 %v5442_v61  ;;  %1941 = vmatmul.bf16.gmra.mxu2 %v5370_v62 }
  0x92   :  { %1772 = vmatmul.bf16.gmra.mxu1 %v5446_v63  ;;  %2135 = vmatmul.bf16.gmra.mxu3 %v5394_v0 }
  0x9e   :  { %v1549_v11 = vpop.f32.mrf.mxu0 }
  0x9f   :  { %v1738_v14 = vpop.f32.mrf.mxu1 }
  0xa0   :  { %v8645_v15 = vadd.f32 %v1738_v14, %v1549_v11  ;;  %v5450_v11 = vor.u32 %v7773_v5, %v5449_v4  ;;  %v5526_v14 = vor.u32 %v7790_v3, %v5523_v6  ;;  %v7783_v3 = vld [vmem:[%s12352_s0 + $0x180] sm:$0xf0]  ;;  %v5563_v4 = vld [vmem:[%s12352_s0 + $0x21c] sm:$0xf0]  ;;  %v7786_v5 = vld [vmem:[%s12352_s0 + $0x19c] sm:$0xf] }
  0xa1   :  { %1588 = vmatmul.bf16.gmra.mxu0 %v5462_v9  ;;  %1946 = vmatmul.bf16.gmra.mxu2 %v5390_v10  ;;  %v5522_v10 = vor.u32 %v7792_v2, %v5521_v1  ;;  %v7802_v1 = vld [vmem:[%s12352_s0 + $0x218] sm:$0xf0]  ;;  %v5489_v2 = vld [vmem:[%s12352_s0 + $0x170] sm:$0xf] }
  0xa2   :  { %1777 = vmatmul.bf16.gmra.mxu1 %v5466_v12  ;;  %2140 = vmatmul.bf16.gmra.mxu3 %v5414_v13  ;;  %v5511_v6 = vld [vmem:[%s12352_s0 + $0x1ac] sm:$0xf0] }
  0xa4   :  { %v8647_v16 = vpop.f32.mrf.mxu2 }
  0xa5   :  { %12373 = vst [vmem:[#allocation2_spill] sm:$0xff] %v8647_v16  ;;  %v8649_v17 = vpop.f32.mrf.mxu3 }
  0xa6   :  { %12374 = vst [vmem:[#allocation3_spill] sm:$0xff] %v8649_v17  ;;  %v1551_v18 = vpop.f32.mrf.mxu0 }
  0xa7   :  { %v1740_v19 = vpop.f32.mrf.mxu1 }
  0xa8   :  { %v8651_v20 = vadd.f32 %v1740_v19, %v1551_v18  ;;  %v5474_v18 = vor.u32 %v7776_v7, %v5471_v8 }
  0xac   :  { %v8677_v29 = vpop.f32.mrf.mxu2 }
  0xad   :  { %12375 = vst [vmem:[#allocation4_spill] sm:$0xff] %v8677_v29  ;;  %v8679_v32 = vpop.f32.mrf.mxu3 }
  0xae   :  { %12376 = vst [vmem:[#allocation5_spill] sm:$0xff] %v8679_v32  ;;  %v1554_v33 = vpop.f32.mrf.mxu0 }
  0xaf   :  { %v1743_v36 = vpop.f32.mrf.mxu1 }
  0xb0   :  { %v8681_v37 = vadd.f32 %v1743_v36, %v1554_v33  ;;  %v7778_v33 = vld [vmem:[%s12352_s0 + $0x158] sm:$0xf0]  ;;  %v5491_v36 = vld [vmem:[%s12352_s0 + $0x184] sm:$0xf0] }
  0xb1   :  { %1593 = vmatmul.bf16.gmra.mxu0 %v5482_v30  ;;  %1951 = vmatmul.bf16.gmra.mxu2 %v5410_v31  ;;  %v7795_v30 = vld [vmem:[%s12352_s0 + $0x1e4] sm:$0xf]  ;;  %v5469_v31 = vld [vmem:[%s12352_s0 + $0x148] sm:$0xf] }
  0xb2   :  { %1782 = vmatmul.bf16.gmra.mxu1 %v5486_v34  ;;  %2145 = vmatmul.bf16.gmra.mxu3 %v5434_v35  ;;  %v5543_v34 = vld [vmem:[%s12352_s0 + $0x1f4] sm:$0xf0]  ;;  %v7781_v35 = vld [vmem:[%s12352_s0 + $0x174] sm:$0xf]  ;;  %v5470_v43 = vor.u32 %v7778_v33, %v5469_v31 }
  0xb3   :  { %v5546_v46 = vor.u32 %v7795_v30, %v5543_v34  ;;  %v5494_v47 = vor.u32 %v7781_v35, %v5491_v36  ;;  %v5581_v35 = vld [vmem:[%s12352_s0 + $0x230] sm:$0xf]  ;;  %v7807_v36 = vld [vmem:[%s12352_s0 + $0x240] sm:$0xf0] }
  0xb4   :  { %v8683_v38 = vpop.f32.mrf.mxu2 }
  0xb5   :  { %12377 = vst [vmem:[#allocation6_spill] sm:$0xff] %v8683_v38  ;;  %v8685_v39 = vpop.f32.mrf.mxu3 }
  0xb6   :  { %12378 = vst [vmem:[#allocation7_spill] sm:$0xff] %v8685_v39  ;;  %v1556_v40 = vpop.f32.mrf.mxu0 }
  0xb7   :  { %v1745_v41 = vpop.f32.mrf.mxu1 }
  0xb8   :  { %v8687_v42 = vadd.f32 %v1745_v41, %v1556_v40  ;;  %v5542_v41 = vor.u32 %v7797_v28, %v5541_v27 }
  0xbc   :  { %v8713_v51 = vpop.f32.mrf.mxu2 }
  0xbd   :  { %12379 = vst [vmem:[#allocation8_spill] sm:$0xff] %v8713_v51  ;;  %v8715_v54 = vpop.f32.mrf.mxu3 }
  0xbe   :  { %12380 = vst [vmem:[#allocation9_spill] sm:$0xff] %v8715_v54  ;;  %v1559_v55 = vpop.f32.mrf.mxu0 }
  0xbf   :  { %v1748_v58 = vpop.f32.mrf.mxu1 }
  0xc0   :  { %v8717_v59 = vadd.f32 %v1748_v58, %v1559_v55 }
  0xc1   :  { %1598 = vmatmul.bf16.gmra.mxu0 %v5502_v52  ;;  %1956 = vmatmul.bf16.gmra.mxu2 %v5430_v53 }
  0xc2   :  { %1787 = vmatmul.bf16.gmra.mxu1 %v5506_v56  ;;  %2150 = vmatmul.bf16.gmra.mxu3 %v5454_v57 }
  0xc4   :  { %v8719_v60 = vpop.f32.mrf.mxu2 }
  0xc5   :  { %12381 = vst [vmem:[#allocation10_spill] sm:$0xff] %v8719_v60  ;;  %v8721_v61 = vpop.f32.mrf.mxu3 }
  0xc6   :  { %12382 = vst [vmem:[#allocation11_spill] sm:$0xff] %v8721_v61  ;;  %v1561_v62 = vpop.f32.mrf.mxu0 }
  0xc7   :  { %v1750_v63 = vpop.f32.mrf.mxu1 }
  0xc8   :  { %v8723_v0 = vadd.f32 %v1750_v63, %v1561_v62  ;;  %v7949_v62 = vld [vmem:[%s12351_s1 + $0x110] sm:$0xff]  ;;  %v5561_v63 = vld [vmem:[%s12352_s0 + $0x208] sm:$0xf] }
  0xc9   :  { %2301 = vmatpush.bf16.msrb.mxu0 %v7949_v62 }
  0xcc   :  { %v8749_v9 = vpop.f32.mrf.mxu2 }
  0xcd   :  { %12383 = vst [vmem:[#allocation12_spill] sm:$0xff] %v8749_v9  ;;  %v8751_v12 = vpop.f32.mrf.mxu3 }
  0xce   :  { %12384 = vst [vmem:[#allocation13_spill] sm:$0xff] %v8751_v12  ;;  %v1564_v13 = vpop.f32.mrf.mxu0 }
  0xcf   :  { %v1753_v19 = vpop.f32.mrf.mxu1 }
  0xd0   :  { %v8753_v21 = vadd.f32 %v1753_v19, %v1564_v13  ;;  %v5514_v19 = vor.u32 %v7786_v5, %v5511_v6 }
  0xd1   :  { %1603 = vmatmul.bf16.gmra.mxu0 %v5522_v10  ;;  %1961 = vmatmul.bf16.gmra.mxu2 %v5450_v11  ;;  %v5562_v10 = vor.u32 %v7802_v1, %v5561_v63  ;;  %v5490_v11 = vor.u32 %v7783_v3, %v5489_v2 }
  0xd2   :  { %1792 = vmatmul.bf16.gmra.mxu1 %v5526_v14  ;;  %2155 = vmatmul.bf16.gmra.mxu3 %v5474_v18 }
  0xd4   :  { %v8755_v22 = vpop.f32.mrf.mxu2 }
  0xd5   :  { %12385 = vst [vmem:[#allocation14_spill] sm:$0xff] %v8755_v22  ;;  %v2116_v23 = vpop.f32.mrf.mxu3 }
  0xd6   :  { %v1566_v24 = vpop.f32.mrf.mxu0 }
  0xd7   :  { %v1755_v25 = vpop.f32.mrf.mxu1 }
  0xd8   :  { %v8757_v26 = vadd.f32 %v1755_v25, %v1566_v24 }
  0xdc   :  { %v8783_v40 = vpop.f32.mrf.mxu2 }
  0xdd   :  { %12386 = vst [vmem:[#allocation15_spill] sm:$0xff] %v8783_v40  ;;  %v2118_v44 = vpop.f32.mrf.mxu3 }
  0xde   :  { %v1569_v45 = vpop.f32.mrf.mxu0 }
  0xdf   :  { %v1758_v48 = vpop.f32.mrf.mxu1 }
  0xe0   :  { %v8785_v49 = vadd.f32 %v1758_v48, %v1569_v45  ;;  %v7791_v45 = vld [vmem:[%s12352_s0 + $0x1c4] sm:$0xf] }
  0xe1   :  { %1608 = vmatmul.bf16.gmra.mxu0 %v5542_v41  ;;  %1966 = vmatmul.bf16.gmra.mxu2 %v5470_v43  ;;  %v7805_v41 = vld [vmem:[%s12352_s0 + $0x234] sm:$0xf]  ;;  %v7788_v43 = vld [vmem:[%s12352_s0 + $0x1a8] sm:$0xf0] }
  0xe2   :  { %1797 = vmatmul.bf16.gmra.mxu1 %v5546_v46  ;;  %2160 = vmatmul.bf16.gmra.mxu3 %v5494_v47  ;;  %v5531_v46 = vld [vmem:[%s12352_s0 + $0x1d4] sm:$0xf0] }
  0xe3   :  { %v5534_v62 = vor.u32 %v7791_v45, %v5531_v46 }
  0xe4   :  { %v1927_v50 = vpop.f32.mrf.mxu2 }
  0xe5   :  { %v1928_v52 = vadd.f32 %v1927_v50, %v8645_v15  ;;  %v2121_v53 = vpop.f32.mrf.mxu3  ;;  %v7800_v15 = vld [vmem:[%s12352_s0 + $0x20c] sm:$0xf]  ;;  %v5582_v50 = vor.u32 %v7807_v36, %v5581_v35 }
  0xe6   :  { %v1571_v55 = vpop.f32.mrf.mxu0  ;;  %v5566_v18 = vor.u32 %v7800_v15, %v5563_v4 }
  0xe7   :  { %v1760_v56 = vpop.f32.mrf.mxu1  ;;  %v8788_v57 = vadd.f32 %v2116_v23, %v1928_v52 }
  0xe8   :  { %v8790_v58 = vadd.f32 %v1760_v56, %v1571_v55 }
  0xec   :  { %v1929_v7 = vpop.f32.mrf.mxu2 }
  0xed   :  { %v1930_v8 = vadd.f32 %v1929_v7, %v8651_v20  ;;  %v2123_v13 = vpop.f32.mrf.mxu3 }
  0xee   :  { %v1574_v14 = vpop.f32.mrf.mxu0 }
  0xef   :  { %v1763_v23 = vpop.f32.mrf.mxu1  ;;  %v8820_v24 = vadd.f32 %v2118_v44, %v1930_v8  ;;  %v5583_v44 = vld [vmem:[%s12352_s0 + $0x244] sm:$0xf0]  ;;  %v5601_v8 = vld [vmem:[%s12352_s0 + $0x258] sm:$0xf] }
  0xf0   :  { %v8822_v25 = vadd.f32 %v1763_v23, %v1574_v14  ;;  %v5586_v56 = vor.u32 %v7805_v41, %v5583_v44  ;;  %v5603_v14 = vld [vmem:[%s12352_s0 + $0x26c] sm:$0xf0] }
  0xf1   :  { %1613 = vmatmul.bf16.gmra.mxu0 %v5562_v10  ;;  %1971 = vmatmul.bf16.gmra.mxu2 %v5490_v11  ;;  %v7812_v10 = vld [vmem:[%s12352_s0 + $0x268] sm:$0xf0]  ;;  %v7810_v11 = vld [vmem:[%s12352_s0 + $0x25c] sm:$0xf] }
  0xf2   :  { %1802 = vmatmul.bf16.gmra.mxu1 %v5566_v18  ;;  %2165 = vmatmul.bf16.gmra.mxu3 %v5514_v19  ;;  %v7796_v18 = vld [vmem:[%s12352_s0 + $0x1ec] sm:$0xf]  ;;  %v5551_v19 = vld [vmem:[%s12352_s0 + $0x1fc] sm:$0xf0]  ;;  %v5606_v35 = vor.u32 %v7810_v11, %v5603_v14 }
  0xf3   :  { %v5554_v36 = vor.u32 %v7796_v18, %v5551_v19 }
  0xf4   :  { %v1932_v27 = vpop.f32.mrf.mxu2 }
  0xf5   :  { %v1933_v28 = vadd.f32 %v1932_v27, %v8681_v37  ;;  %v2126_v30 = vpop.f32.mrf.mxu3  ;;  %v5509_v37 = vld [vmem:[%s12352_s0 + $0x198] sm:$0xf] }
  0xf6   :  { %v1576_v20 = vpop.f32.mrf.mxu0  ;;  %v5510_v52 = vor.u32 %v7788_v43, %v5509_v37 }
  0xf7   :  { %v1765_v31 = vpop.f32.mrf.mxu1  ;;  %v8825_v33 = vadd.f32 %v2121_v53, %v1933_v28  ;;  %v5602_v28 = vor.u32 %v7812_v10, %v5601_v8 }
  0xf8   :  { %v8827_v34 = vadd.f32 %v1765_v31, %v1576_v20 }
  0xfc   :  { %v1934_v47 = vpop.f32.mrf.mxu2 }
  0xfd   :  { %v1935_v48 = vadd.f32 %v1934_v47, %v8687_v42  ;;  %v2128_v53 = vpop.f32.mrf.mxu3 }
  0xfe   :  { %v1579_v55 = vpop.f32.mrf.mxu0 }
  0xff   :  { %v1768_v63 = vpop.f32.mrf.mxu1  ;;  %v8854_v1 = vadd.f32 %v2123_v13, %v1935_v48  ;;  %v7793_v13 = vld [vmem:[%s12352_s0 + $0x1d0] sm:$0xf0] }
 0x100   :  { %v8856_v15 = vadd.f32 %v1768_v63, %v1579_v55  ;;  %v7815_v55 = vld [vmem:[%s12352_s0 + $0x284] sm:$0xf]  ;;  %v7801_v63 = vld [vmem:[%s12352_s0 + $0x214] sm:$0xf] }
 0x101   :  { %1618 = vmatmul.bf16.gmra.mxu0 %v5582_v50  ;;  %1976 = vmatmul.bf16.gmra.mxu2 %v5510_v52  ;;  %v5621_v52 = vld [vmem:[%s12352_s0 + $0x280] sm:$0xf] }
 0x102   :  { %1807 = vmatmul.bf16.gmra.mxu1 %v5586_v56  ;;  %2170 = vmatmul.bf16.gmra.mxu3 %v5534_v62  ;;  %v7798_v56 = vld [vmem:[%s12352_s0 + $0x1f8] sm:$0xf0]  ;;  %v5623_v62 = vld [vmem:[%s12352_s0 + $0x294] sm:$0xf0] }
 0x103   :  { %v5626_v11 = vor.u32 %v7815_v55, %v5623_v62 }
 0x104   :  { %v1937_v2 = vpop.f32.mrf.mxu2 }
 0x105   :  { %v1938_v3 = vadd.f32 %v1937_v2, %v8717_v59  ;;  %v2131_v4 = vpop.f32.mrf.mxu3  ;;  %v5529_v59 = vld [vmem:[%s12352_s0 + $0x1c0] sm:$0xf]  ;;  %v5571_v2 = vld [vmem:[%s12352_s0 + $0x224] sm:$0xf0] }
 0x106   :  { %v1581_v42 = vpop.f32.mrf.mxu0 }
 0x107   :  { %v1770_v5 = vpop.f32.mrf.mxu1  ;;  %v8859_v6 = vadd.f32 %v2126_v30, %v1938_v3  ;;  %v5530_v30 = vor.u32 %v7793_v13, %v5529_v59  ;;  %v5574_v59 = vor.u32 %v7801_v63, %v5571_v2 }
 0x108   :  { %v8861_v7 = vadd.f32 %v1770_v5, %v1581_v42 }
 0x10c   :  { %v1939_v23 = vpop.f32.mrf.mxu2 }
 0x10d   :  { %v1940_v27 = vadd.f32 %v1939_v23, %v8723_v0  ;;  %v2133_v20 = vpop.f32.mrf.mxu3 }
 0x10e   :  { %v1584_v31 = vpop.f32.mrf.mxu0 }
 0x10f   :  { %v1773_v41 = vpop.f32.mrf.mxu1  ;;  %v8888_v37 = vadd.f32 %v2128_v53, %v1940_v27  ;;  %v7817_v53 = vld [vmem:[%s12352_s0 + $0x290] sm:$0xf0] }
 0x110   :  { %v8890_v43 = vadd.f32 %v1773_v41, %v1584_v31  ;;  %v5622_v42 = vor.u32 %v7817_v53, %v5621_v52  ;;  %v7803_v41 = vld [vmem:[%s12352_s0 + $0x220] sm:$0xf0] }
 0x111   :  { %1623 = vmatmul.bf16.gmra.mxu0 %v5602_v28  ;;  %1981 = vmatmul.bf16.gmra.mxu2 %v5530_v30 }
 0x112   :  { %1812 = vmatmul.bf16.gmra.mxu1 %v5606_v35  ;;  %2175 = vmatmul.bf16.gmra.mxu3 %v5554_v36  ;;  %v7822_v35 = vld [vmem:[%s12352_s0 + $0x2b8] sm:$0xf0]  ;;  %v7820_v36 = vld [vmem:[%s12352_s0 + $0x2ac] sm:$0xf] }
 0x114   :  { %v1942_v44 = vpop.f32.mrf.mxu2 }
 0x115   :  { %v1943_v45 = vadd.f32 %v1942_v44, %v8753_v21  ;;  %v2136_v46 = vpop.f32.mrf.mxu3  ;;  %v5549_v21 = vld [vmem:[%s12352_s0 + $0x1e8] sm:$0xf]  ;;  %v5643_v44 = vld [vmem:[%s12352_s0 + $0x2bc] sm:$0xf0] }
 0x116   :  { %v1586_v0 = vpop.f32.mrf.mxu0  ;;  %v5550_v5 = vor.u32 %v7798_v56, %v5549_v21  ;;  %v5646_v56 = vor.u32 %v7820_v36, %v5643_v44 }
 0x117   :  { %v1775_v47 = vpop.f32.mrf.mxu1  ;;  %v8893_v48 = vadd.f32 %v2131_v4, %v1943_v45  ;;  %v7806_v45 = vld [vmem:[%s12352_s0 + $0x23c] sm:$0xf] }
 0x118   :  { %v8895_v50 = vadd.f32 %v1775_v47, %v1586_v0 }
 0x11c   :  { %v1944_v3 = vpop.f32.mrf.mxu2 }
 0x11d   :  { %v1945_v4 = vadd.f32 %v1944_v3, %v8757_v26  ;;  %v2138_v8 = vpop.f32.mrf.mxu3 }
 0x11e   :  { %v1589_v10 = vpop.f32.mrf.mxu0 }
 0x11f   :  { %v1778_v13 = vpop.f32.mrf.mxu1  ;;  %v8922_v14 = vadd.f32 %v2133_v20, %v1945_v4  ;;  %v5641_v20 = vld [vmem:[%s12352_s0 + $0x2a8] sm:$0xf] }
 0x120   :  { %v8924_v18 = vadd.f32 %v1778_v13, %v1589_v10  ;;  %v5642_v52 = vor.u32 %v7822_v35, %v5641_v20  ;;  %v7827_v13 = vld [vmem:[%s12352_s0 + $0x2e0] sm:$0xf0] }
 0x121   :  { %1628 = vmatmul.bf16.gmra.mxu0 %v5622_v42  ;;  %1986 = vmatmul.bf16.gmra.mxu2 %v5550_v5 }
 0x122   :  { %1817 = vmatmul.bf16.gmra.mxu1 %v5626_v11  ;;  %2180 = vmatmul.bf16.gmra.mxu3 %v5574_v59 }
 0x124   :  { %v1947_v19 = vpop.f32.mrf.mxu2 }
 0x125   :  { %v1948_v23 = vadd.f32 %v1947_v19, %v8785_v49  ;;  %v2141_v27 = vpop.f32.mrf.mxu3  ;;  %v5569_v49 = vld [vmem:[%s12352_s0 + $0x210] sm:$0xf]  ;;  %v7825_v19 = vld [vmem:[%s12352_s0 + $0x2d4] sm:$0xf] }
 0x126   :  { %v1591_v26 = vpop.f32.mrf.mxu0  ;;  %v5570_v53 = vor.u32 %v7803_v41, %v5569_v49 }
 0x127   :  { %v1780_v28 = vpop.f32.mrf.mxu1  ;;  %v8927_v30 = vadd.f32 %v2136_v46, %v1948_v23  ;;  %v5591_v46 = vld [vmem:[%s12352_s0 + $0x24c] sm:$0xf0]  ;;  %v7808_v23 = vld [vmem:[%s12352_s0 + $0x248] sm:$0xf0] }
 0x128   :  { %v8929_v31 = vadd.f32 %v1780_v28, %v1591_v26  ;;  %v5594_v62 = vor.u32 %v7806_v45, %v5591_v46  ;;  %v7811_v26 = vld [vmem:[%s12352_s0 + $0x264] sm:$0xf]  ;;  %v5611_v28 = vld [vmem:[%s12352_s0 + $0x274] sm:$0xf0] }
 0x129   :  { %v5614_v46 = vor.u32 %v7811_v26, %v5611_v28 }
 0x12c   :  { %v1949_v0 = vpop.f32.mrf.mxu2 }
 0x12d   :  { %v1950_v47 = vadd.f32 %v1949_v0, %v8790_v58  ;;  %v2143_v55 = vpop.f32.mrf.mxu3 }
 0x12e   :  { %v1594_v21 = vpop.f32.mrf.mxu0 }
 0x12f   :  { %v1783_v63 = vpop.f32.mrf.mxu1  ;;  %v8956_v2 = vadd.f32 %v2138_v8, %v1950_v47  ;;  %v5661_v8 = vld [vmem:[%s12352_s0 + $0x2d0] sm:$0xf] }
 0x130   :  { %v8958_v3 = vadd.f32 %v1783_v63, %v1594_v21  ;;  %v5662_v36 = vor.u32 %v7827_v13, %v5661_v8  ;;  %v7816_v8 = vld [vmem:[%s12352_s0 + $0x28c] sm:$0xf]  ;;  %v5631_v13 = vld [vmem:[%s12352_s0 + $0x29c] sm:$0xf0] }
 0x131   :  { %1633 = vmatmul.bf16.gmra.mxu0 %v5642_v52  ;;  %1991 = vmatmul.bf16.gmra.mxu2 %v5570_v53 }
 0x132   :  { %1822 = vmatmul.bf16.gmra.mxu1 %v5646_v56  ;;  %2185 = vmatmul.bf16.gmra.mxu3 %v5594_v62 }
 0x134   :  { %v1952_v4 = vpop.f32.mrf.mxu2 }
 0x135   :  { %v1953_v42 = vadd.f32 %v1952_v4, %v8822_v25  ;;  %v2146_v5 = vpop.f32.mrf.mxu3  ;;  %v5589_v25 = vld [vmem:[%s12352_s0 + $0x238] sm:$0xf] }
 0x136   :  { %v1596_v58 = vpop.f32.mrf.mxu0  ;;  %v5590_v49 = vor.u32 %v7808_v23, %v5589_v25 }
 0x137   :  { %v1785_v10 = vpop.f32.mrf.mxu1  ;;  %v8961_v11 = vadd.f32 %v2141_v27, %v1953_v42  ;;  %v5663_v27 = vld [vmem:[%s12352_s0 + $0x2e4] sm:$0xf0]  ;;  %v7832_v42 = vld [vmem:[%s12352_s0 + $0x308] sm:$0xf0] }
 0x138   :  { %v8963_v59 = vadd.f32 %v1785_v10, %v1596_v58  ;;  %v5666_v45 = vor.u32 %v7825_v19, %v5663_v27  ;;  %v7830_v58 = vld [vmem:[%s12352_s0 + $0x2fc] sm:$0xf]  ;;  %v5683_v10 = vld [vmem:[%s12352_s0 + $0x30c] sm:$0xf0] }
 0x13c   :  { %v1954_v20 = vpop.f32.mrf.mxu2 }
 0x13d   :  { %v1955_v35 = vadd.f32 %v1954_v20, %v8827_v34  ;;  %v2148_v41 = vpop.f32.mrf.mxu3  ;;  %v5686_v20 = vor.u32 %v7830_v58, %v5683_v10  ;;  %v7821_v58 = vld [vmem:[%s12352_s0 + $0x2b4] sm:$0xf] }
 0x13e   :  { %v1599_v44 = vpop.f32.mrf.mxu0 }
 0x13f   :  { %v1788_v0 = vpop.f32.mrf.mxu1  ;;  %v8990_v47 = vadd.f32 %v2143_v55, %v1955_v35  ;;  %v5681_v55 = vld [vmem:[%s12352_s0 + $0x2f8] sm:$0xf]  ;;  %v5634_v35 = vor.u32 %v7816_v8, %v5631_v13 }
 0x140   :  { %v8992_v52 = vadd.f32 %v1788_v0, %v1599_v44  ;;  %v5682_v23 = vor.u32 %v7832_v42, %v5681_v55  ;;  %v7835_v55 = vld [vmem:[%s12352_s0 + $0x324] sm:$0xf]  ;;  %v5703_v42 = vld [vmem:[%s12352_s0 + $0x334] sm:$0xf0] }
 0x141   :  { %1638 = vmatmul.bf16.gmra.mxu0 %v5662_v36  ;;  %1996 = vmatmul.bf16.gmra.mxu2 %v5590_v49 }
 0x142   :  { %1827 = vmatmul.bf16.gmra.mxu1 %v5666_v45  ;;  %2190 = vmatmul.bf16.gmra.mxu3 %v5614_v46 }
 0x144   :  { %v1957_v53 = vpop.f32.mrf.mxu2 }
 0x145   :  { %v1958_v21 = vadd.f32 %v1957_v53, %v8856_v15  ;;  %v2151_v56 = vpop.f32.mrf.mxu3  ;;  %v5609_v15 = vld [vmem:[%s12352_s0 + $0x260] sm:$0xf] }
 0x146   :  { %v1601_v34 = vpop.f32.mrf.mxu0 }
 0x147   :  { %v1790_v62 = vpop.f32.mrf.mxu1  ;;  %v8995_v63 = vadd.f32 %v2146_v5, %v1958_v21  ;;  %v7813_v5 = vld [vmem:[%s12352_s0 + $0x270] sm:$0xf0] }
 0x148   :  { %v8997_v4 = vadd.f32 %v1790_v62, %v1601_v34  ;;  %v5610_v27 = vor.u32 %v7813_v5, %v5609_v15  ;;  %v7837_v62 = vld [vmem:[%s12352_s0 + $0x330] sm:$0xf0]  ;;  %v5651_v15 = vld [vmem:[%s12352_s0 + $0x2c4] sm:$0xf0] }
 0x14c   :  { %v1959_v19 = vpop.f32.mrf.mxu2 }
 0x14d   :  { %v1960_v25 = vadd.f32 %v1959_v19, %v8861_v7  ;;  %v2153_v26 = vpop.f32.mrf.mxu3 }
 0x14e   :  { %v1604_v28 = vpop.f32.mrf.mxu0 }
 0x14f   :  { %v1793_v36 = vpop.f32.mrf.mxu1  ;;  %v9024_v49 = vadd.f32 %v2148_v41, %v1960_v25  ;;  %v5701_v41 = vld [vmem:[%s12352_s0 + $0x320] sm:$0xf]  ;;  %v7948_v25 = vld [vmem:[%s12351_s1 + $0x108] sm:$0xff] }
 0x150   :  { %v9026_v44 = vadd.f32 %v1793_v36, %v1604_v28  ;;  %v5702_v8 = vor.u32 %v7837_v62, %v5701_v41  ;;  %v5654_v28 = vor.u32 %v7821_v58, %v5651_v15  ;;  %2302 = vmatpush.bf16.msrb.mxu0 %v7948_v25  ;;  %v5671_v58 = vld [vmem:[%s12352_s0 + $0x2ec] sm:$0xf0] }
 0x151   :  { %1643 = vmatmul.bf16.gmra.mxu0 %v5682_v23  ;;  %2001 = vmatmul.bf16.gmra.mxu2 %v5610_v27  ;;  %v5706_v27 = vor.u32 %v7835_v55, %v5703_v42  ;;  %v7842_v55 = vld [vmem:[%s12352_s0 + $0x358] sm:$0xf0] }
 0x152   :  { %1832 = vmatmul.bf16.gmra.mxu1 %v5686_v20  ;;  %2195 = vmatmul.bf16.gmra.mxu3 %v5634_v35  ;;  %v7826_v42 = vld [vmem:[%s12352_s0 + $0x2dc] sm:$0xf] }
 0x154   :  { %v1962_v45 = vpop.f32.mrf.mxu2 }
 0x155   :  { %v1963_v46 = vadd.f32 %v1962_v45, %v8890_v43  ;;  %v2156_v0 = vpop.f32.mrf.mxu3  ;;  %v5629_v43 = vld [vmem:[%s12352_s0 + $0x288] sm:$0xf] }
 0x156   :  { %v1606_v7 = vpop.f32.mrf.mxu0 }
 0x157   :  { %v1795_v53 = vpop.f32.mrf.mxu1  ;;  %v9029_v21 = vadd.f32 %v2151_v56, %v1963_v46  ;;  %v7818_v56 = vld [vmem:[%s12352_s0 + $0x298] sm:$0xf0] }
 0x158   :  { %v9031_v34 = vadd.f32 %v1795_v53, %v1606_v7  ;;  %v5630_v13 = vor.u32 %v7818_v56, %v5629_v43  ;;  %v7840_v43 = vld [vmem:[%s12352_s0 + $0x34c] sm:$0xf]  ;;  %v5723_v56 = vld [vmem:[%s12352_s0 + $0x35c] sm:$0xf0] }
 0x15c   :  { %v1964_v5 = vpop.f32.mrf.mxu2 }
 0x15d   :  { %v1965_v10 = vadd.f32 %v1964_v5, %v8895_v50  ;;  %v2158_v19 = vpop.f32.mrf.mxu3 }
 0x15e   :  { %v1609_v23 = vpop.f32.mrf.mxu0 }
 0x15f   :  { %v1798_v20 = vpop.f32.mrf.mxu1  ;;  %v9061_v35 = vadd.f32 %v2153_v26, %v1965_v10  ;;  %v5721_v26 = vld [vmem:[%s12352_s0 + $0x348] sm:$0xf] }
 0x160   :  { %v9063_v36 = vadd.f32 %v1798_v20, %v1609_v23  ;;  %v5722_v10 = vor.u32 %v7842_v55, %v5721_v26  ;;  %v5726_v23 = vor.u32 %v7840_v43, %v5723_v56  ;;  %v7847_v43 = vld [vmem:[%s12352_s0 + $0x380] sm:$0xf0]  ;;  %v5743_v56 = vld [vmem:[%s12352_s0 + $0x384] sm:$0xf0] }
 0x161   :  { %1648 = vmatmul.bf16.gmra.mxu0 %v5702_v8  ;;  %2006 = vmatmul.bf16.gmra.mxu2 %v5630_v13 }
 0x162   :  { %1837 = vmatmul.bf16.gmra.mxu1 %v5706_v27  ;;  %2200 = vmatmul.bf16.gmra.mxu3 %v5654_v28  ;;  %v5674_v27 = vor.u32 %v7826_v42, %v5671_v58  ;;  %v7831_v42 = vld [vmem:[%s12352_s0 + $0x304] sm:$0xf]  ;;  %v5691_v58 = vld [vmem:[%s12352_s0 + $0x314] sm:$0xf0] }
 0x164   :  { %v1967_v50 = vpop.f32.mrf.mxu2 }
 0x165   :  { %v1968_v45 = vadd.f32 %v1967_v50, %v8924_v18  ;;  %v2161_v46 = vpop.f32.mrf.mxu3  ;;  %v5649_v18 = vld [vmem:[%s12352_s0 + $0x2b0] sm:$0xf] }
 0x166   :  { %v1611_v7 = vpop.f32.mrf.mxu0 }
 0x167   :  { %v1800_v53 = vpop.f32.mrf.mxu1  ;;  %v9066_v41 = vadd.f32 %v2156_v0, %v1968_v45  ;;  %v7823_v0 = vld [vmem:[%s12352_s0 + $0x2c0] sm:$0xf0] }
 0x168   :  { %v9068_v62 = vadd.f32 %v1800_v53, %v1611_v7  ;;  %v5650_v8 = vor.u32 %v7823_v0, %v5649_v18  ;;  %v7845_v0 = vld [vmem:[%s12352_s0 + $0x374] sm:$0xf] }
 0x16c   :  { %v1969_v15 = vpop.f32.mrf.mxu2 }
 0x16d   :  { %v1970_v5 = vadd.f32 %v1969_v15, %v8929_v31  ;;  %v2163_v13 = vpop.f32.mrf.mxu3 }
 0x16e   :  { %v1614_v25 = vpop.f32.mrf.mxu0 }
 0x16f   :  { %v1803_v28 = vpop.f32.mrf.mxu1  ;;  %v9095_v20 = vadd.f32 %v2158_v19, %v1970_v5  ;;  %v5741_v19 = vld [vmem:[%s12352_s0 + $0x370] sm:$0xf] }
 0x170   :  { %v9097_v50 = vadd.f32 %v1803_v28, %v1614_v25  ;;  %v5694_v28 = vor.u32 %v7831_v42, %v5691_v58  ;;  %v5711_v42 = vld [vmem:[%s12352_s0 + $0x33c] sm:$0xf0] }
 0x171   :  { %1653 = vmatmul.bf16.gmra.mxu0 %v5722_v10  ;;  %2011 = vmatmul.bf16.gmra.mxu2 %v5650_v8  ;;  %v5742_v10 = vor.u32 %v7847_v43, %v5741_v19 }
 0x172   :  { %1842 = vmatmul.bf16.gmra.mxu1 %v5726_v23  ;;  %2205 = vmatmul.bf16.gmra.mxu3 %v5674_v27  ;;  %v5746_v27 = vor.u32 %v7845_v0, %v5743_v56  ;;  %v7852_v0 = vld [vmem:[%s12352_s0 + $0x3a8] sm:$0xf0] }
 0x173   :  { %v7836_v56 = vld [vmem:[%s12352_s0 + $0x32c] sm:$0xf] }
 0x174   :  { %v1972_v45 = vpop.f32.mrf.mxu2 }
 0x175   :  { %v1973_v7 = vadd.f32 %v1972_v45, %v8958_v3  ;;  %v2166_v53 = vpop.f32.mrf.mxu3  ;;  %v5669_v3 = vld [vmem:[%s12352_s0 + $0x2d8] sm:$0xf] }
 0x176   :  { %v1616_v31 = vpop.f32.mrf.mxu0 }
 0x177   :  { %v1805_v26 = vpop.f32.mrf.mxu1  ;;  %v9100_v55 = vadd.f32 %v2161_v46, %v1973_v7  ;;  %v7828_v46 = vld [vmem:[%s12352_s0 + $0x2e8] sm:$0xf0] }
 0x178   :  { %v9102_v18 = vadd.f32 %v1805_v26, %v1616_v31  ;;  %v5670_v8 = vor.u32 %v7828_v46, %v5669_v3  ;;  %v7850_v46 = vld [vmem:[%s12352_s0 + $0x39c] sm:$0xf] }
 0x17c   :  { %v1974_v15 = vpop.f32.mrf.mxu2 }
 0x17d   :  { %v1975_v5 = vadd.f32 %v1974_v15, %v8963_v59  ;;  %v2168_v25 = vpop.f32.mrf.mxu3 }
 0x17e   :  { %v1619_v23 = vpop.f32.mrf.mxu0 }
 0x17f   :  { %v1808_v45 = vpop.f32.mrf.mxu1  ;;  %v9129_v7 = vadd.f32 %v2163_v13, %v1975_v5  ;;  %v5761_v13 = vld [vmem:[%s12352_s0 + $0x398] sm:$0xf] }
 0x180   :  { %v9131_v31 = vadd.f32 %v1808_v45, %v1619_v23  ;;  %v5762_v5 = vor.u32 %v7852_v0, %v5761_v13 }
 0x181   :  { %1658 = vmatmul.bf16.gmra.mxu0 %v5742_v10  ;;  %2016 = vmatmul.bf16.gmra.mxu2 %v5670_v8 }
 0x182   :  { %1847 = vmatmul.bf16.gmra.mxu1 %v5746_v27  ;;  %2210 = vmatmul.bf16.gmra.mxu3 %v5694_v28  ;;  %v5714_v28 = vor.u32 %v7836_v56, %v5711_v42  ;;  %v5731_v56 = vld [vmem:[%s12352_s0 + $0x364] sm:$0xf0] }
 0x184   :  { %v1977_v26 = vpop.f32.mrf.mxu2 }
 0x185   :  { %v1978_v12 = vadd.f32 %v1977_v26, %v8992_v52  ;;  %v2171_v61 = vpop.f32.mrf.mxu3  ;;  %v5689_v52 = vld [vmem:[%s12352_s0 + $0x300] sm:$0xf] }
 0x186   :  { %v1621_v59 = vpop.f32.mrf.mxu0 }
 0x187   :  { %v1810_v19 = vpop.f32.mrf.mxu1  ;;  %v9134_v43 = vadd.f32 %v2166_v53, %v1978_v12  ;;  %v7833_v12 = vld [vmem:[%s12352_s0 + $0x310] sm:$0xf0]  ;;  %v5763_v53 = vld [vmem:[%s12352_s0 + $0x3ac] sm:$0xf0] }
 0x188   :  { %v9136_v3 = vadd.f32 %v1810_v19, %v1621_v59  ;;  %v5690_v10 = vor.u32 %v7833_v12, %v5689_v52  ;;  %v5766_v27 = vor.u32 %v7850_v46, %v5763_v53  ;;  %v7857_v46 = vld [vmem:[%s12352_s0 + $0x3d0] sm:$0xf0]  ;;  %v7855_v12 = vld [vmem:[%s12352_s0 + $0x3c4] sm:$0xf] }
 0x189   :  { %v7841_v53 = vld [vmem:[%s12352_s0 + $0x354] sm:$0xf] }
 0x18c   :  { %v1979_v58 = vpop.f32.mrf.mxu2 }
 0x18d   :  { %v1980_v15 = vadd.f32 %v1979_v58, %v8997_v4  ;;  %v2173_v8 = vpop.f32.mrf.mxu3 }
 0x18e   :  { %v1624_v23 = vpop.f32.mrf.mxu0 }
 0x18f   :  { %v1813_v45 = vpop.f32.mrf.mxu1  ;;  %v9163_v26 = vadd.f32 %v2168_v25, %v1980_v15  ;;  %v5781_v25 = vld [vmem:[%s12352_s0 + $0x3c0] sm:$0xf] }
 0x190   :  { %v9165_v59 = vadd.f32 %v1813_v45, %v1624_v23  ;;  %v5782_v15 = vor.u32 %v7857_v46, %v5781_v25 }
 0x191   :  { %1663 = vmatmul.bf16.gmra.mxu0 %v5762_v5  ;;  %2021 = vmatmul.bf16.gmra.mxu2 %v5690_v10 }
 0x192   :  { %1852 = vmatmul.bf16.gmra.mxu1 %v5766_v27  ;;  %2215 = vmatmul.bf16.gmra.mxu3 %v5714_v28  ;;  %v5734_v28 = vor.u32 %v7841_v53, %v5731_v56  ;;  %v5751_v53 = vld [vmem:[%s12352_s0 + $0x38c] sm:$0xf0] }
 0x194   :  { %v1982_v19 = vpop.f32.mrf.mxu2 }
 0x195   :  { %v1983_v54 = vadd.f32 %v1982_v19, %v9026_v44  ;;  %v2176_v39 = vpop.f32.mrf.mxu3  ;;  %v5709_v44 = vld [vmem:[%s12352_s0 + $0x328] sm:$0xf] }
 0x196   :  { %v1626_v4 = vpop.f32.mrf.mxu0 }
 0x197   :  { %v1815_v13 = vpop.f32.mrf.mxu1  ;;  %v9168_v0 = vadd.f32 %v2171_v61, %v1983_v54  ;;  %v7838_v54 = vld [vmem:[%s12352_s0 + $0x338] sm:$0xf0]  ;;  %v5783_v61 = vld [vmem:[%s12352_s0 + $0x3d4] sm:$0xf0] }
 0x198   :  { %v9170_v52 = vadd.f32 %v1815_v13, %v1626_v4  ;;  %v5710_v5 = vor.u32 %v7838_v54, %v5709_v44  ;;  %v5786_v27 = vor.u32 %v7855_v12, %v5783_v61  ;;  %v7862_v12 = vld [vmem:[%s12352_s0 + $0x3f8] sm:$0xf0]  ;;  %v7860_v54 = vld [vmem:[%s12352_s0 + $0x3ec] sm:$0xf] }
 0x199   :  { %v7846_v61 = vld [vmem:[%s12352_s0 + $0x37c] sm:$0xf] }
 0x19c   :  { %v1984_v42 = vpop.f32.mrf.mxu2 }
 0x19d   :  { %v1985_v58 = vadd.f32 %v1984_v42, %v9031_v34  ;;  %v2178_v10 = vpop.f32.mrf.mxu3 }
 0x19e   :  { %v1629_v23 = vpop.f32.mrf.mxu0 }
 0x19f   :  { %v1818_v45 = vpop.f32.mrf.mxu1  ;;  %v9197_v19 = vadd.f32 %v2173_v8, %v1985_v58  ;;  %v5801_v8 = vld [vmem:[%s12352_s0 + $0x3e8] sm:$0xf] }
 0x1a0   :  { %v9199_v4 = vadd.f32 %v1818_v45, %v1629_v23  ;;  %v5802_v58 = vor.u32 %v7862_v12, %v5801_v8 }
 0x1a1   :  { %1668 = vmatmul.bf16.gmra.mxu0 %v5782_v15  ;;  %2026 = vmatmul.bf16.gmra.mxu2 %v5710_v5 }
 0x1a2   :  { %1857 = vmatmul.bf16.gmra.mxu1 %v5786_v27  ;;  %2220 = vmatmul.bf16.gmra.mxu3 %v5734_v28  ;;  %v5754_v28 = vor.u32 %v7846_v61, %v5751_v53  ;;  %v5771_v61 = vld [vmem:[%s12352_s0 + $0x3b4] sm:$0xf0] }
 0x1a4   :  { %v1987_v13 = vpop.f32.mrf.mxu2 }
 0x1a5   :  { %v1988_v32 = vadd.f32 %v1987_v13, %v9063_v36  ;;  %v2181_v17 = vpop.f32.mrf.mxu3  ;;  %v5729_v36 = vld [vmem:[%s12352_s0 + $0x350] sm:$0xf] }
 0x1a6   :  { %v1631_v34 = vpop.f32.mrf.mxu0 }
 0x1a7   :  { %v1820_v25 = vpop.f32.mrf.mxu1  ;;  %v9202_v46 = vadd.f32 %v2176_v39, %v1988_v32  ;;  %v7843_v32 = vld [vmem:[%s12352_s0 + $0x360] sm:$0xf0]  ;;  %v5803_v39 = vld [vmem:[%s12352_s0 + $0x3fc] sm:$0xf0] }
 0x1a8   :  { %v9204_v44 = vadd.f32 %v1820_v25, %v1631_v34  ;;  %v5730_v15 = vor.u32 %v7843_v32, %v5729_v36  ;;  %v5806_v27 = vor.u32 %v7860_v54, %v5803_v39  ;;  %v7867_v54 = vld [vmem:[%s12352_s0 + $0x420] sm:$0xf0]  ;;  %v7865_v32 = vld [vmem:[%s12352_s0 + $0x414] sm:$0xf] }
 0x1a9   :  { %v7851_v39 = vld [vmem:[%s12352_s0 + $0x3a4] sm:$0xf] }
 0x1ac   :  { %v1989_v56 = vpop.f32.mrf.mxu2 }
 0x1ad   :  { %v1990_v42 = vadd.f32 %v1989_v56, %v9068_v62  ;;  %v2183_v5 = vpop.f32.mrf.mxu3 }
 0x1ae   :  { %v1634_v23 = vpop.f32.mrf.mxu0 }
 0x1af   :  { %v1823_v45 = vpop.f32.mrf.mxu1  ;;  %v9231_v13 = vadd.f32 %v2178_v10, %v1990_v42  ;;  %v5821_v10 = vld [vmem:[%s12352_s0 + $0x410] sm:$0xf] }
 0x1b0   :  { %v9233_v34 = vadd.f32 %v1823_v45, %v1634_v23  ;;  %v5822_v42 = vor.u32 %v7867_v54, %v5821_v10 }
 0x1b1   :  { %1673 = vmatmul.bf16.gmra.mxu0 %v5802_v58  ;;  %2031 = vmatmul.bf16.gmra.mxu2 %v5730_v15 }
 0x1b2   :  { %1862 = vmatmul.bf16.gmra.mxu1 %v5806_v27  ;;  %2225 = vmatmul.bf16.gmra.mxu3 %v5754_v28  ;;  %v5774_v28 = vor.u32 %v7851_v39, %v5771_v61  ;;  %v5791_v39 = vld [vmem:[%s12352_s0 + $0x3dc] sm:$0xf0] }
 0x1b4   :  { %v1992_v25 = vpop.f32.mrf.mxu2 }
 0x1b5   :  { %v1993_v40 = vadd.f32 %v1992_v25, %v9097_v50  ;;  %v2186_v22 = vpop.f32.mrf.mxu3  ;;  %v5749_v50 = vld [vmem:[%s12352_s0 + $0x378] sm:$0xf] }
 0x1b6   :  { %v1636_v62 = vpop.f32.mrf.mxu0 }
 0x1b7   :  { %v1825_v8 = vpop.f32.mrf.mxu1  ;;  %v9236_v12 = vadd.f32 %v2181_v17, %v1993_v40  ;;  %v7848_v17 = vld [vmem:[%s12352_s0 + $0x388] sm:$0xf0]  ;;  %v5823_v40 = vld [vmem:[%s12352_s0 + $0x424] sm:$0xf0] }
 0x1b8   :  { %v9238_v36 = vadd.f32 %v1825_v8, %v1636_v62  ;;  %v5750_v58 = vor.u32 %v7848_v17, %v5749_v50  ;;  %v5826_v27 = vor.u32 %v7865_v32, %v5823_v40  ;;  %v7872_v32 = vld [vmem:[%s12352_s0 + $0x448] sm:$0xf0]  ;;  %v7870_v17 = vld [vmem:[%s12352_s0 + $0x43c] sm:$0xf] }
 0x1b9   :  { %v7856_v40 = vld [vmem:[%s12352_s0 + $0x3cc] sm:$0xf] }
 0x1bc   :  { %v1994_v53 = vpop.f32.mrf.mxu2 }
 0x1bd   :  { %v1995_v56 = vadd.f32 %v1994_v53, %v9102_v18  ;;  %v2188_v15 = vpop.f32.mrf.mxu3 }
 0x1be   :  { %v1639_v23 = vpop.f32.mrf.mxu0 }
 0x1bf   :  { %v1828_v45 = vpop.f32.mrf.mxu1  ;;  %v9265_v25 = vadd.f32 %v2183_v5, %v1995_v56  ;;  %v5841_v5 = vld [vmem:[%s12352_s0 + $0x438] sm:$0xf] }
 0x1c0   :  { %v9267_v62 = vadd.f32 %v1828_v45, %v1639_v23  ;;  %v5842_v56 = vor.u32 %v7872_v32, %v5841_v5  ;;  %v7947_v23 = vld [vmem:[%s12351_s1 + $0x100] sm:$0xff]  ;;  %v5794_v45 = vor.u32 %v7856_v40, %v5791_v39  ;;  %v5863_v39 = vld [vmem:[%s12352_s0 + $0x474] sm:$0xf0] }
 0x1c1   :  { %1678 = vmatmul.bf16.gmra.mxu0 %v5822_v42  ;;  %2036 = vmatmul.bf16.gmra.mxu2 %v5750_v58  ;;  %v7875_v40 = vld [vmem:[%s12352_s0 + $0x464] sm:$0xf] }
 0x1c2   :  { %1867 = vmatmul.bf16.gmra.mxu1 %v5826_v27  ;;  %2230 = vmatmul.bf16.gmra.mxu3 %v5774_v28 }
 0x1c3   :  { %2303 = vmatpush.bf16.msrb.mxu0 %v7947_v23 }
 0x1c4   :  { %v1997_v8 = vpop.f32.mrf.mxu2 }
 0x1c5   :  { %v1998_v9 = vadd.f32 %v1997_v8, %v9131_v31  ;;  %v2191_v60 = vpop.f32.mrf.mxu3  ;;  %v5769_v31 = vld [vmem:[%s12352_s0 + $0x3a0] sm:$0xf] }
 0x1c6   :  { %v1641_v18 = vpop.f32.mrf.mxu0 }
 0x1c7   :  { %v1830_v10 = vpop.f32.mrf.mxu1  ;;  %v9270_v54 = vadd.f32 %v2186_v22, %v1998_v9  ;;  %v7853_v9 = vld [vmem:[%s12352_s0 + $0x3b0] sm:$0xf0]  ;;  %v5843_v22 = vld [vmem:[%s12352_s0 + $0x44c] sm:$0xf0] }
 0x1c8   :  { %v9272_v50 = vadd.f32 %v1830_v10, %v1641_v18  ;;  %v5770_v42 = vor.u32 %v7853_v9, %v5769_v31  ;;  %v5846_v28 = vor.u32 %v7870_v17, %v5843_v22  ;;  %v7877_v22 = vld [vmem:[%s12352_s0 + $0x470] sm:$0xf0] }
 0x1cc   :  { %v1999_v61 = vpop.f32.mrf.mxu2 }
 0x1cd   :  { %v2000_v53 = vadd.f32 %v1999_v61, %v9136_v3  ;;  %v2193_v58 = vpop.f32.mrf.mxu3 }
 0x1ce   :  { %v1644_v27 = vpop.f32.mrf.mxu0 }
 0x1cf   :  { %v1833_v8 = vpop.f32.mrf.mxu1  ;;  %v9302_v18 = vadd.f32 %v2188_v15, %v2000_v53  ;;  %v5861_v15 = vld [vmem:[%s12352_s0 + $0x460] sm:$0xf]  ;;  %v7861_v53 = vld [vmem:[%s12352_s0 + $0x3f4] sm:$0xf] }
 0x1d0   :  { %v9304_v10 = vadd.f32 %v1833_v8, %v1644_v27  ;;  %v5862_v27 = vor.u32 %v7877_v22, %v5861_v15 }
 0x1d1   :  { %1683 = vmatmul.bf16.gmra.mxu0 %v5842_v56  ;;  %2041 = vmatmul.bf16.gmra.mxu2 %v5770_v42  ;;  %v5811_v56 = vld [vmem:[%s12352_s0 + $0x404] sm:$0xf0] }
 0x1d2   :  { %1872 = vmatmul.bf16.gmra.mxu1 %v5846_v28  ;;  %2235 = vmatmul.bf16.gmra.mxu3 %v5794_v45 }
 0x1d4   :  { %v2002_v3 = vpop.f32.mrf.mxu2 }
 0x1d5   :  { %v2003_v5 = vadd.f32 %v2002_v3, %v9165_v59  ;;  %v2196_v32 = vpop.f32.mrf.mxu3  ;;  %v5789_v59 = vld [vmem:[%s12352_s0 + $0x3c8] sm:$0xf]  ;;  %v5866_v3 = vor.u32 %v7875_v40, %v5863_v39  ;;  %v5809_v40 = vld [vmem:[%s12352_s0 + $0x3f0] sm:$0xf] }
 0x1d6   :  { %v1646_v31 = vpop.f32.mrf.mxu0  ;;  %v5831_v39 = vld [vmem:[%s12352_s0 + $0x42c] sm:$0xf0] }
 0x1d7   :  { %v1835_v9 = vpop.f32.mrf.mxu1  ;;  %v9307_v61 = vadd.f32 %v2191_v60, %v2003_v5  ;;  %v7858_v60 = vld [vmem:[%s12352_s0 + $0x3d8] sm:$0xf0]  ;;  %v5814_v5 = vor.u32 %v7861_v53, %v5811_v56 }
 0x1d8   :  { %v9309_v17 = vadd.f32 %v1835_v9, %v1646_v31  ;;  %v5790_v28 = vor.u32 %v7858_v60, %v5789_v59  ;;  %v7863_v60 = vld [vmem:[%s12352_s0 + $0x400] sm:$0xf0] }
 0x1dc   :  { %v2004_v42 = vpop.f32.mrf.mxu2 }
 0x1dd   :  { %v2005_v23 = vadd.f32 %v2004_v42, %v9170_v52  ;;  %v2198_v45 = vpop.f32.mrf.mxu3  ;;  %v5810_v42 = vor.u32 %v7863_v60, %v5809_v40 }
 0x1de   :  { %v1649_v8 = vpop.f32.mrf.mxu0 }
 0x1df   :  { %v1838_v31 = vpop.f32.mrf.mxu1  ;;  %v9336_v9 = vadd.f32 %v2193_v58, %v2005_v23  ;;  %v7880_v58 = vld [vmem:[%s12352_s0 + $0x48c] sm:$0xf] }
 0x1e0   :  { %v9338_v51 = vadd.f32 %v1838_v31, %v1649_v8 }
 0x1e1   :  { %1688 = vmatmul.bf16.gmra.mxu0 %v5862_v27  ;;  %2046 = vmatmul.bf16.gmra.mxu2 %v5790_v28 }
 0x1e2   :  { %1877 = vmatmul.bf16.gmra.mxu1 %v5866_v3  ;;  %2240 = vmatmul.bf16.gmra.mxu3 %v5814_v5 }
 0x1e4   :  { %v2007_v38 = vpop.f32.mrf.mxu2 }
 0x1e5   :  { %v2008_v29 = vadd.f32 %v2007_v38, %v9199_v4  ;;  %v2201_v16 = vpop.f32.mrf.mxu3  ;;  %v5317_v38 = vld [vmem:[%s12352_s0 + $0x10] sm:$0xf]  ;;  %v5883_v4 = vld [vmem:[%s12352_s0 + $0x49c] sm:$0xf0] }
 0x1e6   :  { %v1651_v52 = vpop.f32.mrf.mxu0  ;;  %v5886_v8 = vor.u32 %v7880_v58, %v5883_v4  ;;  %v5829_v4 = vld [vmem:[%s12352_s0 + $0x418] sm:$0xf] }
 0x1e7   :  { %v1840_v15 = vpop.f32.mrf.mxu1  ;;  %v9341_v22 = vadd.f32 %v2196_v32, %v2008_v29  ;;  %v7739_v29 = vld [vmem:[%s12352_s0 + $0x20] sm:$0xf0]  ;;  %v7866_v32 = vld [vmem:[%s12352_s0 + $0x41c] sm:$0xf] }
 0x1e8   :  { %v9343_v59 = vadd.f32 %v1840_v15, %v1651_v52  ;;  %v5318_v23 = vor.u32 %v7739_v29, %v5317_v38  ;;  %v5834_v3 = vor.u32 %v7866_v32, %v5831_v39  ;;  %v7868_v32 = vld [vmem:[%s12352_s0 + $0x428] sm:$0xf0]  ;;  %v5903_v39 = vld [vmem:[%s12352_s0 + $0x4c4] sm:$0xf0] }
 0x1e9   :  { %12387 = vst [vmem:[#allocation16_spill] sm:$0xff] %v9341_v22 }
 0x1ec   :  { %v2009_v53 = vpop.f32.mrf.mxu2 }
 0x1ed   :  { %v2010_v56 = vadd.f32 %v2009_v53, %v9204_v44  ;;  %v2203_v27 = vpop.f32.mrf.mxu3  ;;  %v7871_v53 = vld [vmem:[%s12352_s0 + $0x444] sm:$0xf] }
 0x1ee   :  { %v1654_v28 = vpop.f32.mrf.mxu0 }
 0x1ef   :  { %v1843_v5 = vpop.f32.mrf.mxu1  ;;  %v9370_v31 = vadd.f32 %v2198_v45, %v2010_v56  ;;  %v7885_v45 = vld [vmem:[%s12352_s0 + $0x4b4] sm:$0xf]  ;;  %v5851_v56 = vld [vmem:[%s12352_s0 + $0x454] sm:$0xf0] }
 0x1f0   :  { %v9372_v52 = vadd.f32 %v1843_v5, %v1654_v28  ;;  %v5830_v28 = vor.u32 %v7868_v32, %v5829_v4 }
 0x1f1   :  { %12388 = vst [vmem:[#allocation17_spill] sm:$0xff] %v9370_v31  ;;  %2051 = vmatmul.bf16.gmra.mxu2 %v5810_v42  ;;  %6163 = vmatmul.msk.bf16.vlgmr.msrb.gmra.mxu0 %vm1431_vm0, %v5318_v23 }
 0x1f2   :  { %1882 = vmatmul.bf16.gmra.mxu1 %v5886_v8  ;;  %2245 = vmatmul.bf16.gmra.mxu3 %v5834_v3 }
 0x1f4   :  { %v2012_v15 = vpop.f32.mrf.mxu2 }
 0x1f5   :  { %v2013_v44 = vadd.f32 %v2012_v15, %v9233_v34  ;;  %v2206_v40 = vpop.f32.mrf.mxu3  ;;  %v5337_v34 = vld [vmem:[%s12352_s0 + $0x38] sm:$0xf]  ;;  %v5906_v15 = vor.u32 %v7885_v45, %v5903_v39  ;;  %v7873_v39 = vld [vmem:[%s12352_s0 + $0x450] sm:$0xf0] }
 0x1f6   :  { %v1656_v60 = vpop.f32.mrf.mxu0 }
 0x1f7   :  { %v1845_v38 = vpop.f32.mrf.mxu1  ;;  %v9376_v29 = vadd.f32 %v2201_v16, %v2013_v44  ;;  %v7744_v16 = vld [vmem:[%s12352_s0 + $0x48] sm:$0xf0]  ;;  %v5854_v44 = vor.u32 %v7871_v53, %v5851_v56  ;;  %v5871_v53 = vld [vmem:[%s12352_s0 + $0x47c] sm:$0xf0] }
 0x1f8   :  { %v9378_v58 = vadd.f32 %v1845_v38, %v1656_v60  ;;  %v5338_v8 = vor.u32 %v7744_v16, %v5337_v34  ;;  %v5849_v16 = vld [vmem:[%s12352_s0 + $0x440] sm:$0xf] }
 0x1f9   :  { %12389 = vst [vmem:[#allocation18_spill] sm:$0xff] %v9376_v29 }
 0x1fc   :  { %v2014_v42 = vpop.f32.mrf.mxu2 }
 0x1fd   :  { %v2015_v23 = vadd.f32 %v2014_v42, %v9238_v36  ;;  %v2208_v3 = vpop.f32.mrf.mxu3 }
 0x1fe   :  { %v1659_v5 = vpop.f32.mrf.mxu0 }
 0x1ff   :  { %v1848_v60 = vpop.f32.mrf.mxu1  ;;  %v9405_v38 = vadd.f32 %v2203_v27, %v2015_v23  ;;  %v7890_v27 = vld [vmem:[%s12352_s0 + $0x4dc] sm:$0xf]  ;;  %v5850_v23 = vor.u32 %v7873_v39, %v5849_v16 }
 0x200   :  { %v9407_v29 = vadd.f32 %v1848_v60, %v1659_v5 }
 0x201   :  { %12390 = vst [vmem:[#allocation19_spill] sm:$0xff] %v9405_v38  ;;  %2056 = vmatmul.bf16.gmra.mxu2 %v5830_v28  ;;  %6164 = vmatmul.msk.bf16.gmra.mxu0 %vm1431_vm0, %v5338_v8 }
 0x202   :  { %1887 = vmatmul.bf16.gmra.mxu1 %v5906_v15  ;;  %2250 = vmatmul.bf16.gmra.mxu3 %v5854_v44 }
 0x204   :  { %v2017_v31 = vpop.f32.mrf.mxu2 }
 0x205   :  { %v2018_v22 = vadd.f32 %v2017_v31, %v9267_v62  ;;  %v2211_v36 = vpop.f32.mrf.mxu3  ;;  %v5357_v62 = vld [vmem:[%s12352_s0 + $0x60] sm:$0xf]  ;;  %v5923_v31 = vld [vmem:[%s12352_s0 + $0x4ec] sm:$0xf0] }
 0x206   :  { %v1661_v4 = vpop.f32.mrf.mxu0  ;;  %v5926_v15 = vor.u32 %v7890_v27, %v5923_v31  ;;  %v7878_v31 = vld [vmem:[%s12352_s0 + $0x478] sm:$0xf0] }
 0x207   :  { %v1850_v32 = vpop.f32.mrf.mxu1  ;;  %v9411_v34 = vadd.f32 %v2206_v40, %v2018_v22  ;;  %v7749_v22 = vld [vmem:[%s12352_s0 + $0x70] sm:$0xf0]  ;;  %v7876_v40 = vld [vmem:[%s12352_s0 + $0x46c] sm:$0xf] }
 0x208   :  { %v9413_v45 = vadd.f32 %v1850_v32, %v1661_v4  ;;  %v5358_v28 = vor.u32 %v7749_v22, %v5357_v62  ;;  %v5874_v44 = vor.u32 %v7876_v40, %v5871_v53  ;;  %v5869_v22 = vld [vmem:[%s12352_s0 + $0x468] sm:$0xf] }
 0x209   :  { %12391 = vst [vmem:[#allocation20_spill] sm:$0xff] %v9411_v34  ;;  %v5891_v40 = vld [vmem:[%s12352_s0 + $0x4a4] sm:$0xf0] }
 0x20c   :  { %v2019_v56 = vpop.f32.mrf.mxu2 }
 0x20d   :  { %v2020_v42 = vadd.f32 %v2019_v56, %v9272_v50  ;;  %v2213_v8 = vpop.f32.mrf.mxu3 }
 0x20e   :  { %v1664_v5 = vpop.f32.mrf.mxu0 }
 0x20f   :  { %v1853_v60 = vpop.f32.mrf.mxu1  ;;  %v9440_v4 = vadd.f32 %v2208_v3, %v2020_v42  ;;  %v7895_v3 = vld [vmem:[%s12352_s0 + $0x504] sm:$0xf]  ;;  %v5870_v42 = vor.u32 %v7878_v31, %v5869_v22 }
 0x210   :  { %v9442_v32 = vadd.f32 %v1853_v60, %v1664_v5 }
 0x211   :  { %12392 = vst [vmem:[#allocation21_spill] sm:$0xff] %v9440_v4  ;;  %2061 = vmatmul.bf16.gmra.mxu2 %v5850_v23  ;;  %6165 = vmatmul.msk.bf16.gmra.mxu0 %vm1431_vm0, %v5358_v28 }
 0x212   :  { %1892 = vmatmul.bf16.gmra.mxu1 %v5926_v15  ;;  %2255 = vmatmul.bf16.gmra.mxu3 %v5874_v44 }
 0x214   :  { %v2022_v34 = vpop.f32.mrf.mxu2 }
 0x215   :  { %v2023_v38 = vadd.f32 %v2022_v34, %v9304_v10  ;;  %v2216_v50 = vpop.f32.mrf.mxu3  ;;  %v5377_v10 = vld [vmem:[%s12352_s0 + $0x88] sm:$0xf]  ;;  %v7881_v34 = vld [vmem:[%s12352_s0 + $0x494] sm:$0xf] }
 0x216   :  { %v1666_v16 = vpop.f32.mrf.mxu0  ;;  %v5894_v44 = vor.u32 %v7881_v34, %v5891_v40 }
 0x217   :  { %v1855_v39 = vpop.f32.mrf.mxu1  ;;  %v9446_v62 = vadd.f32 %v2211_v36, %v2023_v38  ;;  %v7754_v38 = vld [vmem:[%s12352_s0 + $0x98] sm:$0xf0]  ;;  %v5943_v36 = vld [vmem:[%s12352_s0 + $0x514] sm:$0xf0] }
 0x218   :  { %v9448_v27 = vadd.f32 %v1855_v39, %v1666_v16  ;;  %v5378_v23 = vor.u32 %v7754_v38, %v5377_v10  ;;  %v5946_v15 = vor.u32 %v7895_v3, %v5943_v36  ;;  %v5889_v10 = vld [vmem:[%s12352_s0 + $0x490] sm:$0xf]  ;;  %v7883_v38 = vld [vmem:[%s12352_s0 + $0x4a0] sm:$0xf0] }
 0x219   :  { %12393 = vst [vmem:[#allocation22_spill] sm:$0xff] %v9446_v62  ;;  %v5911_v36 = vld [vmem:[%s12352_s0 + $0x4cc] sm:$0xf0] }
 0x21c   :  { %v2024_v53 = vpop.f32.mrf.mxu2 }
 0x21d   :  { %v2025_v56 = vadd.f32 %v2024_v53, %v9309_v17  ;;  %v2218_v28 = vpop.f32.mrf.mxu3  ;;  %v5890_v53 = vor.u32 %v7883_v38, %v5889_v10 }
 0x21e   :  { %v1669_v5 = vpop.f32.mrf.mxu0 }
 0x21f   :  { %v1858_v60 = vpop.f32.mrf.mxu1  ;;  %v9475_v16 = vadd.f32 %v2213_v8, %v2025_v56  ;;  %v7900_v8 = vld [vmem:[%s12352_s0 + $0x52c] sm:$0xf] }
 0x220   :  { %v9477_v39 = vadd.f32 %v1858_v60, %v1669_v5 }
 0x221   :  { %2066 = vmatmul.bf16.gmra.mxu2 %v5870_v42  ;;  %6166 = vmatmul.msk.bf16.gmra.mxu0 %vm1431_vm0, %v5378_v23 }
 0x222   :  { %1897 = vmatmul.bf16.gmra.mxu1 %v5946_v15  ;;  %2260 = vmatmul.bf16.gmra.mxu3 %v5894_v44 }
 0x224   :  { %v2027_v62 = vpop.f32.mrf.mxu2 }
 0x225   :  { %v2028_v4 = vadd.f32 %v2027_v62, %v9338_v51  ;;  %v2221_v17 = vpop.f32.mrf.mxu3  ;;  %v5397_v51 = vld [vmem:[%s12352_s0 + $0xb0] sm:$0xf]  ;;  %v7886_v62 = vld [vmem:[%s12352_s0 + $0x4bc] sm:$0xf] }
 0x226   :  { %v9481_v22 = vpop.f32.mrf.mxu0  ;;  %v5914_v15 = vor.u32 %v7886_v62, %v5911_v36 }
 0x227   :  { %12394 = vst [vmem:[#allocation23_spill] sm:$0xff] %v9481_v22  ;;  %v9483_v31 = vpop.f32.mrf.mxu1  ;;  %v9485_v3 = vadd.f32 %v2216_v50, %v2028_v4  ;;  %v7759_v4 = vld [vmem:[%s12352_s0 + $0xc0] sm:$0xf0]  ;;  %v5963_v50 = vld [vmem:[%s12352_s0 + $0x53c] sm:$0xf0] }
 0x228   :  { %12395 = vst [vmem:[#allocation24_spill] sm:$0xff] %v9483_v31  ;;  %v5398_v56 = vor.u32 %v7759_v4, %v5397_v51  ;;  %v5966_v5 = vor.u32 %v7900_v8, %v5963_v50  ;;  %v5909_v51 = vld [vmem:[%s12352_s0 + $0x4b8] sm:$0xf]  ;;  %v7888_v4 = vld [vmem:[%s12352_s0 + $0x4c8] sm:$0xf0] }
 0x229   :  { %12396 = vst [vmem:[#allocation25_spill] sm:$0xff] %v9485_v3  ;;  %v5931_v50 = vld [vmem:[%s12352_s0 + $0x4f4] sm:$0xf0] }
 0x22c   :  { %v2029_v34 = vpop.f32.mrf.mxu2 }
 0x22d   :  { %v2030_v40 = vadd.f32 %v2029_v34, %v9343_v59  ;;  %v2223_v42 = vpop.f32.mrf.mxu3  ;;  %v5910_v34 = vor.u32 %v7888_v4, %v5909_v51  ;;  %v5929_v4 = vld [vmem:[%s12352_s0 + $0x4e0] sm:$0xf] }
 0x22e   :  { %v1674_v23 = vpop.f32.mrf.mxu0 }
 0x22f   :  { %v1863_v44 = vpop.f32.mrf.mxu1  ;;  %v9512_v60 = vadd.f32 %v2218_v28, %v2030_v40  ;;  %v7905_v28 = vld [vmem:[%s12352_s0 + $0x554] sm:$0xf] }
 0x230   :  { %v9514_v31 = vadd.f32 %v1863_v44, %v1674_v23 }
 0x231   :  { %2071 = vmatmul.bf16.gmra.mxu2 %v5890_v53  ;;  %6167 = vmatmul.msk.bf16.gmra.mxu0 %vm1431_vm0, %v5398_v56 }
 0x232   :  { %1902 = vmatmul.bf16.gmra.mxu1 %v5966_v5  ;;  %2265 = vmatmul.bf16.gmra.mxu3 %v5914_v15 }
 0x234   :  { %v2032_v22 = vpop.f32.mrf.mxu2 }
 0x235   :  { %v2033_v3 = vadd.f32 %v2032_v22, %v9372_v52  ;;  %v2226_v59 = vpop.f32.mrf.mxu3  ;;  %v5417_v52 = vld [vmem:[%s12352_s0 + $0xd8] sm:$0xf]  ;;  %v5983_v22 = vld [vmem:[%s12352_s0 + $0x564] sm:$0xf0] }
 0x236   :  { %v9518_v10 = vpop.f32.mrf.mxu0  ;;  %v5986_v56 = vor.u32 %v7905_v28, %v5983_v22 }
 0x237   :  { %12397 = vst [vmem:[#allocation26_spill] sm:$0xff] %v9518_v10  ;;  %v9520_v38 = vpop.f32.mrf.mxu1  ;;  %v9522_v8 = vadd.f32 %v2221_v17, %v2033_v3  ;;  %v7764_v17 = vld [vmem:[%s12352_s0 + $0xe8] sm:$0xf0]  ;;  %v7891_v3 = vld [vmem:[%s12352_s0 + $0x4e4] sm:$0xf] }
 0x238   :  { %12398 = vst [vmem:[#allocation27_spill] sm:$0xff] %v9520_v38  ;;  %v5418_v40 = vor.u32 %v7764_v17, %v5417_v52  ;;  %v5934_v5 = vor.u32 %v7891_v3, %v5931_v50  ;;  %v7893_v52 = vld [vmem:[%s12352_s0 + $0x4f0] sm:$0xf0]  ;;  %v5951_v17 = vld [vmem:[%s12352_s0 + $0x51c] sm:$0xf0] }
 0x239   :  { %12399 = vst [vmem:[#allocation28_spill] sm:$0xff] %v9522_v8  ;;  %v5930_v50 = vor.u32 %v7893_v52, %v5929_v4  ;;  %v5949_v4 = vld [vmem:[%s12352_s0 + $0x508] sm:$0xf] }
 0x23c   :  { %v2034_v62 = vpop.f32.mrf.mxu2 }
 0x23d   :  { %v2035_v36 = vadd.f32 %v2034_v62, %v9378_v58  ;;  %v2228_v23 = vpop.f32.mrf.mxu3 }
 0x23e   :  { %v1679_v53 = vpop.f32.mrf.mxu0 }
 0x23f   :  { %v1868_v15 = vpop.f32.mrf.mxu1  ;;  %v9549_v44 = vadd.f32 %v2223_v42, %v2035_v36  ;;  %v7910_v42 = vld [vmem:[%s12352_s0 + $0x57c] sm:$0xf] }
 0x240   :  { %v9551_v38 = vadd.f32 %v1868_v15, %v1679_v53 }
 0x241   :  { %2076 = vmatmul.bf16.gmra.mxu2 %v5910_v34  ;;  %6168 = vmatmul.msk.bf16.gmra.mxu0 %vm1431_vm0, %v5418_v40 }
 0x242   :  { %1907 = vmatmul.bf16.gmra.mxu1 %v5986_v56  ;;  %2270 = vmatmul.bf16.gmra.mxu3 %v5934_v5 }
 0x244   :  { %v2037_v10 = vpop.f32.mrf.mxu2 }
 0x245   :  { %v2038_v8 = vadd.f32 %v2037_v10, %v9407_v29  ;;  %v2231_v28 = vpop.f32.mrf.mxu3  ;;  %v5437_v29 = vld [vmem:[%s12352_s0 + $0x100] sm:$0xf]  ;;  %v6003_v10 = vld [vmem:[%s12352_s0 + $0x58c] sm:$0xf0] }
 0x246   :  { %v9555_v58 = vpop.f32.mrf.mxu0  ;;  %v6006_v34 = vor.u32 %v7910_v42, %v6003_v10  ;;  %v8011_v42 = vld [vmem:[%s12353_s3 + $0x1e4] sm:$0xf]  ;;  %v5971_v10 = vld [vmem:[%s12352_s0 + $0x544] sm:$0xf0] }
 0x247   :  { %12400 = vst [vmem:[#allocation29_spill] sm:$0xff] %v9555_v58  ;;  %v9557_v51 = vadd.f32 %v2226_v59, %v2038_v8  ;;  %v7769_v59 = vld [vmem:[%s12352_s0 + $0x110] sm:$0xf0]  ;;  %v7896_v8 = vld [vmem:[%s12352_s0 + $0x50c] sm:$0xf] }
 0x248   :  { %v5438_v62 = vor.u32 %v7769_v59, %v5437_v29  ;;  %v5954_v40 = vor.u32 %v7896_v8, %v5951_v17  ;;  %v7774_v29 = vld [vmem:[%s12352_s0 + $0x138] sm:$0xf0]  ;;  %v7901_v59 = vld [vmem:[%s12352_s0 + $0x534] sm:$0xf] }
 0x24c   :  { %v2039_v22 = vpop.f32.mrf.mxu2 }
 0x24d   :  { %v2040_v3 = vadd.f32 %v2039_v22, %v9413_v45  ;;  %v2233_v56 = vpop.f32.mrf.mxu3 }
 0x24e   :  { %v9584_v36 = vpop.f32.mrf.mxu0 }
 0x24f   :  { %v9586_v53 = vadd.f32 %v2228_v23, %v2040_v3  ;;  %v6347_v23 = vld [vmem:[%s12353_s3 + $0x1f0] sm:$0xf0] }
 0x250   :  { %v6350_v52 = vor.u32 %v8011_v42, %v6347_v23 }
 0x251   :  { %2081 = vmatmul.bf16.gmra.mxu2 %v5930_v50  ;;  %6169 = vmatmul.msk.bf16.gmra.mxu0 %vm1431_vm0, %v5438_v62 }
 0x252   :  { %1912 = vmatmul.bf16.gmra.mxu1 %v6006_v34  ;;  %2275 = vmatmul.bf16.gmra.mxu3 %v5954_v40  ;;  %v5974_v34 = vor.u32 %v7901_v59, %v5971_v10  ;;  %v5969_v59 = vld [vmem:[%s12352_s0 + $0x530] sm:$0xf]  ;;  %v7903_v10 = vld [vmem:[%s12352_s0 + $0x540] sm:$0xf0] }
 0x253   :  { %2842 = vmatpush.bf16.msra.mxu2 %v6350_v52 }
 0x254   :  { %v2042_v5 = vpop.f32.mrf.mxu2 }
 0x255   :  { %v2043_v15 = vadd.f32 %v2042_v5, %v9442_v32  ;;  %v7898_v32 = vld [vmem:[%s12352_s0 + $0x518] sm:$0xf0]  ;;  %v2236_v17 = vpop.f32.mrf.mxu3  ;;  %v6345_v5 = vld [vmem:[%s12353_s3 + $0x1e0] sm:$0xf] }
 0x256   :  { %v9590_v58 = vpop.f32.mrf.mxu0  ;;  %v5950_v3 = vor.u32 %v7898_v32, %v5949_v4 }
 0x257   :  { %12401 = vst [vmem:[#allocation30_spill] sm:$0xff] %v9590_v58  ;;  %v9592_v45 = vadd.f32 %v2231_v28, %v2043_v15  ;;  %v5457_v28 = vld [vmem:[%s12352_s0 + $0x128] sm:$0xf]  ;;  %v8013_v15 = vld [vmem:[%s12353_s3 + $0x1ec] sm:$0xf0] }
 0x258   :  { %v5458_v50 = vor.u32 %v7774_v29, %v5457_v28  ;;  %v6346_v42 = vor.u32 %v8013_v15, %v6345_v5 }
 0x25a   :  { %2828 = vmatpush.bf16.msrb.mxu1 %v6346_v42 }
 0x25c   :  { %v2044_v8 = vpop.f32.mrf.mxu2 }
 0x25d   :  { %v2045_v22 = vadd.f32 %v2044_v8, %v9448_v27  ;;  %v6353_v27 = vld [vmem:[%s12353_s3 + $0x1e8] sm:$0xf]  ;;  %v9639_v28 = vpop.f32.mrf.mxu3  ;;  %v5477_v8 = vld [vmem:[%s12352_s0 + $0x150] sm:$0xf] }
 0x25e   :  { %v9619_v62 = vpop.f32.mrf.mxu0 }
 0x25f   :  { %12402 = vst [vmem:[#allocation31_spill] sm:$0xff] %v9619_v62  ;;  %v9621_v40 = vadd.f32 %v2233_v56, %v2045_v22  ;;  %v8014_v56 = vld [vmem:[%s12353_s3 + $0x1f4] sm:$0xf0]  ;;  %v5991_v22 = vld [vmem:[%s12352_s0 + $0x56c] sm:$0xf0] }
 0x260   :  { %v6354_v23 = vor.u32 %v8014_v56, %v6353_v27 }
 0x261   :  { %2086 = vmatmul.bf16.gmra.mxu2 %v5950_v3  ;;  %6170 = vmatmul.msk.bf16.gmra.mxu0 %vm1431_vm0, %v5458_v50  ;;  %v5970_v50 = vor.u32 %v7903_v10, %v5969_v59  ;;  %v5989_v59 = vld [vmem:[%s12352_s0 + $0x558] sm:$0xf]  ;;  %v7908_v10 = vld [vmem:[%s12352_s0 + $0x568] sm:$0xf0] }
 0x262   :  { %2280 = vmatmul.bf16.gmra.mxu3 %v5974_v34 }
 0x263   :  { %2856 = vmatpush.bf16.msra.mxu3 %v6354_v23 }
 0x264   :  { %v2047_v4 = vpop.f32.mrf.mxu2 }
 0x265   :  { %v2048_v52 = vadd.f32 %v2047_v4, %v9477_v39  ;;  %v7779_v39 = vld [vmem:[%s12352_s0 + $0x160] sm:$0xf0]  ;;  %v2241_v27 = vpop.f32.mrf.mxu3 }
 0x266   :  { %v9637_v32 = vpop.f32.mrf.mxu0  ;;  %v5478_v34 = vor.u32 %v7779_v39, %v5477_v8  ;;  %v7784_v8 = vld [vmem:[%s12352_s0 + $0x188] sm:$0xf0]  ;;  %v6011_v39 = vld [vmem:[%s12352_s0 + $0x594] sm:$0xf0] }
 0x267   :  { %12403 = vst [vmem:[#allocation32_spill] sm:$0xff] %v9637_v32  ;;  %v9641_v29 = vadd.f32 %v2236_v17, %v2048_v52  ;;  %v7906_v17 = vld [vmem:[%s12352_s0 + $0x55c] sm:$0xf] }
 0x268   :  { %v5994_v15 = vor.u32 %v7906_v17, %v5991_v22  ;;  %v5990_v22 = vor.u32 %v7908_v10, %v5989_v59  ;;  %v6009_v59 = vld [vmem:[%s12352_s0 + $0x580] sm:$0xf] }
 0x269   :  { %v5517_v10 = vld [vmem:[%s12352_s0 + $0x1a0] sm:$0xf] }
 0x26c   :  { %v9661_v3 = vpop.f32.mrf.mxu2 }
 0x26e   :  { %v2305_v5 = vpop.f32.mrf.mxu0 }
 0x26f   :  { %v9664_v42 = vadd.f32 %v2305_v5, %v8788_v57  ;;  %v9676_v57 = vpop.f32.mrf.mxu3 }
 0x271   :  { %2091 = vmatmul.bf16.gmra.mxu2 %v5970_v50  ;;  %6171 = vmatmul.msk.bf16.gmra.mxu0 %vm1431_vm0, %v5478_v34 }
 0x272   :  { %2285 = vmatmul.bf16.gmra.mxu3 %v5994_v15 }
 0x274   :  { %v2052_v56 = vpop.f32.mrf.mxu2 }
 0x275   :  { %v2053_v23 = vadd.f32 %v2052_v56, %v9514_v31  ;;  %v5497_v31 = vld [vmem:[%s12352_s0 + $0x178] sm:$0xf] }
 0x276   :  { %v2307_v4 = vpop.f32.mrf.mxu0  ;;  %v5498_v50 = vor.u32 %v7784_v8, %v5497_v31 }
 0x277   :  { %v9668_v52 = vadd.f32 %v2241_v27, %v2053_v23  ;;  %v9671_v32 = vadd.f32 %v2307_v4, %v8820_v24  ;;  %v7911_v24 = vld [vmem:[%s12352_s0 + $0x584] sm:$0xf]  ;;  %v2246_v56 = vpop.f32.mrf.mxu3 }
 0x278   :  { %v6014_v5 = vor.u32 %v7911_v24, %v6011_v39 }
 0x27c   :  { %v9693_v17 = vpop.f32.mrf.mxu2 }
 0x27e   :  { %v2310_v34 = vpop.f32.mrf.mxu0 }
 0x27f   :  { %v9696_v15 = vadd.f32 %v2310_v34, %v8825_v33  ;;  %v7913_v33 = vld [vmem:[%s12352_s0 + $0x590] sm:$0xf0]  ;;  %v7794_v34 = vld [vmem:[%s12352_s0 + $0x1d8] sm:$0xf0] }
 0x280   :  { %v6010_v31 = vor.u32 %v7913_v33, %v6009_v59  ;;  %v8009_v33 = vld [vmem:[%s12353_s3 + $0x1cc] sm:$0xf0] }
 0x281   :  { %2096 = vmatmul.bf16.gmra.mxu2 %v5990_v22  ;;  %6172 = vmatmul.msk.bf16.gmra.mxu0 %vm1431_vm0, %v5498_v50  ;;  %v5537_v50 = vld [vmem:[%s12352_s0 + $0x1c8] sm:$0xf] }
 0x282   :  { %2290 = vmatmul.bf16.gmra.mxu3 %v6014_v5  ;;  %v5538_v5 = vor.u32 %v7794_v34, %v5537_v50 }
 0x284   :  { %v2057_v27 = vpop.f32.mrf.mxu2 }
 0x285   :  { %v2058_v23 = vadd.f32 %v2057_v27, %v9551_v38  ;;  %v7789_v38 = vld [vmem:[%s12352_s0 + $0x1b0] sm:$0xf0] }
 0x286   :  { %v2312_v4 = vpop.f32.mrf.mxu0  ;;  %v5518_v8 = vor.u32 %v7789_v38, %v5517_v10  ;;  %v6337_v10 = vld [vmem:[%s12353_s3 + $0x1c8] sm:$0xf] }
 0x287   :  { %v9700_v62 = vadd.f32 %v2246_v56, %v2058_v23  ;;  %v9703_v58 = vadd.f32 %v2312_v4, %v8854_v1  ;;  %v6331_v56 = vld [vmem:[%s12353_s3 + $0x1d0] sm:$0xf0] }
 0x28e   :  { %v2315_v1 = vpop.f32.mrf.mxu0 }
 0x28f   :  { %v9718_v24 = vadd.f32 %v2315_v1, %v8859_v6 }
 0x291   :  { %2101 = vmatmul.bf16.gmra.mxu2 %v6010_v31  ;;  %6173 = vmatmul.msk.bf16.gmra.mxu0 %vm1431_vm0, %v5518_v8  ;;  %v8010_v31 = vld [vmem:[%s12353_s3 + $0x1d4] sm:$0xf0]  ;;  %v7799_v8 = vld [vmem:[%s12352_s0 + $0x200] sm:$0xf0] }
 0x292   :  { %v6338_v1 = vor.u32 %v8010_v31, %v6337_v10  ;;  %v7809_v10 = vld [vmem:[%s12352_s0 + $0x250] sm:$0xf0] }
 0x294   :  { %2857 = vmatpush.bf16.msra.mxu3 %v6338_v1  ;;  %v7814_v1 = vld [vmem:[%s12352_s0 + $0x278] sm:$0xf0] }
 0x296   :  { %v2317_v39 = vpop.f32.mrf.mxu0 }
 0x297   :  { %v9722_v22 = vadd.f32 %v2317_v39, %v8888_v37  ;;  %v8007_v37 = vld [vmem:[%s12353_s3 + $0x1c4] sm:$0xf] }
 0x298   :  { %v6334_v23 = vor.u32 %v8007_v37, %v6331_v56  ;;  %v5577_v37 = vld [vmem:[%s12352_s0 + $0x218] sm:$0xf]  ;;  %v7804_v56 = vld [vmem:[%s12352_s0 + $0x228] sm:$0xf0] }
 0x29a   :  { %2843 = vmatpush.bf16.msra.mxu2 %v6334_v23  ;;  %v5578_v23 = vor.u32 %v7804_v56, %v5577_v37  ;;  %v6315_v56 = vld [vmem:[%s12353_s3 + $0x1b0] sm:$0xf0] }
 0x29e   :  { %v2320_v27 = vpop.f32.mrf.mxu0 }
 0x29f   :  { %v9731_v6 = vadd.f32 %v2320_v27, %v8893_v48  ;;  %v6329_v48 = vld [vmem:[%s12353_s3 + $0x1c0] sm:$0xf] }
 0x2a0   :  { %v6330_v38 = vor.u32 %v8009_v33, %v6329_v48 }
 0x2a1   :  { %6174 = vmatmul.msk.bf16.gmra.mxu0 %vm1431_vm0, %v5538_v5 }
 0x2a2   :  { %2829 = vmatpush.bf16.msrb.mxu1 %v6330_v38 }
 0x2a6   :  { %v2322_v4 = vpop.f32.mrf.mxu0 }
 0x2a7   :  { %v9741_v59 = vadd.f32 %v2322_v4, %v8922_v14  ;;  %v5557_v14 = vld [vmem:[%s12352_s0 + $0x1f0] sm:$0xf] }
 0x2a8   :  { %v5558_v39 = vor.u32 %v7799_v8, %v5557_v14 }
 0x2ae   :  { %v2325_v50 = vpop.f32.mrf.mxu0 }
 0x2af   :  { %v9762_v34 = vadd.f32 %v2325_v50, %v8927_v30 }
 0x2b1   :  { %6175 = vmatmul.msk.bf16.gmra.mxu0 %vm1431_vm0, %v5558_v39 }
 0x2b6   :  { %v2327_v5 = vpop.f32.mrf.mxu0 }
 0x2b7   :  { %v9766_v27 = vadd.f32 %v2327_v5, %v8956_v2  ;;  %v5597_v2 = vld [vmem:[%s12352_s0 + $0x240] sm:$0xf] }
 0x2b8   :  { %v5598_v38 = vor.u32 %v7809_v10, %v5597_v2  ;;  %v6313_v10 = vld [vmem:[%s12353_s3 + $0x1a0] sm:$0xf] }
 0x2be   :  { %v2330_v4 = vpop.f32.mrf.mxu0 }
 0x2bf   :  { %v9775_v48 = vadd.f32 %v2330_v4, %v8961_v11 }
 0x2c1   :  { %6176 = vmatmul.msk.bf16.gmra.mxu0 %vm1431_vm0, %v5578_v23  ;;  %v5637_v23 = vld [vmem:[%s12352_s0 + $0x290] sm:$0xf] }
 0x2c6   :  { %v2332_v30 = vpop.f32.mrf.mxu0 }
 0x2c7   :  { %v9779_v33 = vadd.f32 %v2332_v30, %v8990_v47  ;;  %v5617_v47 = vld [vmem:[%s12352_s0 + $0x268] sm:$0xf] }
 0x2c8   :  { %v5618_v39 = vor.u32 %v7814_v1, %v5617_v47 }
 0x2c9   :  { %12404 = vst [vmem:[#allocation33_spill] sm:$0xff] %v9779_v33  ;;  %v12435_v33 = vld [vmem:[#allocation29_spill] sm:$0xff] }
 0x2ce   :  { %v2335_v31 = vpop.f32.mrf.mxu0 }
 0x2cf   :  { %v9788_v14 = vadd.f32 %v2335_v31, %v8995_v63  ;;  %v6321_v31 = vld [vmem:[%s12353_s3 + $0x1a8] sm:$0xf] }
 0x2d1   :  { %12405 = vst [vmem:[#allocation34_spill] sm:$0xff] %v9788_v14  ;;  %6177 = vmatmul.msk.bf16.gmra.mxu0 %vm1431_vm0, %v5598_v38  ;;  %v8005_v38 = vld [vmem:[%s12353_s3 + $0x1ac] sm:$0xf0] }
 0x2d2   :  { %v7981_v14 = vld [vmem:[%s12353_s3 + $0xec] sm:$0xf0] }
 0x2d6   :  { %v2337_v11 = vpop.f32.mrf.mxu0 }
 0x2d7   :  { %v9792_v8 = vadd.f32 %v2337_v11, %v9024_v49  ;;  %v8003_v49 = vld [vmem:[%s12353_s3 + $0x1a4] sm:$0xf]  ;;  %v6314_v11 = vor.u32 %v8005_v38, %v6313_v10 }
 0x2d8   :  { %v6318_v4 = vor.u32 %v8003_v49, %v6315_v56 }
 0x2d9   :  { %12406 = vst [vmem:[#allocation35_spill] sm:$0xff] %v9792_v8  ;;  %2830 = vmatpush.bf16.msrb.mxu1 %v6314_v11  ;;  %v6249_v8 = vld [vmem:[%s12353_s3 + $0x120] sm:$0xf] }
 0x2da   :  { %2844 = vmatpush.bf16.msra.mxu2 %v6318_v4 }
 0x2de   :  { %v2340_v50 = vpop.f32.mrf.mxu0 }
 0x2df   :  { %v9801_v5 = vadd.f32 %v2340_v50, %v9029_v21  ;;  %v7819_v21 = vld [vmem:[%s12352_s0 + $0x2a0] sm:$0xf0]  ;;  %v5657_v50 = vld [vmem:[%s12352_s0 + $0x2b8] sm:$0xf] }
 0x2e1   :  { %12407 = vst [vmem:[#allocation36_spill] sm:$0xff] %v9801_v5  ;;  %6178 = vmatmul.msk.bf16.gmra.mxu0 %vm1431_vm0, %v5618_v39 }
 0x2e6   :  { %v2342_v63 = vpop.f32.mrf.mxu0 }
 0x2e7   :  { %v9805_v37 = vadd.f32 %v2342_v63, %v9061_v35  ;;  %v5638_v35 = vor.u32 %v7819_v21, %v5637_v23  ;;  %v7824_v63 = vld [vmem:[%s12352_s0 + $0x2c8] sm:$0xf0] }
 0x2e8   :  { %v5658_v49 = vor.u32 %v7824_v63, %v5657_v50 }
 0x2e9   :  { %12408 = vst [vmem:[#allocation37_spill] sm:$0xff] %v9805_v37 }
 0x2ee   :  { %v2345_v30 = vpop.f32.mrf.mxu0 }
 0x2ef   :  { %v9820_v2 = vadd.f32 %v2345_v30, %v9066_v41  ;;  %v8006_v41 = vld [vmem:[%s12353_s3 + $0x1b4] sm:$0xf0]  ;;  %v5677_v30 = vld [vmem:[%s12352_s0 + $0x2e0] sm:$0xf] }
 0x2f0   :  { %v6322_v47 = vor.u32 %v8006_v41, %v6321_v31 }
 0x2f1   :  { %12409 = vst [vmem:[#allocation38_spill] sm:$0xff] %v9820_v2  ;;  %6179 = vmatmul.msk.bf16.gmra.mxu0 %vm1431_vm0, %v5638_v35 }
 0x2f2   :  { %2858 = vmatpush.bf16.msra.mxu3 %v6322_v47 }
 0x2f6   :  { %v2347_v1 = vpop.f32.mrf.mxu0 }
 0x2f7   :  { %v9836_v39 = vadd.f32 %v2347_v1, %v9095_v20  ;;  %v5697_v1 = vld [vmem:[%s12352_s0 + $0x308] sm:$0xf] }
 0x2f9   :  { %12410 = vst [vmem:[#allocation39_spill] sm:$0xff] %v9836_v39 }
 0x2fe   :  { %v2350_v56 = vpop.f32.mrf.mxu0 }
 0x2ff   :  { %v9845_v23 = vadd.f32 %v2350_v56, %v9100_v55  ;;  %v7829_v55 = vld [vmem:[%s12352_s0 + $0x2f0] sm:$0xf0] }
 0x300   :  { %v5678_v10 = vor.u32 %v7829_v55, %v5677_v30  ;;  %v5717_v55 = vld [vmem:[%s12352_s0 + $0x330] sm:$0xf] }
 0x301   :  { %6180 = vmatmul.msk.bf16.gmra.mxu0 %vm1431_vm0, %v5658_v49 }
 0x306   :  { %v2352_v20 = vpop.f32.mrf.mxu0 }
 0x307   :  { %v9851_v4 = vadd.f32 %v2352_v20, %v9129_v7 }
 0x30e   :  { %v2355_v38 = vpop.f32.mrf.mxu0 }
 0x30f   :  { %v9862_v31 = vadd.f32 %v2355_v38, %v9134_v43  ;;  %v7834_v43 = vld [vmem:[%s12352_s0 + $0x318] sm:$0xf0] }
 0x310   :  { %v5698_v50 = vor.u32 %v7834_v43, %v5697_v1  ;;  %v7999_v1 = vld [vmem:[%s12353_s3 + $0x184] sm:$0xf]  ;;  %v6299_v43 = vld [vmem:[%s12353_s3 + $0x190] sm:$0xf0] }
 0x311   :  { %6181 = vmatmul.msk.bf16.gmra.mxu0 %vm1431_vm0, %v5678_v10 }
 0x316   :  { %v2357_v11 = vpop.f32.mrf.mxu0 }
 0x317   :  { %v9868_v41 = vadd.f32 %v2357_v11, %v9163_v26 }
 0x31e   :  { %v2360_v63 = vpop.f32.mrf.mxu0 }
 0x31f   :  { %v9879_v49 = vadd.f32 %v2360_v63, %v9168_v0  ;;  %v7839_v0 = vld [vmem:[%s12352_s0 + $0x340] sm:$0xf0] }
 0x320   :  { %v5718_v10 = vor.u32 %v7839_v0, %v5717_v55  ;;  %v6297_v55 = vld [vmem:[%s12353_s3 + $0x180] sm:$0xf]  ;;  %v8001_v0 = vld [vmem:[%s12353_s3 + $0x18c] sm:$0xf0] }
 0x321   :  { %6182 = vmatmul.msk.bf16.gmra.mxu0 %vm1431_vm0, %v5698_v50  ;;  %v6302_v50 = vor.u32 %v7999_v1, %v6299_v43  ;;  %v6298_v1 = vor.u32 %v8001_v0, %v6297_v55  ;;  %v8002_v43 = vld [vmem:[%s12353_s3 + $0x194] sm:$0xf0] }
 0x323   :  { %2845 = vmatpush.bf16.msra.mxu2 %v6302_v50  ;;  %2831 = vmatpush.bf16.msrb.mxu1 %v6298_v1 }
 0x326   :  { %v2362_v56 = vpop.f32.mrf.mxu0 }
 0x327   :  { %v9885_v20 = vadd.f32 %v2362_v56, %v9197_v19 }
 0x32e   :  { %v2365_v38 = vpop.f32.mrf.mxu0 }
 0x32f   :  { %v9896_v11 = vadd.f32 %v2365_v38, %v9202_v46  ;;  %v7844_v38 = vld [vmem:[%s12352_s0 + $0x368] sm:$0xf0] }
 0x331   :  { %6183 = vmatmul.msk.bf16.gmra.mxu0 %vm1431_vm0, %v5718_v10  ;;  %v6305_v10 = vld [vmem:[%s12353_s3 + $0x188] sm:$0xf] }
 0x332   :  { %v6306_v50 = vor.u32 %v8002_v43, %v6305_v10  ;;  %v5757_v10 = vld [vmem:[%s12352_s0 + $0x380] sm:$0xf] }
 0x334   :  { %2859 = vmatpush.bf16.msra.mxu3 %v6306_v50  ;;  %v5777_v50 = vld [vmem:[%s12352_s0 + $0x3a8] sm:$0xf] }
 0x336   :  { %v2367_v63 = vpop.f32.mrf.mxu0 }
 0x337   :  { %v9908_v56 = vadd.f32 %v2367_v63, %v9231_v13  ;;  %v5737_v13 = vld [vmem:[%s12352_s0 + $0x358] sm:$0xf] }
 0x338   :  { %v5738_v63 = vor.u32 %v7844_v38, %v5737_v13 }
 0x33e   :  { %v2370_v46 = vpop.f32.mrf.mxu0 }
 0x33f   :  { %v9931_v19 = vadd.f32 %v2370_v46, %v9236_v12  ;;  %v7849_v12 = vld [vmem:[%s12352_s0 + $0x390] sm:$0xf0] }
 0x340   :  { %v5758_v46 = vor.u32 %v7849_v12, %v5757_v10 }
 0x341   :  { %6184 = vmatmul.msk.bf16.gmra.mxu0 %vm1431_vm0, %v5738_v63 }
 0x346   :  { %v2372_v26 = vpop.f32.mrf.mxu0 }
 0x347   :  { %v9937_v55 = vadd.f32 %v2372_v26, %v9265_v25  ;;  %v7995_v25 = vld [vmem:[%s12353_s3 + $0x164] sm:$0xf] }
 0x34e   :  { %v2375_v13 = vpop.f32.mrf.mxu0 }
 0x34f   :  { %v9948_v38 = vadd.f32 %v2375_v13, %v9270_v54  ;;  %v7854_v54 = vld [vmem:[%s12352_s0 + $0x3b8] sm:$0xf0] }
 0x350   :  { %v5778_v63 = vor.u32 %v7854_v54, %v5777_v50  ;;  %v5797_v50 = vld [vmem:[%s12352_s0 + $0x3d0] sm:$0xf] }
 0x351   :  { %6185 = vmatmul.msk.bf16.gmra.mxu0 %vm1431_vm0, %v5758_v46 }
 0x356   :  { %v2377_v26 = vpop.f32.mrf.mxu0 }
 0x357   :  { %v9954_v1 = vadd.f32 %v2377_v26, %v9302_v18  ;;  %v12414_v18 = vld [vmem:[#allocation16_spill] sm:$0xff] }
 0x359   :  { %12411 = vst [vmem:[#allocation40_spill] sm:$0xff] %v9954_v1 }
 0x35e   :  { %v2380_v10 = vpop.f32.mrf.mxu0 }
 0x35f   :  { %v9965_v12 = vadd.f32 %v2380_v10, %v9307_v61  ;;  %v7859_v61 = vld [vmem:[%s12352_s0 + $0x3e0] sm:$0xf0] }
 0x360   :  { %v5798_v54 = vor.u32 %v7859_v61, %v5797_v50  ;;  %v6283_v50 = vld [vmem:[%s12353_s3 + $0x170] sm:$0xf0] }
 0x361   :  { %12412 = vst [vmem:[#allocation41_spill] sm:$0xff] %v9965_v12  ;;  %6186 = vmatmul.msk.bf16.gmra.mxu0 %vm1431_vm0, %v5778_v63  ;;  %v6286_v61 = vor.u32 %v7995_v25, %v6283_v50  ;;  %v6281_v25 = vld [vmem:[%s12353_s3 + $0x160] sm:$0xf]  ;;  %v7997_v50 = vld [vmem:[%s12353_s3 + $0x16c] sm:$0xf0] }
 0x362   :  { %v6233_v12 = vld [vmem:[%s12353_s3 + $0x100] sm:$0xf] }
 0x363   :  { %2846 = vmatpush.bf16.msra.mxu2 %v6286_v61  ;;  %v6289_v61 = vld [vmem:[%s12353_s3 + $0x168] sm:$0xf] }
 0x366   :  { %v2382_v46 = vpop.f32.mrf.mxu0 }
 0x367   :  { %v9971_v13 = vadd.f32 %v2382_v46, %v9336_v9  ;;  %v12416_v46 = vld [vmem:[#allocation17_spill] sm:$0xff]  ;;  %v12418_v9 = vld [vmem:[#allocation18_spill] sm:$0xff] }
 0x369   :  { %12413 = vst [vmem:[#allocation42_spill] sm:$0xff] %v9971_v13 }
 0x36e   :  { %v2385_v10 = vpop.f32.mrf.mxu0 }
 0x36f   :  { %v9982_v43 = vadd.f32 %v2385_v10, %v12414_v18  ;;  %v7864_v10 = vld [vmem:[%s12352_s0 + $0x408] sm:$0xf0]  ;;  %v6282_v18 = vor.u32 %v7997_v50, %v6281_v25  ;;  %v7869_v50 = vld [vmem:[%s12352_s0 + $0x430] sm:$0xf0]  ;;  %v7874_v25 = vld [vmem:[%s12352_s0 + $0x458] sm:$0xf0] }
 0x371   :  { %12415 = vst [vmem:[#allocation16_spill] sm:$0xff] %v9982_v43  ;;  %6187 = vmatmul.msk.bf16.gmra.mxu0 %vm1431_vm0, %v5798_v54  ;;  %v5817_v54 = vld [vmem:[%s12352_s0 + $0x3f8] sm:$0xf]  ;;  %2832 = vmatpush.bf16.msrb.mxu1 %v6282_v18  ;;  %v12422_v18 = vld [vmem:[#allocation20_spill] sm:$0xff] }
 0x376   :  { %v2387_v63 = vpop.f32.mrf.mxu0 }
 0x377   :  { %v9988_v26 = vadd.f32 %v2387_v63, %v12416_v46  ;;  %v5818_v63 = vor.u32 %v7864_v10, %v5817_v54 }
 0x379   :  { %12417 = vst [vmem:[#allocation17_spill] sm:$0xff] %v9988_v26 }
 0x37e   :  { %v2390_v46 = vpop.f32.mrf.mxu0 }
 0x37f   :  { %v10005_v0 = vadd.f32 %v2390_v46, %v12418_v9  ;;  %v7998_v9 = vld [vmem:[%s12353_s3 + $0x174] sm:$0xf0]  ;;  %v12420_v46 = vld [vmem:[#allocation19_spill] sm:$0xff] }
 0x380   :  { %v6290_v54 = vor.u32 %v7998_v9, %v6289_v61 }
 0x381   :  { %12419 = vst [vmem:[#allocation18_spill] sm:$0xff] %v10005_v0  ;;  %6188 = vmatmul.msk.bf16.gmra.mxu0 %vm1431_vm0, %v5818_v63  ;;  %v5837_v63 = vld [vmem:[%s12352_s0 + $0x420] sm:$0xf] }
 0x382   :  { %2860 = vmatpush.bf16.msra.mxu3 %v6290_v54  ;;  %v5838_v30 = vor.u32 %v7869_v50, %v5837_v63  ;;  %v12423_v54 = vld [vmem:[#allocation21_spill] sm:$0xff]  ;;  %v12424_v50 = vld [vmem:[#allocation22_spill] sm:$0xff] }
 0x386   :  { %v2392_v10 = vpop.f32.mrf.mxu0 }
 0x387   :  { %v10023_v47 = vadd.f32 %v2392_v10, %v12420_v46  ;;  %v5857_v46 = vld [vmem:[%s12352_s0 + $0x448] sm:$0xf] }
 0x388   :  { %v5858_v35 = vor.u32 %v7874_v25, %v5857_v46  ;;  %v12425_v46 = vld [vmem:[#allocation25_spill] sm:$0xff] }
 0x389   :  { %12421 = vst [vmem:[#allocation19_spill] sm:$0xff] %v10023_v47 }
 0x38e   :  { %v2395_v7 = vpop.f32.mrf.mxu0 }
 0x38f   :  { %v10034_v61 = vadd.f32 %v2395_v7, %v12422_v18  ;;  %v5877_v18 = vld [vmem:[%s12352_s0 + $0x470] sm:$0xf] }
 0x391   :  { %6189 = vmatmul.msk.bf16.gmra.mxu0 %vm1431_vm0, %v5838_v30 }
 0x396   :  { %v2397_v9 = vpop.f32.mrf.mxu0 }
 0x397   :  { %v10038_v10 = vadd.f32 %v2397_v9, %v12423_v54  ;;  %v7879_v9 = vld [vmem:[%s12352_s0 + $0x480] sm:$0xf0] }
 0x398   :  { %v5878_v54 = vor.u32 %v7879_v9, %v5877_v18  ;;  %v12426_v9 = vld [vmem:[#allocation28_spill] sm:$0xff] }
 0x39e   :  { %v2400_v63 = vpop.f32.mrf.mxu0 }
 0x39f   :  { %v10047_v21 = vadd.f32 %v2400_v63, %v12424_v50  ;;  %v7884_v50 = vld [vmem:[%s12352_s0 + $0x4a8] sm:$0xf0] }
 0x3a1   :  { %6190 = vmatmul.msk.bf16.gmra.mxu0 %vm1431_vm0, %v5858_v35 }
 0x3a6   :  { %v2402_v7 = vpop.f32.mrf.mxu0 }
 0x3a7   :  { %v10051_v30 = vadd.f32 %v2402_v7, %v9475_v16  ;;  %v5897_v16 = vld [vmem:[%s12352_s0 + $0x498] sm:$0xf] }
 0x3a8   :  { %v5898_v7 = vor.u32 %v7884_v50, %v5897_v16  ;;  %v6265_v16 = vld [vmem:[%s12353_s3 + $0x140] sm:$0xf]  ;;  %v7993_v50 = vld [vmem:[%s12353_s3 + $0x14c] sm:$0xf0] }
 0x3ae   :  { %v2405_v25 = vpop.f32.mrf.mxu0 }
 0x3af   :  { %v10060_v47 = vadd.f32 %v2405_v25, %v12425_v46 }
 0x3b1   :  { %6191 = vmatmul.msk.bf16.gmra.mxu0 %vm1431_vm0, %v5878_v54  ;;  %v6267_v54 = vld [vmem:[%s12353_s3 + $0x150] sm:$0xf0] }
 0x3b6   :  { %v2407_v35 = vpop.f32.mrf.mxu0 }
 0x3b7   :  { %v10064_v63 = vadd.f32 %v2407_v35, %v9512_v60  ;;  %v7991_v60 = vld [vmem:[%s12353_s3 + $0x144] sm:$0xf] }
 0x3b8   :  { %v6270_v25 = vor.u32 %v7991_v60, %v6267_v54  ;;  %v7889_v54 = vld [vmem:[%s12352_s0 + $0x4d0] sm:$0xf0] }
 0x3ba   :  { %2847 = vmatpush.bf16.msra.mxu2 %v6270_v25 }
 0x3be   :  { %v2410_v18 = vpop.f32.mrf.mxu0 }
 0x3bf   :  { %v10073_v39 = vadd.f32 %v2410_v18, %v12426_v9  ;;  %v6266_v18 = vor.u32 %v7993_v50, %v6265_v16  ;;  %v7994_v9 = vld [vmem:[%s12353_s3 + $0x154] sm:$0xf0] }
 0x3c1   :  { %6192 = vmatmul.msk.bf16.gmra.mxu0 %vm1431_vm0, %v5898_v7  ;;  %v6273_v7 = vld [vmem:[%s12353_s3 + $0x148] sm:$0xf]  ;;  %2833 = vmatpush.bf16.msrb.mxu1 %v6266_v18  ;;  %v7894_v18 = vld [vmem:[%s12352_s0 + $0x4f8] sm:$0xf0] }
 0x3c2   :  { %v6274_v60 = vor.u32 %v7994_v9, %v6273_v7  ;;  %v5937_v7 = vld [vmem:[%s12352_s0 + $0x4e8] sm:$0xf] }
 0x3c3   :  { %v5938_v9 = vor.u32 %v7894_v18, %v5937_v7 }
 0x3c4   :  { %2861 = vmatpush.bf16.msra.mxu3 %v6274_v60 }
 0x3c6   :  { %v2412_v46 = vpop.f32.mrf.mxu0 }
 0x3c7   :  { %v10083_v35 = vadd.f32 %v2412_v46, %v9549_v44  ;;  %v5917_v44 = vld [vmem:[%s12352_s0 + $0x4c0] sm:$0xf] }
 0x3c8   :  { %v5918_v25 = vor.u32 %v7889_v54, %v5917_v44  ;;  %v10120_v54 = vpop.f32.mrf.mxu1 }
 0x3ce   :  { %v2415_v46 = vpop.f32.mrf.mxu0 }
 0x3cf   :  { %v10104_v0 = vadd.f32 %v2415_v46, %v9557_v51  ;;  %v5957_v46 = vld [vmem:[%s12352_s0 + $0x510] sm:$0xf] }
 0x3d1   :  { %6193 = vmatmul.msk.bf16.gmra.mxu0 %vm1431_vm0, %v5918_v25  ;;  %v10125_v25 = vpop.f32.mrf.mxu2 }
 0x3d6   :  { %v2417_v16 = vpop.f32.mrf.mxu0 }
 0x3d7   :  { %v10108_v50 = vadd.f32 %v2417_v16, %v9586_v53  ;;  %v7899_v16 = vld [vmem:[%s12352_s0 + $0x520] sm:$0xf0] }
 0x3d8   :  { %v5958_v7 = vor.u32 %v7899_v16, %v5957_v46  ;;  %v7904_v16 = vld [vmem:[%s12352_s0 + $0x548] sm:$0xf0] }
 0x3d9   :  { %v10144_v37 = vpop.f32.mrf.mxu2 }
 0x3de   :  { %v2420_v60 = vpop.f32.mrf.mxu0 }
 0x3df   :  { %v10117_v44 = vadd.f32 %v2420_v60, %v9592_v45  ;;  %v10133_v45 = vpop.f32.mrf.mxu3  ;;  %v12428_v60 = vld [vmem:[#allocation24_spill] sm:$0xff] }
 0x3e1   :  { %6194 = vmatmul.msk.bf16.gmra.mxu0 %vm1431_vm0, %v5938_v9  ;;  %v12427_v9 = vld [vmem:[#allocation23_spill] sm:$0xff] }
 0x3e2   :  { %v1861_v2 = vadd.f32 %v12428_v60, %v12427_v9 }
 0x3e4   :  { %v2050_v26 = vadd.f32 %v9661_v3, %v1861_v2  ;;  %v10159_v2 = vpop.f32.mrf.mxu2 }
 0x3e6   :  { %v2422_v51 = vpop.f32.mrf.mxu0  ;;  %v2239_v43 = vadd.f32 %v9639_v28, %v2050_v26  ;;  %v12431_v28 = vld [vmem:[#allocation26_spill] sm:$0xff]  ;;  %v12432_v26 = vld [vmem:[#allocation27_spill] sm:$0xff] }
 0x3e7   :  { %v10123_v53 = vadd.f32 %v2422_v51, %v9621_v40  ;;  %v10140_v51 = vpop.f32.mrf.mxu1  ;;  %v10147_v13 = vpop.f32.mrf.mxu3  ;;  %v1866_v9 = vadd.f32 %v12432_v26, %v12431_v28 }
 0x3ee   :  { %v2425_v18 = vpop.f32.mrf.mxu0 }
 0x3ef   :  { %v10138_v40 = vadd.f32 %v2425_v18, %v9641_v29  ;;  %v5977_v29 = vld [vmem:[%s12352_s0 + $0x538] sm:$0xf]  ;;  %v10157_v3 = vpop.f32.mrf.mxu1  ;;  %v10167_v60 = vpop.f32.mrf.mxu3 }
 0x3f1   :  { %12429 = vst [vmem:[#allocation20_spill] sm:$0xff] %v10138_v40  ;;  %6195 = vmatmul.msk.bf16.gmra.mxu0 %vm1431_vm0, %v5958_v7  ;;  %v5978_v7 = vor.u32 %v7904_v16, %v5977_v29  ;;  %v7989_v29 = vld [vmem:[%s12353_s3 + $0x12c] sm:$0xf0] }
 0x3f2   :  { %v6250_v16 = vor.u32 %v7989_v29, %v6249_v8  ;;  %v7990_v8 = vld [vmem:[%s12353_s3 + $0x134] sm:$0xf0] }
 0x3f4   :  { %2834 = vmatpush.bf16.msrb.mxu1 %v6250_v16  ;;  %v5997_v16 = vld [vmem:[%s12352_s0 + $0x560] sm:$0xf] }
 0x3f6   :  { %v2427_v5 = vpop.f32.mrf.mxu0 }
 0x3f7   :  { %v10149_v46 = vadd.f32 %v2427_v5, %v2239_v43  ;;  %v2055_v43 = vadd.f32 %v9693_v17, %v1866_v9  ;;  %v6251_v17 = vld [vmem:[%s12353_s3 + $0x130] sm:$0xf0] }
 0x3f9   :  { %12430 = vst [vmem:[#allocation21_spill] sm:$0xff] %v10149_v46  ;;  %v2244_v28 = vadd.f32 %v9676_v57, %v2055_v43  ;;  %v7985_v57 = vld [vmem:[%s12353_s3 + $0x10c] sm:$0xf0]  ;;  %v7983_v43 = vld [vmem:[%s12353_s3 + $0x104] sm:$0xf] }
 0x3fe   :  { %v2430_v18 = vpop.f32.mrf.mxu0 }
 0x3ff   :  { %v10164_v5 = vadd.f32 %v2430_v18, %v9668_v52  ;;  %v7987_v52 = vld [vmem:[%s12353_s3 + $0x124] sm:$0xf]  ;;  %v10185_v18 = vpop.f32.mrf.mxu1 }
 0x400   :  { %v6254_v26 = vor.u32 %v7987_v52, %v6251_v17  ;;  %v7909_v52 = vld [vmem:[%s12352_s0 + $0x570] sm:$0xf0]  ;;  %v6234_v17 = vor.u32 %v7985_v57, %v6233_v12  ;;  %v6355_v12 = vld [vmem:[%s12353_s3 + $0x1f8] sm:$0xf0] }
 0x401   :  { %12433 = vst [vmem:[#allocation22_spill] sm:$0xff] %v10164_v5  ;;  %6196 = vmatmul.msk.bf16.gmra.mxu0 %vm1431_vm0, %v5978_v7  ;;  %v6257_v7 = vld [vmem:[%s12353_s3 + $0x128] sm:$0xf]  ;;  %v10191_v5 = vpop.f32.mrf.mxu2  ;;  %v5998_v1 = vor.u32 %v7909_v52, %v5997_v16  ;;  %v1871_v16 = vadd.f32 %v10120_v54, %v12435_v33 }
 0x402   :  { %v6258_v29 = vor.u32 %v7990_v8, %v6257_v7  ;;  %2848 = vmatpush.bf16.msra.mxu2 %v6254_v26  ;;  %v6235_v7 = vld [vmem:[%s12353_s3 + $0x110] sm:$0xf0]  ;;  %v7986_v26 = vld [vmem:[%s12353_s3 + $0x114] sm:$0xf0]  ;;  %2835 = vmatpush.bf16.msrb.mxu1 %v6234_v17  ;;  %v6339_v17 = vld [vmem:[%s12353_s3 + $0x1d8] sm:$0xf0] }
 0x403   :  { %v6238_v8 = vor.u32 %v7983_v43, %v6235_v7  ;;  %v7979_v43 = vld [vmem:[%s12353_s3 + $0xe4] sm:$0xf]  ;;  %v6475_v7 = vld [vmem:[%s12353_s3 + $0xf0] sm:$0xf0]  ;;  %v2060_v33 = vadd.f32 %v10125_v25, %v1871_v16 }
 0x404   :  { %2862 = vmatpush.bf16.msra.mxu3 %v6258_v29  ;;  %v6473_v29 = vld [vmem:[%s12353_s3 + $0xe0] sm:$0xf]  ;;  %v6478_v40 = vor.u32 %v7979_v43, %v6475_v7 }
 0x406   :  { %v2432_v9 = vpop.f32.mrf.mxu0  ;;  %2849 = vmatpush.bf16.msra.mxu2 %v6238_v8 }
 0x407   :  { %v10193_v46 = vadd.f32 %v2432_v9, %v2244_v28  ;;  %v6241_v28 = vld [vmem:[%s12353_s3 + $0x108] sm:$0xf] }
 0x408   :  { %v6242_v9 = vor.u32 %v7986_v26, %v6241_v28  ;;  %v10237_v28 = vpop.f32.mrf.mxu3  ;;  %v6474_v26 = vor.u32 %v7981_v14, %v6473_v29  ;;  %v7977_v14 = vld [vmem:[%s12353_s3 + $0xcc] sm:$0xf0]  ;;  %v6459_v29 = vld [vmem:[%s12353_s3 + $0xd0] sm:$0xf0] }
 0x409   :  { %12434 = vst [vmem:[#allocation25_spill] sm:$0xff] %v10193_v46  ;;  %v8012_v46 = vld [vmem:[%s12353_s3 + $0x1ec] sm:$0xf]  ;;  %v10274_v54 = vpop.f32.mrf.mxu2 }
 0x40a   :  { %v6358_v57 = vor.u32 %v8012_v46, %v6355_v12  ;;  %2863 = vmatpush.bf16.msra.mxu3 %v6242_v9  ;;  %v8008_v46 = vld [vmem:[%s12353_s3 + $0x1cc] sm:$0xf]  ;;  %v6457_v12 = vld [vmem:[%s12353_s3 + $0xc0] sm:$0xf]  ;;  %3050 = vmatpush.bf16.msrb.mxu2 %v6474_v26  ;;  %v7975_v9 = vld [vmem:[%s12353_s3 + $0xc4] sm:$0xf] }
 0x40b   :  { %v6342_v8 = vor.u32 %v8008_v46, %v6339_v17  ;;  %v6458_v43 = vor.u32 %v7977_v14, %v6457_v12  ;;  %v6462_v7 = vor.u32 %v7975_v9, %v6459_v29  ;;  %v8004_v26 = vld [vmem:[%s12353_s3 + $0x1ac] sm:$0xf]  ;;  %v6323_v46 = vld [vmem:[%s12353_s3 + $0x1b8] sm:$0xf0]  ;;  %v6441_v17 = vld [vmem:[%s12353_s3 + $0xa0] sm:$0xf] }
 0x40c   :  { %2870 = vmatpush.bf16.msra.mxu1 %v6358_v57  ;;  %v7973_v12 = vld [vmem:[%s12353_s3 + $0xac] sm:$0xf0]  ;;  %v6443_v14 = vld [vmem:[%s12353_s3 + $0xb0] sm:$0xf0]  ;;  %v6307_v29 = vld [vmem:[%s12353_s3 + $0x198] sm:$0xf0] }
 0x40d   :  { %v6442_v25 = vor.u32 %v7973_v12, %v6441_v17  ;;  %v6427_v17 = vld [vmem:[%s12353_s3 + $0x90] sm:$0xf0] }
 0x40e   :  { %3064 = vmatpush.bf16.msrb.mxu3 %v6478_v40  ;;  %v2435_v57 = vpop.f32.mrf.mxu0  ;;  %v10259_v40 = vpop.f32.mrf.mxu1  ;;  %3051 = vmatpush.bf16.msrb.mxu2 %v6458_v43  ;;  %v2249_v43 = vadd.f32 %v10133_v45, %v2060_v33  ;;  %v1874_v33 = vadd.f32 %v10140_v51, %v9584_v36  ;;  %v7965_v51 = vld [vmem:[%s12353_s3 + $0x6c] sm:$0xf0] }
 0x40f   :  { %v10262_v52 = vadd.f32 %v2435_v57, %v9700_v62  ;;  %v6326_v62 = vor.u32 %v8004_v26, %v6323_v46  ;;  %v6425_v57 = vld [vmem:[%s12353_s3 + $0x80] sm:$0xf]  ;;  %v7969_v26 = vld [vmem:[%s12353_s3 + $0x8c] sm:$0xf0]  ;;  %v7967_v46 = vld [vmem:[%s12353_s3 + $0x84] sm:$0xf] }
 0x410   :  { %2871 = vmatpush.bf16.msra.mxu1 %v6342_v8  ;;  %v7971_v8 = vld [vmem:[%s12353_s3 + $0xa4] sm:$0xf]  ;;  %v10296_v16 = vpop.f32.mrf.mxu3  ;;  %v6426_v12 = vor.u32 %v7969_v26, %v6425_v57  ;;  %v6430_v45 = vor.u32 %v7967_v46, %v6427_v17 }
 0x411   :  { %6197 = vmatmul.msk.bf16.gmra.mxu0 %vm1431_vm0, %v5998_v1  ;;  %v6446_v9 = vor.u32 %v7971_v8, %v6443_v14  ;;  %v8000_v1 = vld [vmem:[%s12353_s3 + $0x18c] sm:$0xf]  ;;  %v7963_v57 = vld [vmem:[%s12353_s3 + $0x64] sm:$0xf]  ;;  %v10338_v17 = vpop.f32.mrf.mxu2 }
 0x412   :  { %3065 = vmatpush.bf16.msrb.mxu3 %v6462_v7  ;;  %3052 = vmatpush.bf16.msrb.mxu2 %v6442_v25  ;;  %v6310_v7 = vor.u32 %v8000_v1, %v6307_v29  ;;  %v7996_v14 = vld [vmem:[%s12353_s3 + $0x16c] sm:$0xf]  ;;  %v6291_v25 = vld [vmem:[%s12353_s3 + $0x178] sm:$0xf0]  ;;  %v2063_v29 = vadd.f32 %v10144_v37, %v1874_v33  ;;  %v6393_v33 = vld [vmem:[%s12353_s3 + $0x40] sm:$0xf] }
 0x413   :  { %v6294_v36 = vor.u32 %v7996_v14, %v6291_v25  ;;  %v7914_v37 = vld [vmem:[%s12352_s0 + $0x598] sm:$0xf0] }
 0x414   :  { %2872 = vmatpush.bf16.msra.mxu1 %v6326_v62  ;;  %v2252_v14 = vadd.f32 %v10147_v13, %v2063_v29  ;;  %v12437_v13 = vld [vmem:[#allocation30_spill] sm:$0xff] }
 0x415   :  { %v1876_v29 = vadd.f32 %v10157_v3, %v12437_v13  ;;  %v6361_v13 = vld [vmem:[%s12353_s3] sm:$0xf] }
 0x416   :  { %v2437_v62 = vpop.f32.mrf.mxu0  ;;  %3066 = vmatpush.bf16.msrb.mxu3 %v6446_v9  ;;  %v6409_v9 = vld [vmem:[%s12353_s3 + $0x60] sm:$0xf]  ;;  %v10320_v1 = vpop.f32.mrf.mxu1  ;;  %3053 = vmatpush.bf16.msrb.mxu2 %v6426_v12  ;;  %v6275_v12 = vld [vmem:[%s12353_s3 + $0x158] sm:$0xf0] }
 0x417   :  { %v10309_v8 = vadd.f32 %v2437_v62, %v2249_v43  ;;  %v6411_v43 = vld [vmem:[%s12353_s3 + $0x70] sm:$0xf0]  ;;  %v6410_v26 = vor.u32 %v7965_v51, %v6409_v9  ;;  %v7992_v62 = vld [vmem:[%s12353_s3 + $0x14c] sm:$0xf]  ;;  %v7961_v9 = vld [vmem:[%s12353_s3 + $0x4c] sm:$0xf0] }
 0x418   :  { %2873 = vmatpush.bf16.msra.mxu1 %v6310_v7  ;;  %v6017_v7 = vld [vmem:[%s12352_s0 + $0x588] sm:$0xf]  ;;  %v6414_v46 = vor.u32 %v7963_v57, %v6411_v43  ;;  %v6278_v25 = vor.u32 %v7992_v62, %v6275_v12  ;;  %v6395_v51 = vld [vmem:[%s12353_s3 + $0x50] sm:$0xf0]  ;;  %v6394_v43 = vor.u32 %v7961_v9, %v6393_v33  ;;  %v6259_v62 = vld [vmem:[%s12353_s3 + $0x138] sm:$0xf0]  ;;  %v2065_v12 = vadd.f32 %v10159_v2, %v1876_v29 }
 0x419   :  { %12436 = vst [vmem:[#allocation28_spill] sm:$0xff] %v10309_v8  ;;  %v6379_v9 = vld [vmem:[%s12353_s3 + $0x30] sm:$0xf0] }
 0x41a   :  { %3067 = vmatpush.bf16.msrb.mxu3 %v6430_v45  ;;  %v6018_v45 = vor.u32 %v7914_v37, %v6017_v7  ;;  %3054 = vmatpush.bf16.msrb.mxu2 %v6410_v26  ;;  %v10361_v7 = vpop.f32.mrf.mxu3  ;;  %v7988_v26 = vld [vmem:[%s12353_s3 + $0x12c] sm:$0xf] }
 0x41b   :  { %v6262_v33 = vor.u32 %v7988_v26, %v6259_v62  ;;  %v7951_v26 = vld [vmem:[%s12353_s3 + $0x4] sm:$0xf]  ;;  %v6363_v62 = vld [vmem:[%s12353_s3 + $0x10] sm:$0xf0] }
 0x41c   :  { %2874 = vmatpush.bf16.msra.mxu1 %v6294_v36  ;;  %v7959_v36 = vld [vmem:[%s12353_s3 + $0x44] sm:$0xf] }
 0x41d   :  { %v6398_v8 = vor.u32 %v7959_v36, %v6395_v51 }
 0x41e   :  { %v2440_v57 = vpop.f32.mrf.mxu0  ;;  %3068 = vmatpush.bf16.msrb.mxu3 %v6414_v46  ;;  %v6377_v46 = vld [vmem:[%s12353_s3 + $0x20] sm:$0xf]  ;;  %3055 = vmatpush.bf16.msrb.mxu2 %v6394_v43  ;;  %v7984_v43 = vld [vmem:[%s12353_s3 + $0x10c] sm:$0xf] }
 0x41f   :  { %v2441_v37 = vadd.f32 %v2440_v57, %v2252_v14  ;;  %v7957_v14 = vld [vmem:[%s12353_s3 + $0x2c] sm:$0xf0]  ;;  %v10390_v57 = vld [vmem:[%s12354_s2] ss:$0 sm:$0xff] }
 0x420   :  { %2875 = vmatpush.bf16.msra.mxu1 %v6278_v25  ;;  %v7955_v25 = vld [vmem:[%s12353_s3 + $0x24] sm:$0xf]  ;;  %v6378_v2 = vor.u32 %v7957_v14, %v6377_v46 }
 0x421   :  { %v2503_v3 = vmax.f32 %v10034_v61, %v2441_v37  ;;  %6198 = vmatmul.msk.bf16.gmra.mxu0 %vm1431_vm0, %v6018_v45  ;;  %v6382_v36 = vor.u32 %v7955_v25, %v6379_v9  ;;  %v1885_v61 = vpop.f32.mrf.mxu1  ;;  %v12438_v45 = vmax.f32 %v9664_v42, %v9845_v23  ;;  %v2254_v42 = vadd.f32 %v10167_v60, %v2065_v12  ;;  %v2074_v23 = vpop.f32.mrf.mxu2  ;;  %v7953_v37 = vld [vmem:[%s12353_s3 + $0xc] sm:$0xf0]  ;;  %v12439_v60 = vld [vmem:[#allocation31_spill] sm:$0xff] }
 0x422   :  { %3069 = vmatpush.bf16.msrb.mxu3 %v6398_v8  ;;  %v6243_v8 = vld [vmem:[%s12353_s3 + $0x118] sm:$0xf0]  ;;  %3056 = vmatpush.bf16.msrb.mxu2 %v6378_v2  ;;  %v1879_v12 = vadd.f32 %v10185_v18, %v12439_v60  ;;  %v2263_v2 = vpop.f32.mrf.mxu3  ;;  %v12442_v60 = vmax.f32 %v9696_v15, %v9862_v31 }
 0x423   :  { %v2521_v51 = vmax.f32 %v12438_v45, %v2503_v3  ;;  %v6246_v29 = vor.u32 %v7984_v43, %v6243_v8  ;;  %v6362_v3 = vor.u32 %v7953_v37, %v6361_v13 }
 0x424   :  { %2876 = vmatpush.bf16.msra.mxu1 %v6262_v33  ;;  %v6366_v33 = vor.u32 %v7951_v26, %v6363_v62  ;;  %v2068_v9 = vadd.f32 %v10191_v5, %v1879_v12 }
 0x425   :  { %v2543_v14 = vadd.f32 %v10390_v57, %v2521_v51 }
 0x426   :  { %v2442_v46 = vpop.f32.mrf.mxu0  ;;  %3070 = vmatpush.bf16.msrb.mxu3 %v6382_v36  ;;  %3057 = vmatpush.bf16.msrb.mxu2 %v6362_v3  ;;  %v12440_v36 = vmax.f32 %v9671_v32, %v9851_v4  ;;  %v2257_v37 = vadd.f32 %v10237_v28, %v2068_v9  ;;  %v12443_v9 = vld [vmem:[#allocation2_spill] sm:$0xff] }
 0x427   :  { %v2443_v25 = vadd.f32 %v2442_v46, %v2254_v42  ;;  %v2561_v43 = vmax.f32 %v2543_v14, 0.0  ;;  %v12441_v42 = vld [vmem:[#allocation32_spill] sm:$0xff] }
 0x428   :  { %2877 = vmatpush.bf16.msra.mxu1 %v6246_v29  ;;  %v1881_v29 = vadd.f32 %v10259_v40, %v12441_v42 }
 0x429   :  { %v2504_v45 = vmax.f32 %v10038_v10, %v2443_v25  ;;  %v1888_v13 = vpop.f32.mrf.mxu1  ;;  %v10423_v5 = vpop.f32.mrf.mxu2  ;;  %v2579_v26 = vpack.c.bf16 %v2561_v43, %v2561_v43 }
 0x42a   :  { %3071 = vmatpush.bf16.msrb.mxu3 %v6366_v33  ;;  %v2070_v46 = vadd.f32 %v10274_v54, %v1881_v29  ;;  %v10427_v4 = vpop.f32.mrf.mxu3  ;;  %v12445_v29 = vld [vmem:[#allocation4_spill] sm:$0xff] }
 0x42b   :  { %v2522_v8 = vmax.f32 %v12440_v36, %v2504_v45  ;;  %v2886_v33 = vunpack.c.l.b16 %v2579_v26  ;;  %v1884_v45 = vadd.f32 %v10320_v1, %v12443_v9  ;;  %v1886_v26 = vadd.f32 %v1885_v61, %v12445_v29  ;;  %v6483_v61 = vld [vmem:[%s12353_s3 + $0xf8] sm:$0xf0] }
 0x42c   :  { %v2259_v40 = vadd.f32 %v10296_v16, %v2070_v46  ;;  %v12444_v16 = vmax.f32 %v9703_v58, %v9868_v41  ;;  %v6481_v58 = vld [vmem:[%s12353_s3 + $0xe8] sm:$0xf]  ;;  %v7982_v41 = vld [vmem:[%s12353_s3 + $0xf4] sm:$0xf0] }
 0x42d   :  { %v2544_v18 = vadd.f32 %v10390_v57, %v2522_v8  ;;  %v2073_v36 = vadd.f32 %v10338_v17, %v1884_v45 }
 0x42e   :  { %v2445_v51 = vpop.f32.mrf.mxu0 }
 0x42f   :  { %v2562_v10 = vmax.f32 %v2544_v18, 0.0  ;;  %v2446_v62 = vadd.f32 %v2445_v51, %v2257_v37  ;;  %v2262_v18 = vadd.f32 %v10361_v7, %v2073_v36  ;;  %v7980_v7 = vld [vmem:[%s12353_s3 + $0xec] sm:$0xf]  ;;  %v6465_v36 = vld [vmem:[%s12353_s3 + $0xc8] sm:$0xf] }
 0x431   :  { %v2580_v3 = vpack.c.bf16 %v2562_v10, %v2562_v10  ;;  %v2505_v32 = vmax.f32 %v10047_v21, %v2446_v62  ;;  %v10437_v54 = vpop.f32.mrf.mxu1  ;;  %v10441_v8 = vpop.f32.mrf.mxu2 }
 0x432   :  { %v10448_v51 = vpop.f32.mrf.mxu3 }
 0x433   :  { %v2887_v28 = vunpack.c.l.b16 %v2580_v3  ;;  %v2523_v12 = vmax.f32 %v12442_v60, %v2505_v32 }
 0x435   :  { %v10433_v14 = vpack.c.b16 %v2887_v28, %v2886_v33  ;;  %v2545_v21 = vadd.f32 %v10390_v57, %v2523_v12  ;;  %v12446_v12 = vmax.f32 %v9718_v24, %v9879_v49  ;;  %v12447_v24 = vld [vmem:[#allocation6_spill] sm:$0xff] }
 0x436   :  { %v2447_v25 = vpop.f32.mrf.mxu0  ;;  %v1889_v49 = vadd.f32 %v1888_v13, %v12447_v24 }
 0x437   :  { %v2448_v43 = vadd.f32 %v2447_v25, %v2259_v40  ;;  %v2563_v31 = vmax.f32 %v2545_v21, 0.0  ;;  %v6482_v25 = vor.u32 %v7982_v41, %v6481_v58  ;;  %v6486_v21 = vor.u32 %v7980_v7, %v6483_v61  ;;  %v8037_v58 = vld [vmem:[%s12353_s3 + $0x2ac] sm:$0xf0] }
 0x438   :  { %v2078_v13 = vadd.f32 %v10423_v5, %v1889_v49  ;;  %v7972_v5 = vld [vmem:[%s12353_s3 + $0xac] sm:$0xf]  ;;  %v12448_v61 = vmax.f32 %v9722_v22, %v9885_v20  ;;  %v7970_v22 = vld [vmem:[%s12353_s3 + $0x94] sm:$0xf0] }
 0x439   :  { %v2506_v15 = vmax.f32 %v10051_v30, %v2448_v43  ;;  %v2581_v10 = vpack.c.bf16 %v2563_v31, %v2563_v31  ;;  %v10452_v46 = vpop.f32.mrf.mxu1  ;;  %v2075_v30 = vadd.f32 %v2074_v23, %v1886_v26  ;;  %v8045_v23 = vld [vmem:[%s12353_s3 + $0x2ec] sm:$0xf0]  ;;  %v10473_v33 = vpop.f32.mrf.mxu2  ;;  %v7976_v31 = vld [vmem:[%s12353_s3 + $0xcc] sm:$0xf] }
 0x43a   :  { %v7968_v20 = vld [vmem:[%s12353_s3 + $0x8c] sm:$0xf] }
 0x43b   :  { %v2524_v37 = vmax.f32 %v12444_v16, %v2506_v15  ;;  %v2664_v28 = vunpack.c.l.b16 %v2581_v10  ;;  %v2264_v9 = vadd.f32 %v2263_v2, %v2075_v30  ;;  %v7978_v15 = vld [vmem:[%s12353_s3 + $0xd4] sm:$0xf0]  ;;  %v6467_v2 = vld [vmem:[%s12353_s3 + $0xd8] sm:$0xf0]  ;;  %v6449_v30 = vld [vmem:[%s12353_s3 + $0xa8] sm:$0xf] }
 0x43c   :  { %v6466_v26 = vor.u32 %v7978_v15, %v6465_v36  ;;  %v6585_v15 = vld [vmem:[%s12353_s3 + $0x280] sm:$0xf] }
 0x43d   :  { %v2546_v1 = vadd.f32 %v10390_v57, %v2524_v37  ;;  %v6617_v37 = vld [vmem:[%s12353_s3 + $0x2c0] sm:$0xf] }
 0x43e   :  { %v2450_v42 = vpop.f32.mrf.mxu0 }
 0x43f   :  { %v2564_v17 = vmax.f32 %v2546_v1, 0.0  ;;  %v2451_v62 = vadd.f32 %v2450_v42, %v2262_v18  ;;  %v8041_v18 = vld [vmem:[%s12353_s3 + $0x2cc] sm:$0xf0]  ;;  %v10499_v1 = vpop.f32.mrf.mxu3 }
 0x441   :  { %v2582_v3 = vpack.c.bf16 %v2564_v17, %v2564_v17  ;;  %v2507_v32 = vmax.f32 %v10060_v47, %v2451_v62  ;;  %v6633_v47 = vld [vmem:[%s12353_s3 + $0x2e0] sm:$0xf]  ;;  %v6470_v17 = vor.u32 %v7976_v31, %v6467_v2  ;;  %v6618_v62 = vor.u32 %v8041_v18, %v6617_v37  ;;  %v10525_v41 = vpop.f32.mrf.mxu1  ;;  %v8033_v31 = vld [vmem:[%s12353_s3 + $0x28c] sm:$0xf0] }
 0x442   :  { %v6634_v43 = vor.u32 %v8045_v23, %v6633_v47  ;;  %v2267_v23 = vadd.f32 %v10427_v4, %v2078_v13  ;;  %v6435_v4 = vld [vmem:[%s12353_s3 + $0x98] sm:$0xf0]  ;;  %v6586_v13 = vor.u32 %v8033_v31, %v6585_v15 }
 0x443   :  { %v2665_v60 = vunpack.c.l.b16 %v2582_v3  ;;  %v2525_v40 = vmax.f32 %v12446_v12, %v2507_v32  ;;  %v7974_v3 = vld [vmem:[%s12353_s3 + $0xb4] sm:$0xf0]  ;;  %v6601_v32 = vld [vmem:[%s12353_s3 + $0x2a0] sm:$0xf]  ;;  %v10534_v12 = vpop.f32.mrf.mxu2  ;;  %v6438_v18 = vor.u32 %v7968_v20, %v6435_v4 }
 0x445   :  { %v10478_v45 = vpack.c.b16 %v2665_v60, %v2664_v28  ;;  %v2547_v42 = vadd.f32 %v10390_v57, %v2525_v40  ;;  %v6450_v28 = vor.u32 %v7974_v3, %v6449_v30  ;;  %v6433_v60 = vld [vmem:[%s12353_s3 + $0x88] sm:$0xf] }
 0x446   :  { %v2452_v16 = vpop.f32.mrf.mxu0  ;;  %v6434_v37 = vor.u32 %v7970_v22, %v6433_v60  ;;  %v8025_v22 = vld [vmem:[%s12353_s3 + $0x24c] sm:$0xf0] }
 0x447   :  { %v2453_v29 = vadd.f32 %v2452_v16, %v2264_v9  ;;  %2836 = vmatmul.bf16.vlgmr.msrb.gmra.mxu1 %v10478_v45  ;;  %2850 = vmatmul.bf16.vlgmr.msra.gmra.mxu2 %v10478_v45  ;;  %v2565_v7 = vmax.f32 %v2547_v42, 0.0  ;;  %v6602_v9 = vor.u32 %v8037_v58, %v6601_v32  ;;  %v10555_v42 = vpop.f32.mrf.mxu3 }
 0x448   :  { %2864 = vmatmul.bf16.vlgmr.msra.gmra.mxu3 %v10478_v45  ;;  %3078 = vmatpush.bf16.msrb.mxu1 %v6482_v25 }
 0x449   :  { %v2508_v10 = vmax.f32 %v10064_v63, %v2453_v29  ;;  %3092 = vmatpush.bf16.msra.mxu2 %v6486_v21  ;;  %3305 = vmatpush.bf16.msra.mxu3 %v6634_v43  ;;  %v6451_v63 = vld [vmem:[%s12353_s3 + $0xb8] sm:$0xf0]  ;;  %v12449_v21 = vld [vmem:[#allocation8_spill] sm:$0xff]  ;;  %v2583_v24 = vpack.c.bf16 %v2565_v7, %v2565_v7  ;;  %v10580_v7 = vpop.f32.mrf.mxu1 }
 0x44a   :  { %v6454_v25 = vor.u32 %v7972_v5, %v6451_v63  ;;  %v1891_v43 = vadd.f32 %v10437_v54, %v12449_v21  ;;  %v12450_v5 = vmax.f32 %v9731_v6, %v9896_v11  ;;  %v7962_v6 = vld [vmem:[%s12353_s3 + $0x54] sm:$0xf0]  ;;  %v7960_v11 = vld [vmem:[%s12353_s3 + $0x4c] sm:$0xf] }
 0x44b   :  { %v2526_v47 = vmax.f32 %v12448_v61, %v2508_v10  ;;  %v7966_v10 = vld [vmem:[%s12353_s3 + $0x74] sm:$0xf0]  ;;  %v3141_v30 = vunpack.c.l.b16 %v2583_v24  ;;  %v10604_v20 = vpop.f32.mrf.mxu2  ;;  %v6385_v24 = vld [vmem:[%s12353_s3 + $0x28] sm:$0xf] }
 0x44c   :  { %3079 = vmatpush.bf16.msrb.mxu1 %v6466_v26  ;;  %v2080_v2 = vadd.f32 %v10441_v8, %v1891_v43  ;;  %v6417_v26 = vld [vmem:[%s12353_s3 + $0x68] sm:$0xf]  ;;  %v7964_v8 = vld [vmem:[%s12353_s3 + $0x6c] sm:$0xf] }
 0x44d   :  { %v2548_v40 = vadd.f32 %v10390_v57, %v2526_v47  ;;  %3093 = vmatpush.bf16.msra.mxu2 %v6470_v17  ;;  %3306 = vmatpush.bf16.msra.mxu3 %v6618_v62  ;;  %v6419_v17 = vld [vmem:[%s12353_s3 + $0x78] sm:$0xf0]  ;;  %v8029_v62 = vld [vmem:[%s12353_s3 + $0x26c] sm:$0xf0]  ;;  %v6418_v58 = vor.u32 %v7966_v10, %v6417_v26  ;;  %v6369_v26 = vld [vmem:[%s12353_s3 + $0x8] sm:$0xf] }
 0x44e   :  { %v2455_v36 = vpop.f32.mrf.mxu0  ;;  %v2269_v32 = vadd.f32 %v10448_v51, %v2080_v2  ;;  %v6422_v47 = vor.u32 %v7964_v8, %v6419_v17  ;;  %v12451_v51 = vld [vmem:[#allocation10_spill] sm:$0xff]  ;;  %v7954_v10 = vld [vmem:[%s12353_s3 + $0x14] sm:$0xf0] }
 0x44f   :  { %v2566_v49 = vmax.f32 %v2548_v40, 0.0  ;;  %v2456_v16 = vadd.f32 %v2455_v36, %v2267_v23  ;;  %v1894_v60 = vadd.f32 %v10452_v46, %v12451_v51  ;;  %v10630_v2 = vpop.f32.mrf.mxu3  ;;  %v6370_v51 = vor.u32 %v7954_v10, %v6369_v26  ;;  %v8035_v10 = vld [vmem:[%s12353_s3 + $0x2a4] sm:$0xf] }
 0x450   :  { %3080 = vmatpush.bf16.msrb.mxu1 %v6450_v28  ;;  %v6401_v28 = vld [vmem:[%s12353_s3 + $0x48] sm:$0xf] }
 0x451   :  { %v2584_v54 = vpack.c.bf16 %v2566_v49, %v2566_v49  ;;  %v2509_v29 = vmax.f32 %v10073_v39, %v2456_v16  ;;  %3094 = vmatpush.bf16.msra.mxu2 %v6454_v25  ;;  %3307 = vmatpush.bf16.msra.mxu3 %v6602_v9  ;;  %v6569_v39 = vld [vmem:[%s12353_s3 + $0x260] sm:$0xf]  ;;  %v6403_v25 = vld [vmem:[%s12353_s3 + $0x58] sm:$0xf0]  ;;  %v2083_v46 = vadd.f32 %v10473_v33, %v1894_v60  ;;  %v7956_v33 = vld [vmem:[%s12353_s3 + $0x2c] sm:$0xf] }
 0x452   :  { %v6570_v23 = vor.u32 %v8029_v62, %v6569_v39  ;;  %v6553_v9 = vld [vmem:[%s12353_s3 + $0x240] sm:$0xf]  ;;  %v6402_v43 = vor.u32 %v7962_v6, %v6401_v28  ;;  %v6406_v15 = vor.u32 %v7960_v11, %v6403_v25  ;;  %v8021_v16 = vld [vmem:[%s12353_s3 + $0x22c] sm:$0xf0]  ;;  %v8046_v6 = vld [vmem:[%s12353_s3 + $0x2f4] sm:$0xf0] }
 0x453   :  { %v3142_v3 = vunpack.c.l.b16 %v2584_v54  ;;  %v2527_v63 = vmax.f32 %v12450_v5, %v2509_v29  ;;  %v6554_v31 = vor.u32 %v8025_v22, %v6553_v9  ;;  %v6537_v49 = vld [vmem:[%s12353_s3 + $0x220] sm:$0xf]  ;;  %v2272_v29 = vadd.f32 %v10499_v1, %v2083_v46  ;;  %v12453_v62 = vld [vmem:[#allocation12_spill] sm:$0xff]  ;;  %v6643_v25 = vld [vmem:[%s12353_s3 + $0x2f8] sm:$0xf0]  ;;  %v10678_v9 = vpop.f32.mrf.mxu2 }
 0x454   :  { %3081 = vmatpush.bf16.msrb.mxu1 %v6434_v37  ;;  %v6538_v39 = vor.u32 %v8021_v16, %v6537_v49  ;;  %v6521_v1 = vld [vmem:[%s12353_s3 + $0x200] sm:$0xf]  ;;  %v8017_v5 = vld [vmem:[%s12353_s3 + $0x20c] sm:$0xf0]  ;;  %v8040_v49 = vld [vmem:[%s12353_s3 + $0x2cc] sm:$0xf] }
 0x455   :  { %v10582_v61 = vpack.c.b16 %v3142_v3, %v3141_v30  ;;  %3095 = vmatpush.bf16.msra.mxu2 %v6438_v18  ;;  %3308 = vmatpush.bf16.msra.mxu3 %v6586_v13  ;;  %v2549_v4 = vadd.f32 %v10390_v57, %v2527_v63  ;;  %v12452_v18 = vmax.f32 %v9741_v59, %v9908_v56  ;;  %v7952_v59 = vld [vmem:[%s12353_s3 + $0xc] sm:$0xf]  ;;  %v6371_v56 = vld [vmem:[%s12353_s3 + $0x18] sm:$0xf0]  ;;  %v8043_v63 = vld [vmem:[%s12353_s3 + $0x2e4] sm:$0xf] }
 0x456   :  { %v2457_v40 = vpop.f32.mrf.mxu0  ;;  %v1896_v30 = vadd.f32 %v10525_v41, %v12453_v62  ;;  %v6641_v41 = vld [vmem:[%s12353_s3 + $0x2e8] sm:$0xf]  ;;  %v6374_v60 = vor.u32 %v7952_v59, %v6371_v56  ;;  %v8038_v59 = vld [vmem:[%s12353_s3 + $0x2b4] sm:$0xf0]  ;;  %v8036_v56 = vld [vmem:[%s12353_s3 + $0x2ac] sm:$0xf] }
 0x457   :  { %v2458_v21 = vadd.f32 %v2457_v40, %v2269_v32  ;;  %2878 = vmatmul.bf16.vlgmr.msra.gmra.mxu1 %v10478_v45  ;;  %3058 = vmatmul.bf16.vlgmr.msrb.gmra.mxu2 %v10433_v14  ;;  %v7958_v45 = vld [vmem:[%s12353_s3 + $0x34] sm:$0xf0]  ;;  %v2567_v37 = vmax.f32 %v2549_v4, 0.0  ;;  %v6635_v32 = vld [vmem:[%s12353_s3 + $0x2f0] sm:$0xf0]  ;;  %v6642_v46 = vor.u32 %v8046_v6, %v6641_v41  ;;  %v10703_v16 = vpop.f32.mrf.mxu3 }
 0x458   :  { %3072 = vmatmul.bf16.vlgmr.msrb.gmra.mxu3 %v10433_v14  ;;  %3082 = vmatpush.bf16.msrb.mxu1 %v6418_v58  ;;  %v6386_v13 = vor.u32 %v7958_v45, %v6385_v24  ;;  %v10663_v58 = vpop.f32.mrf.mxu1  ;;  %v2085_v11 = vadd.f32 %v10534_v12, %v1896_v30  ;;  %v8044_v40 = vld [vmem:[%s12353_s3 + $0x2ec] sm:$0xf]  ;;  %v6638_v12 = vor.u32 %v8043_v63, %v6635_v32  ;;  %v8031_v63 = vld [vmem:[%s12353_s3 + $0x284] sm:$0xf]  ;;  %v6587_v32 = vld [vmem:[%s12353_s3 + $0x290] sm:$0xf0] }
 0x459   :  { %v2510_v36 = vmax.f32 %v10083_v35, %v2458_v21  ;;  %3096 = vmatpush.bf16.msra.mxu2 %v6422_v47  ;;  %3309 = vmatpush.bf16.msra.mxu3 %v6570_v23  ;;  %v6387_v35 = vld [vmem:[%s12353_s3 + $0x38] sm:$0xf0]  ;;  %v2585_v47 = vpack.c.bf16 %v2567_v37, %v2567_v37  ;;  %v6522_v21 = vor.u32 %v8017_v5, %v6521_v1  ;;  %v6593_v41 = vld [vmem:[%s12353_s3 + $0x288] sm:$0xf]  ;;  %v8034_v6 = vld [vmem:[%s12353_s3 + $0x294] sm:$0xf0] }
 0x45a   :  { %v6390_v17 = vor.u32 %v7956_v33, %v6387_v35  ;;  %v6646_v45 = vor.u32 %v8044_v40, %v6643_v25  ;;  %v6625_v33 = vld [vmem:[%s12353_s3 + $0x2c8] sm:$0xf]  ;;  %v8042_v35 = vld [vmem:[%s12353_s3 + $0x2d4] sm:$0xf0]  ;;  %v6611_v1 = vld [vmem:[%s12353_s3 + $0x2b8] sm:$0xf0] }
 0x45b   :  { %v2528_v54 = vmax.f32 %v12452_v18, %v2510_v36  ;;  %v3404_v36 = vunpack.c.l.b16 %v2585_v47  ;;  %v12455_v18 = vld [vmem:[#allocation14_spill] sm:$0xff]  ;;  %v6626_v26 = vor.u32 %v8042_v35, %v6625_v33  ;;  %v10741_v47 = vpop.f32.mrf.mxu2 }
 0x45c   :  { %3083 = vmatpush.bf16.msrb.mxu1 %v6402_v43  ;;  %v8039_v43 = vld [vmem:[%s12353_s3 + $0x2c4] sm:$0xf] }
 0x45d   :  { %v2550_v8 = vadd.f32 %v10390_v57, %v2528_v54  ;;  %3097 = vmatpush.bf16.msra.mxu2 %v6406_v15  ;;  %3310 = vmatpush.bf16.msra.mxu3 %v6554_v31  ;;  %v12454_v31 = vmax.f32 %v9762_v34, %v9931_v19  ;;  %v6627_v34 = vld [vmem:[%s12353_s3 + $0x2d8] sm:$0xf0]  ;;  %v2274_v19 = vadd.f32 %v10555_v42, %v2085_v11  ;;  %v8032_v11 = vld [vmem:[%s12353_s3 + $0x28c] sm:$0xf] }
 0x45e   :  { %v2460_v3 = vpop.f32.mrf.mxu0  ;;  %v1899_v54 = vadd.f32 %v10580_v7, %v12455_v18  ;;  %v6603_v7 = vld [vmem:[%s12353_s3 + $0x2b0] sm:$0xf0] }
 0x45f   :  { %v2568_v23 = vmax.f32 %v2550_v8, 0.0  ;;  %v2461_v28 = vadd.f32 %v2460_v3, %v2272_v29  ;;  %v6606_v5 = vor.u32 %v8035_v10, %v6603_v7  ;;  %v6561_v10 = vld [vmem:[%s12353_s3 + $0x248] sm:$0xf] }
 0x460   :  { %3084 = vmatpush.bf16.msrb.mxu1 %v6386_v13  ;;  %v10731_v62 = vpop.f32.mrf.mxu1  ;;  %v2088_v30 = vadd.f32 %v10604_v20, %v1899_v54  ;;  %v12456_v20 = vmax.f32 %v9766_v27, %v9937_v55 }
 0x461   :  { %v2586_v22 = vpack.c.bf16 %v2568_v23, %v2568_v23  ;;  %v2511_v4 = vmax.f32 %v10104_v0, %v2461_v28  ;;  %3098 = vmatpush.bf16.msra.mxu2 %v6390_v17  ;;  %3311 = vmatpush.bf16.msra.mxu3 %v6538_v39  ;;  %v6619_v0 = vld [vmem:[%s12353_s3 + $0x2d0] sm:$0xf0]  ;;  %v6630_v17 = vor.u32 %v8040_v49, %v6627_v34  ;;  %v6609_v39 = vld [vmem:[%s12353_s3 + $0x2a8] sm:$0xf] }
 0x462   :  { %v6622_v13 = vor.u32 %v8039_v43, %v6619_v0  ;;  %v2277_v27 = vadd.f32 %v10630_v2, %v2088_v30  ;;  %v12459_v30 = vld [vmem:[#allocation3_spill] sm:$0xff] }
 0x463   :  { %v3405_v15 = vunpack.c.l.b16 %v2586_v22  ;;  %v2529_v24 = vmax.f32 %v12454_v31, %v2511_v4  ;;  %v6590_v22 = vor.u32 %v8031_v63, %v6587_v32  ;;  %v6594_v4 = vor.u32 %v8034_v6, %v6593_v41  ;;  %v8030_v31 = vld [vmem:[%s12353_s3 + $0x274] sm:$0xf0]  ;;  %v6539_v63 = vld [vmem:[%s12353_s3 + $0x230] sm:$0xf0]  ;;  %v6545_v32 = vld [vmem:[%s12353_s3 + $0x228] sm:$0xf] }
 0x464   :  { %3085 = vmatpush.bf16.msrb.mxu1 %v6370_v51  ;;  %v6595_v51 = vld [vmem:[%s12353_s3 + $0x298] sm:$0xf0]  ;;  %v8015_v6 = vld [vmem:[%s12353_s3 + $0x204] sm:$0xf] }
 0x465   :  { %v10705_v37 = vpack.c.b16 %v3405_v15, %v3404_v36  ;;  %3099 = vmatpush.bf16.msra.mxu2 %v6374_v60  ;;  %3312 = vmatpush.bf16.msra.mxu3 %v6522_v21  ;;  %v2551_v42 = vadd.f32 %v10390_v57, %v2529_v24  ;;  %v12457_v60 = vld [vmem:[#allocation15_spill] sm:$0xff]  ;;  %v8027_v21 = vld [vmem:[%s12353_s3 + $0x264] sm:$0xf] }
 0x466   :  { %v2462_v29 = vpop.f32.mrf.mxu0  ;;  %v1901_v40 = vadd.f32 %v10663_v58, %v12457_v60  ;;  %v6598_v58 = vor.u32 %v8032_v11, %v6595_v51  ;;  %v6577_v15 = vld [vmem:[%s12353_s3 + $0x268] sm:$0xf]  ;;  %v8028_v24 = vld [vmem:[%s12353_s3 + $0x26c] sm:$0xf]  ;;  %v12460_v60 = vld [vmem:[#allocation33_spill] sm:$0xff] }
 0x467   :  { %v2463_v8 = vadd.f32 %v2462_v29, %v2274_v19  ;;  %3086 = vmatmul.bf16.vlgmr.msrb.gmra.mxu1 %v10433_v14  ;;  %v2569_v23 = vmax.f32 %v2551_v42, 0.0  ;;  %v6578_v34 = vor.u32 %v8030_v31, %v6577_v15  ;;  %v8023_v19 = vld [vmem:[%s12353_s3 + $0x244] sm:$0xf]  ;;  %v8026_v42 = vld [vmem:[%s12353_s3 + $0x254] sm:$0xf0] }
 0x468   :  { %3319 = vmatpush.bf16.msra.mxu1 %v6638_v12  ;;  %3100 = vmatmul.bf16.vlgmr.msra.gmra.mxu2 %v10433_v14  ;;  %v6610_v14 = vor.u32 %v8038_v59, %v6609_v39  ;;  %v6571_v12 = vld [vmem:[%s12353_s3 + $0x270] sm:$0xf0]  ;;  %v2090_v0 = vadd.f32 %v10678_v9, %v1901_v40  ;;  %v1905_v18 = vpop.f32.mrf.mxu1 }
 0x469   :  { %3333 = vmatpush.bf16.msrb.mxu2 %v6642_v46  ;;  %3347 = vmatpush.bf16.msrb.mxu3 %v6646_v45  ;;  %v2512_v3 = vmax.f32 %v10108_v50, %v2463_v8  ;;  %v6614_v50 = vor.u32 %v8036_v56, %v6611_v1  ;;  %v10768_v46 = vpop.f32.mrf.mxu3  ;;  %v2587_v2 = vpack.c.bf16 %v2569_v23, %v2569_v23  ;;  %v6579_v45 = vld [vmem:[%s12353_s3 + $0x278] sm:$0xf0]  ;;  %v8024_v8 = vld [vmem:[%s12353_s3 + $0x24c] sm:$0xf]  ;;  %v8019_v1 = vld [vmem:[%s12353_s3 + $0x224] sm:$0xf] }
 0x46a   :  { %3313 = vmatmul.bf16.vlgmr.msra.gmra.mxu3 %v10582_v61  ;;  %v6574_v49 = vor.u32 %v8027_v21, %v6571_v12  ;;  %v6582_v9 = vor.u32 %v8028_v24, %v6579_v45  ;;  %v6562_v56 = vor.u32 %v8026_v42, %v6561_v10  ;;  %v8022_v23 = vld [vmem:[%s12353_s3 + $0x234] sm:$0xf0]  ;;  %v6542_v11 = vor.u32 %v8019_v1, %v6539_v63  ;;  %v12461_v40 = vld [vmem:[#allocation40_spill] sm:$0xff]  ;;  %v8016_v21 = vld [vmem:[%s12353_s3 + $0x20c] sm:$0xf] }
 0x46b   :  { %v2530_v28 = vmax.f32 %v12456_v20, %v2512_v3  ;;  %v3667_v54 = vunpack.c.l.b16 %v2587_v2  ;;  %v1904_v3 = vadd.f32 %v10731_v62, %v12459_v30  ;;  %v8020_v62 = vld [vmem:[%s12353_s3 + $0x22c] sm:$0xf]  ;;  %v6547_v20 = vld [vmem:[%s12353_s3 + $0x238] sm:$0xf0]  ;;  %v6546_v51 = vor.u32 %v8022_v23, %v6545_v32  ;;  %v6793_v2 = vld [vmem:[%s12353_s3 + $0x3e0] sm:$0xf] }
 0x46c   :  { %3320 = vmatpush.bf16.msra.mxu1 %v6622_v13  ;;  %v12458_v13 = vmax.f32 %v9775_v48, %v9948_v38  ;;  %v6563_v48 = vld [vmem:[%s12353_s3 + $0x258] sm:$0xf0]  ;;  %v2279_v38 = vadd.f32 %v10703_v16, %v2090_v0  ;;  %v6795_v0 = vld [vmem:[%s12353_s3 + $0x3f0] sm:$0xf0]  ;;  %v6777_v10 = vld [vmem:[%s12353_s3 + $0x3c0] sm:$0xf] }
 0x46d   :  { %3334 = vmatpush.bf16.msrb.mxu2 %v6626_v26  ;;  %3348 = vmatpush.bf16.msrb.mxu3 %v6630_v17  ;;  %v2552_v55 = vadd.f32 %v10390_v57, %v2530_v28  ;;  %v2094_v17 = vpop.f32.mrf.mxu2  ;;  %v6566_v16 = vor.u32 %v8024_v8, %v6563_v48  ;;  %v2093_v28 = vadd.f32 %v10741_v47, %v1904_v3  ;;  %v6529_v47 = vld [vmem:[%s12353_s3 + $0x208] sm:$0xf]  ;;  %v6531_v12 = vld [vmem:[%s12353_s3 + $0x218] sm:$0xf0]  ;;  %v8073_v42 = vld [vmem:[%s12353_s3 + $0x3cc] sm:$0xf0] }
 0x46e   :  { %v2465_v25 = vpop.f32.mrf.mxu0  ;;  %v8071_v8 = vld [vmem:[%s12353_s3 + $0x3c4] sm:$0xf]  ;;  %v6785_v1 = vld [vmem:[%s12353_s3 + $0x3c8] sm:$0xf]  ;;  %v8074_v30 = vld [vmem:[%s12353_s3 + $0x3d4] sm:$0xf0]  ;;  %v6778_v23 = vor.u32 %v8073_v42, %v6777_v10 }
 0x46f   :  { %v2570_v43 = vmax.f32 %v2552_v55, 0.0  ;;  %v2466_v36 = vadd.f32 %v2465_v25, %v2277_v27  ;;  %v6523_v27 = vld [vmem:[%s12353_s3 + $0x210] sm:$0xf0]  ;;  %v12462_v25 = vmax.f32 %v12460_v60, %v12461_v40  ;;  %v2282_v24 = vadd.f32 %v10768_v46, %v2093_v28  ;;  %v6761_v28 = vld [vmem:[%s12353_s3 + $0x3a0] sm:$0xf] }
 0x470   :  { %3321 = vmatpush.bf16.msra.mxu1 %v6606_v5  ;;  %v1908_v31 = vpop.f32.mrf.mxu1  ;;  %v6534_v46 = vor.u32 %v8016_v21, %v6531_v12  ;;  %v6731_v42 = vld [vmem:[%s12353_s3 + $0x370] sm:$0xf0] }
 0x471   :  { %3335 = vmatpush.bf16.msrb.mxu2 %v6610_v14  ;;  %3349 = vmatpush.bf16.msrb.mxu3 %v6614_v50  ;;  %v2588_v33 = vpack.c.bf16 %v2570_v43, %v2570_v43  ;;  %v2513_v35 = vmax.f32 %v10117_v44, %v2466_v36  ;;  %v6555_v44 = vld [vmem:[%s12353_s3 + $0x250] sm:$0xf0]  ;;  %v10830_v50 = vpop.f32.mrf.mxu3  ;;  %v8077_v43 = vld [vmem:[%s12353_s3 + $0x3ec] sm:$0xf0]  ;;  %v8075_v36 = vld [vmem:[%s12353_s3 + $0x3e4] sm:$0xf] }
 0x472   :  { %v6558_v59 = vor.u32 %v8023_v19, %v6555_v44 }
 0x473   :  { %v3668_v29 = vunpack.c.l.b16 %v2588_v33  ;;  %v2531_v26 = vmax.f32 %v12458_v13, %v2513_v35  ;;  %v6801_v33 = vld [vmem:[%s12353_s3 + $0x3e8] sm:$0xf]  ;;  %v8078_v35 = vld [vmem:[%s12353_s3 + $0x3f4] sm:$0xf0] }
 0x474   :  { %3322 = vmatpush.bf16.msra.mxu1 %v6590_v22  ;;  %v6802_v44 = vor.u32 %v8078_v35, %v6801_v33  ;;  %v12470_v35 = vld [vmem:[#allocation35_spill] sm:$0xff] }
 0x475   :  { %3336 = vmatpush.bf16.msrb.mxu2 %v6594_v4  ;;  %3350 = vmatpush.bf16.msrb.mxu3 %v6598_v58  ;;  %v10806_v7 = vpack.c.b16 %v3668_v29, %v3667_v54  ;;  %v2553_v5 = vadd.f32 %v10390_v57, %v2531_v26  ;;  %v6550_v4 = vor.u32 %v8020_v62, %v6547_v20  ;;  %v12463_v58 = vld [vmem:[#allocation5_spill] sm:$0xff] }
 0x476   :  { %v2467_v39 = vpop.f32.mrf.mxu0  ;;  %v1906_v15 = vadd.f32 %v1905_v18, %v12463_v58  ;;  %v2097_v18 = vpop.f32.mrf.mxu2  ;;  %v6794_v26 = vor.u32 %v8077_v43, %v6793_v2  ;;  %v6786_v20 = vor.u32 %v8074_v30, %v6785_v1  ;;  %v6745_v2 = vld [vmem:[%s12353_s3 + $0x380] sm:$0xf]  ;;  %v8063_v43 = vld [vmem:[%s12353_s3 + $0x384] sm:$0xf] }
 0x477   :  { %v2468_v14 = vadd.f32 %v2467_v39, %v2279_v38  ;;  %v2571_v55 = vmax.f32 %v2553_v5, 0.0  ;;  %v12464_v39 = vld [vmem:[#allocation20_spill] sm:$0xff] }
 0x478   :  { %3323 = vmatpush.bf16.msra.mxu1 %v6574_v49  ;;  %v2095_v48 = vadd.f32 %v2094_v17, %v1906_v15  ;;  %v1910_v40 = vpop.f32.mrf.mxu1  ;;  %v12469_v15 = vld [vmem:[#allocation21_spill] sm:$0xff] }
 0x479   :  { %3337 = vmatpush.bf16.msrb.mxu2 %v6578_v34  ;;  %3351 = vmatpush.bf16.msrb.mxu3 %v6582_v9  ;;  %v2514_v41 = vmax.f32 %v10123_v53, %v2468_v14  ;;  %v8018_v53 = vld [vmem:[%s12353_s3 + $0x214] sm:$0xf0]  ;;  %v6526_v34 = vor.u32 %v8015_v6, %v6523_v27  ;;  %v2589_v54 = vpack.c.bf16 %v2571_v55, %v2571_v55  ;;  %v2286_v3 = vpop.f32.mrf.mxu3  ;;  %v12465_v14 = vld [vmem:[#allocation34_spill] sm:$0xff]  ;;  %v6763_v27 = vld [vmem:[%s12353_s3 + $0x3b0] sm:$0xf0] }
 0x47a   :  { %v6530_v19 = vor.u32 %v8018_v53, %v6529_v47  ;;  %v6798_v9 = vor.u32 %v8075_v36, %v6795_v0  ;;  %v8067_v6 = vld [vmem:[%s12353_s3 + $0x3a4] sm:$0xf]  ;;  %v6769_v47 = vld [vmem:[%s12353_s3 + $0x3a8] sm:$0xf]  ;;  %v8070_v53 = vld [vmem:[%s12353_s3 + $0x3b4] sm:$0xf0] }
 0x47b   :  { %v2532_v22 = vmax.f32 %v12462_v25, %v2514_v41  ;;  %v3930_v5 = vunpack.c.l.b16 %v2589_v54  ;;  %v8069_v41 = vld [vmem:[%s12353_s3 + $0x3ac] sm:$0xf0]  ;;  %v12468_v55 = vld [vmem:[#allocation7_spill] sm:$0xff]  ;;  %v6766_v21 = vor.u32 %v8067_v6, %v6763_v27  ;;  %v6770_v12 = vor.u32 %v8070_v53, %v6769_v47  ;;  %v8066_v0 = vld [vmem:[%s12353_s3 + $0x394] sm:$0xf0] }
 0x47c   :  { %3324 = vmatpush.bf16.msra.mxu1 %v6558_v59  ;;  %v1909_v60 = vadd.f32 %v1908_v31, %v12468_v55  ;;  %v6721_v6 = vld [vmem:[%s12353_s3 + $0x348] sm:$0xf]  ;;  %v12476_v55 = vld [vmem:[#allocation16_spill] sm:$0xff] }
 0x47d   :  { %3338 = vmatpush.bf16.msrb.mxu2 %v6562_v56  ;;  %3352 = vmatpush.bf16.msrb.mxu3 %v6566_v16  ;;  %v2554_v45 = vadd.f32 %v10390_v57, %v2532_v22  ;;  %v6779_v56 = vld [vmem:[%s12353_s3 + $0x3d0] sm:$0xf0]  ;;  %v12466_v16 = vld [vmem:[#allocation41_spill] sm:$0xff] }
 0x47e   :  { %v2470_v49 = vpop.f32.mrf.mxu0  ;;  %v12467_v63 = vmax.f32 %v12465_v14, %v12466_v16  ;;  %v6782_v62 = vor.u32 %v8071_v8, %v6779_v56  ;;  %v2098_v36 = vadd.f32 %v2097_v18, %v1909_v60  ;;  %v2099_v58 = vpop.f32.mrf.mxu2  ;;  %v6737_v8 = vld [vmem:[%s12353_s3 + $0x368] sm:$0xf]  ;;  %v6713_v14 = vld [vmem:[%s12353_s3 + $0x340] sm:$0xf]  ;;  %v8057_v16 = vld [vmem:[%s12353_s3 + $0x34c] sm:$0xf0] }
 0x47f   :  { %v2572_v29 = vmax.f32 %v2554_v45, 0.0  ;;  %v2471_v13 = vadd.f32 %v2470_v49, %v2282_v24  ;;  %v6747_v24 = vld [vmem:[%s12353_s3 + $0x390] sm:$0xf0]  ;;  %v6753_v45 = vld [vmem:[%s12353_s3 + $0x388] sm:$0xf]  ;;  %v12471_v49 = vld [vmem:[#allocation42_spill] sm:$0xff] }
 0x480   :  { %3325 = vmatpush.bf16.msra.mxu1 %v6542_v11  ;;  %v2284_v11 = vadd.f32 %v10830_v50, %v2095_v48  ;;  %v6750_v18 = vor.u32 %v8063_v43, %v6747_v24  ;;  %v6754_v54 = vor.u32 %v8066_v0, %v6753_v45  ;;  %v8062_v48 = vld [vmem:[%s12353_s3 + $0x374] sm:$0xf0]  ;;  %v12478_v24 = vld [vmem:[#allocation11_spill] sm:$0xff] }
 0x481   :  { %3339 = vmatpush.bf16.msrb.mxu2 %v6546_v51  ;;  %3353 = vmatpush.bf16.msrb.mxu3 %v6550_v4  ;;  %v2590_v38 = vpack.c.bf16 %v2572_v29, %v2572_v29  ;;  %v2515_v59 = vmax.f32 %v12464_v39, %v2471_v13  ;;  %v6762_v4 = vor.u32 %v8069_v41, %v6761_v28  ;;  %v6729_v29 = vld [vmem:[%s12353_s3 + $0x360] sm:$0xf]  ;;  %v8061_v13 = vld [vmem:[%s12353_s3 + $0x36c] sm:$0xf0]  ;;  %v6715_v41 = vld [vmem:[%s12353_s3 + $0x350] sm:$0xf0] }
 0x483   :  { %v3931_v17 = vunpack.c.l.b16 %v2590_v38  ;;  %v2533_v32 = vmax.f32 %v12467_v63, %v2515_v59  ;;  %v12473_v38 = vld [vmem:[#allocation9_spill] sm:$0xff]  ;;  %v8055_v63 = vld [vmem:[%s12353_s3 + $0x344] sm:$0xf] }
 0x484   :  { %3326 = vmatpush.bf16.msra.mxu1 %v6526_v34  ;;  %v12472_v34 = vmax.f32 %v12470_v35, %v12471_v49  ;;  %v1911_v39 = vadd.f32 %v1910_v40, %v12473_v38 }
 0x485   :  { %3340 = vmatpush.bf16.msrb.mxu2 %v6530_v19  ;;  %3354 = vmatpush.bf16.msrb.mxu3 %v6534_v46  ;;  %v10907_v51 = vpack.c.b16 %v3931_v17, %v3930_v5  ;;  %v2555_v25 = vadd.f32 %v10390_v57, %v2533_v32  ;;  %v6738_v17 = vor.u32 %v8062_v48, %v6737_v8  ;;  %v1913_v32 = vpop.f32.mrf.mxu1  ;;  %v6953_v8 = vld [vmem:[%s12353_s3 + $0x4e0] sm:$0xf]  ;;  %v8109_v48 = vld [vmem:[%s12353_s3 + $0x4ec] sm:$0xf0] }
 0x486   :  { %v2472_v50 = vpop.f32.mrf.mxu0  ;;  %v2102_v27 = vpop.f32.mrf.mxu2  ;;  %v1914_v45 = vadd.f32 %v1913_v32, %v12478_v24  ;;  %v6771_v24 = vld [vmem:[%s12353_s3 + $0x3b8] sm:$0xf0] }
 0x487   :  { %3327 = vmatmul.bf16.vlgmr.msra.gmra.mxu1 %v10582_v61  ;;  %v2473_v22 = vadd.f32 %v2472_v50, %v2284_v11  ;;  %v2573_v33 = vmax.f32 %v2555_v25, 0.0  ;;  %v8058_v11 = vld [vmem:[%s12353_s3 + $0x354] sm:$0xf0]  ;;  %v12475_v50 = vld [vmem:[#allocation36_spill] sm:$0xff]  ;;  %v6714_v25 = vor.u32 %v8057_v16, %v6713_v14 }
 0x488   :  { %3568 = vmatpush.bf16.msrb.mxu1 %v6794_v26  ;;  %3341 = vmatmul.bf16.vlgmr.msrb.gmra.mxu2 %v10582_v61  ;;  %v8059_v26 = vld [vmem:[%s12353_s3 + $0x364] sm:$0xf]  ;;  %v12477_v60 = vmax.f32 %v12475_v50, %v12476_v55  ;;  %v6937_v50 = vld [vmem:[%s12353_s3 + $0x4c0] sm:$0xf]  ;;  %v8105_v55 = vld [vmem:[%s12353_s3 + $0x4cc] sm:$0xf0] }
 0x489   :  { %3582 = vmatpush.bf16.msra.mxu2 %v6798_v9  ;;  %3596 = vmatpush.bf16.msra.mxu3 %v6802_v44  ;;  %v2516_v31 = vmax.f32 %v12469_v15, %v2473_v22  ;;  %v2287_v9 = vadd.f32 %v2286_v3, %v2098_v36  ;;  %v2288_v44 = vpop.f32.mrf.mxu3  ;;  %v2591_v56 = vpack.c.bf16 %v2573_v33, %v2573_v33  ;;  %v6699_v36 = vld [vmem:[%s12353_s3 + $0x330] sm:$0xf0]  ;;  %v8054_v15 = vld [vmem:[%s12353_s3 + $0x334] sm:$0xf0] }
 0x48a   :  { %3355 = vmatmul.bf16.vlgmr.msrb.gmra.mxu3 %v10582_v61  ;;  %v8065_v61 = vld [vmem:[%s12353_s3 + $0x38c] sm:$0xf0]  ;;  %v6730_v3 = vor.u32 %v8061_v13, %v6729_v29  ;;  %v6734_v5 = vor.u32 %v8059_v26, %v6731_v42  ;;  %v6718_v22 = vor.u32 %v8055_v63, %v6715_v41  ;;  %v2103_v29 = vadd.f32 %v2102_v27, %v1914_v45  ;;  %v12479_v13 = vld [vmem:[#allocation25_spill] sm:$0xff]  ;;  %v8072_v41 = vld [vmem:[%s12353_s3 + $0x3cc] sm:$0xf] }
 0x48b   :  { %v2534_v19 = vmax.f32 %v12472_v34, %v2516_v31  ;;  %v6746_v46 = vor.u32 %v8065_v61, %v6745_v2  ;;  %v4193_v47 = vunpack.c.l.b16 %v2591_v56  ;;  %v8051_v2 = vld [vmem:[%s12353_s3 + $0x324] sm:$0xf]  ;;  %v6681_v34 = vld [vmem:[%s12353_s3 + $0x300] sm:$0xf]  ;;  %v6803_v42 = vld [vmem:[%s12353_s3 + $0x3f8] sm:$0xf0] }
 0x48c   :  { %3569 = vmatpush.bf16.msrb.mxu1 %v6778_v23  ;;  %v2100_v23 = vadd.f32 %v2099_v58, %v1911_v39  ;;  %v6705_v58 = vld [vmem:[%s12353_s3 + $0x328] sm:$0xf]  ;;  %v12481_v56 = vld [vmem:[#allocation17_spill] sm:$0xff]  ;;  %v6921_v45 = vld [vmem:[%s12353_s3 + $0x4a0] sm:$0xf] }
 0x48d   :  { %3583 = vmatpush.bf16.msra.mxu2 %v6782_v62  ;;  %3597 = vmatpush.bf16.msra.mxu3 %v6786_v20  ;;  %v2556_v10 = vadd.f32 %v10390_v57, %v2534_v19  ;;  %v12474_v20 = vld [vmem:[#allocation22_spill] sm:$0xff]  ;;  %v6702_v19 = vor.u32 %v8051_v2, %v6699_v36  ;;  %v1915_v38 = vpop.f32.mrf.mxu1 }
 0x48e   :  { %v2475_v59 = vpop.f32.mrf.mxu0  ;;  %v2289_v61 = vadd.f32 %v2288_v44, %v2100_v23  ;;  %v8050_v44 = vld [vmem:[%s12353_s3 + $0x314] sm:$0xf0]  ;;  %v2104_v32 = vpop.f32.mrf.mxu2  ;;  %v11052_v23 = vld [vmem:[%s12354_s2] ss:$0 sm:$0xff] }
 0x48f   :  { %v2574_v1 = vmax.f32 %v2556_v10, 0.0  ;;  %v2476_v30 = vadd.f32 %v2475_v59, %v2287_v9  ;;  %v6689_v9 = vld [vmem:[%s12353_s3 + $0x308] sm:$0xf]  ;;  %v8076_v10 = vld [vmem:[%s12353_s3 + $0x3ec] sm:$0xf]  ;;  %v12480_v59 = vld [vmem:[#allocation37_spill] sm:$0xff] }
 0x490   :  { %3570 = vmatpush.bf16.msrb.mxu1 %v6762_v4  ;;  %v6722_v4 = vor.u32 %v8058_v11, %v6721_v6  ;;  %v6690_v16 = vor.u32 %v8050_v44, %v6689_v9  ;;  %v6787_v6 = vld [vmem:[%s12353_s3 + $0x3d8] sm:$0xf0] }
 0x491   :  { %3584 = vmatpush.bf16.msra.mxu2 %v6766_v21  ;;  %3598 = vmatpush.bf16.msra.mxu3 %v6770_v12  ;;  %v2592_v62 = vpack.c.bf16 %v2574_v1, %v2574_v1  ;;  %v2517_v28 = vmax.f32 %v12474_v20, %v2476_v30  ;;  %v6697_v21 = vld [vmem:[%s12353_s3 + $0x320] sm:$0xf]  ;;  %v8053_v12 = vld [vmem:[%s12353_s3 + $0x32c] sm:$0xf0]  ;;  %v2291_v0 = vpop.f32.mrf.mxu3  ;;  %v12482_v1 = vmax.f32 %v12480_v59, %v12481_v56  ;;  %v12483_v11 = vld [vmem:[#allocation13_spill] sm:$0xff] }
 0x492   :  { %v6698_v49 = vor.u32 %v8053_v12, %v6697_v21  ;;  %v2292_v63 = vadd.f32 %v2291_v0, %v2103_v29  ;;  %v6806_v20 = vor.u32 %v8076_v10, %v6803_v42  ;;  %v1916_v27 = vadd.f32 %v1915_v38, %v12483_v11  ;;  %v6755_v10 = vld [vmem:[%s12353_s3 + $0x398] sm:$0xf0]  ;;  %v6905_v42 = vld [vmem:[%s12353_s3 + $0x480] sm:$0xf]  ;;  %v6907_v59 = vld [vmem:[%s12353_s3 + $0x490] sm:$0xf0] }
 0x493   :  { %v4194_v53 = vunpack.c.l.b16 %v2592_v62  ;;  %v2535_v40 = vmax.f32 %v12477_v60, %v2517_v28  ;;  %v6954_v28 = vor.u32 %v8109_v48, %v6953_v8  ;;  %v6790_v12 = vor.u32 %v8072_v41, %v6787_v6  ;;  %v8097_v8 = vld [vmem:[%s12353_s3 + $0x48c] sm:$0xf0]  ;;  %v8091_v6 = vld [vmem:[%s12353_s3 + $0x464] sm:$0xf]  ;;  %v6891_v11 = vld [vmem:[%s12353_s3 + $0x470] sm:$0xf0] }
 0x494   :  { %3571 = vmatpush.bf16.msrb.mxu1 %v6746_v46  ;;  %v6706_v46 = vor.u32 %v8054_v15, %v6705_v58  ;;  %v2105_v21 = vadd.f32 %v2104_v32, %v1916_v27  ;;  %v6938_v58 = vor.u32 %v8105_v55, %v6937_v50  ;;  %v8068_v15 = vld [vmem:[%s12353_s3 + $0x3ac] sm:$0xf]  ;;  %v12487_v56 = vld [vmem:[#allocation28_spill] sm:$0xff]  ;;  %v6894_v55 = vor.u32 %v8091_v6, %v6891_v11  ;;  %v6931_v11 = vld [vmem:[%s12353_s3 + $0x4b8] sm:$0xf0] }
 0x495   :  { %3585 = vmatpush.bf16.msra.mxu2 %v6750_v18  ;;  %3599 = vmatpush.bf16.msra.mxu3 %v6754_v54  ;;  %v10996_v43 = vpack.c.b16 %v4194_v53, %v4193_v47  ;;  %v2557_v33 = vadd.f32 %v10390_v57, %v2535_v40  ;;  %v8049_v18 = vld [vmem:[%s12353_s3 + $0x30c] sm:$0xf0]  ;;  %v8047_v54 = vld [vmem:[%s12353_s3 + $0x304] sm:$0xf]  ;;  %v6683_v57 = vld [vmem:[%s12353_s3 + $0x310] sm:$0xf0]  ;;  %v6774_v29 = vor.u32 %v8068_v15, %v6771_v24 }
 0x496   :  { %v2477_v31 = vpop.f32.mrf.mxu0  ;;  %v6686_v14 = vor.u32 %v8047_v54, %v6683_v57  ;;  %v8056_v50 = vld [vmem:[%s12353_s3 + $0x34c] sm:$0xf]  ;;  %v6707_v15 = vld [vmem:[%s12353_s3 + $0x338] sm:$0xf0]  ;;  %v8085_v24 = vld [vmem:[%s12353_s3 + $0x42c] sm:$0xf0] }
 0x497   :  { %v2478_v35 = vadd.f32 %v2477_v31, %v2289_v61  ;;  %v2575_v39 = vmax.f32 %v2557_v33, 0.0  ;;  %v8100_v6 = vld [vmem:[%s12353_s3 + $0x4ac] sm:$0xf] }
 0x498   :  { %3572 = vmatpush.bf16.msrb.mxu1 %v6730_v3  ;;  %v6682_v3 = vor.u32 %v8049_v18, %v6681_v34  ;;  %v6923_v18 = vld [vmem:[%s12353_s3 + $0x4b0] sm:$0xf0] }
 0x499   :  { %3586 = vmatpush.bf16.msra.mxu2 %v6734_v5  ;;  %3600 = vmatpush.bf16.msra.mxu3 %v6738_v17  ;;  %v2518_v26 = vmax.f32 %v12479_v13, %v2478_v35  ;;  %v8107_v5 = vld [vmem:[%s12353_s3 + $0x4e4] sm:$0xf]  ;;  %v6955_v17 = vld [vmem:[%s12353_s3 + $0x4f0] sm:$0xf0]  ;;  %v2593_v60 = vpack.c.bf16 %v2575_v39, %v2575_v39  ;;  %v2293_v2 = vpop.f32.mrf.mxu3 }
 0x49a   :  { %v6958_v53 = vor.u32 %v8107_v5, %v6955_v17  ;;  %v12484_v35 = vld [vmem:[#allocation38_spill] sm:$0xff]  ;;  %v2294_v54 = vadd.f32 %v2293_v2, %v2105_v21  ;;  %v8060_v5 = vld [vmem:[%s12353_s3 + $0x36c] sm:$0xf]  ;;  %v6875_v21 = vld [vmem:[%s12353_s3 + $0x450] sm:$0xf0] }
 0x49b   :  { %v2536_v30 = vmax.f32 %v12482_v1, %v2518_v26  ;;  %v4456_v0 = vunpack.c.l.b16 %v2593_v60  ;;  %v8064_v26 = vld [vmem:[%s12353_s3 + $0x38c] sm:$0xf]  ;;  %v8095_v39 = vld [vmem:[%s12353_s3 + $0x484] sm:$0xf]  ;;  %v6723_v60 = vld [vmem:[%s12353_s3 + $0x358] sm:$0xf0] }
 0x49c   :  { %3573 = vmatpush.bf16.msrb.mxu1 %v6714_v25  ;;  %v6910_v17 = vor.u32 %v8095_v39, %v6907_v59  ;;  %v6726_v2 = vor.u32 %v8056_v50, %v6723_v60  ;;  %v8098_v60 = vld [vmem:[%s12353_s3 + $0x494] sm:$0xf0] }
 0x49d   :  { %3587 = vmatpush.bf16.msra.mxu2 %v6718_v22  ;;  %3601 = vmatpush.bf16.msra.mxu3 %v6722_v4  ;;  %v2558_v62 = vadd.f32 %v11052_v23, %v2536_v30  ;;  %v8103_v22 = vld [vmem:[%s12353_s3 + $0x4c4] sm:$0xf]  ;;  %v6939_v4 = vld [vmem:[%s12353_s3 + $0x4d0] sm:$0xf0]  ;;  %v6758_v30 = vor.u32 %v8064_v26, %v6755_v10  ;;  %v8108_v10 = vld [vmem:[%s12353_s3 + $0x4ec] sm:$0xf] }
 0x49e   :  { %v2480_v47 = vpop.f32.mrf.mxu0  ;;  %v6942_v31 = vor.u32 %v8103_v22, %v6939_v4  ;;  %v8087_v4 = vld [vmem:[%s12353_s3 + $0x444] sm:$0xf]  ;;  %v6843_v26 = vld [vmem:[%s12353_s3 + $0x410] sm:$0xf0] }
 0x49f   :  { %v2576_v40 = vmax.f32 %v2558_v62, 0.0  ;;  %v2481_v25 = vadd.f32 %v2480_v47, %v2292_v63  ;;  %v8093_v63 = vld [vmem:[%s12353_s3 + $0x46c] sm:$0xf0]  ;;  %v12488_v62 = vld [vmem:[#allocation39_spill] sm:$0xff] }
 0x4a0   :  { %3574 = vmatpush.bf16.msrb.mxu1 %v6698_v49  ;;  %v12485_v49 = vld [vmem:[#allocation18_spill] sm:$0xff] }
 0x4a1   :  { %3588 = vmatpush.bf16.msra.mxu2 %v6702_v19  ;;  %3602 = vmatpush.bf16.msra.mxu3 %v6706_v46  ;;  %v2594_v61 = vpack.c.bf16 %v2576_v40, %v2576_v40  ;;  %v2519_v36 = vmax.f32 %v10262_v52, %v2481_v25  ;;  %v8101_v52 = vld [vmem:[%s12353_s3 + $0x4ac] sm:$0xf0]  ;;  %v12486_v34 = vmax.f32 %v12484_v35, %v12485_v49  ;;  %v8099_v46 = vld [vmem:[%s12353_s3 + $0x4a4] sm:$0xf]  ;;  %v6873_v40 = vld [vmem:[%s12353_s3 + $0x440] sm:$0xf] }
 0x4a2   :  { %v6922_v13 = vor.u32 %v8101_v52, %v6921_v45  ;;  %v6926_v44 = vor.u32 %v8099_v46, %v6923_v18  ;;  %v6691_v46 = vld [vmem:[%s12353_s3 + $0x318] sm:$0xf0]  ;;  %v6841_v18 = vld [vmem:[%s12353_s3 + $0x400] sm:$0xf] }
 0x4a3   :  { %v4457_v33 = vunpack.c.l.b16 %v2594_v61  ;;  %v2537_v19 = vmax.f32 %v12486_v34, %v2519_v36  ;;  %v8052_v36 = vld [vmem:[%s12353_s3 + $0x32c] sm:$0xf] }
 0x4a4   :  { %3575 = vmatpush.bf16.msrb.mxu1 %v6682_v3  ;;  %v6906_v3 = vor.u32 %v8097_v8, %v6905_v42  ;;  %v6710_v49 = vor.u32 %v8052_v36, %v6707_v15  ;;  %v6963_v42 = vld [vmem:[%s12353_s3 + $0x4f8] sm:$0xf0]  ;;  %v7113_v8 = vld [vmem:[%s12353_s3 + $0x5e0] sm:$0xf]  ;;  %v8094_v36 = vld [vmem:[%s12353_s3 + $0x474] sm:$0xf0] }
 0x4a5   :  { %3589 = vmatpush.bf16.msra.mxu2 %v6686_v14  ;;  %3603 = vmatpush.bf16.msra.mxu3 %v6690_v16  ;;  %v11099_v57 = vpack.c.b16 %v4457_v33, %v4456_v0  ;;  %v2559_v48 = vadd.f32 %v11052_v23, %v2537_v19  ;;  %v6739_v14 = vld [vmem:[%s12353_s3 + $0x378] sm:$0xf0]  ;;  %v6889_v16 = vld [vmem:[%s12353_s3 + $0x460] sm:$0xf]  ;;  %v8083_v0 = vld [vmem:[%s12353_s3 + $0x424] sm:$0xf] }
 0x4a6   :  { %v2482_v9 = vpop.f32.mrf.mxu0  ;;  %v6742_v47 = vor.u32 %v8060_v5, %v6739_v14  ;;  %v6859_v33 = vld [vmem:[%s12353_s3 + $0x430] sm:$0xf0]  ;;  %v8048_v19 = vld [vmem:[%s12353_s3 + $0x30c] sm:$0xf]  ;;  %v8106_v5 = vld [vmem:[%s12353_s3 + $0x4d4] sm:$0xf0] }
 0x4a7   :  { %3576 = vmatmul.bf16.vlgmr.msrb.gmra.mxu1 %v10705_v37  ;;  %v2483_v38 = vadd.f32 %v2482_v9, %v2294_v54  ;;  %v2577_v32 = vmax.f32 %v2559_v48, 0.0  ;;  %v6862_v54 = vor.u32 %v8083_v0, %v6859_v33  ;;  %v6961_v9 = vld [vmem:[%s12353_s3 + $0x4e8] sm:$0xf]  ;;  %v8141_v48 = vld [vmem:[%s12353_s3 + $0x5ec] sm:$0xf0] }
 0x4a8   :  { %3610 = vmatpush.bf16.msra.mxu1 %v6806_v20  ;;  %3590 = vmatmul.bf16.vlgmr.msra.gmra.mxu2 %v10705_v37  ;;  %v12489_v20 = vld [vmem:[#allocation19_spill] sm:$0xff]  ;;  %v6947_v14 = vld [vmem:[%s12353_s3 + $0x4d8] sm:$0xf0] }
 0x4a9   :  { %3831 = vmatpush.bf16.msrb.mxu2 %v6954_v28  ;;  %3845 = vmatpush.bf16.msrb.mxu3 %v6958_v53  ;;  %v2520_v1 = vmax.f32 %v12487_v56, %v2483_v38  ;;  %v12490_v28 = vmax.f32 %v12488_v62, %v12489_v20  ;;  %v6890_v53 = vor.u32 %v8093_v63, %v6889_v16  ;;  %v7097_v16 = vld [vmem:[%s12353_s3 + $0x5c0] sm:$0xf]  ;;  %v8137_v63 = vld [vmem:[%s12353_s3 + $0x5cc] sm:$0xf0]  ;;  %v6899_v15 = vld [vmem:[%s12353_s3 + $0x478] sm:$0xf0] }
 0x4aa   :  { %3604 = vmatmul.bf16.vlgmr.msra.gmra.mxu3 %v10705_v37  ;;  %v2595_v25 = vpack.c.bf16 %v2577_v32, %v2577_v32  ;;  %v6694_v38 = vor.u32 %v8048_v19, %v6691_v46  ;;  %v7098_v20 = vor.u32 %v8137_v63, %v7097_v16  ;;  %v8090_v19 = vld [vmem:[%s12353_s3 + $0x454] sm:$0xf0]  ;;  %v8088_v46 = vld [vmem:[%s12353_s3 + $0x44c] sm:$0xf]  ;;  %v6851_v16 = vld [vmem:[%s12353_s3 + $0x418] sm:$0xf0] }
 0x4ab   :  { %v2538_v41 = vmax.f32 %v12490_v28, %v2520_v1  ;;  %v6966_v1 = vor.u32 %v8108_v10, %v6963_v42  ;;  %v6929_v28 = vld [vmem:[%s12353_s3 + $0x4a8] sm:$0xf]  ;;  %v8086_v42 = vld [vmem:[%s12353_s3 + $0x434] sm:$0xf0] }
 0x4ac   :  { %3611 = vmatpush.bf16.msra.mxu1 %v6790_v12  ;;  %v4719_v45 = vunpack.c.l.b16 %v2595_v25  ;;  %v6915_v25 = vld [vmem:[%s12353_s3 + $0x498] sm:$0xf0]  ;;  %v6865_v10 = vld [vmem:[%s12353_s3 + $0x428] sm:$0xf] }
 0x4ad   :  { %3832 = vmatpush.bf16.msrb.mxu2 %v6938_v58  ;;  %3846 = vmatpush.bf16.msrb.mxu3 %v6942_v31  ;;  %v2560_v27 = vadd.f32 %v11052_v23, %v2538_v41  ;;  %v8089_v23 = vld [vmem:[%s12353_s3 + $0x44c] sm:$0xf0]  ;;  %v6878_v58 = vor.u32 %v8087_v4, %v6875_v21  ;;  %v6857_v31 = vld [vmem:[%s12353_s3 + $0x420] sm:$0xf]  ;;  %v8102_v41 = vld [vmem:[%s12353_s3 + $0x4b4] sm:$0xf0] }
 0x4ae   :  { %v6874_v61 = vor.u32 %v8089_v23, %v6873_v40  ;;  %v6858_v34 = vor.u32 %v8085_v24, %v6857_v31  ;;  %v8096_v40 = vld [vmem:[%s12353_s3 + $0x48c] sm:$0xf]  ;;  %v8129_v4 = vld [vmem:[%s12353_s3 + $0x58c] sm:$0xf0]  ;;  %v7049_v31 = vld [vmem:[%s12353_s3 + $0x560] sm:$0xf] }
 0x4af   :  { %v2578_v22 = vmax.f32 %v2560_v27, 0.0  ;;  %v7081_v27 = vld [vmem:[%s12353_s3 + $0x5a0] sm:$0xf]  ;;  %v8125_v24 = vld [vmem:[%s12353_s3 + $0x56c] sm:$0xf0] }
 0x4b0   :  { %3612 = vmatpush.bf16.msra.mxu1 %v6774_v29  ;;  %v8081_v29 = vld [vmem:[%s12353_s3 + $0x40c] sm:$0xf0] }
 0x4b1   :  { %3833 = vmatpush.bf16.msrb.mxu2 %v6922_v13  ;;  %3847 = vmatpush.bf16.msrb.mxu3 %v6926_v44  ;;  %v2596_v12 = vpack.c.bf16 %v2578_v22, %v2578_v22  ;;  %v8079_v13 = vld [vmem:[%s12353_s3 + $0x404] sm:$0xf]  ;;  %v8110_v44 = vld [vmem:[%s12353_s3 + $0x4f4] sm:$0xf0]  ;;  %v6842_v39 = vor.u32 %v8081_v29, %v6841_v18  ;;  %v7065_v22 = vld [vmem:[%s12353_s3 + $0x580] sm:$0xf] }
 0x4b2   :  { %v6846_v59 = vor.u32 %v8079_v13, %v6843_v26  ;;  %v6962_v56 = vor.u32 %v8110_v44, %v6961_v9  ;;  %v7033_v29 = vld [vmem:[%s12353_s3 + $0x540] sm:$0xf]  ;;  %v8121_v13 = vld [vmem:[%s12353_s3 + $0x54c] sm:$0xf0] }
 0x4b3   :  { %v4720_v52 = vunpack.c.l.b16 %v2596_v12  ;;  %v6918_v12 = vor.u32 %v8096_v40, %v6915_v25  ;;  %v7034_v44 = vor.u32 %v8121_v13, %v7033_v29  ;;  %v7099_v25 = vld [vmem:[%s12353_s3 + $0x5d0] sm:$0xf0]  ;;  %v8127_v29 = vld [vmem:[%s12353_s3 + $0x584] sm:$0xf] }
 0x4b4   :  { %3613 = vmatpush.bf16.msra.mxu1 %v6758_v30  ;;  %v7114_v30 = vor.u32 %v8141_v48, %v7113_v8  ;;  %v8084_v8 = vld [vmem:[%s12353_s3 + $0x42c] sm:$0xf]  ;;  %v6867_v48 = vld [vmem:[%s12353_s3 + $0x438] sm:$0xf0]  ;;  %v7067_v13 = vld [vmem:[%s12353_s3 + $0x590] sm:$0xf0] }
 0x4b5   :  { %3834 = vmatpush.bf16.msrb.mxu2 %v6906_v3  ;;  %3848 = vmatpush.bf16.msrb.mxu3 %v6910_v17  ;;  %v11179_v35 = vpack.c.b16 %v4720_v52, %v4719_v45  ;;  %v6945_v3 = vld [vmem:[%s12353_s3 + $0x4c8] sm:$0xf]  ;;  %v8104_v17 = vld [vmem:[%s12353_s3 + $0x4cc] sm:$0xf] }
 0x4b6   :  { %v6946_v32 = vor.u32 %v8106_v5, %v6945_v3  ;;  %v6950_v62 = vor.u32 %v8104_v17, %v6947_v14  ;;  %v6870_v3 = vor.u32 %v8084_v8, %v6867_v48  ;;  %v8082_v17 = vld [vmem:[%s12353_s3 + $0x414] sm:$0xf0]  ;;  %v8080_v14 = vld [vmem:[%s12353_s3 + $0x40c] sm:$0xf] }
 0x4b8   :  { %3614 = vmatpush.bf16.msra.mxu1 %v6742_v47  ;;  %v8133_v47 = vld [vmem:[%s12353_s3 + $0x5ac] sm:$0xf0] }
 0x4b9   :  { %3835 = vmatpush.bf16.msrb.mxu2 %v6890_v53  ;;  %3849 = vmatpush.bf16.msrb.mxu3 %v6894_v55  ;;  %v6930_v53 = vor.u32 %v8102_v41, %v6929_v28  ;;  %v7082_v50 = vor.u32 %v8133_v47, %v7081_v27  ;;  %v6913_v55 = vld [vmem:[%s12353_s3 + $0x488] sm:$0xf]  ;;  %v7115_v28 = vld [vmem:[%s12353_s3 + $0x5f0] sm:$0xf0]  ;;  %v8140_v27 = vld [vmem:[%s12353_s3 + $0x5ec] sm:$0xf] }
 0x4ba   :  { %v6914_v21 = vor.u32 %v8098_v60, %v6913_v55  ;;  %v7121_v41 = vld [vmem:[%s12353_s3 + $0x5e8] sm:$0xf]  ;;  %v7123_v47 = vld [vmem:[%s12353_s3 + $0x5f8] sm:$0xf0]  ;;  %v8135_v60 = vld [vmem:[%s12353_s3 + $0x5c4] sm:$0xf] }
 0x4bb   :  { %v7126_v40 = vor.u32 %v8140_v27, %v7123_v47  ;;  %v8120_v27 = vld [vmem:[%s12353_s3 + $0x54c] sm:$0xf]  ;;  %v7043_v47 = vld [vmem:[%s12353_s3 + $0x558] sm:$0xf0] }
 0x4bc   :  { %3615 = vmatpush.bf16.msra.mxu1 %v6726_v2  ;;  %v7066_v2 = vor.u32 %v8129_v4, %v7065_v22  ;;  %v7105_v22 = vld [vmem:[%s12353_s3 + $0x5c8] sm:$0xf]  ;;  %v8138_v4 = vld [vmem:[%s12353_s3 + $0x5d4] sm:$0xf0] }
 0x4bd   :  { %3836 = vmatpush.bf16.msrb.mxu2 %v6874_v61  ;;  %3850 = vmatpush.bf16.msrb.mxu3 %v6878_v58  ;;  %v6897_v61 = vld [vmem:[%s12353_s3 + $0x468] sm:$0xf]  ;;  %v8092_v58 = vld [vmem:[%s12353_s3 + $0x46c] sm:$0xf] }
 0x4be   :  { %v6898_v52 = vor.u32 %v8094_v36, %v6897_v61  ;;  %v6902_v33 = vor.u32 %v8092_v58, %v6899_v15 }
 0x4c0   :  { %3616 = vmatpush.bf16.msra.mxu1 %v6710_v49  ;;  %v7050_v49 = vor.u32 %v8125_v24, %v7049_v31  ;;  %v7102_v31 = vor.u32 %v8135_v60, %v7099_v25  ;;  %v7106_v24 = vor.u32 %v8138_v4, %v7105_v22  ;;  %v8115_v25 = vld [vmem:[%s12353_s3 + $0x524] sm:$0xf]  ;;  %v7046_v22 = vor.u32 %v8120_v27, %v7043_v47  ;;  %v7019_v4 = vld [vmem:[%s12353_s3 + $0x530] sm:$0xf0]  ;;  %v8166_v27 = vld [vmem:[%s12353_s3 + $0x6b4] sm:$0xf0] }
 0x4c1   :  { %3837 = vmatpush.bf16.msrb.mxu2 %v6858_v34  ;;  %3851 = vmatpush.bf16.msrb.mxu3 %v6862_v54  ;;  %v6881_v34 = vld [vmem:[%s12353_s3 + $0x448] sm:$0xf]  ;;  %v6883_v54 = vld [vmem:[%s12353_s3 + $0x458] sm:$0xf0] }
 0x4c2   :  { %v6882_v26 = vor.u32 %v8090_v19, %v6881_v34  ;;  %v6886_v9 = vor.u32 %v8088_v46, %v6883_v54  ;;  %v8132_v34 = vld [vmem:[%s12353_s3 + $0x5ac] sm:$0xf]  ;;  %v7091_v19 = vld [vmem:[%s12353_s3 + $0x5b8] sm:$0xf0] }
 0x4c4   :  { %3617 = vmatpush.bf16.msra.mxu1 %v6694_v38  ;;  %v11265_v23 = vpop.f32.mrf.mxu1  ;;  %v7017_v38 = vld [vmem:[%s12353_s3 + $0x520] sm:$0xf] }
 0x4c5   :  { %3838 = vmatpush.bf16.msrb.mxu2 %v6842_v39  ;;  %3852 = vmatpush.bf16.msrb.mxu3 %v6846_v59  ;;  %v8117_v39 = vld [vmem:[%s12353_s3 + $0x52c] sm:$0xf0] }
 0x4c6   :  { %v7018_v5 = vor.u32 %v8117_v39, %v7017_v38  ;;  %v7070_v38 = vor.u32 %v8127_v29, %v7067_v13  ;;  %v8174_v13 = vld [vmem:[%s12353_s3 + $0x6f4] sm:$0xf0] }
 0x4c7   :  { %3618 = vmatmul.bf16.vlgmr.msra.gmra.mxu1 %v10705_v37  ;;  %v6934_v37 = vor.u32 %v8100_v6, %v6931_v11  ;;  %v8142_v6 = vld [vmem:[%s12353_s3 + $0x5f4] sm:$0xf0] }
 0x4c8   :  { %3859 = vmatpush.bf16.msrb.mxu1 %v6962_v56  ;;  %3839 = vmatmul.bf16.vlgmr.msrb.gmra.mxu2 %v10806_v7  ;;  %v6866_v56 = vor.u32 %v8086_v42, %v6865_v10  ;;  %v7122_v55 = vor.u32 %v8142_v6, %v7121_v41  ;;  %v8128_v10 = vld [vmem:[%s12353_s3 + $0x58c] sm:$0xf]  ;;  %v7075_v42 = vld [vmem:[%s12353_s3 + $0x598] sm:$0xf0]  ;;  %v7041_v6 = vld [vmem:[%s12353_s3 + $0x548] sm:$0xf] }
 0x4c9   :  { %3873 = vmatpush.bf16.msra.mxu2 %v6966_v1  ;;  %4094 = vmatpush.bf16.msra.mxu3 %v7114_v30  ;;  %v6849_v1 = vld [vmem:[%s12353_s3 + $0x408] sm:$0xf] }
 0x4ca   :  { %3853 = vmatmul.bf16.vlgmr.msrb.gmra.mxu3 %v10806_v7  ;;  %v11294_v45 = vpop.f32.mrf.mxu2  ;;  %v6850_v11 = vor.u32 %v8082_v17, %v6849_v1  ;;  %v7057_v17 = vld [vmem:[%s12353_s3 + $0x568] sm:$0xf] }
 0x4cb   :  { %v11296_v0 = vpop.f32.mrf.mxu3 }
 0x4cc   :  { %3860 = vmatpush.bf16.msrb.mxu1 %v6946_v32  ;;  %v11307_v18 = vpop.f32.mrf.mxu1  ;;  %v7001_v32 = vld [vmem:[%s12353_s3 + $0x500] sm:$0xf] }
 0x4cd   :  { %3874 = vmatpush.bf16.msra.mxu2 %v6950_v62  ;;  %4095 = vmatpush.bf16.msra.mxu3 %v7098_v20  ;;  %v8113_v62 = vld [vmem:[%s12353_s3 + $0x50c] sm:$0xf0]  ;;  %v8139_v20 = vld [vmem:[%s12353_s3 + $0x5e4] sm:$0xf] }
 0x4d0   :  { %3861 = vmatpush.bf16.msrb.mxu1 %v6930_v53  ;;  %v6854_v53 = vor.u32 %v8080_v14, %v6851_v16  ;;  %v8126_v14 = vld [vmem:[%s12353_s3 + $0x574] sm:$0xf0]  ;;  %v8124_v16 = vld [vmem:[%s12353_s3 + $0x56c] sm:$0xf] }
 0x4d1   :  { %3875 = vmatpush.bf16.msra.mxu2 %v6934_v37  ;;  %4096 = vmatpush.bf16.msra.mxu3 %v7082_v50  ;;  %v7002_v37 = vor.u32 %v8113_v62, %v7001_v32  ;;  %v7118_v50 = vor.u32 %v8139_v20, %v7115_v28  ;;  %v7058_v62 = vor.u32 %v8126_v14, %v7057_v17  ;;  %v8119_v20 = vld [vmem:[%s12353_s3 + $0x544] sm:$0xf]  ;;  %v7035_v28 = vld [vmem:[%s12353_s3 + $0x550] sm:$0xf0]  ;;  %v7265_v17 = vld [vmem:[%s12353_s3 + $0x6c8] sm:$0xf] }
 0x4d2   :  { %v11336_v59 = vpop.f32.mrf.mxu2  ;;  %v8170_v14 = vld [vmem:[%s12353_s3 + $0x6d4] sm:$0xf0] }
 0x4d3   :  { %v11341_v30 = vpop.f32.mrf.mxu3 }
 0x4d4   :  { %3862 = vmatpush.bf16.msrb.mxu1 %v6914_v21  ;;  %v11352_v63 = vpop.f32.mrf.mxu1 }
 0x4d5   :  { %3876 = vmatpush.bf16.msra.mxu2 %v6918_v12  ;;  %4097 = vmatpush.bf16.msra.mxu3 %v7066_v2  ;;  %v8136_v12 = vld [vmem:[%s12353_s3 + $0x5cc] sm:$0xf]  ;;  %v7107_v2 = vld [vmem:[%s12353_s3 + $0x5d8] sm:$0xf0] }
 0x4d8   :  { %3863 = vmatpush.bf16.msrb.mxu1 %v6898_v52  ;;  %v8131_v52 = vld [vmem:[%s12353_s3 + $0x5a4] sm:$0xf] }
 0x4d9   :  { %3877 = vmatpush.bf16.msra.mxu2 %v6902_v33  ;;  %4098 = vmatpush.bf16.msra.mxu3 %v7050_v49  ;;  %v7110_v33 = vor.u32 %v8136_v12, %v7107_v2  ;;  %v8134_v49 = vld [vmem:[%s12353_s3 + $0x5b4] sm:$0xf0]  ;;  %v8116_v12 = vld [vmem:[%s12353_s3 + $0x52c] sm:$0xf]  ;;  %v7027_v2 = vld [vmem:[%s12353_s3 + $0x538] sm:$0xf0] }
 0x4da   :  { %v3059_v21 = vpop.f32.mrf.mxu2 }
 0x4db   :  { %v11397_v61 = vadd.f32 %v3059_v21, %v11265_v23  ;;  %v3073_v36 = vpop.f32.mrf.mxu3  ;;  %v7083_v23 = vld [vmem:[%s12353_s3 + $0x5b0] sm:$0xf0]  ;;  %v7025_v21 = vld [vmem:[%s12353_s3 + $0x528] sm:$0xf] }
 0x4dc   :  { %3864 = vmatpush.bf16.msrb.mxu1 %v6882_v26  ;;  %v11400_v58 = vadd.f32 %v3073_v36, %v11294_v45  ;;  %v11402_v15 = vpop.f32.mrf.mxu1  ;;  %v7089_v45 = vld [vmem:[%s12353_s3 + $0x5a8] sm:$0xf]  ;;  %v7086_v46 = vor.u32 %v8131_v52, %v7083_v23  ;;  %v8114_v23 = vld [vmem:[%s12353_s3 + $0x514] sm:$0xf0] }
 0x4dd   :  { %3878 = vmatpush.bf16.msra.mxu2 %v6886_v9  ;;  %4099 = vmatpush.bf16.msra.mxu3 %v7034_v44  ;;  %v7090_v54 = vor.u32 %v8134_v49, %v7089_v45  ;;  %v7073_v26 = vld [vmem:[%s12353_s3 + $0x588] sm:$0xf]  ;;  %v8130_v9 = vld [vmem:[%s12353_s3 + $0x594] sm:$0xf0]  ;;  %v8112_v45 = vld [vmem:[%s12353_s3 + $0x50c] sm:$0xf] }
 0x4de   :  { %v7074_v39 = vor.u32 %v8130_v9, %v7073_v26  ;;  %v7009_v52 = vld [vmem:[%s12353_s3 + $0x508] sm:$0xf]  ;;  %v7011_v49 = vld [vmem:[%s12353_s3 + $0x518] sm:$0xf0] }
 0x4e0   :  { %3865 = vmatpush.bf16.msrb.mxu1 %v6866_v56  ;;  %v8123_v56 = vld [vmem:[%s12353_s3 + $0x564] sm:$0xf] }
 0x4e1   :  { %3879 = vmatpush.bf16.msra.mxu2 %v6870_v3  ;;  %4100 = vmatpush.bf16.msra.mxu3 %v7018_v5  ;;  %v7078_v3 = vor.u32 %v8128_v10, %v7075_v42  ;;  %v7051_v5 = vld [vmem:[%s12353_s3 + $0x570] sm:$0xf0]  ;;  %v7014_v10 = vor.u32 %v8112_v45, %v7011_v49  ;;  %v8158_v45 = vld [vmem:[%s12353_s3 + $0x674] sm:$0xf0] }
 0x4e2   :  { %v3061_v44 = vpop.f32.mrf.mxu2  ;;  %v7054_v32 = vor.u32 %v8123_v56, %v7051_v5  ;;  %v8169_v56 = vld [vmem:[%s12353_s3 + $0x6cc] sm:$0xf0]  ;;  %v7259_v5 = vld [vmem:[%s12353_s3 + $0x6d0] sm:$0xf0] }
 0x4e3   :  { %v11443_v8 = vpop.f32.mrf.mxu3 }
 0x4e4   :  { %3866 = vmatpush.bf16.msrb.mxu1 %v6850_v11  ;;  %v3087_v48 = vpop.f32.mrf.mxu1  ;;  %v8122_v11 = vld [vmem:[%s12353_s3 + $0x554] sm:$0xf0] }
 0x4e5   :  { %3880 = vmatpush.bf16.msra.mxu2 %v6854_v53  ;;  %4101 = vmatpush.bf16.msra.mxu3 %v7002_v37  ;;  %v11449_v1 = vadd.f32 %v3087_v48, %v11296_v0  ;;  %v7059_v0 = vld [vmem:[%s12353_s3 + $0x578] sm:$0xf0] }
 0x4e6   :  { %v7062_v41 = vor.u32 %v8124_v16, %v7059_v0 }
 0x4e7   :  { %3867 = vmatmul.bf16.vlgmr.msrb.gmra.mxu1 %v10806_v7 }
 0x4e8   :  { %4108 = vmatpush.bf16.msra.mxu1 %v7118_v50  ;;  %3881 = vmatmul.bf16.vlgmr.msra.gmra.mxu2 %v10806_v7  ;;  %v7094_v7 = vor.u32 %v8132_v34, %v7091_v19  ;;  %v7038_v50 = vor.u32 %v8119_v20, %v7035_v28  ;;  %v3062_v34 = vadd.f32 %v3061_v44, %v11307_v18  ;;  %v7273_v19 = vld [vmem:[%s12353_s3 + $0x6e0] sm:$0xf]  ;;  %v7281_v18 = vld [vmem:[%s12353_s3 + $0x6e8] sm:$0xf]  ;;  %v8165_v28 = vld [vmem:[%s12353_s3 + $0x6ac] sm:$0xf0] }
 0x4e9   :  { %4122 = vmatpush.bf16.msrb.mxu2 %v7122_v55  ;;  %4136 = vmatpush.bf16.msrb.mxu3 %v7126_v40  ;;  %v7042_v40 = vor.u32 %v8122_v11, %v7041_v6  ;;  %v7010_v44 = vor.u32 %v8114_v23, %v7009_v52  ;;  %v7241_v20 = vld [vmem:[%s12353_s3 + $0x6a0] sm:$0xf]  ;;  %v7243_v6 = vld [vmem:[%s12353_s3 + $0x6b0] sm:$0xf0]  ;;  %v7249_v11 = vld [vmem:[%s12353_s3 + $0x6a8] sm:$0xf] }
 0x4ea   :  { %4102 = vmatmul.bf16.vlgmr.msra.gmra.mxu3 %v10907_v51  ;;  %v7242_v47 = vor.u32 %v8165_v28, %v7241_v20  ;;  %v7217_v23 = vld [vmem:[%s12353_s3 + $0x668] sm:$0xf]  ;;  %v8145_v20 = vld [vmem:[%s12353_s3 + $0x60c] sm:$0xf0]  ;;  %v8143_v28 = vld [vmem:[%s12353_s3 + $0x604] sm:$0xf] }
 0x4eb   :  { %v3101_v53 = vpop.f32.mrf.mxu2 }
 0x4ec   :  { %4109 = vmatpush.bf16.msra.mxu1 %v7102_v31  ;;  %v11485_v55 = vadd.f32 %v3101_v53, %v11352_v63  ;;  %v8118_v63 = vld [vmem:[%s12353_s3 + $0x534] sm:$0xf0]  ;;  %v8111_v31 = vld [vmem:[%s12353_s3 + $0x504] sm:$0xf]  ;;  %v11565_v0 = vpop.f32.mrf.mxu1 }
 0x4ed   :  { %4123 = vmatpush.bf16.msrb.mxu2 %v7106_v24  ;;  %4137 = vmatpush.bf16.msrb.mxu3 %v7110_v33  ;;  %v3314_v37 = vpop.f32.mrf.mxu3  ;;  %v7026_v36 = vor.u32 %v8118_v63, %v7025_v21  ;;  %v7003_v24 = vld [vmem:[%s12353_s3 + $0x510] sm:$0xf0]  ;;  %v7030_v33 = vor.u32 %v8116_v12, %v7027_v2 }
 0x4ee   :  { %v11488_v60 = vadd.f32 %v3314_v37, %v11397_v61  ;;  %v7022_v61 = vor.u32 %v8115_v25, %v7019_v4  ;;  %v7006_v9 = vor.u32 %v8111_v31, %v7003_v24  ;;  %v7250_v37 = vor.u32 %v8166_v27, %v7249_v11  ;;  %v8159_v25 = vld [vmem:[%s12353_s3 + $0x684] sm:$0xf]  ;;  %v8162_v4 = vld [vmem:[%s12353_s3 + $0x694] sm:$0xf0]  ;;  %v8157_v31 = vld [vmem:[%s12353_s3 + $0x66c] sm:$0xf0] }
 0x4ef   :  { %v8155_v24 = vld [vmem:[%s12353_s3 + $0x664] sm:$0xf]  ;;  %v7169_v11 = vld [vmem:[%s12353_s3 + $0x608] sm:$0xf]  ;;  %v8146_v27 = vld [vmem:[%s12353_s3 + $0x614] sm:$0xf0] }
 0x4f0   :  { %4110 = vmatpush.bf16.msra.mxu1 %v7086_v46  ;;  %v8173_v46 = vld [vmem:[%s12353_s3 + $0x6ec] sm:$0xf0] }
 0x4f1   :  { %4124 = vmatpush.bf16.msrb.mxu2 %v7090_v54  ;;  %4138 = vmatpush.bf16.msrb.mxu3 %v7094_v7  ;;  %v8171_v54 = vld [vmem:[%s12353_s3 + $0x6e4] sm:$0xf]  ;;  %v7275_v7 = vld [vmem:[%s12353_s3 + $0x6f0] sm:$0xf0]  ;;  %v7274_v42 = vor.u32 %v8173_v46, %v7273_v19  ;;  %v7218_v19 = vor.u32 %v8158_v45, %v7217_v23  ;;  %v8153_v46 = vld [vmem:[%s12353_s3 + $0x64c] sm:$0xf0] }
 0x4f2   :  { %v7278_v48 = vor.u32 %v8171_v54, %v7275_v7  ;;  %v8151_v54 = vld [vmem:[%s12353_s3 + $0x644] sm:$0xf]  ;;  %v7201_v7 = vld [vmem:[%s12353_s3 + $0x648] sm:$0xf]  ;;  %v7419_v45 = vld [vmem:[%s12353_s3 + $0x7d0] sm:$0xf0] }
 0x4f3   :  { %v3103_v21 = vpop.f32.mrf.mxu2  ;;  %v8199_v23 = vld [vmem:[%s12353_s3 + $0x7c4] sm:$0xf] }
 0x4f4   :  { %4111 = vmatpush.bf16.msra.mxu1 %v7070_v38  ;;  %v7282_v38 = vor.u32 %v8174_v13, %v7281_v18  ;;  %v8154_v18 = vld [vmem:[%s12353_s3 + $0x654] sm:$0xf0] }
 0x4f5   :  { %4125 = vmatpush.bf16.msrb.mxu2 %v7074_v39  ;;  %4139 = vmatpush.bf16.msrb.mxu3 %v7078_v3  ;;  %v3316_v29 = vpop.f32.mrf.mxu3  ;;  %v7257_v39 = vld [vmem:[%s12353_s3 + $0x6c0] sm:$0xf]  ;;  %v8167_v3 = vld [vmem:[%s12353_s3 + $0x6c4] sm:$0xf] }
 0x4f6   :  { %v11545_v26 = vadd.f32 %v3316_v29, %v3062_v34  ;;  %v7258_v16 = vor.u32 %v8169_v56, %v7257_v39  ;;  %v7195_v29 = vld [vmem:[%s12353_s3 + $0x650] sm:$0xf0]  ;;  %v7202_v56 = vor.u32 %v8154_v18, %v7201_v7  ;;  %v8195_v7 = vld [vmem:[%s12353_s3 + $0x7a4] sm:$0xf] }
 0x4f7   :  { %v7198_v39 = vor.u32 %v8151_v54, %v7195_v29  ;;  %v7401_v54 = vld [vmem:[%s12353_s3 + $0x7a0] sm:$0xf]  ;;  %v8197_v29 = vld [vmem:[%s12353_s3 + $0x7ac] sm:$0xf0]  ;;  %v7403_v18 = vld [vmem:[%s12353_s3 + $0x7b0] sm:$0xf0] }
 0x4f8   :  { %4112 = vmatpush.bf16.msra.mxu1 %v7054_v32  ;;  %v7262_v32 = vor.u32 %v8167_v3, %v7259_v5  ;;  %v7177_v3 = vld [vmem:[%s12353_s3 + $0x620] sm:$0xf]  ;;  %v7185_v5 = vld [vmem:[%s12353_s3 + $0x628] sm:$0xf] }
 0x4f9   :  { %4126 = vmatpush.bf16.msrb.mxu2 %v7058_v62  ;;  %4140 = vmatpush.bf16.msrb.mxu3 %v7062_v41  ;;  %v7266_v62 = vor.u32 %v8170_v14, %v7265_v17  ;;  %v8163_v41 = vld [vmem:[%s12353_s3 + $0x6a4] sm:$0xf]  ;;  %v8150_v17 = vld [vmem:[%s12353_s3 + $0x634] sm:$0xf0] }
 0x4fa   :  { %v7246_v53 = vor.u32 %v8163_v41, %v7243_v6  ;;  %v7163_v41 = vld [vmem:[%s12353_s3 + $0x610] sm:$0xf0]  ;;  %v3090_v6 = vadd.f32 %v11565_v0, %v11341_v30  ;;  %v7433_v30 = vld [vmem:[%s12353_s3 + $0x7e0] sm:$0xf]  ;;  %v8205_v0 = vld [vmem:[%s12353_s3 + $0x7ec] sm:$0xf0] }
 0x4fc   :  { %4113 = vmatpush.bf16.msra.mxu1 %v7038_v50  ;;  %v7225_v50 = vld [vmem:[%s12353_s3 + $0x680] sm:$0xf] }
 0x4fd   :  { %4127 = vmatpush.bf16.msrb.mxu2 %v7042_v40  ;;  %4141 = vmatpush.bf16.msrb.mxu3 %v7046_v22  ;;  %v8161_v40 = vld [vmem:[%s12353_s3 + $0x68c] sm:$0xf0]  ;;  %v7233_v22 = vld [vmem:[%s12353_s3 + $0x688] sm:$0xf] }
 0x4fe   :  { %v7226_v63 = vor.u32 %v8161_v40, %v7225_v50  ;;  %v7283_v50 = vld [vmem:[%s12353_s3 + $0x6f8] sm:$0xf0] }
 0x500   :  { %4114 = vmatpush.bf16.msra.mxu1 %v7022_v61  ;;  %v7234_v61 = vor.u32 %v8162_v4, %v7233_v22  ;;  %v7435_v22 = vld [vmem:[%s12353_s3 + $0x7f0] sm:$0xf0] }
 0x501   :  { %4128 = vmatpush.bf16.msrb.mxu2 %v7026_v36  ;;  %4142 = vmatpush.bf16.msrb.mxu3 %v7030_v33  ;;  %v7209_v36 = vld [vmem:[%s12353_s3 + $0x660] sm:$0xf]  ;;  %v7211_v33 = vld [vmem:[%s12353_s3 + $0x670] sm:$0xf0] }
 0x502   :  { %v7210_v49 = vor.u32 %v8157_v31, %v7209_v36  ;;  %v7214_v34 = vor.u32 %v8155_v24, %v7211_v33  ;;  %v7267_v31 = vld [vmem:[%s12353_s3 + $0x6d8] sm:$0xf0]  ;;  %v7417_v24 = vld [vmem:[%s12353_s3 + $0x7c0] sm:$0xf]  ;;  %v8201_v33 = vld [vmem:[%s12353_s3 + $0x7cc] sm:$0xf0] }
 0x504   :  { %4115 = vmatpush.bf16.msra.mxu1 %v7006_v9  ;;  %v3328_v12 = vpop.f32.mrf.mxu1  ;;  %v3076_v9 = vadd.f32 %v11443_v8, %v11336_v59  ;;  %v8149_v59 = vld [vmem:[%s12353_s3 + $0x62c] sm:$0xf0]  ;;  %v8147_v8 = vld [vmem:[%s12353_s3 + $0x624] sm:$0xf] }
 0x505   :  { %4129 = vmatpush.bf16.msrb.mxu2 %v7010_v44  ;;  %4143 = vmatpush.bf16.msrb.mxu3 %v7014_v10  ;;  %v11616_v52 = vadd.f32 %v3328_v12, %v11400_v58  ;;  %v7193_v58 = vld [vmem:[%s12353_s3 + $0x640] sm:$0xf]  ;;  %v7178_v14 = vor.u32 %v8149_v59, %v7177_v3  ;;  %v8191_v3 = vld [vmem:[%s12353_s3 + $0x784] sm:$0xf]  ;;  %v7387_v59 = vld [vmem:[%s12353_s3 + $0x790] sm:$0xf0] }
 0x507   :  { %4116 = vmatmul.bf16.vlgmr.msra.gmra.mxu1 %v10907_v51 }
 0x508   :  { %4357 = vmatpush.bf16.msrb.mxu1 %v7274_v42  ;;  %4130 = vmatmul.bf16.vlgmr.msrb.gmra.mxu2 %v10907_v51  ;;  %v7194_v42 = vor.u32 %v8153_v46, %v7193_v58  ;;  %v7422_v58 = vor.u32 %v8199_v23, %v7419_v45  ;;  %v7251_v46 = vld [vmem:[%s12353_s3 + $0x6b8] sm:$0xf0]  ;;  %v8144_v23 = vld [vmem:[%s12353_s3 + $0x60c] sm:$0xf] }
 0x509   :  { %4371 = vmatpush.bf16.msra.mxu2 %v7278_v48  ;;  %4385 = vmatpush.bf16.msra.mxu3 %v7282_v38  ;;  %v7171_v45 = vld [vmem:[%s12353_s3 + $0x618] sm:$0xf0] }
 0x50a   :  { %4144 = vmatmul.bf16.vlgmr.msrb.gmra.mxu3 %v10907_v51  ;;  %v7227_v51 = vld [vmem:[%s12353_s3 + $0x690] sm:$0xf0] }
 0x50b   :  { %v7230_v2 = vor.u32 %v8159_v25, %v7227_v51  ;;  %v3342_v13 = vpop.f32.mrf.mxu2 }
 0x50c   :  { %4358 = vmatpush.bf16.msrb.mxu1 %v7258_v16  ;;  %v11648_v44 = vadd.f32 %v3342_v13, %v11449_v1  ;;  %v3330_v38 = vpop.f32.mrf.mxu1  ;;  %v7161_v16 = vld [vmem:[%s12353_s3 + $0x600] sm:$0xf] }
 0x50d   :  { %4372 = vmatpush.bf16.msra.mxu2 %v7262_v32  ;;  %4386 = vmatpush.bf16.msra.mxu3 %v7266_v62  ;;  %v3356_v10 = vpop.f32.mrf.mxu3  ;;  %v11662_v1 = vadd.f32 %v3330_v38, %v3076_v9  ;;  %v7186_v62 = vor.u32 %v8150_v17, %v7185_v5  ;;  %v7162_v51 = vor.u32 %v8145_v20, %v7161_v16  ;;  %v7235_v38 = vld [vmem:[%s12353_s3 + $0x698] sm:$0xf0]  ;;  %v8156_v17 = vld [vmem:[%s12353_s3 + $0x66c] sm:$0xf]  ;;  %v8189_v20 = vld [vmem:[%s12353_s3 + $0x76c] sm:$0xf0] }
 0x50e   :  { %v11651_v48 = vadd.f32 %v3356_v10, %v11485_v55  ;;  %v7179_v55 = vld [vmem:[%s12353_s3 + $0x630] sm:$0xf0]  ;;  %v7402_v9 = vor.u32 %v8197_v29, %v7401_v54  ;;  %v8160_v10 = vld [vmem:[%s12353_s3 + $0x68c] sm:$0xf]  ;;  %v7390_v16 = vor.u32 %v8191_v3, %v7387_v59  ;;  %v7441_v54 = vld [vmem:[%s12353_s3 + $0x7e8] sm:$0xf] }
 0x50f   :  { %v7182_v32 = vor.u32 %v8147_v8, %v7179_v55  ;;  %v7238_v55 = vor.u32 %v8160_v10, %v7235_v38  ;;  %v8206_v29 = vld [vmem:[%s12353_s3 + $0x7f4] sm:$0xf0]  ;;  %v7443_v10 = vld [vmem:[%s12353_s3 + $0x7f8] sm:$0xf0]  ;;  %v8237_v38 = vld [vmem:[%s12353_s3 + $0x8ec] sm:$0xf0] }
 0x510   :  { %4359 = vmatpush.bf16.msrb.mxu1 %v7242_v47  ;;  %v8172_v47 = vld [vmem:[%s12353_s3 + $0x6ec] sm:$0xf] }
 0x511   :  { %4373 = vmatpush.bf16.msra.mxu2 %v7246_v53  ;;  %4387 = vmatpush.bf16.msra.mxu3 %v7250_v37  ;;  %v3104_v53 = vadd.f32 %v3103_v21, %v11402_v15  ;;  %v8203_v15 = vld [vmem:[%s12353_s3 + $0x7e4] sm:$0xf]  ;;  %v7166_v21 = vor.u32 %v8143_v28, %v7163_v41  ;;  %v7286_v12 = vor.u32 %v8172_v47, %v7283_v50 }
 0x512   :  { %v7438_v36 = vor.u32 %v8203_v15, %v7435_v22  ;;  %v8187_v28 = vld [vmem:[%s12353_s3 + $0x764] sm:$0xf] }
 0x513   :  { %v3344_v37 = vpop.f32.mrf.mxu2  ;;  %v8183_v50 = vld [vmem:[%s12353_s3 + $0x744] sm:$0xf] }
 0x514   :  { %4360 = vmatpush.bf16.msrb.mxu1 %v7226_v63  ;;  %v11706_v40 = vadd.f32 %v3344_v37, %v3090_v6  ;;  %v7170_v63 = vor.u32 %v8146_v27, %v7169_v11  ;;  %v8152_v11 = vld [vmem:[%s12353_s3 + $0x64c] sm:$0xf]  ;;  %v7203_v27 = vld [vmem:[%s12353_s3 + $0x658] sm:$0xf0]  ;;  %v8185_v37 = vld [vmem:[%s12353_s3 + $0x74c] sm:$0xf0] }
 0x515   :  { %4374 = vmatpush.bf16.msra.mxu2 %v7230_v2  ;;  %4388 = vmatpush.bf16.msra.mxu3 %v7234_v61  ;;  %v3358_v25 = vpop.f32.mrf.mxu3  ;;  %v7434_v2 = vor.u32 %v8205_v0, %v7433_v30  ;;  %v8168_v61 = vld [vmem:[%s12353_s3 + $0x6cc] sm:$0xf]  ;;  %v7355_v30 = vld [vmem:[%s12353_s3 + $0x750] sm:$0xf0] }
 0x516   :  { %v11714_v4 = vadd.f32 %v3358_v25, %v3104_v53  ;;  %v7353_v53 = vld [vmem:[%s12353_s3 + $0x740] sm:$0xf] }
 0x518   :  { %4361 = vmatpush.bf16.msrb.mxu1 %v7210_v49  ;;  %v7270_v49 = vor.u32 %v8168_v61, %v7267_v31  ;;  %v7358_v61 = vor.u32 %v8183_v50, %v7355_v30  ;;  %v8179_v31 = vld [vmem:[%s12353_s3 + $0x724] sm:$0xf]  ;;  %v7393_v30 = vld [vmem:[%s12353_s3 + $0x788] sm:$0xf] }
 0x519   :  { %4375 = vmatpush.bf16.msra.mxu2 %v7214_v34  ;;  %4389 = vmatpush.bf16.msra.mxu3 %v7218_v19  ;;  %v7418_v34 = vor.u32 %v8201_v33, %v7417_v24  ;;  %v8164_v19 = vld [vmem:[%s12353_s3 + $0x6ac] sm:$0xf] }
 0x51a   :  { %v7254_v13 = vor.u32 %v8164_v19, %v7251_v46  ;;  %v8177_v19 = vld [vmem:[%s12353_s3 + $0x70c] sm:$0xf0]  ;;  %v7323_v46 = vld [vmem:[%s12353_s3 + $0x710] sm:$0xf0] }
 0x51c   :  { %4362 = vmatpush.bf16.msrb.mxu1 %v7194_v42  ;;  %v7406_v42 = vor.u32 %v8195_v7, %v7403_v18  ;;  %v8204_v7 = vld [vmem:[%s12353_s3 + $0x7ec] sm:$0xf] }
 0x51d   :  { %4376 = vmatpush.bf16.msra.mxu2 %v7198_v39  ;;  %4390 = vmatpush.bf16.msra.mxu3 %v7202_v56  ;;  %v7385_v39 = vld [vmem:[%s12353_s3 + $0x780] sm:$0xf]  ;;  %v8193_v56 = vld [vmem:[%s12353_s3 + $0x78c] sm:$0xf0] }
 0x51e   :  { %v7386_v5 = vor.u32 %v8193_v56, %v7385_v39 }
 0x520   :  { %4363 = vmatpush.bf16.msrb.mxu1 %v7178_v14 }
 0x521   :  { %4377 = vmatpush.bf16.msra.mxu2 %v7182_v32  ;;  %4391 = vmatpush.bf16.msra.mxu3 %v7186_v62  ;;  %v7219_v32 = vld [vmem:[%s12353_s3 + $0x678] sm:$0xf0]  ;;  %v7369_v62 = vld [vmem:[%s12353_s3 + $0x760] sm:$0xf] }
 0x522   :  { %v7222_v41 = vor.u32 %v8156_v17, %v7219_v32  ;;  %v7370_v6 = vor.u32 %v8189_v20, %v7369_v62  ;;  %v7425_v17 = vld [vmem:[%s12353_s3 + $0x7c8] sm:$0xf]  ;;  %v7577_v32 = vld [vmem:[%s12353_s3 + $0x8c0] sm:$0xf]  ;;  %v8233_v62 = vld [vmem:[%s12353_s3 + $0x8cc] sm:$0xf0] }
 0x524   :  { %4364 = vmatpush.bf16.msrb.mxu1 %v7162_v51  ;;  %v3577_v8 = vpop.f32.mrf.mxu1  ;;  %v7206_v51 = vor.u32 %v8152_v11, %v7203_v27  ;;  %v8196_v11 = vld [vmem:[%s12353_s3 + $0x7ac] sm:$0xf]  ;;  %v7411_v27 = vld [vmem:[%s12353_s3 + $0x7b8] sm:$0xf0] }
 0x525   :  { %4378 = vmatpush.bf16.msra.mxu2 %v7166_v21  ;;  %4392 = vmatpush.bf16.msra.mxu3 %v7170_v63  ;;  %v11777_v14 = vadd.f32 %v3577_v8, %v11488_v60  ;;  %v7371_v60 = vld [vmem:[%s12353_s3 + $0x770] sm:$0xf0]  ;;  %v7354_v63 = vor.u32 %v8185_v37, %v7353_v53  ;;  %v7442_v8 = vor.u32 %v8206_v29, %v7441_v54  ;;  %v8229_v53 = vld [vmem:[%s12353_s3 + $0x8ac] sm:$0xf0]  ;;  %v7363_v54 = vld [vmem:[%s12353_s3 + $0x758] sm:$0xf0] }
 0x526   :  { %v7374_v47 = vor.u32 %v8187_v28, %v7371_v60  ;;  %v7578_v60 = vor.u32 %v8233_v62, %v7577_v32  ;;  %v7513_v29 = vld [vmem:[%s12353_s3 + $0x840] sm:$0xf]  ;;  %v8178_v62 = vld [vmem:[%s12353_s3 + $0x714] sm:$0xf0] }
 0x527   :  { %4365 = vmatmul.bf16.vlgmr.msrb.gmra.mxu1 %v10996_v43 }
 0x528   :  { %4399 = vmatpush.bf16.msra.mxu1 %v7286_v12  ;;  %4379 = vmatmul.bf16.vlgmr.msra.gmra.mxu2 %v10996_v43  ;;  %v8148_v12 = vld [vmem:[%s12353_s3 + $0x62c] sm:$0xf] }
 0x529   :  { %4620 = vmatpush.bf16.msrb.mxu2 %v7434_v2  ;;  %4634 = vmatpush.bf16.msrb.mxu3 %v7438_v36  ;;  %v7187_v36 = vld [vmem:[%s12353_s3 + $0x638] sm:$0xf0] }
 0x52a   :  { %4393 = vmatmul.bf16.vlgmr.msra.gmra.mxu3 %v10996_v43  ;;  %v7190_v24 = vor.u32 %v8148_v12, %v7187_v36 }
 0x52b   :  { %v3591_v0 = vpop.f32.mrf.mxu2 }
 0x52c   :  { %4400 = vmatpush.bf16.msra.mxu1 %v7270_v49  ;;  %v11813_v15 = vadd.f32 %v3591_v0, %v11616_v52  ;;  %v3579_v21 = vpop.f32.mrf.mxu1  ;;  %v7337_v52 = vld [vmem:[%s12353_s3 + $0x720] sm:$0xf]  ;;  %v8194_v0 = vld [vmem:[%s12353_s3 + $0x794] sm:$0xf0] }
 0x52d   :  { %4621 = vmatpush.bf16.msrb.mxu2 %v7418_v34  ;;  %4635 = vmatpush.bf16.msrb.mxu3 %v7422_v58  ;;  %v3605_v25 = vpop.f32.mrf.mxu3  ;;  %v11822_v2 = vadd.f32 %v3579_v21, %v11545_v26  ;;  %v7339_v26 = vld [vmem:[%s12353_s3 + $0x730] sm:$0xf0]  ;;  %v7321_v49 = vld [vmem:[%s12353_s3 + $0x700] sm:$0xf]  ;;  %v8175_v58 = vld [vmem:[%s12353_s3 + $0x704] sm:$0xf]  ;;  %v7394_v12 = vor.u32 %v8194_v0, %v7393_v30 }
 0x52e   :  { %v11816_v22 = vadd.f32 %v3605_v25, %v11648_v44  ;;  %v8181_v44 = vld [vmem:[%s12353_s3 + $0x72c] sm:$0xf0]  ;;  %v7342_v34 = vor.u32 %v8179_v31, %v7339_v26  ;;  %v7322_v3 = vor.u32 %v8177_v19, %v7321_v49  ;;  %v7326_v59 = vor.u32 %v8175_v58, %v7323_v46  ;;  %v8192_v25 = vld [vmem:[%s12353_s3 + $0x78c] sm:$0xf]  ;;  %v7545_v21 = vld [vmem:[%s12353_s3 + $0x880] sm:$0xf] }
 0x52f   :  { %v7338_v33 = vor.u32 %v8181_v44, %v7337_v52  ;;  %v7377_v44 = vld [vmem:[%s12353_s3 + $0x768] sm:$0xf]  ;;  %v8190_v31 = vld [vmem:[%s12353_s3 + $0x774] sm:$0xf0]  ;;  %v8188_v26 = vld [vmem:[%s12353_s3 + $0x76c] sm:$0xf] }
 0x530   :  { %4401 = vmatpush.bf16.msra.mxu1 %v7254_v13  ;;  %v7378_v49 = vor.u32 %v8190_v31, %v7377_v44  ;;  %v8186_v58 = vld [vmem:[%s12353_s3 + $0x754] sm:$0xf0]  ;;  %v8184_v46 = vld [vmem:[%s12353_s3 + $0x74c] sm:$0xf]  ;;  %v7587_v44 = vld [vmem:[%s12353_s3 + $0x8d8] sm:$0xf0] }
 0x531   :  { %4622 = vmatpush.bf16.msrb.mxu2 %v7402_v9  ;;  %4636 = vmatpush.bf16.msrb.mxu3 %v7406_v42  ;;  %v7174_v9 = vor.u32 %v8144_v23, %v7171_v45  ;;  %v7593_v42 = vld [vmem:[%s12353_s3 + $0x8e0] sm:$0xf]  ;;  %v8221_v45 = vld [vmem:[%s12353_s3 + $0x86c] sm:$0xf0] }
 0x532   :  { %v7529_v23 = vld [vmem:[%s12353_s3 + $0x860] sm:$0xf] }
 0x533   :  { %v3593_v18 = vpop.f32.mrf.mxu2  ;;  %v7530_v19 = vor.u32 %v8221_v45, %v7529_v23  ;;  %v7563_v45 = vld [vmem:[%s12353_s3 + $0x8b0] sm:$0xf0] }
 0x534   :  { %4402 = vmatpush.bf16.msra.mxu1 %v7238_v55  ;;  %v11876_v39 = vadd.f32 %v3593_v18, %v11662_v1  ;;  %v7446_v55 = vor.u32 %v8204_v7, %v7443_v10  ;;  %v8200_v1 = vld [vmem:[%s12353_s3 + $0x7cc] sm:$0xf]  ;;  %v8217_v7 = vld [vmem:[%s12353_s3 + $0x84c] sm:$0xf0] }
 0x535   :  { %4623 = vmatpush.bf16.msrb.mxu2 %v7386_v5  ;;  %4637 = vmatpush.bf16.msrb.mxu3 %v7390_v16  ;;  %v3607_v13 = vpop.f32.mrf.mxu3  ;;  %v7594_v5 = vor.u32 %v8237_v38, %v7593_v42  ;;  %v8202_v16 = vld [vmem:[%s12353_s3 + $0x7d4] sm:$0xf0] }
 0x536   :  { %v11879_v56 = vadd.f32 %v3607_v13, %v11706_v40  ;;  %v7427_v40 = vld [vmem:[%s12353_s3 + $0x7d8] sm:$0xf0]  ;;  %v7426_v20 = vor.u32 %v8202_v16, %v7425_v17  ;;  %v7497_v17 = vld [vmem:[%s12353_s3 + $0x820] sm:$0xf]  ;;  %v8213_v16 = vld [vmem:[%s12353_s3 + $0x82c] sm:$0xf0] }
 0x537   :  { %v7430_v28 = vor.u32 %v8200_v1, %v7427_v40  ;;  %v7329_v40 = vld [vmem:[%s12353_s3 + $0x708] sm:$0xf]  ;;  %v7498_v32 = vor.u32 %v8213_v16, %v7497_v17  ;;  %v7531_v17 = vld [vmem:[%s12353_s3 + $0x870] sm:$0xf0] }
 0x538   :  { %4403 = vmatpush.bf16.msra.mxu1 %v7222_v41  ;;  %v7409_v41 = vld [vmem:[%s12353_s3 + $0x7a8] sm:$0xf] }
 0x539   :  { %4624 = vmatpush.bf16.msrb.mxu2 %v7370_v6  ;;  %4638 = vmatpush.bf16.msrb.mxu3 %v7374_v47  ;;  %v8198_v6 = vld [vmem:[%s12353_s3 + $0x7b4] sm:$0xf0]  ;;  %v7561_v47 = vld [vmem:[%s12353_s3 + $0x8a0] sm:$0xf]  ;;  %v7537_v16 = vld [vmem:[%s12353_s3 + $0x868] sm:$0xf] }
 0x53a   :  { %v7410_v37 = vor.u32 %v8198_v6, %v7409_v41  ;;  %v7562_v50 = vor.u32 %v8229_v53, %v7561_v47  ;;  %v8209_v41 = vld [vmem:[%s12353_s3 + $0x80c] sm:$0xf0]  ;;  %v8235_v6 = vld [vmem:[%s12353_s3 + $0x8e4] sm:$0xf]  ;;  %v8238_v47 = vld [vmem:[%s12353_s3 + $0x8f4] sm:$0xf0] }
 0x53c   :  { %4404 = vmatpush.bf16.msra.mxu1 %v7206_v51  ;;  %v7395_v51 = vld [vmem:[%s12353_s3 + $0x798] sm:$0xf0] }
 0x53d   :  { %4625 = vmatpush.bf16.msrb.mxu2 %v7354_v63  ;;  %4639 = vmatpush.bf16.msrb.mxu3 %v7358_v61  ;;  %v8225_v63 = vld [vmem:[%s12353_s3 + $0x88c] sm:$0xf0]  ;;  %v7398_v36 = vor.u32 %v8192_v25, %v7395_v51 }
 0x53e   :  { %v7546_v52 = vor.u32 %v8225_v63, %v7545_v21  ;;  %v8231_v63 = vld [vmem:[%s12353_s3 + $0x8c4] sm:$0xf] }
 0x540   :  { %4405 = vmatpush.bf16.msra.mxu1 %v7190_v24 }
 0x541   :  { %4626 = vmatpush.bf16.msrb.mxu2 %v7338_v33  ;;  %4640 = vmatpush.bf16.msrb.mxu3 %v7342_v34  ;;  %v7379_v33 = vld [vmem:[%s12353_s3 + $0x778] sm:$0xf0] }
 0x542   :  { %v7382_v34 = vor.u32 %v8188_v26, %v7379_v33  ;;  %v8227_v33 = vld [vmem:[%s12353_s3 + $0x8a4] sm:$0xf] }
 0x544   :  { %4406 = vmatpush.bf16.msra.mxu1 %v7174_v9  ;;  %v3619_v61 = vpop.f32.mrf.mxu1 }
 0x545   :  { %4627 = vmatpush.bf16.msrb.mxu2 %v7322_v3  ;;  %4641 = vmatpush.bf16.msrb.mxu3 %v7326_v59  ;;  %v11948_v24 = vadd.f32 %v3619_v61, %v11651_v48  ;;  %v7361_v48 = vld [vmem:[%s12353_s3 + $0x748] sm:$0xf]  ;;  %v7366_v3 = vor.u32 %v8184_v46, %v7363_v54  ;;  %v7514_v59 = vor.u32 %v8217_v7, %v7513_v29  ;;  %v7579_v61 = vld [vmem:[%s12353_s3 + $0x8d0] sm:$0xf0]  ;;  %v8223_v54 = vld [vmem:[%s12353_s3 + $0x884] sm:$0xf] }
 0x546   :  { %v7362_v10 = vor.u32 %v8186_v58, %v7361_v48  ;;  %v7582_v31 = vor.u32 %v8231_v63, %v7579_v61  ;;  %v7571_v48 = vld [vmem:[%s12353_s3 + $0x8b8] sm:$0xf0]  ;;  %v7566_v58 = vor.u32 %v8227_v33, %v7563_v45  ;;  %v7547_v29 = vld [vmem:[%s12353_s3 + $0x890] sm:$0xf0]  ;;  %v7553_v7 = vld [vmem:[%s12353_s3 + $0x888] sm:$0xf] }
 0x547   :  { %4407 = vmatmul.bf16.vlgmr.msra.gmra.mxu1 %v10996_v43  ;;  %v7414_v43 = vor.u32 %v8196_v11, %v7411_v27  ;;  %v7595_v11 = vld [vmem:[%s12353_s3 + $0x8f0] sm:$0xf0]  ;;  %v7601_v27 = vld [vmem:[%s12353_s3 + $0x8e8] sm:$0xf]  ;;  %v8208_v33 = vld [vmem:[%s12353_s3 + $0x80c] sm:$0xf] }
 0x548   :  { %4648 = vmatpush.bf16.msrb.mxu1 %v7442_v8  ;;  %4628 = vmatmul.bf16.vlgmr.msrb.gmra.mxu2 %v11099_v57  ;;  %v7345_v8 = vld [vmem:[%s12353_s3 + $0x728] sm:$0xf]  ;;  %v7598_v51 = vor.u32 %v8235_v6, %v7595_v11  ;;  %v7602_v21 = vor.u32 %v8238_v47, %v7601_v27  ;;  %v8216_v6 = vld [vmem:[%s12353_s3 + $0x84c] sm:$0xf]  ;;  %v7523_v11 = vld [vmem:[%s12353_s3 + $0x858] sm:$0xf0] }
 0x549   :  { %4662 = vmatpush.bf16.msra.mxu2 %v7446_v55  ;;  %4883 = vmatpush.bf16.msra.mxu3 %v7594_v5  ;;  %v8182_v55 = vld [vmem:[%s12353_s3 + $0x734] sm:$0xf0]  ;;  %v7499_v63 = vld [vmem:[%s12353_s3 + $0x830] sm:$0xf0] }
 0x54a   :  { %4642 = vmatmul.bf16.vlgmr.msrb.gmra.mxu3 %v11099_v57  ;;  %v7346_v1 = vor.u32 %v8182_v55, %v7345_v8  ;;  %v8219_v55 = vld [vmem:[%s12353_s3 + $0x864] sm:$0xf] }
 0x54b   :  { %v3840_v18 = vpop.f32.mrf.mxu2 }
 0x54c   :  { %4649 = vmatpush.bf16.msrb.mxu1 %v7426_v20  ;;  %v11978_v13 = vadd.f32 %v3840_v18, %v11777_v14  ;;  %v3621_v38 = vpop.f32.mrf.mxu1  ;;  %v8180_v14 = vld [vmem:[%s12353_s3 + $0x72c] sm:$0xf]  ;;  %v8226_v18 = vld [vmem:[%s12353_s3 + $0x894] sm:$0xf0] }
 0x54d   :  { %4663 = vmatpush.bf16.msra.mxu2 %v7430_v28  ;;  %4884 = vmatpush.bf16.msra.mxu3 %v7578_v60  ;;  %v3854_v9 = vpop.f32.mrf.mxu3  ;;  %v11993_v5 = vadd.f32 %v3621_v38, %v11714_v4  ;;  %v8176_v20 = vld [vmem:[%s12353_s3 + $0x70c] sm:$0xf]  ;;  %v7331_v28 = vld [vmem:[%s12353_s3 + $0x718] sm:$0xf0]  ;;  %v7481_v60 = vld [vmem:[%s12353_s3 + $0x800] sm:$0xf]  ;;  %v7554_v8 = vor.u32 %v8226_v18, %v7553_v7 }
 0x54e   :  { %v11981_v42 = vadd.f32 %v3854_v9, %v11813_v15  ;;  %v7347_v15 = vld [vmem:[%s12353_s3 + $0x738] sm:$0xf0]  ;;  %v7334_v0 = vor.u32 %v8176_v20, %v7331_v28  ;;  %v7482_v25 = vor.u32 %v8209_v41, %v7481_v60  ;;  %v8224_v9 = vld [vmem:[%s12353_s3 + $0x88c] sm:$0xf]  ;;  %v7515_v20 = vld [vmem:[%s12353_s3 + $0x850] sm:$0xf0] }
 0x54f   :  { %v7350_v4 = vor.u32 %v8180_v14, %v7347_v15  ;;  %v7521_v60 = vld [vmem:[%s12353_s3 + $0x848] sm:$0xf]  ;;  %v8218_v41 = vld [vmem:[%s12353_s3 + $0x854] sm:$0xf0] }
 0x550   :  { %4650 = vmatpush.bf16.msrb.mxu1 %v7410_v37  ;;  %v7330_v37 = vor.u32 %v8178_v62, %v7329_v40  ;;  %v8220_v40 = vld [vmem:[%s12353_s3 + $0x86c] sm:$0xf]  ;;  %v8215_v62 = vld [vmem:[%s12353_s3 + $0x844] sm:$0xf] }
 0x551   :  { %4664 = vmatpush.bf16.msra.mxu2 %v7414_v43  ;;  %4885 = vmatpush.bf16.msra.mxu3 %v7562_v50  ;;  %v8236_v43 = vld [vmem:[%s12353_s3 + $0x8ec] sm:$0xf]  ;;  %v7603_v50 = vld [vmem:[%s12353_s3 + $0x8f8] sm:$0xf0] }
 0x553   :  { %v12100_v38 = vpop.f32.mrf.mxu2 }
 0x554   :  { %4651 = vmatpush.bf16.msrb.mxu1 %v7394_v12  ;;  %v7606_v12 = vor.u32 %v8236_v43, %v7603_v50 }
 0x555   :  { %4665 = vmatpush.bf16.msra.mxu2 %v7398_v36  ;;  %4886 = vmatpush.bf16.msra.mxu3 %v7546_v52  ;;  %v3856_v53 = vpop.f32.mrf.mxu3  ;;  %v7585_v36 = vld [vmem:[%s12353_s3 + $0x8c8] sm:$0xf]  ;;  %v8232_v52 = vld [vmem:[%s12353_s3 + $0x8cc] sm:$0xf] }
 0x556   :  { %v12041_v30 = vadd.f32 %v3856_v53, %v11876_v39  ;;  %v8234_v39 = vld [vmem:[%s12353_s3 + $0x8d4] sm:$0xf0]  ;;  %v7590_v23 = vor.u32 %v8232_v52, %v7587_v44  ;;  %v7518_v53 = vor.u32 %v8215_v62, %v7515_v20  ;;  %v7483_v44 = vld [vmem:[%s12353_s3 + $0x810] sm:$0xf0]  ;;  %v8239_v20 = vld [vmem:[%s12356_s5] sm:$0xff] }
 0x557   :  { %v7586_v26 = vor.u32 %v8234_v39, %v7585_v36  ;;  %v8207_v39 = vld [vmem:[%s12353_s3 + $0x804] sm:$0xf]  ;;  %v8253_v62 = vld [vmem:[%s12356_s5 + $0x70] sm:$0xff] }
 0x558   :  { %4652 = vmatpush.bf16.msrb.mxu1 %v7378_v49  ;;  %v7569_v49 = vld [vmem:[%s12353_s3 + $0x8a8] sm:$0xf] }
 0x559   :  { %4666 = vmatpush.bf16.msra.mxu2 %v7382_v34  ;;  %4887 = vmatpush.bf16.msra.mxu3 %v7530_v19  ;;  %v8230_v34 = vld [vmem:[%s12353_s3 + $0x8b4] sm:$0xf0]  ;;  %v8228_v19 = vld [vmem:[%s12353_s3 + $0x8ac] sm:$0xf] }
 0x55a   :  { %v7570_v46 = vor.u32 %v8230_v34, %v7569_v49  ;;  %v7486_v34 = vor.u32 %v8207_v39, %v7483_v44  ;;  %v3891_v44 = vadd.f32 %v12100_v38, %v11822_v2  ;;  %v8247_v38 = vld [vmem:[%s12356_s5 + $0x40] sm:$0xff] }
 0x55c   :  { %4653 = vmatpush.bf16.msrb.mxu1 %v7362_v10  ;;  %v7555_v10 = vld [vmem:[%s12353_s3 + $0x898] sm:$0xf0] }
 0x55d   :  { %4667 = vmatpush.bf16.msra.mxu2 %v7366_v3  ;;  %4888 = vmatpush.bf16.msra.mxu3 %v7514_v59  ;;  %v7550_v59 = vor.u32 %v8223_v54, %v7547_v29  ;;  %v7558_v15 = vor.u32 %v8224_v9, %v7555_v10 }
 0x560   :  { %4654 = vmatpush.bf16.msrb.mxu1 %v7346_v1  ;;  %v8222_v1 = vld [vmem:[%s12353_s3 + $0x874] sm:$0xf0] }
 0x561   :  { %4668 = vmatpush.bf16.msra.mxu2 %v7350_v4  ;;  %4889 = vmatpush.bf16.msra.mxu3 %v7498_v32  ;;  %v7534_v4 = vor.u32 %v8219_v55, %v7531_v17  ;;  %v7538_v32 = vor.u32 %v8222_v1, %v7537_v16  ;;  %v8243_v55 = vld [vmem:[%s12356_s5 + $0x20] sm:$0xff]  ;;  %v8242_v17 = vld [vmem:[%s12356_s5 + $0x18] sm:$0xff]  ;;  %v8241_v16 = vld [vmem:[%s12356_s5 + $0x10] sm:$0xff] }
 0x564   :  { %4655 = vmatpush.bf16.msrb.mxu1 %v7330_v37  ;;  %v3868_v3 = vpop.f32.mrf.mxu1 }
 0x565   :  { %4669 = vmatpush.bf16.msra.mxu2 %v7334_v0  ;;  %4890 = vmatpush.bf16.msra.mxu3 %v7482_v25  ;;  %v12106_v14 = vadd.f32 %v3868_v3, %v11816_v22  ;;  %v7539_v22 = vld [vmem:[%s12353_s3 + $0x878] sm:$0xf0]  ;;  %v7522_v0 = vor.u32 %v8218_v41, %v7521_v60  ;;  %v8211_v25 = vld [vmem:[%s12353_s3 + $0x824] sm:$0xf] }
 0x566   :  { %v7542_v28 = vor.u32 %v8220_v40, %v7539_v22  ;;  %v7502_v61 = vor.u32 %v8211_v25, %v7499_v63  ;;  %v8254_v22 = vld [vmem:[%s12356_s5 + $0x78] sm:$0xff] }
 0x567   :  { %4656 = vmatmul.bf16.vlgmr.msrb.gmra.mxu1 %v11099_v57  ;;  %v8262_v60 = vld [vmem:[%s12356_s5 + $0xb8] sm:$0xff] }
 0x568   :  { %4897 = vmatpush.bf16.msra.mxu1 %v7598_v51  ;;  %4670 = vmatmul.bf16.vlgmr.msra.gmra.mxu2 %v11099_v57  ;;  %v7574_v57 = vor.u32 %v8228_v19, %v7571_v48  ;;  %v8270_v41 = vld [vmem:[%s12356_s5 + $0xf8] sm:$0xff] }
 0x569   :  { %4911 = vmatpush.bf16.msrb.mxu2 %v7602_v21  ;;  %4925 = vmatpush.bf16.msrb.mxu3 %v7606_v12  ;;  %v7526_v21 = vor.u32 %v8216_v6, %v7523_v11  ;;  %v8212_v12 = vld [vmem:[%s12353_s3 + $0x82c] sm:$0xf] }
 0x56a   :  { %4891 = vmatmul.bf16.vlgmr.msra.gmra.mxu3 %v11179_v35  ;;  %v8252_v6 = vld [vmem:[%s12356_s5 + $0x68] sm:$0xff] }
 0x56b   :  { %v3882_v27 = vpop.f32.mrf.mxu2 }
 0x56c   :  { %4898 = vmatpush.bf16.msra.mxu1 %v7582_v31  ;;  %v3890_v37 = vadd.f32 %v3882_v27, %v11948_v24  ;;  %v3870_v50 = vpop.f32.mrf.mxu1  ;;  %v7505_v24 = vld [vmem:[%s12353_s3 + $0x828] sm:$0xf]  ;;  %v8261_v27 = vld [vmem:[%s12356_s5 + $0xb0] sm:$0xff] }
 0x56d   :  { %4912 = vmatpush.bf16.msrb.mxu2 %v7586_v26  ;;  %4926 = vmatpush.bf16.msrb.mxu3 %v7590_v23  ;;  %v4103_v47 = vpop.f32.mrf.mxu3  ;;  %v12149_v51 = vadd.f32 %v3870_v50, %v11879_v56  ;;  %v7507_v56 = vld [vmem:[%s12353_s3 + $0x838] sm:$0xf0]  ;;  %v7489_v31 = vld [vmem:[%s12353_s3 + $0x808] sm:$0xf]  ;;  %v8210_v26 = vld [vmem:[%s12353_s3 + $0x814] sm:$0xf0] }
 0x56e   :  { %v12143_v43 = vadd.f32 %v4103_v47, %v11978_v13  ;;  %v8214_v13 = vld [vmem:[%s12353_s3 + $0x834] sm:$0xf0]  ;;  %v7510_v52 = vor.u32 %v8212_v12, %v7507_v56  ;;  %v7491_v23 = vld [vmem:[%s12353_s3 + $0x818] sm:$0xf0]  ;;  %v7490_v19 = vor.u32 %v8210_v26, %v7489_v31  ;;  %v8269_v47 = vld [vmem:[%s12356_s5 + $0xf0] sm:$0xff] }
 0x56f   :  { %v7506_v36 = vor.u32 %v8214_v13, %v7505_v24  ;;  %v7494_v48 = vor.u32 %v8208_v33, %v7491_v23  ;;  %v8260_v50 = vld [vmem:[%s12356_s5 + $0xa8] sm:$0xff]  ;;  %v8259_v24 = vld [vmem:[%s12356_s5 + $0xa0] sm:$0xff]  ;;  %v8249_v12 = vld [vmem:[%s12356_s5 + $0x50] sm:$0xff] }
 0x570   :  { %4899 = vmatpush.bf16.msra.mxu1 %v7566_v58  ;;  %v8267_v13 = vld [vmem:[%s12356_s5 + $0xe0] sm:$0xff]  ;;  %v8257_v33 = vld [vmem:[%s12356_s5 + $0x90] sm:$0xff] }
 0x571   :  { %4913 = vmatpush.bf16.msrb.mxu2 %v7570_v46  ;;  %4927 = vmatpush.bf16.msrb.mxu3 %v7574_v57  ;;  %v12299_v26 = vld [vmem:[%s12357_s4] sm:$0xf]  ;;  %v8265_v23 = vld [vmem:[%s12356_s5 + $0xd0] sm:$0xff] }
 0x573   :  { %v3884_v45 = vpop.f32.mrf.mxu2 }
 0x574   :  { %4900 = vmatpush.bf16.msra.mxu1 %v7550_v59  ;;  %v3894_v49 = vadd.f32 %v3884_v45, %v11993_v5 }
 0x575   :  { %4914 = vmatpush.bf16.msrb.mxu2 %v7554_v8  ;;  %4928 = vmatpush.bf16.msrb.mxu3 %v7558_v15  ;;  %v12188_v58 = vpop.f32.mrf.mxu3  ;;  %v8244_v8 = vld [vmem:[%s12356_s5 + $0x28] sm:$0xff] }
 0x576   :  { %v4154_v45 = vadd.f32 %v12188_v58, %v3891_v44  ;;  %v8264_v58 = vld [vmem:[%s12356_s5 + $0xc8] sm:$0xff] }
 0x578   :  { %4901 = vmatpush.bf16.msra.mxu1 %v7534_v4  ;;  %v8240_v4 = vld [vmem:[%s12356_s5 + $0x8] sm:$0xff] }
 0x579   :  { %4915 = vmatpush.bf16.msrb.mxu2 %v7538_v32  ;;  %4929 = vmatpush.bf16.msrb.mxu3 %v7542_v28 }
 0x57c   :  { %4902 = vmatpush.bf16.msra.mxu1 %v7518_v53  ;;  %v8251_v53 = vld [vmem:[%s12356_s5 + $0x60] sm:$0xff] }
 0x57d   :  { %4916 = vmatpush.bf16.msrb.mxu2 %v7522_v0  ;;  %4930 = vmatpush.bf16.msrb.mxu3 %v7526_v21  ;;  %v8268_v0 = vld [vmem:[%s12356_s5 + $0xe8] sm:$0xff]  ;;  %v8250_v21 = vld [vmem:[%s12356_s5 + $0x58] sm:$0xff] }
 0x580   :  { %4903 = vmatpush.bf16.msra.mxu1 %v7502_v61  ;;  %v8258_v61 = vld [vmem:[%s12356_s5 + $0x98] sm:$0xff] }
 0x581   :  { %4917 = vmatpush.bf16.msrb.mxu2 %v7506_v36  ;;  %4931 = vmatpush.bf16.msrb.mxu3 %v7510_v52  ;;  %v8266_v36 = vld [vmem:[%s12356_s5 + $0xd8] sm:$0xff]  ;;  %v8248_v52 = vld [vmem:[%s12356_s5 + $0x48] sm:$0xff] }
 0x584   :  { %4904 = vmatpush.bf16.msra.mxu1 %v7486_v34  ;;  %v4117_v46 = vpop.f32.mrf.mxu1 }
 0x585   :  { %4918 = vmatpush.bf16.msrb.mxu2 %v7490_v19  ;;  %4932 = vmatpush.bf16.msrb.mxu3 %v7494_v48  ;;  %v12191_v54 = vadd.f32 %v4117_v46, %v11981_v42  ;;  %v8245_v42 = vld [vmem:[%s12356_s5 + $0x30] sm:$0xff]  ;;  %v4949_v48 = vperm.slane %v12299_v26, 0  ;;  %v8256_v46 = vld [vmem:[%s12356_s5 + $0x88] sm:$0xff] }
 0x587   :  { %4905 = vmatmul.bf16.vlgmr.msra.gmra.mxu1 %v11179_v35 }
 0x588   :  { %4919 = vmatmul.bf16.vlgmr.msrb.gmra.mxu2 %v11179_v35  ;;  %4933 = vmatmul.bf16.vlgmr.msrb.gmra.mxu3 %v11179_v35  ;;  %v8246_v35 = vld [vmem:[%s12356_s5 + $0x38] sm:$0xff] }
 0x589   :  { %5237 = vmatpush.bf16.msrb.mxu1 %v8246_v35  ;;  %5251 = vmatpush.bf16.msra.mxu2 %v8254_v22  ;;  %v8263_v35 = vld [vmem:[%s12356_s5 + $0xc0] sm:$0xff] }
 0x58a   :  { %5265 = vmatpush.bf16.msra.mxu3 %v8262_v60 }
 0x58b   :  { %v4131_v5 = vpop.f32.mrf.mxu2 }
 0x58c   :  { %v4152_v57 = vadd.f32 %v4131_v5, %v12106_v14  ;;  %v12206_v59 = vpop.f32.mrf.mxu1 }
 0x58d   :  { %v4145_v29 = vpop.f32.mrf.mxu3  ;;  %5238 = vmatpush.bf16.msrb.mxu1 %v8245_v42  ;;  %5252 = vmatpush.bf16.msra.mxu2 %v8253_v62  ;;  %v4155_v62 = vadd.f32 %v12206_v59, %v12041_v30 }
 0x58e   :  { %v12194_v7 = vadd.f32 %v4145_v29, %v3890_v37  ;;  %5266 = vmatpush.bf16.msra.mxu3 %v8261_v27 }
 0x591   :  { %5239 = vmatpush.bf16.msrb.mxu1 %v8244_v8  ;;  %5253 = vmatpush.bf16.msra.mxu2 %v8252_v6  ;;  %v4950_v6 = vperm.slane %v12299_v26, 1 }
 0x592   :  { %5267 = vmatpush.bf16.msra.mxu3 %v8260_v50 }
 0x593   :  { %v12214_v14 = vpop.f32.mrf.mxu2 }
 0x595   :  { %v4147_v18 = vpop.f32.mrf.mxu3  ;;  %5240 = vmatpush.bf16.msrb.mxu1 %v8243_v55  ;;  %5254 = vmatpush.bf16.msra.mxu2 %v8251_v53 }
 0x596   :  { %v12196_v9 = vadd.f32 %v4147_v18, %v3894_v49  ;;  %5268 = vmatpush.bf16.msra.mxu3 %v8259_v24 }
 0x599   :  { %5241 = vmatpush.bf16.msrb.mxu1 %v8242_v17  ;;  %5255 = vmatpush.bf16.msra.mxu2 %v8250_v21 }
 0x59a   :  { %5269 = vmatpush.bf16.msra.mxu3 %v8258_v61 }
 0x59d   :  { %5242 = vmatpush.bf16.msrb.mxu1 %v8241_v16  ;;  %5256 = vmatpush.bf16.msra.mxu2 %v8249_v12 }
 0x59e   :  { %5270 = vmatpush.bf16.msra.mxu3 %v8257_v33 }
 0x5a1   :  { %5243 = vmatpush.bf16.msrb.mxu1 %v8240_v4  ;;  %5257 = vmatpush.bf16.msra.mxu2 %v8248_v52 }
 0x5a2   :  { %5271 = vmatpush.bf16.msra.mxu3 %v8256_v46 }
 0x5a4   :  { %v4366_v15 = vpop.f32.mrf.mxu1 }
 0x5a5   :  { %5244 = vmatpush.bf16.msrb.mxu1 %v8239_v20  ;;  %v4413_v31 = vadd.f32 %v4366_v15, %v12143_v43  ;;  %5258 = vmatpush.bf16.msra.mxu2 %v8247_v38 }
 0x5a9   :  { %5279 = vmatpush.bf16.msra.mxu1 %v8270_v41 }
 0x5ab   :  { %v12224_v40 = vpop.f32.mrf.mxu2 }
 0x5ac   :  { %v4368_v32 = vpop.f32.mrf.mxu1 }
 0x5ad   :  { %v4394_v10 = vpop.f32.mrf.mxu3  ;;  %5280 = vmatpush.bf16.msra.mxu1 %v8269_v47  ;;  %v4417_v43 = vadd.f32 %v4368_v32, %v4154_v45  ;;  %v4414_v32 = vadd.f32 %v12224_v40, %v12191_v54  ;;  %v4156_v54 = vadd.f32 %v12214_v14, %v12149_v51 }
 0x5ae   :  { %v12198_v3 = vadd.f32 %v4394_v10, %v4152_v57  ;;  %v8255_v10 = vld [vmem:[%s12356_s5 + $0x80] sm:$0xff] }
 0x5af   :  { %5272 = vmatpush.bf16.msra.mxu3 %v8255_v10 }
 0x5b1   :  { %5281 = vmatpush.bf16.msra.mxu1 %v8268_v0 }
 0x5b3   :  { %v12249_v11 = vpop.f32.mrf.mxu2 }
 0x5b4   :  { %v4418_v60 = vadd.f32 %v12249_v11, %v4155_v62 }
 0x5b5   :  { %v12222_v1 = vpop.f32.mrf.mxu3  ;;  %5282 = vmatpush.bf16.msra.mxu1 %v8267_v13 }
 0x5b6   :  { %v4419_v11 = vadd.f32 %v12222_v1, %v4156_v54 }
 0x5b9   :  { %5283 = vmatpush.bf16.msra.mxu1 %v8266_v36 }
 0x5bd   :  { %5284 = vmatpush.bf16.msra.mxu1 %v8265_v23 }
 0x5c1   :  { %5285 = vmatpush.bf16.msra.mxu1 %v8264_v58 }
 0x5c4   :  { %v12260_v37 = vpop.f32.mrf.mxu1 }
 0x5c5   :  { %5286 = vmatpush.bf16.msra.mxu1 %v8263_v35  ;;  %v4416_v50 = vadd.f32 %v12260_v37, %v12194_v7  ;;  %v4952_v7 = vperm.slane %v12299_v26, 3 }
 0x5cb   :  { %v4629_v63 = vpop.f32.mrf.mxu2 }
 0x5cc   :  { %v12282_v56 = vpop.f32.mrf.mxu1  ;;  %v4676_v49 = vadd.f32 %v4629_v63, %v4413_v31  ;;  %v4951_v63 = vperm.slane %v12299_v26, 2 }
 0x5cd   :  { %v12238_v28 = vpop.f32.mrf.mxu3 }
 0x5ce   :  { %v4677_v20 = vadd.f32 %v12238_v28, %v4414_v32 }
 0x5d3   :  { %v4631_v2 = vpop.f32.mrf.mxu2 }
 0x5d4   :  { %v4680_v5 = vadd.f32 %v4631_v2, %v4417_v43  ;;  %v8288_v43 = vld [vmem:[%s12355_s6] ss:$0 sm:$0xff] }
 0x5d5   :  { %v12268_v25 = vpop.f32.mrf.mxu3 }
 0x5d6   :  { %v4681_v47 = vadd.f32 %v12268_v25, %v4418_v60  ;;  %v4420_v25 = vadd.f32 %v12282_v56, %v12196_v9 }
 0x5e4   :  { %v4657_v34 = vpop.f32.mrf.mxu1 }
 0x5e5   :  { %v4678_v30 = vadd.f32 %v4657_v34, %v12198_v3 }
 0x5eb   :  { %v4671_v42 = vpop.f32.mrf.mxu2 }
 0x5ec   :  { %v4659_v17 = vpop.f32.mrf.mxu1  ;;  %v4679_v28 = vadd.f32 %v4671_v42, %v4416_v50 }
 0x5ed   :  { %v4892_v39 = vpop.f32.mrf.mxu3  ;;  %v4682_v37 = vadd.f32 %v4659_v17, %v4419_v11 }
 0x5ee   :  { %v4939_v19 = vadd.f32 %v4892_v39, %v4676_v49 }
 0x5f0   :  { %v4957_v29 = vadd.f32 %v4949_v48, %v4939_v19 }
 0x5f2   :  { %v4965_v55 = vmax.f32 %v4957_v29, 0.0 }
 0x5f3   :  { %v4673_v22 = vpop.f32.mrf.mxu2 }
 0x5f4   :  { %v4683_v14 = vadd.f32 %v4673_v22, %v4420_v25 }
 0x5f5   :  { %v4894_v57 = vpop.f32.mrf.mxu3 }
 0x5f6   :  { %v4943_v18 = vadd.f32 %v4894_v57, %v4680_v5 }
 0x5f8   :  { %v4961_v8 = vadd.f32 %v4949_v48, %v4943_v18 }
 0x5fa   :  { %v4969_v15 = vmax.f32 %v4961_v8, 0.0 }
 0x5fc   :  { %v4973_v16 = vpack.c.bf16 %v4969_v15, %v4965_v55 }
 0x5fe   :  { %5245 = vmatmul.bf16.vlgmr.msrb.gmra.mxu1 %v4973_v16 }
 0x604   :  { %v4906_v4 = vpop.f32.mrf.mxu1 }
 0x605   :  { %v4940_v41 = vadd.f32 %v4906_v4, %v4677_v20 }
 0x607   :  { %v4958_v59 = vadd.f32 %v4950_v6, %v4940_v41 }
 0x609   :  { %v4966_v12 = vmax.f32 %v4958_v59, 0.0 }
 0x60b   :  { %v4920_v27 = vpop.f32.mrf.mxu2  ;;  %v4934_v53 = vpop.f32.mrf.mxu3 }
 0x60c   :  { %v4908_v0 = vpop.f32.mrf.mxu1  ;;  %v4941_v21 = vadd.f32 %v4920_v27, %v4678_v30  ;;  %v4942_v13 = vadd.f32 %v4934_v53, %v4679_v28 }
 0x60d   :  { %v4944_v40 = vadd.f32 %v4908_v0, %v4681_v47 }
 0x60e   :  { %v4959_v61 = vadd.f32 %v4951_v63, %v4941_v21  ;;  %v4960_v1 = vadd.f32 %v4952_v7, %v4942_v13 }
 0x60f   :  { %v4962_v24 = vadd.f32 %v4950_v6, %v4944_v40 }
 0x610   :  { %v4967_v23 = vmax.f32 %v4959_v61, 0.0  ;;  %v4968_v9 = vmax.f32 %v4960_v1, 0.0 }
 0x611   :  { %v4970_v51 = vmax.f32 %v4962_v24, 0.0 }
 0x613   :  { %v4922_v3 = vpop.f32.mrf.mxu2  ;;  %v4974_v36 = vpack.c.bf16 %v4970_v51, %v4966_v12  ;;  %v4936_v52 = vpop.f32.mrf.mxu3 }
 0x614   :  { %v4945_v39 = vadd.f32 %v4922_v3, %v4682_v37  ;;  %v4946_v44 = vadd.f32 %v4936_v52, %v4683_v14 }
 0x615   :  { %5259 = vmatmul.bf16.vlgmr.msra.gmra.mxu2 %v4974_v36 }
 0x616   :  { %v4963_v31 = vadd.f32 %v4951_v63, %v4945_v39  ;;  %v4964_v33 = vadd.f32 %v4952_v7, %v4946_v44 }
 0x618   :  { %v4971_v45 = vmax.f32 %v4963_v31, 0.0  ;;  %v4972_v56 = vmax.f32 %v4964_v33, 0.0 }
 0x61a   :  { %v4975_v49 = vpack.c.bf16 %v4971_v45, %v4967_v23  ;;  %v4976_v26 = vpack.c.bf16 %v4972_v56, %v4968_v9 }
 0x61c   :  { %5273 = vmatmul.bf16.vlgmr.msra.gmra.mxu3 %v4975_v49  ;;  %5287 = vmatmul.bf16.vlgmr.msra.gmra.mxu1 %v4976_v26 }
 0x67b   :  { %v5246_v2 = vpop.f32.mrf.mxu1 }
 0x67c   :  { %v5247_v19 = vadd.f32 %v8288_v43, %v5246_v2 }
 0x683   :  { %v5248_v38 = vpop.f32.mrf.mxu1 }
 0x684   :  { %v5249_v18 = vadd.f32 %v8288_v43, %v5248_v38 }
 0x698   :  { %v5260_v34 = vpop.f32.mrf.mxu2 }
 0x699   :  { %v5261_v48 = vadd.f32 %v5260_v34, %v5247_v19  ;;  %v5288_v46 = vpop.f32.mrf.mxu1 }
 0x69f   :  { %v5274_v58 = vpop.f32.mrf.mxu3 }
 0x6a0   :  { %v5275_v5 = vadd.f32 %v5274_v58, %v5261_v48  ;;  %v5262_v29 = vpop.f32.mrf.mxu2 }
 0x6a1   :  { %v5263_v10 = vadd.f32 %v5262_v29, %v5249_v18  ;;  %v5290_v8 = vpop.f32.mrf.mxu1 }
 0x6a2   :  { %v5289_v57 = vadd.f32 %v5288_v46, %v5275_v5 }
 0x6a4   :  { %5293 = vst [vmem:[%s12358_s7] sm:$0xff] %v5289_v57 }
 0x6a7   :  { %v5276_v35 = vpop.f32.mrf.mxu3 }
 0x6a8   :  { %v5277_v42 = vadd.f32 %v5276_v35, %v5263_v10 }
 0x6aa   :  { %v5291_v55 = vadd.f32 %v5290_v8, %v5277_v42 }
 0x6ac   :  { %5294 = vst [vmem:[%s12358_s7 + $0x8] sm:$0xff] %v5291_v55 }

</bundles_post_ra>
